<compile_context>
chip_gen: v5e
topology: v5e:2x2
jax: 0.10.0
libtpu: 0.0.40
codegen_flags: <defaults>
</compile_context>

<pallas_src>
import numpy as np
import jax
import jax.numpy as jnp
from jax.experimental import pallas as pl
from jax.experimental.pallas import tpu as pltpu


def _conv_out(h, k, s, p):
    return (h + 2 * p - k) // s + 1


def _build_conv3_gather(Ho1, Wo1, Ho3, Wo3):
    """0/1 gather matrices G (9, M3, M1): G[t] @ a2 pulls the stride-2 window
    of tap t = kh*3 + kw out of conv2's output; all-zero rows implement the
    zero padding.  Gathered rows are ordered (w3-major, h3-minor) so that the
    conv3 result can be written into conv4's padded scratch with contiguous
    row blocks (no strided VMEM access anywhere)."""
    M1, M3 = Ho1 * Wo1, Ho3 * Wo3
    g = np.zeros((9, M3, M1), np.float32)
    for kh in range(3):
        for kw in range(3):
            t = kh * 3 + kw
            for h3 in range(Ho3):
                for w3 in range(Wo3):
                    hi = 2 * h3 + kh - 1
                    wi = 2 * w3 + kw - 1
                    if 0 <= hi < Ho1 and 0 <= wi < Wo1:
                        g[t, w3 * Ho3 + h3, hi * Wo1 + wi] = 1.0
    return jnp.asarray(g, jnp.bfloat16)


def _make_kernel(Ho1, Wo1, Ho3, Wo3, C0, C1, C2, C3):
    """Whole-network kernel, one batch sample per grid step."""
    M1, M3 = Ho1 * Wo1, Ho3 * Wo3
    Hp1, Wp1 = Ho1 + 2, Wo1 + 2            # conv2 padded input (pad = 1)
    K4 = 7
    Hp4, Wp4 = Ho3 + K4 - 1, Wo3 + K4 - 1  # conv4 padded input (pad = 3)
    T4 = K4 * C3                           # lanes per kh-group in conv4 im2col

    def kernel(xph_ref, g3_ref, w1_ref, b1_ref, w2_ref, b2_ref, w3_ref,
               b3_ref, w4_ref, b4_ref, wfc_ref, bfc_ref, o_ref,
               col1, xp2, col2, col3, xp4, col4):
        f32 = jnp.float32

        # ---- zero only the pad rings of the padded scratches (interiors are
        #      fully rewritten every step, so this is per-step safe even with
        #      a "parallel" grid axis) -------------------------------------
        xp2[0:1, :, :] = jnp.zeros((1, Wp1, C1), xp2.dtype)
        xp2[Hp1 - 1:Hp1, :, :] = jnp.zeros((1, Wp1, C1), xp2.dtype)
        xp2[:, 0:1, :] = jnp.zeros((Hp1, 1, C1), xp2.dtype)
        xp2[:, Wp1 - 1:Wp1, :] = jnp.zeros((Hp1, 1, C1), xp2.dtype)
        xp4[0:3, :] = jnp.zeros((3, Wp4 * C3), xp4.dtype)
        xp4[3 + Ho3:Hp4, :] = jnp.zeros((Hp4 - 3 - Ho3, Wp4 * C3), xp4.dtype)
        xp4[:, 0:3 * C3] = jnp.zeros((Hp4, 3 * C3), xp4.dtype)
        xp4[:, (3 + Wo3) * C3:Wp4 * C3] = jnp.zeros(
            (Hp4, (Wp4 - 3 - Wo3) * C3), xp4.dtype)

        # ---- conv1: 3x3 stride 2 -- phase-decomposed input, im2col, 1 matmul
        for kh in range(3):
            for kw in range(3):
                t = kh * 3 + kw
                p = (kh % 2) * 2 + (kw % 2)          # (row parity, col parity)
                r0, c0 = kh // 2, kw // 2
                win = xph_ref[0, p, r0:r0 + Ho1, c0:c0 + Wo1, :]
                col1[:, t * C0:(t + 1) * C0] = win.reshape(M1, C0)
        a1 = jnp.maximum(
            jnp.dot(col1[...], w1_ref[...], preferred_element_type=f32)
            + b1_ref[...], 0.0)                      # (M1, C1) f32, BN folded

        # ---- conv2: 3x3 stride 1 -- pad into VMEM scratch, im2col, 1 matmul
        xp2[1:1 + Ho1, 1:1 + Wo1, :] = a1.reshape(Ho1, Wo1, C1).astype(xp2.dtype)
        for kh in range(3):
            for kw in range(3):
                t = kh * 3 + kw
                win = xp2[kh:kh + Ho1, kw:kw + Wo1, :]
                col2[:, t * C1:(t + 1) * C1] = win.reshape(M1, C1)
        a2 = jnp.maximum(
            jnp.dot(col2[...], w2_ref[...], preferred_element_type=f32)
            + b2_ref[...], 0.0).astype(jnp.bfloat16)  # (M1, C2)

        # ---- conv3: 3x3 stride 2 -- stride-2 gather via constant 0/1 MXU
        #      matmuls (no strided VMEM access), then one K=1152 matmul ------
        for t in range(9):
            gat = jnp.dot(g3_ref[t], a2, preferred_element_type=f32)
            col3[:, t * C2:(t + 1) * C2] = gat.astype(col3.dtype)
        a3 = jnp.maximum(
            jnp.dot(col3[...], w3_ref[...], preferred_element_type=f32)
            + b3_ref[...], 0.0).astype(jnp.bfloat16)  # (M3, C3), rows (w3, h3)

        # ---- conv4: 7x7 stride 1 -- lane-dense flattened padded scratch,
        #      im2col built from contiguous (Ho3, 7*C3) copies, one K=1568 mm
        for w3 in range(Wo3):
            xp4[3:3 + Ho3, (3 + w3) * C3:(4 + w3) * C3] = (
                a3[w3 * Ho3:(w3 + 1) * Ho3, :])
        for kh in range(K4):
            for w3 in range(Wo3):
                col4[w3 * Ho3:(w3 + 1) * Ho3, kh * T4:(kh + 1) * T4] = (
                    xp4[kh:kh + Ho3, w3 * C3:w3 * C3 + T4])
        a4 = jnp.maximum(
            jnp.dot(col4[...], w4_ref[...], preferred_element_type=f32)
            + b4_ref[...], 0.0)                       # (M3, C4) f32

        # ---- AdaptiveAvgPool2d(1) + flatten + folded fc1.fc2 ---------------
        pooled = jnp.mean(a4, axis=0, keepdims=True)  # (1, C4)
        out = jnp.dot(pooled.astype(wfc_ref.dtype), wfc_ref[...],
                      preferred_element_type=f32) + bfc_ref[...]
        o_ref[0] = out                                # (1, n_classes)

    return kernel


# ----------------------------------------------------------------------------
# Parameter init: BatchNorm2d (eval, eps=1e-3) folded into the conv weights,
# weights pre-reshaped to (k*k*Cin, Cout) bf16, fc1.fc2 pre-folded.
# ----------------------------------------------------------------------------
def _fold_conv_bn(key, cin, cout, k):
    kw_, kg, kb, km, kv = jax.random.split(key, 5)
    w = jax.random.normal(kw_, (k, k, cin, cout), jnp.float32) * 0.05
    gamma = jax.random.uniform(kg, (cout,), jnp.float32, 0.5, 1.5)
    beta = jax.random.normal(kb, (cout,), jnp.float32) * 0.1
    rmean = jax.random.normal(km, (cout,), jnp.float32) * 0.1
    rvar = jax.random.uniform(kv, (cout,), jnp.float32, 0.5, 1.5)
    scale = gamma / jnp.sqrt(rvar + 1e-3)
    bias = (beta - rmean * scale).reshape(1, cout)            # fp32
    w2d = (w * scale).reshape(k * k * cin, cout).astype(jnp.bfloat16)
    return w2d, bias


def init_params(key):
    k1, k2, k3, k4, k5 = jax.random.split(key, 5)
    params = {
        "conv1": _fold_conv_bn(k1, 64, 128, 3),
        "conv2": _fold_conv_bn(k2, 128, 128, 3),
        "conv3": _fold_conv_bn(k3, 128, 32, 3),
        "conv4": _fold_conv_bn(k4, 32, 128, 7),
    }
    kw1, kb1, kw2, kb2 = jax.random.split(k5, 4)
    fw1 = jax.random.normal(kw1, (128, 32), jnp.float32) * 0.05
    fb1 = jax.random.normal(kb1, (32,), jnp.float32) * 0.05
    fw2 = jax.random.normal(kw2, (32, 3), jnp.float32) * 0.05
    fb2 = jax.random.normal(kb2, (3,), jnp.float32) * 0.05
    # No nonlinearity between fc1 and fc2 in AuxiliaryNet -> fold them.
    params["head"] = ((fw1 @ fw2).astype(jnp.bfloat16),
                      (fb1 @ fw2 + fb2).reshape(1, 3))
    return params


# ----------------------------------------------------------------------------
# Forward pass (mirrors AuxiliaryNet.forward)
# ----------------------------------------------------------------------------
@jax.jit
def auxiliarynet_forward(x_nchw, params):
    B, C0, H, W = x_nchw.shape

    # Front-end glue (fuses into one small XLA op chain): NCHW->NHWC, bf16
    # cast, pad=1 (+ round spatial dims up to even), stride-2 phase split.
    x = jnp.transpose(x_nchw, (0, 2, 3, 1)).astype(jnp.bfloat16)
    Hp, Wp = H + 2, W + 2
    x = jnp.pad(x, ((0, 0), (1, 1 + Hp % 2), (1, 1 + Wp % 2), (0, 0)))
    xph = jnp.stack([x[:, ph::2, pw::2, :] for ph in range(2)
                     for pw in range(2)], axis=1)      # (B, 4, H1h, W1h, C0)
    _, _, H1h, W1h, _ = xph.shape

    w1, b1 = params["conv1"]
    w2, b2 = params["conv2"]
    w3, b3 = params["conv3"]
    w4, b4 = params["conv4"]
    wfc, bfc = params["head"]
    C1, C2, C3 = w1.shape[1], w2.shape[1], w3.shape[1]
    n_out = wfc.shape[1]

    Ho1, Wo1 = _conv_out(H, 3, 2, 1), _conv_out(W, 3, 2, 1)
    Ho3, Wo3 = _conv_out(Ho1, 3, 2, 1), _conv_out(Wo1, 3, 2, 1)
    M1, M3 = Ho1 * Wo1, Ho3 * Wo3
    K4 = 7
    Hp1, Wp1 = Ho1 + 2, Wo1 + 2
    Hp4, Wp4 = Ho3 + K4 - 1, Wo3 + K4 - 1

    g3 = _build_conv3_gather(Ho1, Wo1, Ho3, Wo3)       # (9, M3, M1) bf16 const
    kern = _make_kernel(Ho1, Wo1, Ho3, Wo3, C0, C1, C2, C3)

    def full(shape):
        nd = len(shape)
        return pl.BlockSpec(tuple(shape), lambda b, _nd=nd: (0,) * _nd)

    out = pl.pallas_call(
        kern,
        out_shape=jax.ShapeDtypeStruct((B, 1, n_out), jnp.float32),
        grid=(B,),
        in_specs=[
            pl.BlockSpec((1, 4, H1h, W1h, C0), lambda b: (b, 0, 0, 0, 0)),
            full(g3.shape),
            full(w1.shape), full(b1.shape),
            full(w2.shape), full(b2.shape),
            full(w3.shape), full(b3.shape),
            full(w4.shape), full(b4.shape),
            full(wfc.shape), full(bfc.shape),
        ],
        out_specs=pl.BlockSpec((1, 1, n_out), lambda b: (b, 0, 0)),
        scratch_shapes=[
            pltpu.VMEM((M1, 9 * C0), jnp.bfloat16),        # conv1 im2col
            pltpu.VMEM((Hp1, Wp1, C1), jnp.bfloat16),      # conv2 padded input
            pltpu.VMEM((M1, 9 * C1), jnp.bfloat16),        # conv2 im2col
            pltpu.VMEM((M3, 9 * C2), jnp.bfloat16),        # conv3 im2col
            pltpu.VMEM((Hp4, Wp4 * C3), jnp.bfloat16),     # conv4 padded (flat)
            pltpu.VMEM((M3, K4 * K4 * C3), jnp.bfloat16),  # conv4 im2col
        ],
        compiler_params=pltpu.CompilerParams(
            dimension_semantics=("parallel",),             # v7x: 2 TCs
            vmem_limit_bytes=32 * 1024 * 1024),
    )(xph, g3, w1, b1, w2, b2, w3, b3, w4, b4, wfc, bfc)
    return out[:, 0, :]


if __name__ == "__main__":
    key = jax.random.PRNGKey(0)
    kx, kp = jax.random.split(key)
    # AuxiliaryNet requires 64 input channels; small spatial size for the demo.
    x = jax.random.normal(kx, (2, 64, 14, 14), jnp.float32)        # NCHW
    params = init_params(kp)

    out = auxiliarynet_forward(x, params)
    out = jax.block_until_ready(out)
    assert out.shape == (2, 3), out.shape
    print("KERNEL_OK")
</pallas_src>

<mosaic_0001>
module attributes {stable_mosaic.version = 11 : i64} {
  func.func @kernel(%arg0: i32, %arg1: memref<1x4x8x8x64xbf16, #tpu.memory_space<vmem>>, %arg2: memref<9x16x49xbf16, #tpu.memory_space<vmem>>, %arg3: memref<576x128xbf16, #tpu.memory_space<vmem>>, %arg4: memref<1x128xf32, #tpu.memory_space<vmem>>, %arg5: memref<1152x128xbf16, #tpu.memory_space<vmem>>, %arg6: memref<1x128xf32, #tpu.memory_space<vmem>>, %arg7: memref<1152x32xbf16, #tpu.memory_space<vmem>>, %arg8: memref<1x32xf32, #tpu.memory_space<vmem>>, %arg9: memref<1568x128xbf16, #tpu.memory_space<vmem>>, %arg10: memref<1x128xf32, #tpu.memory_space<vmem>>, %arg11: memref<128x3xbf16, #tpu.memory_space<vmem>>, %arg12: memref<1x3xf32, #tpu.memory_space<vmem>>, %arg13: memref<1x1x3xf32, #tpu.memory_space<vmem>>, %arg14: memref<49x576xbf16, #tpu.memory_space<vmem>>, %arg15: memref<9x9x128xbf16, #tpu.memory_space<vmem>>, %arg16: memref<49x1152xbf16, #tpu.memory_space<vmem>>, %arg17: memref<16x1152xbf16, #tpu.memory_space<vmem>>, %arg18: memref<10x320xbf16, #tpu.memory_space<vmem>>, %arg19: memref<16x1568xbf16, #tpu.memory_space<vmem>>) attributes {dimension_semantics = [#tpu.dimension_semantics<parallel>], iteration_bounds = array<i64: 2>, scalar_prefetch = 0 : i64, scratch_operands = 6 : i64, tpu.core_type = #tpu.core_type<tc>, window_params = [{transform_indices = @transform_0, window_bounds = array<i64: 1, 4, 8, 8, 64>}, {pipeline_mode = #tpu.pipeline_mode<synchronous>, transform_indices = @transform_1, window_bounds = array<i64: 9, 16, 49>}, {pipeline_mode = #tpu.pipeline_mode<synchronous>, transform_indices = @transform_2, window_bounds = array<i64: 576, 128>}, {pipeline_mode = #tpu.pipeline_mode<synchronous>, transform_indices = @transform_3, window_bounds = array<i64: 1, 128>}, {pipeline_mode = #tpu.pipeline_mode<synchronous>, transform_indices = @transform_4, window_bounds = array<i64: 1152, 128>}, {pipeline_mode = #tpu.pipeline_mode<synchronous>, transform_indices = @transform_5, window_bounds = array<i64: 1, 128>}, {pipeline_mode = #tpu.pipeline_mode<synchronous>, transform_indices = @transform_6, window_bounds = array<i64: 1152, 32>}, {pipeline_mode = #tpu.pipeline_mode<synchronous>, transform_indices = @transform_7, window_bounds = array<i64: 1, 32>}, {pipeline_mode = #tpu.pipeline_mode<synchronous>, transform_indices = @transform_8, window_bounds = array<i64: 1568, 128>}, {pipeline_mode = #tpu.pipeline_mode<synchronous>, transform_indices = @transform_9, window_bounds = array<i64: 1, 128>}, {pipeline_mode = #tpu.pipeline_mode<synchronous>, transform_indices = @transform_10, window_bounds = array<i64: 128, 3>}, {pipeline_mode = #tpu.pipeline_mode<synchronous>, transform_indices = @transform_11, window_bounds = array<i64: 1, 3>}, {transform_indices = @transform_12, window_bounds = array<i64: 1, 1, 3>}]} {
    %cst = arith.constant 0.000000e+00 : bf16
    %0 = vector.broadcast %cst : bf16 to vector<1x9x128xbf16>
    %c0 = arith.constant 0 : index
    %c0_0 = arith.constant 0 : index
    %c0_1 = arith.constant 0 : index
    %1 = vector.load %arg15[%c0, %c0_0, %c0_1] : memref<9x9x128xbf16, #tpu.memory_space<vmem>>, vector<1x9x128xbf16>
    tpu.vector_store %arg15[%c0, %c0_0, %c0_1], %0 {strides = array<i32>} : memref<9x9x128xbf16, #tpu.memory_space<vmem>>, vector<1x9x128xbf16>,
    %cst_2 = arith.constant 0.000000e+00 : bf16
    %2 = vector.broadcast %cst_2 : bf16 to vector<1x9x128xbf16>
    %c8 = arith.constant 8 : index
    %c0_3 = arith.constant 0 : index
    %c0_4 = arith.constant 0 : index
    %3 = vector.load %arg15[%c8, %c0_3, %c0_4] : memref<9x9x128xbf16, #tpu.memory_space<vmem>>, vector<1x9x128xbf16>
    tpu.vector_store %arg15[%c8, %c0_3, %c0_4], %2 {strides = array<i32>} : memref<9x9x128xbf16, #tpu.memory_space<vmem>>, vector<1x9x128xbf16>,
    %cst_5 = arith.constant 0.000000e+00 : bf16
    %4 = vector.broadcast %cst_5 : bf16 to vector<9x1x128xbf16>
    %c0_6 = arith.constant 0 : index
    %c0_7 = arith.constant 0 : index
    %c0_8 = arith.constant 0 : index
    %5 = vector.load %arg15[%c0_6, %c0_7, %c0_8] : memref<9x9x128xbf16, #tpu.memory_space<vmem>>, vector<9x1x128xbf16>
    tpu.vector_store %arg15[%c0_6, %c0_7, %c0_8], %4 {strides = array<i32>} : memref<9x9x128xbf16, #tpu.memory_space<vmem>>, vector<9x1x128xbf16>,
    %cst_9 = arith.constant 0.000000e+00 : bf16
    %6 = vector.broadcast %cst_9 : bf16 to vector<9x1x128xbf16>
    %c0_10 = arith.constant 0 : index
    %c8_11 = arith.constant 8 : index
    %c0_12 = arith.constant 0 : index
    %7 = vector.load %arg15[%c0_10, %c8_11, %c0_12] : memref<9x9x128xbf16, #tpu.memory_space<vmem>>, vector<9x1x128xbf16>
    tpu.vector_store %arg15[%c0_10, %c8_11, %c0_12], %6 {strides = array<i32>} : memref<9x9x128xbf16, #tpu.memory_space<vmem>>, vector<9x1x128xbf16>,
    %cst_13 = arith.constant 0.000000e+00 : bf16
    %8 = vector.broadcast %cst_13 : bf16 to vector<3x320xbf16>
    %c0_14 = arith.constant 0 : index
    %c0_15 = arith.constant 0 : index
    %9 = vector.load %arg18[%c0_14, %c0_15] : memref<10x320xbf16, #tpu.memory_space<vmem>>, vector<3x320xbf16>
    tpu.vector_store %arg18[%c0_14, %c0_15], %8 {strides = array<i32>} : memref<10x320xbf16, #tpu.memory_space<vmem>>, vector<3x320xbf16>,
    %cst_16 = arith.constant 0.000000e+00 : bf16
    %10 = vector.broadcast %cst_16 : bf16 to vector<3x320xbf16>
    %c7 = arith.constant 7 : index
    %c0_17 = arith.constant 0 : index
    %11 = vector.load %arg18[%c7, %c0_17] : memref<10x320xbf16, #tpu.memory_space<vmem>>, vector<3x320xbf16>
    tpu.vector_store %arg18[%c7, %c0_17], %10 {strides = array<i32>} : memref<10x320xbf16, #tpu.memory_space<vmem>>, vector<3x320xbf16>,
    %cst_18 = arith.constant 0.000000e+00 : bf16
    %12 = vector.broadcast %cst_18 : bf16 to vector<10x96xbf16>
    %c0_19 = arith.constant 0 : index
    %c0_20 = arith.constant 0 : index
    %13 = vector.load %arg18[%c0_19, %c0_20] : memref<10x320xbf16, #tpu.memory_space<vmem>>, vector<10x96xbf16>
    tpu.vector_store %arg18[%c0_19, %c0_20], %12 {strides = array<i32>} : memref<10x320xbf16, #tpu.memory_space<vmem>>, vector<10x96xbf16>,
    %cst_21 = arith.constant 0.000000e+00 : bf16
    %14 = vector.broadcast %cst_21 : bf16 to vector<10x96xbf16>
    %c0_22 = arith.constant 0 : index
    %c224 = arith.constant 224 : index
    %15 = vector.load %arg18[%c0_22, %c224] : memref<10x320xbf16, #tpu.memory_space<vmem>>, vector<10x96xbf16>
    tpu.vector_store %arg18[%c0_22, %c224], %14 {strides = array<i32>} : memref<10x320xbf16, #tpu.memory_space<vmem>>, vector<10x96xbf16>,
    %c0_23 = arith.constant 0 : index
    %c0_24 = arith.constant 0 : index
    %c0_25 = arith.constant 0 : index
    %c0_26 = arith.constant 0 : index
    %c0_27 = arith.constant 0 : index
    %16 = vector.load %arg1[%c0_23, %c0_24, %c0_25, %c0_26, %c0_27] : memref<1x4x8x8x64xbf16, #tpu.memory_space<vmem>>, vector<1x1x7x7x64xbf16>
    %17 = vector.shape_cast %16 : vector<1x1x7x7x64xbf16> to vector<7x7x64xbf16>
    %18 = vector.shape_cast %17 : vector<7x7x64xbf16> to vector<49x64xbf16>
    %c0_28 = arith.constant 0 : index
    %c0_29 = arith.constant 0 : index
    %19 = vector.load %arg14[%c0_28, %c0_29] : memref<49x576xbf16, #tpu.memory_space<vmem>>, vector<49x64xbf16>
    tpu.vector_store %arg14[%c0_28, %c0_29], %18 {strides = array<i32>} : memref<49x576xbf16, #tpu.memory_space<vmem>>, vector<49x64xbf16>,
    %c0_30 = arith.constant 0 : index
    %c1 = arith.constant 1 : index
    %c0_31 = arith.constant 0 : index
    %c0_32 = arith.constant 0 : index
    %c0_33 = arith.constant 0 : index
    %20 = vector.load %arg1[%c0_30, %c1, %c0_31, %c0_32, %c0_33] : memref<1x4x8x8x64xbf16, #tpu.memory_space<vmem>>, vector<1x1x7x7x64xbf16>
    %21 = vector.shape_cast %20 : vector<1x1x7x7x64xbf16> to vector<7x7x64xbf16>
    %22 = vector.shape_cast %21 : vector<7x7x64xbf16> to vector<49x64xbf16>
    %c0_34 = arith.constant 0 : index
    %c64 = arith.constant 64 : index
    %23 = vector.load %arg14[%c0_34, %c64] : memref<49x576xbf16, #tpu.memory_space<vmem>>, vector<49x64xbf16>
    tpu.vector_store %arg14[%c0_34, %c64], %22 {strides = array<i32>} : memref<49x576xbf16, #tpu.memory_space<vmem>>, vector<49x64xbf16>,
    %c0_35 = arith.constant 0 : index
    %c0_36 = arith.constant 0 : index
    %c0_37 = arith.constant 0 : index
    %c1_38 = arith.constant 1 : index
    %c0_39 = arith.constant 0 : index
    %24 = vector.load %arg1[%c0_35, %c0_36, %c0_37, %c1_38, %c0_39] : memref<1x4x8x8x64xbf16, #tpu.memory_space<vmem>>, vector<1x1x7x7x64xbf16>
    %25 = vector.shape_cast %24 : vector<1x1x7x7x64xbf16> to vector<7x7x64xbf16>
    %26 = vector.shape_cast %25 : vector<7x7x64xbf16> to vector<49x64xbf16>
    %c0_40 = arith.constant 0 : index
    %c128 = arith.constant 128 : index
    %27 = vector.load %arg14[%c0_40, %c128] : memref<49x576xbf16, #tpu.memory_space<vmem>>, vector<49x64xbf16>
    tpu.vector_store %arg14[%c0_40, %c128], %26 {strides = array<i32>} : memref<49x576xbf16, #tpu.memory_space<vmem>>, vector<49x64xbf16>,
    %c0_41 = arith.constant 0 : index
    %c2 = arith.constant 2 : index
    %c0_42 = arith.constant 0 : index
    %c0_43 = arith.constant 0 : index
    %c0_44 = arith.constant 0 : index
    %28 = vector.load %arg1[%c0_41, %c2, %c0_42, %c0_43, %c0_44] : memref<1x4x8x8x64xbf16, #tpu.memory_space<vmem>>, vector<1x1x7x7x64xbf16>
    %29 = vector.shape_cast %28 : vector<1x1x7x7x64xbf16> to vector<7x7x64xbf16>
    %30 = vector.shape_cast %29 : vector<7x7x64xbf16> to vector<49x64xbf16>
    %c0_45 = arith.constant 0 : index
    %c192 = arith.constant 192 : index
    %31 = vector.load %arg14[%c0_45, %c192] : memref<49x576xbf16, #tpu.memory_space<vmem>>, vector<49x64xbf16>
    tpu.vector_store %arg14[%c0_45, %c192], %30 {strides = array<i32>} : memref<49x576xbf16, #tpu.memory_space<vmem>>, vector<49x64xbf16>,
    %c0_46 = arith.constant 0 : index
    %c3 = arith.constant 3 : index
    %c0_47 = arith.constant 0 : index
    %c0_48 = arith.constant 0 : index
    %c0_49 = arith.constant 0 : index
    %32 = vector.load %arg1[%c0_46, %c3, %c0_47, %c0_48, %c0_49] : memref<1x4x8x8x64xbf16, #tpu.memory_space<vmem>>, vector<1x1x7x7x64xbf16>
    %33 = vector.shape_cast %32 : vector<1x1x7x7x64xbf16> to vector<7x7x64xbf16>
    %34 = vector.shape_cast %33 : vector<7x7x64xbf16> to vector<49x64xbf16>
    %c0_50 = arith.constant 0 : index
    %c256 = arith.constant 256 : index
    %35 = vector.load %arg14[%c0_50, %c256] : memref<49x576xbf16, #tpu.memory_space<vmem>>, vector<49x64xbf16>
    tpu.vector_store %arg14[%c0_50, %c256], %34 {strides = array<i32>} : memref<49x576xbf16, #tpu.memory_space<vmem>>, vector<49x64xbf16>,
    %c0_51 = arith.constant 0 : index
    %c2_52 = arith.constant 2 : index
    %c0_53 = arith.constant 0 : index
    %c1_54 = arith.constant 1 : index
    %c0_55 = arith.constant 0 : index
    %36 = vector.load %arg1[%c0_51, %c2_52, %c0_53, %c1_54, %c0_55] : memref<1x4x8x8x64xbf16, #tpu.memory_space<vmem>>, vector<1x1x7x7x64xbf16>
    %37 = vector.shape_cast %36 : vector<1x1x7x7x64xbf16> to vector<7x7x64xbf16>
    %38 = vector.shape_cast %37 : vector<7x7x64xbf16> to vector<49x64xbf16>
    %c0_56 = arith.constant 0 : index
    %c320 = arith.constant 320 : index
    %39 = vector.load %arg14[%c0_56, %c320] : memref<49x576xbf16, #tpu.memory_space<vmem>>, vector<49x64xbf16>
    tpu.vector_store %arg14[%c0_56, %c320], %38 {strides = array<i32>} : memref<49x576xbf16, #tpu.memory_space<vmem>>, vector<49x64xbf16>,
    %c0_57 = arith.constant 0 : index
    %c0_58 = arith.constant 0 : index
    %c1_59 = arith.constant 1 : index
    %c0_60 = arith.constant 0 : index
    %c0_61 = arith.constant 0 : index
    %40 = vector.load %arg1[%c0_57, %c0_58, %c1_59, %c0_60, %c0_61] : memref<1x4x8x8x64xbf16, #tpu.memory_space<vmem>>, vector<1x1x7x7x64xbf16>
    %41 = vector.shape_cast %40 : vector<1x1x7x7x64xbf16> to vector<7x7x64xbf16>
    %42 = vector.shape_cast %41 : vector<7x7x64xbf16> to vector<49x64xbf16>
    %c0_62 = arith.constant 0 : index
    %c384 = arith.constant 384 : index
    %43 = vector.load %arg14[%c0_62, %c384] : memref<49x576xbf16, #tpu.memory_space<vmem>>, vector<49x64xbf16>
    tpu.vector_store %arg14[%c0_62, %c384], %42 {strides = array<i32>} : memref<49x576xbf16, #tpu.memory_space<vmem>>, vector<49x64xbf16>,
    %c0_63 = arith.constant 0 : index
    %c1_64 = arith.constant 1 : index
    %c1_65 = arith.constant 1 : index
    %c0_66 = arith.constant 0 : index
    %c0_67 = arith.constant 0 : index
    %44 = vector.load %arg1[%c0_63, %c1_64, %c1_65, %c0_66, %c0_67] : memref<1x4x8x8x64xbf16, #tpu.memory_space<vmem>>, vector<1x1x7x7x64xbf16>
    %45 = vector.shape_cast %44 : vector<1x1x7x7x64xbf16> to vector<7x7x64xbf16>
    %46 = vector.shape_cast %45 : vector<7x7x64xbf16> to vector<49x64xbf16>
    %c0_68 = arith.constant 0 : index
    %c448 = arith.constant 448 : index
    %47 = vector.load %arg14[%c0_68, %c448] : memref<49x576xbf16, #tpu.memory_space<vmem>>, vector<49x64xbf16>
    tpu.vector_store %arg14[%c0_68, %c448], %46 {strides = array<i32>} : memref<49x576xbf16, #tpu.memory_space<vmem>>, vector<49x64xbf16>,
    %c0_69 = arith.constant 0 : index
    %c0_70 = arith.constant 0 : index
    %c1_71 = arith.constant 1 : index
    %c1_72 = arith.constant 1 : index
    %c0_73 = arith.constant 0 : index
    %48 = vector.load %arg1[%c0_69, %c0_70, %c1_71, %c1_72, %c0_73] : memref<1x4x8x8x64xbf16, #tpu.memory_space<vmem>>, vector<1x1x7x7x64xbf16>
    %49 = vector.shape_cast %48 : vector<1x1x7x7x64xbf16> to vector<7x7x64xbf16>
    %50 = vector.shape_cast %49 : vector<7x7x64xbf16> to vector<49x64xbf16>
    %c0_74 = arith.constant 0 : index
    %c512 = arith.constant 512 : index
    %51 = vector.load %arg14[%c0_74, %c512] : memref<49x576xbf16, #tpu.memory_space<vmem>>, vector<49x64xbf16>
    tpu.vector_store %arg14[%c0_74, %c512], %50 {strides = array<i32>} : memref<49x576xbf16, #tpu.memory_space<vmem>>, vector<49x64xbf16>,
    %c0_75 = arith.constant 0 : index
    %c0_76 = arith.constant 0 : index
    %52 = vector.load %arg14[%c0_75, %c0_76] : memref<49x576xbf16, #tpu.memory_space<vmem>>, vector<49x576xbf16>
    %c0_77 = arith.constant 0 : index
    %c0_78 = arith.constant 0 : index
    %53 = vector.load %arg3[%c0_77, %c0_78] : memref<576x128xbf16, #tpu.memory_space<vmem>>, vector<576x128xbf16>
    %cst_79 = arith.constant dense<0.000000e+00> : vector<49x128xf32>
    %54 = tpu.matmul %52, %53, %cst_79 {dimension_numbers = #tpu.dot_dimension_numbers<[1], [0], [0], [1], [0, 0, 1, 1], [], []>} : vector<49x576xbf16>, vector<576x128xbf16>, vector<49x128xf32> -> vector<49x128xf32>
    %c0_80 = arith.constant 0 : index
    %c0_81 = arith.constant 0 : index
    %55 = vector.load %arg4[%c0_80, %c0_81] : memref<1x128xf32, #tpu.memory_space<vmem>>, vector<1x128xf32>
    %56 = vector.broadcast %55 : vector<1x128xf32> to vector<49x128xf32>
    %57 = arith.addf %54, %56 : vector<49x128xf32>
    %cst_82 = arith.constant 0.000000e+00 : f32
    %58 = vector.broadcast %cst_82 : f32 to vector<49x128xf32>
    %59 = arith.maximumf %57, %58 : vector<49x128xf32>
    %60 = vector.shape_cast %59 : vector<49x128xf32> to vector<7x7x128xf32>
    %61 = arith.truncf %60 : vector<7x7x128xf32> to vector<7x7x128xbf16>
    %c1_83 = arith.constant 1 : index
    %c1_84 = arith.constant 1 : index
    %c0_85 = arith.constant 0 : index
    %62 = vector.load %arg15[%c1_83, %c1_84, %c0_85] : memref<9x9x128xbf16, #tpu.memory_space<vmem>>, vector<7x7x128xbf16>
    tpu.vector_store %arg15[%c1_83, %c1_84, %c0_85], %61 {strides = array<i32>} : memref<9x9x128xbf16, #tpu.memory_space<vmem>>, vector<7x7x128xbf16>,
    %c0_86 = arith.constant 0 : index
    %c0_87 = arith.constant 0 : index
    %c0_88 = arith.constant 0 : index
    %63 = vector.load %arg15[%c0_86, %c0_87, %c0_88] : memref<9x9x128xbf16, #tpu.memory_space<vmem>>, vector<7x7x128xbf16>
    %64 = vector.shape_cast %63 : vector<7x7x128xbf16> to vector<49x128xbf16>
    %c0_89 = arith.constant 0 : index
    %c0_90 = arith.constant 0 : index
    %65 = vector.load %arg16[%c0_89, %c0_90] : memref<49x1152xbf16, #tpu.memory_space<vmem>>, vector<49x128xbf16>
    tpu.vector_store %arg16[%c0_89, %c0_90], %64 {strides = array<i32>} : memref<49x1152xbf16, #tpu.memory_space<vmem>>, vector<49x128xbf16>,
    %c0_91 = arith.constant 0 : index
    %c1_92 = arith.constant 1 : index
    %c0_93 = arith.constant 0 : index
    %66 = vector.load %arg15[%c0_91, %c1_92, %c0_93] : memref<9x9x128xbf16, #tpu.memory_space<vmem>>, vector<7x7x128xbf16>
    %67 = vector.shape_cast %66 : vector<7x7x128xbf16> to vector<49x128xbf16>
    %c0_94 = arith.constant 0 : index
    %c128_95 = arith.constant 128 : index
    %68 = vector.load %arg16[%c0_94, %c128_95] : memref<49x1152xbf16, #tpu.memory_space<vmem>>, vector<49x128xbf16>
    tpu.vector_store %arg16[%c0_94, %c128_95], %67 {strides = array<i32>} : memref<49x1152xbf16, #tpu.memory_space<vmem>>, vector<49x128xbf16>,
    %c0_96 = arith.constant 0 : index
    %c2_97 = arith.constant 2 : index
    %c0_98 = arith.constant 0 : index
    %69 = vector.load %arg15[%c0_96, %c2_97, %c0_98] : memref<9x9x128xbf16, #tpu.memory_space<vmem>>, vector<7x7x128xbf16>
    %70 = vector.shape_cast %69 : vector<7x7x128xbf16> to vector<49x128xbf16>
    %c0_99 = arith.constant 0 : index
    %c256_100 = arith.constant 256 : index
    %71 = vector.load %arg16[%c0_99, %c256_100] : memref<49x1152xbf16, #tpu.memory_space<vmem>>, vector<49x128xbf16>
    tpu.vector_store %arg16[%c0_99, %c256_100], %70 {strides = array<i32>} : memref<49x1152xbf16, #tpu.memory_space<vmem>>, vector<49x128xbf16>,
    %c1_101 = arith.constant 1 : index
    %c0_102 = arith.constant 0 : index
    %c0_103 = arith.constant 0 : index
    %72 = vector.load %arg15[%c1_101, %c0_102, %c0_103] : memref<9x9x128xbf16, #tpu.memory_space<vmem>>, vector<7x7x128xbf16>
    %73 = vector.shape_cast %72 : vector<7x7x128xbf16> to vector<49x128xbf16>
    %c0_104 = arith.constant 0 : index
    %c384_105 = arith.constant 384 : index
    %74 = vector.load %arg16[%c0_104, %c384_105] : memref<49x1152xbf16, #tpu.memory_space<vmem>>, vector<49x128xbf16>
    tpu.vector_store %arg16[%c0_104, %c384_105], %73 {strides = array<i32>} : memref<49x1152xbf16, #tpu.memory_space<vmem>>, vector<49x128xbf16>,
    %c1_106 = arith.constant 1 : index
    %c1_107 = arith.constant 1 : index
    %c0_108 = arith.constant 0 : index
    %75 = vector.load %arg15[%c1_106, %c1_107, %c0_108] : memref<9x9x128xbf16, #tpu.memory_space<vmem>>, vector<7x7x128xbf16>
    %76 = vector.shape_cast %75 : vector<7x7x128xbf16> to vector<49x128xbf16>
    %c0_109 = arith.constant 0 : index
    %c512_110 = arith.constant 512 : index
    %77 = vector.load %arg16[%c0_109, %c512_110] : memref<49x1152xbf16, #tpu.memory_space<vmem>>, vector<49x128xbf16>
    tpu.vector_store %arg16[%c0_109, %c512_110], %76 {strides = array<i32>} : memref<49x1152xbf16, #tpu.memory_space<vmem>>, vector<49x128xbf16>,
    %c1_111 = arith.constant 1 : index
    %c2_112 = arith.constant 2 : index
    %c0_113 = arith.constant 0 : index
    %78 = vector.load %arg15[%c1_111, %c2_112, %c0_113] : memref<9x9x128xbf16, #tpu.memory_space<vmem>>, vector<7x7x128xbf16>
    %79 = vector.shape_cast %78 : vector<7x7x128xbf16> to vector<49x128xbf16>
    %c0_114 = arith.constant 0 : index
    %c640 = arith.constant 640 : index
    %80 = vector.load %arg16[%c0_114, %c640] : memref<49x1152xbf16, #tpu.memory_space<vmem>>, vector<49x128xbf16>
    tpu.vector_store %arg16[%c0_114, %c640], %79 {strides = array<i32>} : memref<49x1152xbf16, #tpu.memory_space<vmem>>, vector<49x128xbf16>,
    %c2_115 = arith.constant 2 : index
    %c0_116 = arith.constant 0 : index
    %c0_117 = arith.constant 0 : index
    %81 = vector.load %arg15[%c2_115, %c0_116, %c0_117] : memref<9x9x128xbf16, #tpu.memory_space<vmem>>, vector<7x7x128xbf16>
    %82 = vector.shape_cast %81 : vector<7x7x128xbf16> to vector<49x128xbf16>
    %c0_118 = arith.constant 0 : index
    %c768 = arith.constant 768 : index
    %83 = vector.load %arg16[%c0_118, %c768] : memref<49x1152xbf16, #tpu.memory_space<vmem>>, vector<49x128xbf16>
    tpu.vector_store %arg16[%c0_118, %c768], %82 {strides = array<i32>} : memref<49x1152xbf16, #tpu.memory_space<vmem>>, vector<49x128xbf16>,
    %c2_119 = arith.constant 2 : index
    %c1_120 = arith.constant 1 : index
    %c0_121 = arith.constant 0 : index
    %84 = vector.load %arg15[%c2_119, %c1_120, %c0_121] : memref<9x9x128xbf16, #tpu.memory_space<vmem>>, vector<7x7x128xbf16>
    %85 = vector.shape_cast %84 : vector<7x7x128xbf16> to vector<49x128xbf16>
    %c0_122 = arith.constant 0 : index
    %c896 = arith.constant 896 : index
    %86 = vector.load %arg16[%c0_122, %c896] : memref<49x1152xbf16, #tpu.memory_space<vmem>>, vector<49x128xbf16>
    tpu.vector_store %arg16[%c0_122, %c896], %85 {strides = array<i32>} : memref<49x1152xbf16, #tpu.memory_space<vmem>>, vector<49x128xbf16>,
    %c2_123 = arith.constant 2 : index
    %c2_124 = arith.constant 2 : index
    %c0_125 = arith.constant 0 : index
    %87 = vector.load %arg15[%c2_123, %c2_124, %c0_125] : memref<9x9x128xbf16, #tpu.memory_space<vmem>>, vector<7x7x128xbf16>
    %88 = vector.shape_cast %87 : vector<7x7x128xbf16> to vector<49x128xbf16>
    %c0_126 = arith.constant 0 : index
    %c1024 = arith.constant 1024 : index
    %89 = vector.load %arg16[%c0_126, %c1024] : memref<49x1152xbf16, #tpu.memory_space<vmem>>, vector<49x128xbf16>
    tpu.vector_store %arg16[%c0_126, %c1024], %88 {strides = array<i32>} : memref<49x1152xbf16, #tpu.memory_space<vmem>>, vector<49x128xbf16>,
    %c0_127 = arith.constant 0 : index
    %c0_128 = arith.constant 0 : index
    %90 = vector.load %arg16[%c0_127, %c0_128] : memref<49x1152xbf16, #tpu.memory_space<vmem>>, vector<49x1152xbf16>
    %c0_129 = arith.constant 0 : index
    %c0_130 = arith.constant 0 : index
    %91 = vector.load %arg5[%c0_129, %c0_130] : memref<1152x128xbf16, #tpu.memory_space<vmem>>, vector<1152x128xbf16>
    %cst_131 = arith.constant dense<0.000000e+00> : vector<49x128xf32>
    %92 = tpu.matmul %90, %91, %cst_131 {dimension_numbers = #tpu.dot_dimension_numbers<[1], [0], [0], [1], [0, 0, 1, 1], [], []>} : vector<49x1152xbf16>, vector<1152x128xbf16>, vector<49x128xf32> -> vector<49x128xf32>
    %c0_132 = arith.constant 0 : index
    %c0_133 = arith.constant 0 : index
    %93 = vector.load %arg6[%c0_132, %c0_133] : memref<1x128xf32, #tpu.memory_space<vmem>>, vector<1x128xf32>
    %94 = vector.broadcast %93 : vector<1x128xf32> to vector<49x128xf32>
    %95 = arith.addf %92, %94 : vector<49x128xf32>
    %cst_134 = arith.constant 0.000000e+00 : f32
    %96 = vector.broadcast %cst_134 : f32 to vector<49x128xf32>
    %97 = arith.maximumf %95, %96 : vector<49x128xf32>
    %98 = arith.truncf %97 : vector<49x128xf32> to vector<49x128xbf16>
    %c0_135 = arith.constant 0 : index
    %c0_136 = arith.constant 0 : index
    %c0_137 = arith.constant 0 : index
    %99 = vector.load %arg2[%c0_135, %c0_136, %c0_137] : memref<9x16x49xbf16, #tpu.memory_space<vmem>>, vector<1x16x49xbf16>
    %100 = vector.shape_cast %99 : vector<1x16x49xbf16> to vector<16x49xbf16>
    %cst_138 = arith.constant dense<0.000000e+00> : vector<16x128xf32>
    %101 = tpu.matmul %100, %98, %cst_138 {dimension_numbers = #tpu.dot_dimension_numbers<[1], [0], [0], [1], [0, 0, 1, 1], [], []>} : vector<16x49xbf16>, vector<49x128xbf16>, vector<16x128xf32> -> vector<16x128xf32>
    %102 = arith.truncf %101 : vector<16x128xf32> to vector<16x128xbf16>
    %c0_139 = arith.constant 0 : index
    %c0_140 = arith.constant 0 : index
    %103 = vector.load %arg17[%c0_139, %c0_140] : memref<16x1152xbf16, #tpu.memory_space<vmem>>, vector<16x128xbf16>
    tpu.vector_store %arg17[%c0_139, %c0_140], %102 {strides = array<i32>} : memref<16x1152xbf16, #tpu.memory_space<vmem>>, vector<16x128xbf16>,
    %c1_141 = arith.constant 1 : index
    %c0_142 = arith.constant 0 : index
    %c0_143 = arith.constant 0 : index
    %104 = vector.load %arg2[%c1_141, %c0_142, %c0_143] : memref<9x16x49xbf16, #tpu.memory_space<vmem>>, vector<1x16x49xbf16>
    %105 = vector.shape_cast %104 : vector<1x16x49xbf16> to vector<16x49xbf16>
    %cst_144 = arith.constant dense<0.000000e+00> : vector<16x128xf32>
    %106 = tpu.matmul %105, %98, %cst_144 {dimension_numbers = #tpu.dot_dimension_numbers<[1], [0], [0], [1], [0, 0, 1, 1], [], []>} : vector<16x49xbf16>, vector<49x128xbf16>, vector<16x128xf32> -> vector<16x128xf32>
    %107 = arith.truncf %106 : vector<16x128xf32> to vector<16x128xbf16>
    %c0_145 = arith.constant 0 : index
    %c128_146 = arith.constant 128 : index
    %108 = vector.load %arg17[%c0_145, %c128_146] : memref<16x1152xbf16, #tpu.memory_space<vmem>>, vector<16x128xbf16>
    tpu.vector_store %arg17[%c0_145, %c128_146], %107 {strides = array<i32>} : memref<16x1152xbf16, #tpu.memory_space<vmem>>, vector<16x128xbf16>,
    %c2_147 = arith.constant 2 : index
    %c0_148 = arith.constant 0 : index
    %c0_149 = arith.constant 0 : index
    %109 = vector.load %arg2[%c2_147, %c0_148, %c0_149] : memref<9x16x49xbf16, #tpu.memory_space<vmem>>, vector<1x16x49xbf16>
    %110 = vector.shape_cast %109 : vector<1x16x49xbf16> to vector<16x49xbf16>
    %cst_150 = arith.constant dense<0.000000e+00> : vector<16x128xf32>
    %111 = tpu.matmul %110, %98, %cst_150 {dimension_numbers = #tpu.dot_dimension_numbers<[1], [0], [0], [1], [0, 0, 1, 1], [], []>} : vector<16x49xbf16>, vector<49x128xbf16>, vector<16x128xf32> -> vector<16x128xf32>
    %112 = arith.truncf %111 : vector<16x128xf32> to vector<16x128xbf16>
    %c0_151 = arith.constant 0 : index
    %c256_152 = arith.constant 256 : index
    %113 = vector.load %arg17[%c0_151, %c256_152] : memref<16x1152xbf16, #tpu.memory_space<vmem>>, vector<16x128xbf16>
    tpu.vector_store %arg17[%c0_151, %c256_152], %112 {strides = array<i32>} : memref<16x1152xbf16, #tpu.memory_space<vmem>>, vector<16x128xbf16>,
    %c3_153 = arith.constant 3 : index
    %c0_154 = arith.constant 0 : index
    %c0_155 = arith.constant 0 : index
    %114 = vector.load %arg2[%c3_153, %c0_154, %c0_155] : memref<9x16x49xbf16, #tpu.memory_space<vmem>>, vector<1x16x49xbf16>
    %115 = vector.shape_cast %114 : vector<1x16x49xbf16> to vector<16x49xbf16>
    %cst_156 = arith.constant dense<0.000000e+00> : vector<16x128xf32>
    %116 = tpu.matmul %115, %98, %cst_156 {dimension_numbers = #tpu.dot_dimension_numbers<[1], [0], [0], [1], [0, 0, 1, 1], [], []>} : vector<16x49xbf16>, vector<49x128xbf16>, vector<16x128xf32> -> vector<16x128xf32>
    %117 = arith.truncf %116 : vector<16x128xf32> to vector<16x128xbf16>
    %c0_157 = arith.constant 0 : index
    %c384_158 = arith.constant 384 : index
    %118 = vector.load %arg17[%c0_157, %c384_158] : memref<16x1152xbf16, #tpu.memory_space<vmem>>, vector<16x128xbf16>
    tpu.vector_store %arg17[%c0_157, %c384_158], %117 {strides = array<i32>} : memref<16x1152xbf16, #tpu.memory_space<vmem>>, vector<16x128xbf16>,
    %c4 = arith.constant 4 : index
    %c0_159 = arith.constant 0 : index
    %c0_160 = arith.constant 0 : index
    %119 = vector.load %arg2[%c4, %c0_159, %c0_160] : memref<9x16x49xbf16, #tpu.memory_space<vmem>>, vector<1x16x49xbf16>
    %120 = vector.shape_cast %119 : vector<1x16x49xbf16> to vector<16x49xbf16>
    %cst_161 = arith.constant dense<0.000000e+00> : vector<16x128xf32>
    %121 = tpu.matmul %120, %98, %cst_161 {dimension_numbers = #tpu.dot_dimension_numbers<[1], [0], [0], [1], [0, 0, 1, 1], [], []>} : vector<16x49xbf16>, vector<49x128xbf16>, vector<16x128xf32> -> vector<16x128xf32>
    %122 = arith.truncf %121 : vector<16x128xf32> to vector<16x128xbf16>
    %c0_162 = arith.constant 0 : index
    %c512_163 = arith.constant 512 : index
    %123 = vector.load %arg17[%c0_162, %c512_163] : memref<16x1152xbf16, #tpu.memory_space<vmem>>, vector<16x128xbf16>
    tpu.vector_store %arg17[%c0_162, %c512_163], %122 {strides = array<i32>} : memref<16x1152xbf16, #tpu.memory_space<vmem>>, vector<16x128xbf16>,
    %c5 = arith.constant 5 : index
    %c0_164 = arith.constant 0 : index
    %c0_165 = arith.constant 0 : index
    %124 = vector.load %arg2[%c5, %c0_164, %c0_165] : memref<9x16x49xbf16, #tpu.memory_space<vmem>>, vector<1x16x49xbf16>
    %125 = vector.shape_cast %124 : vector<1x16x49xbf16> to vector<16x49xbf16>
    %cst_166 = arith.constant dense<0.000000e+00> : vector<16x128xf32>
    %126 = tpu.matmul %125, %98, %cst_166 {dimension_numbers = #tpu.dot_dimension_numbers<[1], [0], [0], [1], [0, 0, 1, 1], [], []>} : vector<16x49xbf16>, vector<49x128xbf16>, vector<16x128xf32> -> vector<16x128xf32>
    %127 = arith.truncf %126 : vector<16x128xf32> to vector<16x128xbf16>
    %c0_167 = arith.constant 0 : index
    %c640_168 = arith.constant 640 : index
    %128 = vector.load %arg17[%c0_167, %c640_168] : memref<16x1152xbf16, #tpu.memory_space<vmem>>, vector<16x128xbf16>
    tpu.vector_store %arg17[%c0_167, %c640_168], %127 {strides = array<i32>} : memref<16x1152xbf16, #tpu.memory_space<vmem>>, vector<16x128xbf16>,
    %c6 = arith.constant 6 : index
    %c0_169 = arith.constant 0 : index
    %c0_170 = arith.constant 0 : index
    %129 = vector.load %arg2[%c6, %c0_169, %c0_170] : memref<9x16x49xbf16, #tpu.memory_space<vmem>>, vector<1x16x49xbf16>
    %130 = vector.shape_cast %129 : vector<1x16x49xbf16> to vector<16x49xbf16>
    %cst_171 = arith.constant dense<0.000000e+00> : vector<16x128xf32>
    %131 = tpu.matmul %130, %98, %cst_171 {dimension_numbers = #tpu.dot_dimension_numbers<[1], [0], [0], [1], [0, 0, 1, 1], [], []>} : vector<16x49xbf16>, vector<49x128xbf16>, vector<16x128xf32> -> vector<16x128xf32>
    %132 = arith.truncf %131 : vector<16x128xf32> to vector<16x128xbf16>
    %c0_172 = arith.constant 0 : index
    %c768_173 = arith.constant 768 : index
    %133 = vector.load %arg17[%c0_172, %c768_173] : memref<16x1152xbf16, #tpu.memory_space<vmem>>, vector<16x128xbf16>
    tpu.vector_store %arg17[%c0_172, %c768_173], %132 {strides = array<i32>} : memref<16x1152xbf16, #tpu.memory_space<vmem>>, vector<16x128xbf16>,
    %c7_174 = arith.constant 7 : index
    %c0_175 = arith.constant 0 : index
    %c0_176 = arith.constant 0 : index
    %134 = vector.load %arg2[%c7_174, %c0_175, %c0_176] : memref<9x16x49xbf16, #tpu.memory_space<vmem>>, vector<1x16x49xbf16>
    %135 = vector.shape_cast %134 : vector<1x16x49xbf16> to vector<16x49xbf16>
    %cst_177 = arith.constant dense<0.000000e+00> : vector<16x128xf32>
    %136 = tpu.matmul %135, %98, %cst_177 {dimension_numbers = #tpu.dot_dimension_numbers<[1], [0], [0], [1], [0, 0, 1, 1], [], []>} : vector<16x49xbf16>, vector<49x128xbf16>, vector<16x128xf32> -> vector<16x128xf32>
    %137 = arith.truncf %136 : vector<16x128xf32> to vector<16x128xbf16>
    %c0_178 = arith.constant 0 : index
    %c896_179 = arith.constant 896 : index
    %138 = vector.load %arg17[%c0_178, %c896_179] : memref<16x1152xbf16, #tpu.memory_space<vmem>>, vector<16x128xbf16>
    tpu.vector_store %arg17[%c0_178, %c896_179], %137 {strides = array<i32>} : memref<16x1152xbf16, #tpu.memory_space<vmem>>, vector<16x128xbf16>,
    %c8_180 = arith.constant 8 : index
    %c0_181 = arith.constant 0 : index
    %c0_182 = arith.constant 0 : index
    %139 = vector.load %arg2[%c8_180, %c0_181, %c0_182] : memref<9x16x49xbf16, #tpu.memory_space<vmem>>, vector<1x16x49xbf16>
    %140 = vector.shape_cast %139 : vector<1x16x49xbf16> to vector<16x49xbf16>
    %cst_183 = arith.constant dense<0.000000e+00> : vector<16x128xf32>
    %141 = tpu.matmul %140, %98, %cst_183 {dimension_numbers = #tpu.dot_dimension_numbers<[1], [0], [0], [1], [0, 0, 1, 1], [], []>} : vector<16x49xbf16>, vector<49x128xbf16>, vector<16x128xf32> -> vector<16x128xf32>
    %142 = arith.truncf %141 : vector<16x128xf32> to vector<16x128xbf16>
    %c0_184 = arith.constant 0 : index
    %c1024_185 = arith.constant 1024 : index
    %143 = vector.load %arg17[%c0_184, %c1024_185] : memref<16x1152xbf16, #tpu.memory_space<vmem>>, vector<16x128xbf16>
    tpu.vector_store %arg17[%c0_184, %c1024_185], %142 {strides = array<i32>} : memref<16x1152xbf16, #tpu.memory_space<vmem>>, vector<16x128xbf16>,
    %c0_186 = arith.constant 0 : index
    %c0_187 = arith.constant 0 : index
    %144 = vector.load %arg17[%c0_186, %c0_187] : memref<16x1152xbf16, #tpu.memory_space<vmem>>, vector<16x1152xbf16>
    %c0_188 = arith.constant 0 : index
    %c0_189 = arith.constant 0 : index
    %145 = vector.load %arg7[%c0_188, %c0_189] : memref<1152x32xbf16, #tpu.memory_space<vmem>>, vector<1152x32xbf16>
    %cst_190 = arith.constant dense<0.000000e+00> : vector<16x32xf32>
    %146 = tpu.matmul %144, %145, %cst_190 {dimension_numbers = #tpu.dot_dimension_numbers<[1], [0], [0], [1], [0, 0, 1, 1], [], []>} : vector<16x1152xbf16>, vector<1152x32xbf16>, vector<16x32xf32> -> vector<16x32xf32>
    %c0_191 = arith.constant 0 : index
    %c0_192 = arith.constant 0 : index
    %147 = vector.load %arg8[%c0_191, %c0_192] : memref<1x32xf32, #tpu.memory_space<vmem>>, vector<1x32xf32>
    %148 = vector.broadcast %147 : vector<1x32xf32> to vector<16x32xf32>
    %149 = arith.addf %146, %148 : vector<16x32xf32>
    %cst_193 = arith.constant 0.000000e+00 : f32
    %150 = vector.broadcast %cst_193 : f32 to vector<16x32xf32>
    %151 = arith.maximumf %149, %150 : vector<16x32xf32>
    %152 = arith.truncf %151 : vector<16x32xf32> to vector<16x32xbf16>
    %153 = vector.extract_strided_slice %152 {offsets = [0, 0], sizes = [4, 32], strides = [1, 1]} : vector<16x32xbf16> to vector<4x32xbf16>
    %c3_194 = arith.constant 3 : index
    %c96 = arith.constant 96 : index
    %154 = vector.load %arg18[%c3_194, %c96] : memref<10x320xbf16, #tpu.memory_space<vmem>>, vector<4x32xbf16>
    tpu.vector_store %arg18[%c3_194, %c96], %153 {strides = array<i32>} : memref<10x320xbf16, #tpu.memory_space<vmem>>, vector<4x32xbf16>,
    %155 = vector.extract_strided_slice %152 {offsets = [4, 0], sizes = [4, 32], strides = [1, 1]} : vector<16x32xbf16> to vector<4x32xbf16>
    %c3_195 = arith.constant 3 : index
    %c128_196 = arith.constant 128 : index
    %156 = vector.load %arg18[%c3_195, %c128_196] : memref<10x320xbf16, #tpu.memory_space<vmem>>, vector<4x32xbf16>
    tpu.vector_store %arg18[%c3_195, %c128_196], %155 {strides = array<i32>} : memref<10x320xbf16, #tpu.memory_space<vmem>>, vector<4x32xbf16>,
    %157 = vector.extract_strided_slice %152 {offsets = [8, 0], sizes = [4, 32], strides = [1, 1]} : vector<16x32xbf16> to vector<4x32xbf16>
    %c3_197 = arith.constant 3 : index
    %c160 = arith.constant 160 : index
    %158 = vector.load %arg18[%c3_197, %c160] : memref<10x320xbf16, #tpu.memory_space<vmem>>, vector<4x32xbf16>
    tpu.vector_store %arg18[%c3_197, %c160], %157 {strides = array<i32>} : memref<10x320xbf16, #tpu.memory_space<vmem>>, vector<4x32xbf16>,
    %159 = vector.extract_strided_slice %152 {offsets = [12, 0], sizes = [4, 32], strides = [1, 1]} : vector<16x32xbf16> to vector<4x32xbf16>
    %c3_198 = arith.constant 3 : index
    %c192_199 = arith.constant 192 : index
    %160 = vector.load %arg18[%c3_198, %c192_199] : memref<10x320xbf16, #tpu.memory_space<vmem>>, vector<4x32xbf16>
    tpu.vector_store %arg18[%c3_198, %c192_199], %159 {strides = array<i32>} : memref<10x320xbf16, #tpu.memory_space<vmem>>, vector<4x32xbf16>,
    %c0_200 = arith.constant 0 : index
    %c0_201 = arith.constant 0 : index
    %161 = vector.load %arg18[%c0_200, %c0_201] : memref<10x320xbf16, #tpu.memory_space<vmem>>, vector<4x224xbf16>
    %c0_202 = arith.constant 0 : index
    %c0_203 = arith.constant 0 : index
    %162 = vector.load %arg19[%c0_202, %c0_203] : memref<16x1568xbf16, #tpu.memory_space<vmem>>, vector<4x224xbf16>
    tpu.vector_store %arg19[%c0_202, %c0_203], %161 {strides = array<i32>} : memref<16x1568xbf16, #tpu.memory_space<vmem>>, vector<4x224xbf16>,
    %c0_204 = arith.constant 0 : index
    %c32 = arith.constant 32 : index
    %163 = vector.load %arg18[%c0_204, %c32] : memref<10x320xbf16, #tpu.memory_space<vmem>>, vector<4x224xbf16>
    %c4_205 = arith.constant 4 : index
    %c0_206 = arith.constant 0 : index
    %164 = vector.load %arg19[%c4_205, %c0_206] : memref<16x1568xbf16, #tpu.memory_space<vmem>>, vector<4x224xbf16>
    tpu.vector_store %arg19[%c4_205, %c0_206], %163 {strides = array<i32>} : memref<16x1568xbf16, #tpu.memory_space<vmem>>, vector<4x224xbf16>,
    %c0_207 = arith.constant 0 : index
    %c64_208 = arith.constant 64 : index
    %165 = vector.load %arg18[%c0_207, %c64_208] : memref<10x320xbf16, #tpu.memory_space<vmem>>, vector<4x224xbf16>
    %c8_209 = arith.constant 8 : index
    %c0_210 = arith.constant 0 : index
    %166 = vector.load %arg19[%c8_209, %c0_210] : memref<16x1568xbf16, #tpu.memory_space<vmem>>, vector<4x224xbf16>
    tpu.vector_store %arg19[%c8_209, %c0_210], %165 {strides = array<i32>} : memref<16x1568xbf16, #tpu.memory_space<vmem>>, vector<4x224xbf16>,
    %c0_211 = arith.constant 0 : index
    %c96_212 = arith.constant 96 : index
    %167 = vector.load %arg18[%c0_211, %c96_212] : memref<10x320xbf16, #tpu.memory_space<vmem>>, vector<4x224xbf16>
    %c12 = arith.constant 12 : index
    %c0_213 = arith.constant 0 : index
    %168 = vector.load %arg19[%c12, %c0_213] : memref<16x1568xbf16, #tpu.memory_space<vmem>>, vector<4x224xbf16>
    tpu.vector_store %arg19[%c12, %c0_213], %167 {strides = array<i32>} : memref<16x1568xbf16, #tpu.memory_space<vmem>>, vector<4x224xbf16>,
    %c1_214 = arith.constant 1 : index
    %c0_215 = arith.constant 0 : index
    %169 = vector.load %arg18[%c1_214, %c0_215] : memref<10x320xbf16, #tpu.memory_space<vmem>>, vector<4x224xbf16>
    %c0_216 = arith.constant 0 : index
    %c224_217 = arith.constant 224 : index
    %170 = vector.load %arg19[%c0_216, %c224_217] : memref<16x1568xbf16, #tpu.memory_space<vmem>>, vector<4x224xbf16>
    tpu.vector_store %arg19[%c0_216, %c224_217], %169 {strides = array<i32>} : memref<16x1568xbf16, #tpu.memory_space<vmem>>, vector<4x224xbf16>,
    %c1_218 = arith.constant 1 : index
    %c32_219 = arith.constant 32 : index
    %171 = vector.load %arg18[%c1_218, %c32_219] : memref<10x320xbf16, #tpu.memory_space<vmem>>, vector<4x224xbf16>
    %c4_220 = arith.constant 4 : index
    %c224_221 = arith.constant 224 : index
    %172 = vector.load %arg19[%c4_220, %c224_221] : memref<16x1568xbf16, #tpu.memory_space<vmem>>, vector<4x224xbf16>
    tpu.vector_store %arg19[%c4_220, %c224_221], %171 {strides = array<i32>} : memref<16x1568xbf16, #tpu.memory_space<vmem>>, vector<4x224xbf16>,
    %c1_222 = arith.constant 1 : index
    %c64_223 = arith.constant 64 : index
    %173 = vector.load %arg18[%c1_222, %c64_223] : memref<10x320xbf16, #tpu.memory_space<vmem>>, vector<4x224xbf16>
    %c8_224 = arith.constant 8 : index
    %c224_225 = arith.constant 224 : index
    %174 = vector.load %arg19[%c8_224, %c224_225] : memref<16x1568xbf16, #tpu.memory_space<vmem>>, vector<4x224xbf16>
    tpu.vector_store %arg19[%c8_224, %c224_225], %173 {strides = array<i32>} : memref<16x1568xbf16, #tpu.memory_space<vmem>>, vector<4x224xbf16>,
    %c1_226 = arith.constant 1 : index
    %c96_227 = arith.constant 96 : index
    %175 = vector.load %arg18[%c1_226, %c96_227] : memref<10x320xbf16, #tpu.memory_space<vmem>>, vector<4x224xbf16>
    %c12_228 = arith.constant 12 : index
    %c224_229 = arith.constant 224 : index
    %176 = vector.load %arg19[%c12_228, %c224_229] : memref<16x1568xbf16, #tpu.memory_space<vmem>>, vector<4x224xbf16>
    tpu.vector_store %arg19[%c12_228, %c224_229], %175 {strides = array<i32>} : memref<16x1568xbf16, #tpu.memory_space<vmem>>, vector<4x224xbf16>,
    %c2_230 = arith.constant 2 : index
    %c0_231 = arith.constant 0 : index
    %177 = vector.load %arg18[%c2_230, %c0_231] : memref<10x320xbf16, #tpu.memory_space<vmem>>, vector<4x224xbf16>
    %c0_232 = arith.constant 0 : index
    %c448_233 = arith.constant 448 : index
    %178 = vector.load %arg19[%c0_232, %c448_233] : memref<16x1568xbf16, #tpu.memory_space<vmem>>, vector<4x224xbf16>
    tpu.vector_store %arg19[%c0_232, %c448_233], %177 {strides = array<i32>} : memref<16x1568xbf16, #tpu.memory_space<vmem>>, vector<4x224xbf16>,
    %c2_234 = arith.constant 2 : index
    %c32_235 = arith.constant 32 : index
    %179 = vector.load %arg18[%c2_234, %c32_235] : memref<10x320xbf16, #tpu.memory_space<vmem>>, vector<4x224xbf16>
    %c4_236 = arith.constant 4 : index
    %c448_237 = arith.constant 448 : index
    %180 = vector.load %arg19[%c4_236, %c448_237] : memref<16x1568xbf16, #tpu.memory_space<vmem>>, vector<4x224xbf16>
    tpu.vector_store %arg19[%c4_236, %c448_237], %179 {strides = array<i32>} : memref<16x1568xbf16, #tpu.memory_space<vmem>>, vector<4x224xbf16>,
    %c2_238 = arith.constant 2 : index
    %c64_239 = arith.constant 64 : index
    %181 = vector.load %arg18[%c2_238, %c64_239] : memref<10x320xbf16, #tpu.memory_space<vmem>>, vector<4x224xbf16>
    %c8_240 = arith.constant 8 : index
    %c448_241 = arith.constant 448 : index
    %182 = vector.load %arg19[%c8_240, %c448_241] : memref<16x1568xbf16, #tpu.memory_space<vmem>>, vector<4x224xbf16>
    tpu.vector_store %arg19[%c8_240, %c448_241], %181 {strides = array<i32>} : memref<16x1568xbf16, #tpu.memory_space<vmem>>, vector<4x224xbf16>,
    %c2_242 = arith.constant 2 : index
    %c96_243 = arith.constant 96 : index
    %183 = vector.load %arg18[%c2_242, %c96_243] : memref<10x320xbf16, #tpu.memory_space<vmem>>, vector<4x224xbf16>
    %c12_244 = arith.constant 12 : index
    %c448_245 = arith.constant 448 : index
    %184 = vector.load %arg19[%c12_244, %c448_245] : memref<16x1568xbf16, #tpu.memory_space<vmem>>, vector<4x224xbf16>
    tpu.vector_store %arg19[%c12_244, %c448_245], %183 {strides = array<i32>} : memref<16x1568xbf16, #tpu.memory_space<vmem>>, vector<4x224xbf16>,
    %c3_246 = arith.constant 3 : index
    %c0_247 = arith.constant 0 : index
    %185 = vector.load %arg18[%c3_246, %c0_247] : memref<10x320xbf16, #tpu.memory_space<vmem>>, vector<4x224xbf16>
    %c0_248 = arith.constant 0 : index
    %c672 = arith.constant 672 : index
    %186 = vector.load %arg19[%c0_248, %c672] : memref<16x1568xbf16, #tpu.memory_space<vmem>>, vector<4x224xbf16>
    tpu.vector_store %arg19[%c0_248, %c672], %185 {strides = array<i32>} : memref<16x1568xbf16, #tpu.memory_space<vmem>>, vector<4x224xbf16>,
    %c3_249 = arith.constant 3 : index
    %c32_250 = arith.constant 32 : index
    %187 = vector.load %arg18[%c3_249, %c32_250] : memref<10x320xbf16, #tpu.memory_space<vmem>>, vector<4x224xbf16>
    %c4_251 = arith.constant 4 : index
    %c672_252 = arith.constant 672 : index
    %188 = vector.load %arg19[%c4_251, %c672_252] : memref<16x1568xbf16, #tpu.memory_space<vmem>>, vector<4x224xbf16>
    tpu.vector_store %arg19[%c4_251, %c672_252], %187 {strides = array<i32>} : memref<16x1568xbf16, #tpu.memory_space<vmem>>, vector<4x224xbf16>,
    %c3_253 = arith.constant 3 : index
    %c64_254 = arith.constant 64 : index
    %189 = vector.load %arg18[%c3_253, %c64_254] : memref<10x320xbf16, #tpu.memory_space<vmem>>, vector<4x224xbf16>
    %c8_255 = arith.constant 8 : index
    %c672_256 = arith.constant 672 : index
    %190 = vector.load %arg19[%c8_255, %c672_256] : memref<16x1568xbf16, #tpu.memory_space<vmem>>, vector<4x224xbf16>
    tpu.vector_store %arg19[%c8_255, %c672_256], %189 {strides = array<i32>} : memref<16x1568xbf16, #tpu.memory_space<vmem>>, vector<4x224xbf16>,
    %c3_257 = arith.constant 3 : index
    %c96_258 = arith.constant 96 : index
    %191 = vector.load %arg18[%c3_257, %c96_258] : memref<10x320xbf16, #tpu.memory_space<vmem>>, vector<4x224xbf16>
    %c12_259 = arith.constant 12 : index
    %c672_260 = arith.constant 672 : index
    %192 = vector.load %arg19[%c12_259, %c672_260] : memref<16x1568xbf16, #tpu.memory_space<vmem>>, vector<4x224xbf16>
    tpu.vector_store %arg19[%c12_259, %c672_260], %191 {strides = array<i32>} : memref<16x1568xbf16, #tpu.memory_space<vmem>>, vector<4x224xbf16>,
    %c4_261 = arith.constant 4 : index
    %c0_262 = arith.constant 0 : index
    %193 = vector.load %arg18[%c4_261, %c0_262] : memref<10x320xbf16, #tpu.memory_space<vmem>>, vector<4x224xbf16>
    %c0_263 = arith.constant 0 : index
    %c896_264 = arith.constant 896 : index
    %194 = vector.load %arg19[%c0_263, %c896_264] : memref<16x1568xbf16, #tpu.memory_space<vmem>>, vector<4x224xbf16>
    tpu.vector_store %arg19[%c0_263, %c896_264], %193 {strides = array<i32>} : memref<16x1568xbf16, #tpu.memory_space<vmem>>, vector<4x224xbf16>,
    %c4_265 = arith.constant 4 : index
    %c32_266 = arith.constant 32 : index
    %195 = vector.load %arg18[%c4_265, %c32_266] : memref<10x320xbf16, #tpu.memory_space<vmem>>, vector<4x224xbf16>
    %c4_267 = arith.constant 4 : index
    %c896_268 = arith.constant 896 : index
    %196 = vector.load %arg19[%c4_267, %c896_268] : memref<16x1568xbf16, #tpu.memory_space<vmem>>, vector<4x224xbf16>
    tpu.vector_store %arg19[%c4_267, %c896_268], %195 {strides = array<i32>} : memref<16x1568xbf16, #tpu.memory_space<vmem>>, vector<4x224xbf16>,
    %c4_269 = arith.constant 4 : index
    %c64_270 = arith.constant 64 : index
    %197 = vector.load %arg18[%c4_269, %c64_270] : memref<10x320xbf16, #tpu.memory_space<vmem>>, vector<4x224xbf16>
    %c8_271 = arith.constant 8 : index
    %c896_272 = arith.constant 896 : index
    %198 = vector.load %arg19[%c8_271, %c896_272] : memref<16x1568xbf16, #tpu.memory_space<vmem>>, vector<4x224xbf16>
    tpu.vector_store %arg19[%c8_271, %c896_272], %197 {strides = array<i32>} : memref<16x1568xbf16, #tpu.memory_space<vmem>>, vector<4x224xbf16>,
    %c4_273 = arith.constant 4 : index
    %c96_274 = arith.constant 96 : index
    %199 = vector.load %arg18[%c4_273, %c96_274] : memref<10x320xbf16, #tpu.memory_space<vmem>>, vector<4x224xbf16>
    %c12_275 = arith.constant 12 : index
    %c896_276 = arith.constant 896 : index
    %200 = vector.load %arg19[%c12_275, %c896_276] : memref<16x1568xbf16, #tpu.memory_space<vmem>>, vector<4x224xbf16>
    tpu.vector_store %arg19[%c12_275, %c896_276], %199 {strides = array<i32>} : memref<16x1568xbf16, #tpu.memory_space<vmem>>, vector<4x224xbf16>,
    %c5_277 = arith.constant 5 : index
    %c0_278 = arith.constant 0 : index
    %201 = vector.load %arg18[%c5_277, %c0_278] : memref<10x320xbf16, #tpu.memory_space<vmem>>, vector<4x224xbf16>
    %c0_279 = arith.constant 0 : index
    %c1120 = arith.constant 1120 : index
    %202 = vector.load %arg19[%c0_279, %c1120] : memref<16x1568xbf16, #tpu.memory_space<vmem>>, vector<4x224xbf16>
    tpu.vector_store %arg19[%c0_279, %c1120], %201 {strides = array<i32>} : memref<16x1568xbf16, #tpu.memory_space<vmem>>, vector<4x224xbf16>,
    %c5_280 = arith.constant 5 : index
    %c32_281 = arith.constant 32 : index
    %203 = vector.load %arg18[%c5_280, %c32_281] : memref<10x320xbf16, #tpu.memory_space<vmem>>, vector<4x224xbf16>
    %c4_282 = arith.constant 4 : index
    %c1120_283 = arith.constant 1120 : index
    %204 = vector.load %arg19[%c4_282, %c1120_283] : memref<16x1568xbf16, #tpu.memory_space<vmem>>, vector<4x224xbf16>
    tpu.vector_store %arg19[%c4_282, %c1120_283], %203 {strides = array<i32>} : memref<16x1568xbf16, #tpu.memory_space<vmem>>, vector<4x224xbf16>,
    %c5_284 = arith.constant 5 : index
    %c64_285 = arith.constant 64 : index
    %205 = vector.load %arg18[%c5_284, %c64_285] : memref<10x320xbf16, #tpu.memory_space<vmem>>, vector<4x224xbf16>
    %c8_286 = arith.constant 8 : index
    %c1120_287 = arith.constant 1120 : index
    %206 = vector.load %arg19[%c8_286, %c1120_287] : memref<16x1568xbf16, #tpu.memory_space<vmem>>, vector<4x224xbf16>
    tpu.vector_store %arg19[%c8_286, %c1120_287], %205 {strides = array<i32>} : memref<16x1568xbf16, #tpu.memory_space<vmem>>, vector<4x224xbf16>,
    %c5_288 = arith.constant 5 : index
    %c96_289 = arith.constant 96 : index
    %207 = vector.load %arg18[%c5_288, %c96_289] : memref<10x320xbf16, #tpu.memory_space<vmem>>, vector<4x224xbf16>
    %c12_290 = arith.constant 12 : index
    %c1120_291 = arith.constant 1120 : index
    %208 = vector.load %arg19[%c12_290, %c1120_291] : memref<16x1568xbf16, #tpu.memory_space<vmem>>, vector<4x224xbf16>
    tpu.vector_store %arg19[%c12_290, %c1120_291], %207 {strides = array<i32>} : memref<16x1568xbf16, #tpu.memory_space<vmem>>, vector<4x224xbf16>,
    %c6_292 = arith.constant 6 : index
    %c0_293 = arith.constant 0 : index
    %209 = vector.load %arg18[%c6_292, %c0_293] : memref<10x320xbf16, #tpu.memory_space<vmem>>, vector<4x224xbf16>
    %c0_294 = arith.constant 0 : index
    %c1344 = arith.constant 1344 : index
    %210 = vector.load %arg19[%c0_294, %c1344] : memref<16x1568xbf16, #tpu.memory_space<vmem>>, vector<4x224xbf16>
    tpu.vector_store %arg19[%c0_294, %c1344], %209 {strides = array<i32>} : memref<16x1568xbf16, #tpu.memory_space<vmem>>, vector<4x224xbf16>,
    %c6_295 = arith.constant 6 : index
    %c32_296 = arith.constant 32 : index
    %211 = vector.load %arg18[%c6_295, %c32_296] : memref<10x320xbf16, #tpu.memory_space<vmem>>, vector<4x224xbf16>
    %c4_297 = arith.constant 4 : index
    %c1344_298 = arith.constant 1344 : index
    %212 = vector.load %arg19[%c4_297, %c1344_298] : memref<16x1568xbf16, #tpu.memory_space<vmem>>, vector<4x224xbf16>
    tpu.vector_store %arg19[%c4_297, %c1344_298], %211 {strides = array<i32>} : memref<16x1568xbf16, #tpu.memory_space<vmem>>, vector<4x224xbf16>,
    %c6_299 = arith.constant 6 : index
    %c64_300 = arith.constant 64 : index
    %213 = vector.load %arg18[%c6_299, %c64_300] : memref<10x320xbf16, #tpu.memory_space<vmem>>, vector<4x224xbf16>
    %c8_301 = arith.constant 8 : index
    %c1344_302 = arith.constant 1344 : index
    %214 = vector.load %arg19[%c8_301, %c1344_302] : memref<16x1568xbf16, #tpu.memory_space<vmem>>, vector<4x224xbf16>
    tpu.vector_store %arg19[%c8_301, %c1344_302], %213 {strides = array<i32>} : memref<16x1568xbf16, #tpu.memory_space<vmem>>, vector<4x224xbf16>,
    %c6_303 = arith.constant 6 : index
    %c96_304 = arith.constant 96 : index
    %215 = vector.load %arg18[%c6_303, %c96_304] : memref<10x320xbf16, #tpu.memory_space<vmem>>, vector<4x224xbf16>
    %c12_305 = arith.constant 12 : index
    %c1344_306 = arith.constant 1344 : index
    %216 = vector.load %arg19[%c12_305, %c1344_306] : memref<16x1568xbf16, #tpu.memory_space<vmem>>, vector<4x224xbf16>
    tpu.vector_store %arg19[%c12_305, %c1344_306], %215 {strides = array<i32>} : memref<16x1568xbf16, #tpu.memory_space<vmem>>, vector<4x224xbf16>,
    %c0_307 = arith.constant 0 : index
    %c0_308 = arith.constant 0 : index
    %217 = vector.load %arg19[%c0_307, %c0_308] : memref<16x1568xbf16, #tpu.memory_space<vmem>>, vector<16x1568xbf16>
    %c0_309 = arith.constant 0 : index
    %c0_310 = arith.constant 0 : index
    %218 = vector.load %arg9[%c0_309, %c0_310] : memref<1568x128xbf16, #tpu.memory_space<vmem>>, vector<1568x128xbf16>
    %cst_311 = arith.constant dense<0.000000e+00> : vector<16x128xf32>
    %219 = tpu.matmul %217, %218, %cst_311 {dimension_numbers = #tpu.dot_dimension_numbers<[1], [0], [0], [1], [0, 0, 1, 1], [], []>} : vector<16x1568xbf16>, vector<1568x128xbf16>, vector<16x128xf32> -> vector<16x128xf32>
    %c0_312 = arith.constant 0 : index
    %c0_313 = arith.constant 0 : index
    %220 = vector.load %arg10[%c0_312, %c0_313] : memref<1x128xf32, #tpu.memory_space<vmem>>, vector<1x128xf32>
    %221 = vector.broadcast %220 : vector<1x128xf32> to vector<16x128xf32>
    %222 = arith.addf %219, %221 : vector<16x128xf32>
    %cst_314 = arith.constant 0.000000e+00 : f32
    %223 = vector.broadcast %cst_314 : f32 to vector<16x128xf32>
    %224 = arith.maximumf %222, %223 : vector<16x128xf32>
    %cst_315 = arith.constant dense<0.000000e+00> : vector<128xf32>
    %225 = vector.multi_reduction <add>, %224, %cst_315 [0] : vector<16x128xf32> to vector<128xf32>
    %226 = vector.shape_cast %225 : vector<128xf32> to vector<1x128xf32>
    %cst_316 = arith.constant 1.600000e+01 : f32
    %227 = vector.broadcast %cst_316 : f32 to vector<1x128xf32>
    %228 = arith.divf %226, %227 : vector<1x128xf32>
    %229 = arith.truncf %228 : vector<1x128xf32> to vector<1x128xbf16>
    %c0_317 = arith.constant 0 : index
    %c0_318 = arith.constant 0 : index
    %230 = vector.load %arg11[%c0_317, %c0_318] : memref<128x3xbf16, #tpu.memory_space<vmem>>, vector<128x3xbf16>
    %cst_319 = arith.constant dense<0.000000e+00> : vector<1x3xf32>
    %231 = tpu.matmul %229, %230, %cst_319 {dimension_numbers = #tpu.dot_dimension_numbers<[1], [0], [0], [1], [0, 0, 1, 1], [], []>} : vector<1x128xbf16>, vector<128x3xbf16>, vector<1x3xf32> -> vector<1x3xf32>
    %c0_320 = arith.constant 0 : index
    %c0_321 = arith.constant 0 : index
    %232 = vector.load %arg12[%c0_320, %c0_321] : memref<1x3xf32, #tpu.memory_space<vmem>>, vector<1x3xf32>
    %233 = arith.addf %231, %232 : vector<1x3xf32>
    %c0_322 = arith.constant 0 : index
    %c0_323 = arith.constant 0 : index
    %c0_324 = arith.constant 0 : index
    %234 = vector.load %arg13[%c0_322, %c0_323, %c0_324] : memref<1x1x3xf32, #tpu.memory_space<vmem>>, vector<1x1x3xf32>
    %235 = vector.shape_cast %234 : vector<1x1x3xf32> to vector<1x3xf32>
    %236 = vector.shape_cast %233 : vector<1x3xf32> to vector<1x1x3xf32>
    tpu.vector_store %arg13[%c0_322, %c0_323, %c0_324], %236 {strides = array<i32>} : memref<1x1x3xf32, #tpu.memory_space<vmem>>, vector<1x1x3xf32>,
    return
  }
  func.func @transform_0(%arg0: i32) -> (i32, i32, i32, i32, i32) {
    %c0_i32 = arith.constant 0 : i32
    %c0_i32_0 = arith.constant 0 : i32
    %c0_i32_1 = arith.constant 0 : i32
    %c0_i32_2 = arith.constant 0 : i32
    %c0_i32_3 = arith.constant 0 : i32
    return %arg0, %c0_i32, %c0_i32_0, %c0_i32_1, %c0_i32_2 : i32, i32, i32, i32, i32
  }
  func.func @transform_1(%arg0: i32) -> (i32, i32, i32) {
    %c0_i32 = arith.constant 0 : i32
    %c0_i32_0 = arith.constant 0 : i32
    %c0_i32_1 = arith.constant 0 : i32
    %c0_i32_2 = arith.constant 0 : i32
    return %c0_i32, %c0_i32_0, %c0_i32_1 : i32, i32, i32
  }
  func.func @transform_2(%arg0: i32) -> (i32, i32) {
    %c0_i32 = arith.constant 0 : i32
    %c0_i32_0 = arith.constant 0 : i32
    %c0_i32_1 = arith.constant 0 : i32
    return %c0_i32, %c0_i32_0 : i32, i32
  }
  func.func @transform_3(%arg0: i32) -> (i32, i32) {
    %c0_i32 = arith.constant 0 : i32
    %c0_i32_0 = arith.constant 0 : i32
    %c0_i32_1 = arith.constant 0 : i32
    return %c0_i32, %c0_i32_0 : i32, i32
  }
  func.func @transform_4(%arg0: i32) -> (i32, i32) {
    %c0_i32 = arith.constant 0 : i32
    %c0_i32_0 = arith.constant 0 : i32
    %c0_i32_1 = arith.constant 0 : i32
    return %c0_i32, %c0_i32_0 : i32, i32
  }
  func.func @transform_5(%arg0: i32) -> (i32, i32) {
    %c0_i32 = arith.constant 0 : i32
    %c0_i32_0 = arith.constant 0 : i32
    %c0_i32_1 = arith.constant 0 : i32
    return %c0_i32, %c0_i32_0 : i32, i32
  }
  func.func @transform_6(%arg0: i32) -> (i32, i32) {
    %c0_i32 = arith.constant 0 : i32
    %c0_i32_0 = arith.constant 0 : i32
    %c0_i32_1 = arith.constant 0 : i32
    return %c0_i32, %c0_i32_0 : i32, i32
  }
  func.func @transform_7(%arg0: i32) -> (i32, i32) {
    %c0_i32 = arith.constant 0 : i32
    %c0_i32_0 = arith.constant 0 : i32
    %c0_i32_1 = arith.constant 0 : i32
    return %c0_i32, %c0_i32_0 : i32, i32
  }
  func.func @transform_8(%arg0: i32) -> (i32, i32) {
    %c0_i32 = arith.constant 0 : i32
    %c0_i32_0 = arith.constant 0 : i32
    %c0_i32_1 = arith.constant 0 : i32
    return %c0_i32, %c0_i32_0 : i32, i32
  }
  func.func @transform_9(%arg0: i32) -> (i32, i32) {
    %c0_i32 = arith.constant 0 : i32
    %c0_i32_0 = arith.constant 0 : i32
    %c0_i32_1 = arith.constant 0 : i32
    return %c0_i32, %c0_i32_0 : i32, i32
  }
  func.func @transform_10(%arg0: i32) -> (i32, i32) {
    %c0_i32 = arith.constant 0 : i32
    %c0_i32_0 = arith.constant 0 : i32
    %c0_i32_1 = arith.constant 0 : i32
    return %c0_i32, %c0_i32_0 : i32, i32
  }
  func.func @transform_11(%arg0: i32) -> (i32, i32) {
    %c0_i32 = arith.constant 0 : i32
    %c0_i32_0 = arith.constant 0 : i32
    %c0_i32_1 = arith.constant 0 : i32
    return %c0_i32, %c0_i32_0 : i32, i32
  }
  func.func @transform_12(%arg0: i32) -> (i32, i32, i32) {
    %c0_i32 = arith.constant 0 : i32
    %c0_i32_0 = arith.constant 0 : i32
    %c0_i32_1 = arith.constant 0 : i32
    return %arg0, %c0_i32, %c0_i32_0 : i32, i32, i32
  }
}

</mosaic_0001>

<bundles_post_ra>
// kernel: auxiliarynet_forward.1
= control target key start
LH: loop header
LB: loop body
LE: loop exit
PB: predicated region body
PF: predicated region fallthrough
CT: control target
= control target key end

     0   :  { %s16121_s0 = inlined_call_operand.vmem [shape: bf16[2,4,8,8,64], index: 0, kind: input, shape index: {}]   ;;  %s16122_s1 = inlined_call_operand.vmem [shape: bf16[9,16,49], index: 1, kind: input, shape index: {}]   ;;  %s16123_s2 = inlined_call_operand.vmem [shape: bf16[576,128], index: 2, kind: input, shape index: {}]   ;;  %s16124_s3 = inlined_call_operand.vmem [shape: f32[1,128], index: 3, kind: input, shape index: {}]   ;;  %s16125_s4 = inlined_call_operand.vmem [shape: bf16[1152,128], index: 4, kind: input, shape index: {}]   ;;  %s16126_s5 = inlined_call_operand.vmem [shape: f32[1,128], index: 5, kind: input, shape index: {}]   ;;  %s16127_s6 = inlined_call_operand.vmem [shape: bf16[1152,32], index: 6, kind: input, shape index: {}]   ;;  %s16128_s7 = inlined_call_operand.vmem [shape: f32[1,32], index: 7, kind: input, shape index: {}]   ;;  %s16129_s8 = inlined_call_operand.vmem [shape: bf16[1568,128], index: 8, kind: input, shape index: {}]   ;;  %s16130_s9 = inlined_call_operand.vmem [shape: f32[1,128], index: 9, kind: input, shape index: {}]   ;;  %s16131_s10 = inlined_call_operand.vmem [shape: bf16[128,3], index: 10, kind: input, shape index: {}]   ;;  %s16132_s11 = inlined_call_operand.vmem [shape: f32[1,3], index: 11, kind: input, shape index: {}]   ;;  %s16133_s12 = inlined_call_operand.hbm [shape: f32[2,1,3], index: 12, kind: output, shape index: {}]  }
   0x1   :  { %16146 = sst [smem:[#allocation13_spill]] %s16121_s0 }
   0x2   :  { %16147 = sst [smem:[#allocation14_spill]] %s16122_s1 }
   0x3   :  { %16148 = sst [smem:[#allocation15_spill]] %s16123_s2 }
   0x4   :  { %17 = vsyncpa [#allocation9], 0 }
   0x5   :  { %19 = vsyncpa [#allocation9 + $0x1], 0  ;;  %s12356_s21 = smov 0   ;;  %s12358_s22 = smov 0  }
   0x6   :  { %s12360_s23 = smov 0   ;;  %s12362_s24 = smov 0  }
   0x7 LB: > { %s12377_s25 = sadd.s32 4294967295, %s12284_s24   ;;  %s10060_s26 = sadd.s32 4294967294, %s12284_s24   ;;  %s12284_s24 = sphi %s12362_s24, %s16235_s24   ;;  %s12280_s23 = sphi %s12360_s23, %s16234_s23   ;;  %s12276_s22 = sphi %s12358_s22, %s16233_s22   ;;  %s12272_s21 = sphi %s12356_s21, %s16232_s21  }
   0x8   : > { %s12381_s27 = sadd.s32 1, %s12284_s24   ;;  %s289_s28 = sadd.s32 1, %s12280_s23 }
   0x9   : > { %s286_s29 = ssub.s32 %s12284_s24, %s12381_s27  ;;  %p299_p0 = scmp.ne.s32.totalorder %s12280_s23, %s12276_s22 }
   0xa   : > { %p287_p1 = scmp.eq.s32.totalorder %s286_s29, 0  ;;  %p300_p2 = scmp.eq.s32.totalorder %s12377_s25, 1 }
   0xb   : > { %p305_p3 = scmp.ne.s32.totalorder %s12276_s22, %s12272_s21  ;;  %p306_p4 = scmp.eq.s32.totalorder %s10060_s26, 1 }
   0xc   : > { %s12392_s30 = scalar_select %p287_p1, %s12280_s23, %s289_s28  }
   0xd   : > { %p12394_p5 = por %p300_p2, %p299_p0  ;;  %p12398_p6 = por %p306_p4, %p305_p3 }
   0xe   : > { %p10063_p7 = scmp.ge.s32.totalorder %s12284_s24, 1  ;;  %p365_p8 = scmp.lt.s32.totalorder %s12284_s24, 3 }
  0x10   : > { %p366_p9 = pnand %p10063_p7, %p365_p8 }
  0x12   : > { %369 = sbr.rel (%p366_p9) target bundleno = 2411 (0x96b), region = 68 }
  0x17   : > { %p406_p10 = scmp.lt.s32.totalorder %s12377_s25, 1  ;;  %s16151_s0 = sld [smem:[#allocation13_spill]]  ;;  %vm493_vm0 = vcmask 1043459   ;;  %vm549_vm1 = vcmask 1041409   ;;  %vm553_vm2 = vcmask 1042434   ;;  %vm413_vm3 = vcmask 1040384  }
  0x18   : > { %s16135_s20 = smov 64   ;;  %s16155_s2 = sld [smem:[#allocation15_spill]]  ;;  %vm784_vm4 = vcmask 519168   ;;  %vm1075_vm5 = vcmask 1043968   ;;  %vm414_vm6 = vsmask.f32 256 }
  0x19   : > { %s407_s15 = scalar_select %p406_p10, %s12377_s25, 1  ;;  %vm13620_vm7 = vmand %vm413_vm3, %vm414_vm6  ;;  %vm519_vm8 = vcmask 1041152   ;;  %vm520_vm9 = vcmask 520196   ;;  %vm513_vm10 = vcmask 778240   ;;  %vm509_vm11 = vcmask 516096  }
  0x1a   : > { %vm521_vm12 = vmor %vm520_vm9, %vm519_vm8  ;;  %vm1082_vm14 = vcmask 1040896   ;;  %s16166_s1 = sld [smem:[#allocation14_spill]]  ;;  %vm16140_vm9 = vcmask 1045508   ;;  %s404_s18 = sand.u32 1, %s12276_s22  }
  0x1b   : > { %s11811_s16 = sshll.u32 %s407_s15, 7  ;;  %vm13675_vm13 = vmand %vm509_vm11, %vm414_vm6  ;;  %s405_s15 = scalar_lea.vmem [#allocation8], %s404_s18 }
  0x1c   : > { %vm13779_vm15 = vmand %vm1082_vm14, %vm414_vm6  ;;  %vm16137_vm6 = vcmask 523264   ;;  %vm494_vm14 = vsmask.f32 7950  ;;  %s9993_s17 = scalar_lea.sflag [#allocation9], %s404_s18  ;;  %s12242_s28 = scalar_lea.hbm %s16133_s12, 2 }
  0x1d   : > { %s12409_s19 = scalar_lea.vmem %s16151_s0, %s11811_s16  ;;  %s12288_s0 = smov 96  }
  0x1e   : > { %v523_v0 = vld [vmem:[%s12409_s19] sm:$0xf]  ;;  %v12413_v1 = vld [vmem:[%s12409_s19 + $0x4] sm:$0xf]  ;;  %v525_v8 = vld [vmem:[%s12409_s19 + $0x8] sm:$0xf] }
  0x1f   : > { %v537_v2 = vrot.slane %v523_v0, 3  ;;  %v538_v3 = vrot.slane %v12413_v1, 3  ;;  %v12422_v11 = vld [vmem:[%s12409_s19 + $0xc] sm:$0xf]  ;;  %v539_v13 = vrot.slane %v525_v8, 3  ;;  %s10003_s16 = sshll.u32 %s405_s15, 4  ;;  %s10004_s16 = int_to_ptr.vmem [resolvable:$true] %s10003_s16 }
  0x20   : > { %v12429_v15 = vrot.slane %v12422_v11, 3  ;;  %v12434_v18 = vld [vmem:[%s12409_s19 + $0x14] sm:$0xf]  ;;  %v12446_v22 = vld [vmem:[%s12409_s19 + $0x10] sm:$0xf] }
  0x21   : > { %v547_v4 = vsel %vm413_vm3, %v523_v0, %v537_v2  ;;  %v550_v5 = vsel %vm549_vm1, %v523_v0, %v537_v2  ;;  %v554_v6 = vsel %vm553_vm2, %v523_v0, %v537_v2  ;;  %v558_v7 = vsel %vm493_vm0, %v523_v0, %v537_v2  ;;  %v12473_v39 = vld [vmem:[%s12409_s19 + $0x18] sm:$0xf]  ;;  %v10078_v0 = vld [vmem:[%s12409_s19 + $0x20] sm:$0xf] }
  0x22   : > { %v552_v9 = vrot.slane %v550_v5, 1  ;;  %v556_v10 = vrot.slane %v554_v6, 2  ;;  %714 = vst [vmem:[#allocation1] ss:$4 sm:$0xff] %v547_v4  ;;  %v560_v12 = vrot.slane %v558_v7, 3  ;;  %v12426_v14 = vsel %vm413_vm3, %v12413_v1, %v538_v3 }
  0x23   : > { %v584_v17 = vsel %vm493_vm0, %v525_v8, %v539_v13  ;;  %v589_v19 = vsel %vm413_vm3, %v12422_v11, %v12429_v15  ;;  %v12442_v20 = vsel %vm549_vm1, %v12422_v11, %v12429_v15  ;;  %v578_v21 = vsel %vm549_vm1, %v525_v8, %v539_v13 }
  0x24   : > { %717 = vst [vmem:[#allocation1 + $0x1] ss:$4 sm:$0xff] %v552_v9  ;;  %v10066_v16 = vpack.i.b16 %v12426_v14, %v560_v12  ;;  %v581_v23 = vsel %vm553_vm2, %v525_v8, %v539_v13  ;;  %v586_v24 = vrot.slane %v584_v17, 3  ;;  %v12450_v25 = vrot.slane %v12434_v18, 3 }
  0x25   : > { %720 = vst [vmem:[#allocation1 + $0x2] ss:$4 sm:$0xff] %v556_v10  ;;  %v593_v26 = vrot.slane %v12442_v20, 1  ;;  %v661_v27 = vunpack.i.h.s16 %v589_v19  ;;  %v580_v28 = vrot.slane %v578_v21, 1  ;;  %v12454_v29 = vrot.slane %v12446_v22, 3 }
  0x26   : > { %723 = vst [vmem:[#allocation1 + $0x3] ss:$4 sm:$0xff] %v10066_v16  ;;  %v583_v30 = vrot.slane %v581_v23, 2  ;;  %v10070_v31 = vpack.i.b16 %v589_v19, %v586_v24  ;;  %v617_v32 = vsel %vm549_vm1, %v12434_v18, %v12450_v25  ;;  %v615_v36 = vsel %vm413_vm3, %v12434_v18, %v12450_v25 }
  0x27   : > { %v10071_v33 = vpack.i.b16 %v593_v26, %v661_v27  ;;  %v610_v35 = vsel %vm493_vm0, %v12446_v22, %v12454_v29  ;;  %v619_v37 = vrot.slane %v617_v32, 1  ;;  %v12470_v38 = vsel %vm553_vm2, %v12434_v18, %v12450_v25 }
  0x28   : > { %v607_v40 = vsel %vm553_vm2, %v12446_v22, %v12454_v29  ;;  %v612_v41 = vrot.slane %v610_v35, 3  ;;  %v675_v42 = vunpack.i.h.s16 %v615_v36  ;;  %v622_v43 = vrot.slane %v12470_v38, 2  ;;  %v12536_v35 = vld [vmem:[%s12409_s19 + $0x2c] sm:$0xf] }
  0x29   : > { %v677_v44 = vunpack.i.h.s16 %v619_v37  ;;  %v12480_v45 = vrot.slane %v12473_v39, 3  ;;  %v609_v46 = vrot.slane %v607_v40, 2  ;;  %v565_v49 = vsel %vm549_vm1, %v12413_v1, %v538_v3 }
  0x2a   : > { %v10074_v47 = vpack.i.b16 %v615_v36, %v612_v41  ;;  %v10075_v48 = vpack.i.b16 %v619_v37, %v675_v42  ;;  %v568_v50 = vsel %vm553_vm2, %v12413_v1, %v538_v3  ;;  %v571_v51 = vsel %vm493_vm0, %v12413_v1, %v538_v3 }
  0x2b   : > { %v576_v52 = vsel %vm413_vm3, %v525_v8, %v539_v13  ;;  %v10076_v53 = vpack.i.b16 %v622_v43, %v677_v44  ;;  %v567_v55 = vrot.slane %v565_v49, 1  ;;  %v570_v56 = vrot.slane %v568_v50, 2  ;;  %v12505_v8 = vld [vmem:[%s12409_s19 + $0x24] sm:$0xf] }
  0x2c   : > { %735 = vst [vmem:[#allocation1 + $0x23] ss:$4 sm:$0xff] %v576_v52  ;;  %v636_v57 = vsel %vm493_vm0, %v12473_v39, %v12480_v45  ;;  %v573_v58 = vrot.slane %v571_v51, 3  ;;  %v594_v59 = vsel %vm553_vm2, %v12422_v11, %v12429_v15  ;;  %v647_v60 = vunpack.i.h.s16 %v12426_v14 }
  0x2d   : > { %v12459_v34 = vld [vmem:[#allocation1] sm:$0xff]  ;;  %v638_v61 = vrot.slane %v636_v57, 3  ;;  %v649_v62 = vunpack.i.h.s16 %v567_v55  ;;  %v651_v63 = vunpack.i.h.s16 %v570_v56  ;;  %v596_v2 = vrot.slane %v594_v59, 2  ;;  %v12586_v59 = vld [vmem:[%s12409_s19 + $0x30] sm:$0xf] }
  0x2e   : > { %739 = vst [vmem:[#allocation1] ss:$4 sm:$0xff] %v580_v28  ;;  %v10067_v1 = vpack.i.b16 %v567_v55, %v647_v60  ;;  %v597_v5 = vsel %vm493_vm0, %v12422_v11, %v12429_v15  ;;  %v811_v7 = vrot.slane %v10078_v0, 3  ;;  %v663_v9 = vunpack.i.h.s16 %v593_v26 }
  0x2f   : > { %741 = vst [vmem:[#allocation1 + $0x1] ss:$4 sm:$0xff] %v583_v30  ;;  %v10068_v3 = vpack.i.b16 %v570_v56, %v649_v62  ;;  %v10069_v4 = vpack.i.b16 %v573_v58, %v651_v63  ;;  %v687_v6 = vunpack.i.l.s16 %v638_v61  ;;  %v599_v10 = vrot.slane %v597_v5, 3 }
  0x30   : > { %743 = vst [vmem:[#allocation1 + $0x2] ss:$4 sm:$0xff] %v10070_v31  ;;  %v665_v12 = vunpack.i.h.s16 %v596_v2  ;;  %v12510_v14 = vrot.slane %v12505_v8, 3  ;;  %v828_v16 = vsel %vm493_vm0, %v10078_v0, %v811_v7  ;;  %v10072_v11 = vpack.i.b16 %v596_v2, %v663_v9  ;;  %v12530_v31 = vld [vmem:[%s12409_s19 + $0x28] sm:$0xf] }
  0x31   : > { %745 = vst [vmem:[#allocation1 + $0x3] ss:$4 sm:$0xff] %v10071_v33  ;;  %v822_v15 = vsel %vm549_vm1, %v10078_v0, %v811_v7  ;;  %v825_v19 = vsel %vm553_vm2, %v10078_v0, %v811_v7  ;;  %v830_v20 = vrot.slane %v828_v16, 3  ;;  %v602_v23 = vsel %vm413_vm3, %v12446_v22, %v12454_v29 }
  0x32   : > { %726 = vst [vmem:[#allocation1 + $0x20] ss:$4 sm:$0xff] %v10067_v1  ;;  %v10073_v17 = vpack.i.b16 %v599_v10, %v665_v12  ;;  %v12518_v21 = vsel %vm413_vm3, %v12505_v8, %v12510_v14  ;;  %v820_v26 = vsel %vm413_vm3, %v10078_v0, %v811_v7  ;;  %v824_v27 = vrot.slane %v822_v15, 1  ;;  %v12613_v15 = vld [vmem:[%s12409_s19 + $0x38] sm:$0xf] }
  0x33   : > { %729 = vst [vmem:[#allocation1 + $0x21] ss:$4 sm:$0xff] %v10068_v3  ;;  %v604_v28 = vsel %vm549_vm1, %v12446_v22, %v12454_v29  ;;  %v827_v30 = vrot.slane %v825_v19, 2  ;;  %v10085_v33 = vpack.i.b16 %v12518_v21, %v830_v20  ;;  %v623_v37 = vsel %vm493_vm0, %v12434_v18, %v12450_v25 }
  0x34   : > { %732 = vst [vmem:[#allocation1 + $0x22] ss:$4 sm:$0xff] %v10069_v4  ;;  %v606_v36 = vrot.slane %v604_v28, 1  ;;  %v12542_v22 = vrot.slane %v12530_v31, 3  ;;  %v12545_v29 = vrot.slane %v12536_v35, 3  ;;  %v625_v40 = vrot.slane %v623_v37, 3 }
  0x35   : > { %v679_v41 = vunpack.i.h.s16 %v622_v43  ;;  %v630_v38 = vsel %vm549_vm1, %v12473_v39, %v12480_v45  ;;  %v835_v49 = vsel %vm549_vm1, %v12505_v8, %v12510_v14  ;;  %v628_v55 = vsel %vm413_vm3, %v12473_v39, %v12480_v45  ;;  %785 = vst.msk [vmem:[#allocation2] sm:$0xf] %vm784_vm4, %v12459_v34 }
  0x36   : > { %v848_v42 = vsel %vm549_vm1, %v12530_v31, %v12542_v22  ;;  %v854_v18 = vsel %vm493_vm0, %v12530_v31, %v12542_v22  ;;  %v12558_v25 = vsel %vm549_vm1, %v12536_v35, %v12545_v29  ;;  %v859_v44 = vsel %vm413_vm3, %v12536_v35, %v12545_v29 }
  0x37   : > { %v850_v43 = vrot.slane %v848_v42, 1  ;;  %v851_v50 = vsel %vm553_vm2, %v12530_v31, %v12542_v22  ;;  %v856_v51 = vrot.slane %v854_v18, 3  ;;  %v863_v52 = vrot.slane %v12558_v25, 1  ;;  %v1087_v25 = vld [vmem:[%s12409_s19] sm:$0xf] }
  0x38   : > { %v12491_v54 = vld [vmem:[#allocation1] sm:$0xff]  ;;  %v632_v56 = vrot.slane %v630_v38, 1  ;;  %v838_v57 = vsel %vm553_vm2, %v12505_v8, %v12510_v14  ;;  %v931_v58 = vunpack.i.h.s16 %v859_v44  ;;  %v815_v1 = vrot.slane %v12586_v59, 3 }
  0x39   : > { %757 = vst [vmem:[#allocation1] ss:$4 sm:$0xff] %v609_v46  ;;  %v633_v46 = vsel %vm553_vm2, %v12473_v39, %v12480_v45  ;;  %v837_v39 = vrot.slane %v835_v49, 1  ;;  %v853_v45 = vrot.slane %v851_v50, 2  ;;  %v840_v63 = vrot.slane %v838_v57, 2 }
  0x3a   : > { %759 = vst [vmem:[#allocation1 + $0x1] ss:$4 sm:$0xff] %v10074_v47  ;;  %v10077_v47 = vpack.i.b16 %v625_v40, %v679_v41  ;;  %v635_v60 = vrot.slane %v633_v46, 2  ;;  %v10089_v0 = vpack.i.b16 %v859_v44, %v856_v51  ;;  %v841_v2 = vsel %vm493_vm0, %v12505_v8, %v12510_v14  ;;  %v12642_v50 = vld [vmem:[%s12409_s19 + $0x4] sm:$0xf] }
  0x3b   : > { %761 = vst [vmem:[#allocation1 + $0x2] ss:$4 sm:$0xff] %v10075_v48  ;;  %v12523_v24 = vld [vmem:[#allocation1 + $0x20] sm:$0xff]  ;;  %v12570_v48 = vld [vmem:[%s12409_s19 + $0x34] sm:$0xf]  ;;  %v10090_v3 = vpack.i.b16 %v863_v52, %v931_v58  ;;  %v917_v4 = vunpack.i.h.s16 %v12518_v21  ;;  %v843_v7 = vrot.slane %v841_v2, 3  ;;  %v921_v9 = vunpack.i.h.s16 %v840_v63 }
  0x3c   : > { %763 = vst [vmem:[#allocation1 + $0x3] ss:$4 sm:$0xff] %v10076_v53  ;;  %v12592_v62 = vrot.slane %v12570_v48, 3  ;;  %v880_v10 = vsel %vm493_vm0, %v12586_v59, %v815_v1  ;;  %v877_v19 = vsel %vm553_vm2, %v12586_v59, %v815_v1  ;;  %v867_v40 = vsel %vm493_vm0, %v12536_v35, %v12545_v29 }
  0x3d   : > { %747 = vst [vmem:[#allocation1 + $0x20] ss:$4 sm:$0xff] %v10072_v11  ;;  %v10086_v14 = vpack.i.b16 %v837_v39, %v917_v4  ;;  %v882_v20 = vrot.slane %v880_v10, 3  ;;  %v10088_v21 = vpack.i.b16 %v843_v7, %v921_v9  ;;  %v879_v37 = vrot.slane %v877_v19, 2  ;;  %v12665_v7 = vld [vmem:[%s12409_s19 + $0xc] sm:$0xf] }
  0x3e   : > { %749 = vst [vmem:[#allocation1 + $0x21] ss:$4 sm:$0xff] %v10073_v17  ;;  %v887_v5 = vsel %vm549_vm1, %v12570_v48, %v12592_v62  ;;  %v885_v8 = vsel %vm413_vm3, %v12570_v48, %v12592_v62  ;;  %v12610_v16 = vsel %vm553_vm2, %v12570_v48, %v12592_v62  ;;  %v864_v17 = vsel %vm553_vm2, %v12536_v35, %v12545_v29 }
  0x3f   : > { %751 = vst [vmem:[#allocation1 + $0x22] ss:$4 sm:$0xff] %v602_v23  ;;  %v889_v12 = vrot.slane %v887_v5, 1  ;;  %v945_v23 = vunpack.i.h.s16 %v885_v8  ;;  %v10093_v41 = vpack.i.b16 %v885_v8, %v882_v20  ;;  %v869_v38 = vrot.slane %v867_v40, 3 }
  0x40   : > { %753 = vst [vmem:[#allocation1 + $0x23] ss:$4 sm:$0xff] %v606_v36  ;;  %v866_v36 = vrot.slane %v864_v17, 2  ;;  %v1101_v35 = vrot.slane %v1087_v25, 3  ;;  %v874_v29 = vsel %vm549_vm1, %v12586_v59, %v815_v1  ;;  %v12650_v58 = vrot.slane %v12642_v50, 3 }
  0x41   : > { %v947_v28 = vunpack.i.h.s16 %v889_v12  ;;  %v10094_v18 = vpack.i.b16 %v889_v12, %v945_v23  ;;  %v12676_v19 = vrot.slane %v12665_v7, 3  ;;  %786 = vst.msk [vmem:[#allocation2 + $0x14] sm:$0xf] %vm784_vm4, %v12523_v24 }
  0x42   : > { %v935_v44 = vunpack.i.h.s16 %v866_v36  ;;  %v1112_v51 = vsel %vm549_vm1, %v1087_v25, %v1101_v35  ;;  %787 = vst.msk [vmem:[#allocation2 + $0x28] sm:$0xf] %vm784_vm4, %v12491_v54  ;;  %v11829_v54 = vld [vmem:[%s16155_s2 + $0x10] sm:$0xff] }
  0x43   : > { %v12507_v13 = vld [vmem:[#allocation1] sm:$0xff] }
  0x44   : > { %775 = vst [vmem:[#allocation1] ss:$4 sm:$0xff] %v687_v6  ;;  %v919_v6 = vunpack.i.h.s16 %v837_v39  ;;  %v10092_v49 = vpack.i.b16 %v869_v38, %v935_v44  ;;  %v12654_v39 = vld [vmem:[%s12409_s19 + $0x8] sm:$0xf] }
  0x45   : > { %v12659_v2 = vrot.slane %v12654_v39, 3  ;;  %789 = vst.msk [vmem:[#allocation2 + $0x50] sm:$0xf] %vm784_vm4, %v12507_v13  ;;  %v10191_v13 = vld [vmem:[%s12409_s19 + $0x3c] sm:$0xf] }
  0x46   : > { %v10087_v11 = vpack.i.b16 %v840_v63, %v919_v6  ;;  %v1114_v63 = vrot.slane %v1112_v51, 1 }
  0x47   : > { %v12589_v61 = vld [vmem:[#allocation1 + $0x20] sm:$0xff]  ;;  %v12670_v8 = vsel %vm549_vm1, %v12654_v39, %v12659_v2  ;;  %v1144_v20 = vsel %vm493_vm0, %v12654_v39, %v12659_v2 }
  0x48   : > { %765 = vst [vmem:[#allocation1 + $0x20] ss:$4 sm:$0xff] %v10077_v47  ;;  %v1201_v5 = vunpack.i.h.s16 %v1114_v63  ;;  %v1146_v40 = vrot.slane %v1144_v20, 3  ;;  %v12744_v20 = vld [vmem:[%s12409_s19 + $0x44] sm:$0xf] }
  0x49   : > { %767 = vst [vmem:[#allocation1 + $0x21] ss:$4 sm:$0xff] %v628_v55  ;;  %v876_v55 = vrot.slane %v874_v29, 1 }
  0x4a   : > { %769 = vst [vmem:[#allocation1 + $0x22] ss:$4 sm:$0xff] %v632_v56  ;;  %v1115_v56 = vsel %vm553_vm2, %v1087_v25, %v1101_v35 }
  0x4b   : > { %v12532_v32 = vld [vmem:[#allocation1] sm:$0xff]  ;;  %771 = vst [vmem:[#allocation1 + $0x23] ss:$4 sm:$0xff] %v635_v60  ;;  %v1118_v60 = vsel %vm493_vm0, %v1087_v25, %v1101_v35 }
  0x4c   : > { %984 = vst [vmem:[#allocation1] ss:$4 sm:$0xff] %v820_v26 }
  0x4d   : > { %987 = vst [vmem:[#allocation1 + $0x1] ss:$4 sm:$0xff] %v824_v27  ;;  %v892_v27 = vrot.slane %v12610_v16, 2 }
  0x4e   : > { %990 = vst [vmem:[#allocation1 + $0x2] ss:$4 sm:$0xff] %v827_v30  ;;  %v846_v30 = vsel %vm413_vm3, %v12530_v31, %v12542_v22  ;;  %v933_v31 = vunpack.i.h.s16 %v863_v52 }
  0x4f   : > { %993 = vst [vmem:[#allocation1 + $0x3] ss:$4 sm:$0xff] %v10085_v33  ;;  %v12627_v33 = vrot.slane %v12613_v15, 3  ;;  %v10095_v22 = vpack.i.b16 %v892_v27, %v947_v28  ;;  %v1140_v28 = vrot.slane %v12670_v8, 1 }
  0x50   : > { %v10091_v47 = vpack.i.b16 %v866_v36, %v933_v31  ;;  %v12685_v36 = vld [vmem:[%s12409_s19 + $0x10] sm:$0xf]  ;;  %v12696_v31 = vld [vmem:[%s12409_s19 + $0x14] sm:$0xf]  ;;  %788 = vst.msk [vmem:[#allocation2 + $0x3c] sm:$0xf] %vm784_vm4, %v12589_v61 }
  0x51   : > { %v12707_v29 = vrot.slane %v12696_v31, 3  ;;  %v900_v16 = vsel %vm549_vm1, %v12613_v15, %v12627_v33  ;;  %v11828_v61 = vld [vmem:[%s16155_s2 + $0x8] sm:$0xff] }
  0x52   : > { %v12620_v26 = vld [vmem:[#allocation1 + $0x20] sm:$0xff] }
  0x53   : > { %996 = vst [vmem:[#allocation1 + $0x20] ss:$4 sm:$0xff] %v10086_v14  ;;  %v1141_v14 = vsel %vm553_vm2, %v12654_v39, %v12659_v2 }
  0x54   : > { %999 = vst [vmem:[#allocation1 + $0x21] ss:$4 sm:$0xff] %v10087_v11 }
  0x55   : > { %1002 = vst [vmem:[#allocation1 + $0x22] ss:$4 sm:$0xff] %v10088_v21 }
  0x56   : > { %v1006_v53 = vld [vmem:[#allocation1] sm:$0xff]  ;;  %1005 = vst [vmem:[#allocation1 + $0x23] ss:$4 sm:$0xff] %v846_v30 }
  0x57   : > { %1054 = vrot.lane.b32.xlu0 %v1006_v53, %s16135_s20  ;;  %1011 = vst [vmem:[#allocation1] ss:$4 sm:$0xff] %v850_v43  ;;  %v906_v43 = vsel %vm493_vm0, %v12613_v15, %v12627_v33  ;;  %v872_v53 = vsel %vm413_vm3, %v12586_v59, %v815_v1  ;;  %v1117_v59 = vrot.slane %v1115_v56, 2  ;;  %v1120_v1 = vrot.slane %v1118_v60, 3  ;;  %v12721_v60 = vld [vmem:[%s12409_s19 + $0x18] sm:$0xf] }
  0x58   : > { %1013 = vst [vmem:[#allocation1 + $0x1] ss:$4 sm:$0xff] %v853_v45  ;;  %v908_v46 = vrot.slane %v906_v43, 3  ;;  %v1110_v45 = vsel %vm413_vm3, %v1087_v25, %v1101_v35  ;;  %v1151_v43 = vsel %vm549_vm1, %v12665_v7, %v12676_v19  ;;  %v1175_v56 = vsel %vm413_vm3, %v12696_v31, %v12707_v29 }
  0x59   : > { %1015 = vst [vmem:[#allocation1 + $0x2] ss:$4 sm:$0xff] %v10089_v0  ;;  %v1199_v4 = vunpack.i.h.s16 %v1110_v45  ;;  %v1203_v6 = vunpack.i.h.s16 %v1117_v59  ;;  %v1205_v9 = vunpack.i.h.s16 %v1120_v1  ;;  %v10098_v11 = vpack.i.b16 %v1117_v59, %v1201_v5 }
  0x5a   : > { %1017 = vst [vmem:[#allocation1 + $0x3] ss:$4 sm:$0xff] %v10090_v3  ;;  %v957_v57 = vunpack.i.l.s16 %v908_v46  ;;  %v1123_v3 = vsel %vm413_vm3, %v12642_v50, %v12650_v58  ;;  %v1153_v51 = vrot.slane %v1151_v43, 1  ;;  %v1177_v59 = vsel %vm549_vm1, %v12696_v31, %v12707_v29  ;;  %v12763_v43 = vld [vmem:[%s12409_s19 + $0x4c] sm:$0xf] }
  0x5b   : > { %v1206_v10 = vunpack.i.h.s16 %v1123_v3  ;;  %v10097_v12 = vpack.i.b16 %v1114_v63, %v1199_v4  ;;  %v10099_v21 = vpack.i.b16 %v1120_v1, %v1203_v6  ;;  %v1234_v63 = vunpack.i.h.s16 %v1175_v56  ;;  %790 = vst.msk [vmem:[#allocation2 + $0x64] sm:$0xf] %vm784_vm4, %v12620_v26 }
  0x5c   : > { %v1180_v1 = vsel %vm553_vm2, %v12696_v31, %v12707_v29  ;;  %v1179_v5 = vrot.slane %v1177_v59, 1  ;;  %v903_v56 = vsel %vm553_vm2, %v12613_v15, %v12627_v33  ;;  %v2483_v26 = vrot.slane %v10191_v13, 3 }
  0x5d   : > { %v1008_v52 = vld [vmem:[#allocation1 + $0x20] sm:$0xff]  ;;  %v1251_v30 = vpack.i.b16 %v1206_v10, %v1205_v9  ;;  %v1182_v6 = vrot.slane %v1180_v1, 2  ;;  %v905_v59 = vrot.slane %v903_v56, 2  ;;  %v12793_v1 = vld [vmem:[%s12409_s19 + $0x54] sm:$0xf] }
  0x5e   : > { %1019 = vst [vmem:[#allocation1 + $0x20] ss:$4 sm:$0xff] %v10091_v47 }
  0x5f   : > { %1056 = vrot.lane.b32.xlu0 %v1008_v52, %s16135_s20  ;;  %1021 = vst [vmem:[#allocation1 + $0x21] ss:$4 sm:$0xff] %v10092_v49 }
  0x60   : > { %1023 = vst [vmem:[#allocation1 + $0x22] ss:$4 sm:$0xff] %v872_v53 }
  0x61   : > { %v1026_v42 = vld [vmem:[#allocation1] sm:$0xff]  ;;  %1025 = vst [vmem:[#allocation1 + $0x23] ss:$4 sm:$0xff] %v876_v55 }
  0x62   : > { %1058 = vrot.lane.b32.xlu1 %v1026_v42, %s16135_s20  ;;  %1031 = vst [vmem:[#allocation1] ss:$4 sm:$0xff] %v879_v37  ;;  %v1143_v37 = vrot.slane %v1141_v14, 2  ;;  %v12691_v42 = vrot.slane %v12685_v36, 3  ;;  %v10109_v14 = vld [vmem:[%s12409_s19 + $0x40] sm:$0xf] }
  0x63   : > { %1033 = vst [vmem:[#allocation1 + $0x1] ss:$4 sm:$0xff] %v10093_v41  ;;  %v1149_v41 = vsel %vm413_vm3, %v12665_v7, %v12676_v19 }
  0x64   : > { %1035 = vst [vmem:[#allocation1 + $0x2] ss:$4 sm:$0xff] %v10094_v18  ;;  %v1215_v18 = vunpack.i.h.s16 %v1140_v28  ;;  %v1217_v25 = vunpack.i.h.s16 %v1143_v37  ;;  %v1220_v38 = vunpack.i.h.s16 %v1149_v41  ;;  %v12704_v44 = vsel %vm553_vm2, %v12685_v36, %v12691_v42  ;;  %v12757_v41 = vld [vmem:[%s12409_s19 + $0x48] sm:$0xf] }
  0x65   : > { %1037 = vst [vmem:[#allocation1 + $0x3] ss:$4 sm:$0xff] %v10095_v22  ;;  %v1219_v22 = vunpack.i.h.s16 %v1146_v40  ;;  %v1170_v46 = vsel %vm493_vm0, %v12685_v36, %v12691_v42  ;;  %v1169_v52 = vrot.slane %v12704_v44, 2  ;;  %v1183_v44 = vsel %vm493_vm0, %v12696_v31, %v12707_v29 }
  0x66   : > { %v10101_v35 = vpack.i.b16 %v1143_v37, %v1215_v18  ;;  %v10102_v47 = vpack.i.b16 %v1146_v40, %v1217_v25  ;;  %v1172_v55 = vrot.slane %v1170_v46, 3  ;;  %v893_v40 = vsel %vm493_vm0, %v12570_v48, %v12592_v62 }
  0x67   : > { %v1258_v49 = vpack.i.b16 %v1220_v38, %v1219_v22  ;;  %v895_v22 = vrot.slane %v893_v40, 3  ;;  %v949_v38 = vunpack.i.h.s16 %v892_v27  ;;  %v12772_v62 = vrot.slane %v12757_v41, 3 }
  0x68   : > { %v1028_v17 = vld [vmem:[#allocation1 + $0x20] sm:$0xff]  ;;  %v1233_v45 = vunpack.i.h.s16 %v1172_v55 }
  0x69   : > { %v10096_v48 = vpack.i.b16 %v895_v22, %v949_v38  ;;  %1045 = vst [vmem:[#allocation1 + $0x23] ss:$4 sm:$0xff] %v905_v59  ;;  %v1128_v38 = vsel %vm553_vm2, %v12642_v50, %v12650_v58 }
  0x6a   : > { %1060 = vrot.lane.b32.xlu1 %v1028_v17, %s16135_s20  ;;  %v1265_v4 = vpack.i.b16 %v1234_v63, %v1233_v45  ;;  %v1368_v17 = vrot.slane %v10109_v14, 3  ;;  %v902_v45 = vrot.slane %v900_v16, 1  ;;  %v1411_v63 = vsel %vm493_vm0, %v12757_v41, %v12772_v62 }
  0x6b   : > { %1039 = vst [vmem:[#allocation1 + $0x20] ss:$4 sm:$0xff] %v10096_v48 }
  0x6c   : > { %v1046_v0 = vld [vmem:[#allocation1] sm:$0xff]  ;;  %v1379_v37 = vsel %vm549_vm1, %v10109_v14, %v1368_v17  ;;  %v1382_v18 = vsel %vm553_vm2, %v10109_v14, %v1368_v17  ;;  %v1377_v46 = vsel %vm413_vm3, %v10109_v14, %v1368_v17  ;;  %1043 = vst [vmem:[#allocation1 + $0x22] ss:$4 sm:$0xff] %v902_v45 }
  0x6d   : > { %1051 = vst [vmem:[#allocation1] ss:$4 sm:$0xff] %v957_v57  ;;  %1062 = vrot.lane.b32.xlu2 %v1046_v0, %s16135_s20  ;;  %v1231_v57 = vunpack.i.h.s16 %v1169_v52  ;;  %v12727_v0 = vrot.slane %v12721_v60, 3 }
  0x6f   : > { %v10105_v3 = vpack.i.b16 %v1172_v55, %v1231_v57  ;;  %v12737_v10 = vsel %vm493_vm0, %v12721_v60, %v12727_v0  ;;  %v898_v57 = vsel %vm413_vm3, %v12613_v15, %v12627_v33  ;;  %v1405_v15 = vsel %vm549_vm1, %v12757_v41, %v12772_v62  ;;  %v12807_v33 = vld [vmem:[%s12409_s19 + $0x50] sm:$0xf] }
  0x70   : > { %1041 = vst [vmem:[#allocation1 + $0x21] ss:$4 sm:$0xff] %v898_v57  ;;  %v12820_v40 = vrot.slane %v12807_v33, 3 }
  0x72   : > { %v1437_v16 = vsel %vm493_vm0, %v12807_v33, %v12820_v40 }
  0x74   : > { %v1052_v23 = vld [vmem:[#allocation1] sm:$0xff] }
  0x75   : > { %1066 = vrot.lane.b32.xlu0 %v1052_v23, %s16135_s20  ;;  %1274 = vst [vmem:[#allocation1] ss:$4 sm:$0xff] %v10097_v12  ;;  %v1198_v12 = vrot.slane %v12737_v10, 3  ;;  %v12749_v23 = vrot.slane %v12744_v20, 3 }
  0x76   : > { %1277 = vst [vmem:[#allocation1 + $0x1] ss:$4 sm:$0xff] %v10098_v11 }
  0x77   : > { %1280 = vst [vmem:[#allocation1 + $0x2] ss:$4 sm:$0xff] %v10099_v21  ;;  %v1247_v11 = vunpack.i.h.s16 %v1198_v12  ;;  %v1048_v45 = vld [vmem:[#allocation1 + $0x20] sm:$0xff]  ;;  %v1392_v31 = vsel %vm549_vm1, %v12744_v20, %v12749_v23 }
  0x78   : > { %1283 = vst [vmem:[#allocation1 + $0x3] ss:$4 sm:$0xff] %v1251_v30  ;;  %v1385_v30 = vsel %vm493_vm0, %v10109_v14, %v1368_v17  ;;  %v12813_v14 = vrot.slane %v12793_v1, 3  ;;  %1064 = vrot.lane.b32.xlu2 %v1048_v45, %s16135_s20 }
  0x79   : > { %v1387_v25 = vrot.slane %v1385_v30, 3  ;;  %v1407_v30 = vrot.slane %v1405_v15, 1  ;;  %v1434_v15 = vsel %vm553_vm2, %v12807_v33, %v12820_v40 }
  0x7a   : > { %v1442_v56 = vsel %vm413_vm3, %v12793_v1, %v12813_v14 }
  0x7f   : > { %v12713_v53 = vld [vmem:[#allocation1] sm:$0xff] }
  0x80   : > { %1299 = vst [vmem:[#allocation1] ss:$4 sm:$0xff] %v10101_v35  ;;  %v12768_v35 = vsel %vm413_vm3, %v12744_v20, %v12749_v23 }
  0x81   : > { %1301 = vst [vmem:[#allocation1 + $0x1] ss:$4 sm:$0xff] %v10102_v47  ;;  %v1381_v47 = vrot.slane %v1379_v37, 1  ;;  %v10116_v55 = vpack.i.b16 %v12768_v35, %v1387_v25  ;;  %v1136_v37 = vsel %vm413_vm3, %v12654_v39, %v12659_v2  ;;  %v1125_v25 = vsel %vm549_vm1, %v12642_v50, %v12650_v58 }
  0x82   : > { %1303 = vst [vmem:[#allocation1 + $0x2] ss:$4 sm:$0xff] %v1258_v49  ;;  %v1384_v49 = vrot.slane %v1382_v18, 2  ;;  %v1213_v48 = vunpack.i.h.s16 %v1136_v37  ;;  %v1162_v37 = vsel %vm413_vm3, %v12685_v36, %v12691_v42 }
  0x83   : > { %1305 = vst [vmem:[#allocation1 + $0x3] ss:$4 sm:$0xff] %v1153_v51  ;;  %v12780_v51 = vrot.slane %v12763_v43, 3 }
  0x84   : > { %v10100_v59 = vpack.i.b16 %v1140_v28, %v1213_v48  ;;  %v1436_v28 = vrot.slane %v1434_v15, 2  ;;  %1344 = vst.msk [vmem:[#allocation2 + $0x4] sm:$0xf] %vm784_vm4, %v12713_v53  ;;  %v11827_v53 = vld [vmem:[%s16155_s2] sm:$0xff] }
  0x86   : > { %1295 = vst [vmem:[#allocation1 + $0x23] ss:$4 sm:$0xff] %v10100_v59 }
  0x8a   : > { %v12732_v9 = vld [vmem:[#allocation1] sm:$0xff] }
  0x8b   : > { %1317 = vst [vmem:[#allocation1] ss:$4 sm:$0xff] %v10105_v3  ;;  %v1416_v3 = vsel %vm413_vm3, %v12763_v43, %v12780_v51 }
  0x8c   : > { %1319 = vst [vmem:[#allocation1 + $0x1] ss:$4 sm:$0xff] %v1265_v4  ;;  %v12801_v4 = vsel %vm549_vm1, %v12763_v43, %v12780_v51  ;;  %v1488_v17 = vunpack.i.h.s16 %v1416_v3 }
  0x8d   : > { %1321 = vst [vmem:[#allocation1 + $0x2] ss:$4 sm:$0xff] %v1179_v5  ;;  %v1408_v5 = vsel %vm553_vm2, %v12757_v41, %v12772_v62 }
  0x8e   : > { %1323 = vst [vmem:[#allocation1 + $0x3] ss:$4 sm:$0xff] %v1182_v6  ;;  %v1413_v6 = vrot.slane %v1411_v63, 3  ;;  %v1410_v18 = vrot.slane %v1408_v5, 2  ;;  %v1439_v5 = vrot.slane %v1437_v16, 3 }
  0x8f   : > { %1346 = vst.msk [vmem:[#allocation2 + $0x2c] sm:$0xf] %vm784_vm4, %v12732_v9  ;;  %v2572_v9 = vsel %vm493_vm0, %v10191_v13, %v2483_v26 }
  0x90   : > { %v10120_v22 = vpack.i.b16 %v1416_v3, %v1413_v6  ;;  %v12856_v3 = vld [vmem:[%s12409_s19 + $0x58] sm:$0xf]  ;;  %v1502_v6 = vunpack.i.h.s16 %v1442_v56 }
  0x91   : > { %v12866_v8 = vrot.slane %v12856_v3, 3 }
  0x93   : > { %v1463_v48 = vsel %vm493_vm0, %v12856_v3, %v12866_v8 }
  0x95   : > { %v12746_v21 = vld [vmem:[#allocation1] sm:$0xff] }
  0x96   : > { %1335 = vst [vmem:[#allocation1] ss:$4 sm:$0xff] %v1247_v11  ;;  %v1420_v11 = vrot.slane %v12801_v4, 1 }
  0x97   : > { %1348 = vst.msk [vmem:[#allocation2 + $0x54] sm:$0xf] %vm784_vm4, %v12746_v21  ;;  %v2574_v21 = vrot.slane %v2572_v9, 3 }
  0x98   : > { %v10121_v39 = vpack.i.b16 %v1420_v11, %v1488_v17 }
  0x9d   : > { %v12777_v27 = vld [vmem:[#allocation1] sm:$0xff] }
  0x9e   : > { %1541 = vst [vmem:[#allocation1] ss:$4 sm:$0xff] %v1377_v46  ;;  %v1444_v46 = vsel %vm549_vm1, %v12793_v1, %v12813_v14 }
  0x9f   : > { %1544 = vst [vmem:[#allocation1 + $0x1] ss:$4 sm:$0xff] %v1381_v47  ;;  %v1131_v47 = vsel %vm493_vm0, %v12642_v50, %v12650_v58  ;;  %v1446_v57 = vrot.slane %v1444_v46, 1  ;;  %v12847_v50 = vsel %vm553_vm2, %v12793_v1, %v12813_v14  ;;  %v1164_v58 = vsel %vm549_vm1, %v12685_v36, %v12691_v42 }
  0xa0   : > { %1547 = vst [vmem:[#allocation1 + $0x2] ss:$4 sm:$0xff] %v1384_v49  ;;  %v1127_v49 = vrot.slane %v1125_v25, 1  ;;  %v1133_v63 = vrot.slane %v1131_v47, 3  ;;  %v1449_v17 = vrot.slane %v12847_v50, 2  ;;  %v10124_v25 = vpack.i.b16 %v1442_v56, %v1439_v5 }
  0xa1   : > { %1550 = vst [vmem:[#allocation1 + $0x3] ss:$4 sm:$0xff] %v10116_v55  ;;  %v1130_v55 = vrot.slane %v1128_v38, 2  ;;  %v10125_v38 = vpack.i.b16 %v1446_v57, %v1502_v6  ;;  %v1157_v46 = vsel %vm493_vm0, %v12665_v7, %v12676_v19  ;;  %v1193_v56 = vsel %vm553_vm2, %v12721_v60, %v12727_v0 }
  0xa2   : > { %1286 = vst [vmem:[#allocation1 + $0x20] ss:$4 sm:$0xff] %v1127_v49  ;;  %v1159_v16 = vrot.slane %v1157_v46, 3  ;;  %v1195_v15 = vrot.slane %v1193_v56, 2  ;;  %v1398_v56 = vsel %vm493_vm0, %v12744_v20, %v12749_v23  ;;  %v1460_v50 = vsel %vm553_vm2, %v12856_v3, %v12866_v8 }
  0xa3   : > { %1289 = vst [vmem:[#allocation1 + $0x21] ss:$4 sm:$0xff] %v1130_v55  ;;  %v1465_v55 = vrot.slane %v1463_v48, 3 }
  0xa4   : > { %1292 = vst [vmem:[#allocation1 + $0x22] ss:$4 sm:$0xff] %v1133_v63  ;;  %v10128_v63 = vld [vmem:[%s12409_s19 + $0x60] sm:$0xf] }
  0xa5   : > { %v1514_v5 = vunpack.i.l.s16 %v1465_v55  ;;  %v1656_v6 = vrot.slane %v10128_v63, 3 }
  0xa7   : > { %v1667_v46 = vsel %vm549_vm1, %v10128_v63, %v1656_v6  ;;  %v1670_v48 = vsel %vm553_vm2, %v10128_v63, %v1656_v6  ;;  %v1665_v10 = vsel %vm413_vm3, %v10128_v63, %v1656_v6 }
  0xa8   : > { %v12833_v2 = vld [vmem:[#allocation1] sm:$0xff] }
  0xa9   : > { %1568 = vst [vmem:[#allocation1] ss:$4 sm:$0xff] %v1407_v30  ;;  %v1504_v30 = vunpack.i.h.s16 %v1446_v57 }
  0xaa   : > { %1570 = vst [vmem:[#allocation1 + $0x1] ss:$4 sm:$0xff] %v1410_v18  ;;  %v1166_v18 = vrot.slane %v1164_v58, 1  ;;  %v1188_v58 = vsel %vm413_vm3, %v12721_v60, %v12727_v0 }
  0xab   : > { %1572 = vst [vmem:[#allocation1 + $0x2] ss:$4 sm:$0xff] %v10120_v22  ;;  %v1154_v22 = vsel %vm553_vm2, %v12665_v7, %v12676_v19  ;;  %v10126_v36 = vpack.i.b16 %v1449_v17, %v1504_v30  ;;  %v1190_v7 = vsel %vm549_vm1, %v12721_v60, %v12727_v0  ;;  %v12889_v45 = vld [vmem:[#allocation1 + $0x20] sm:$0xff]  ;;  %v1185_v60 = vrot.slane %v1183_v44, 3 }
  0xac   : > { %1574 = vst [vmem:[#allocation1 + $0x3] ss:$4 sm:$0xff] %v10121_v39  ;;  %v1227_v39 = vunpack.i.h.s16 %v1162_v37  ;;  %v1229_v47 = vunpack.i.h.s16 %v1166_v18  ;;  %v1156_v49 = vrot.slane %v1154_v22, 2  ;;  %v1192_v59 = vrot.slane %v1190_v7, 1  ;;  %v12899_v30 = vld [vmem:[%s12409_s19 + $0x64] sm:$0xf] }
  0xad   : > { %1309 = vst [vmem:[#allocation1 + $0x21] ss:$4 sm:$0xff] %v1159_v16  ;;  %v12904_v0 = vrot.slane %v12899_v30, 3  ;;  %v1394_v16 = vrot.slane %v1392_v31, 1  ;;  %v12923_v7 = vld [vmem:[%s12409_s19 + $0x6c] sm:$0xf] }
  0xae   : > { %v10103_v19 = vpack.i.b16 %v1166_v18, %v1227_v39  ;;  %v10104_v57 = vpack.i.b16 %v1169_v52, %v1229_v47  ;;  %1307 = vst [vmem:[#allocation1 + $0x20] ss:$4 sm:$0xff] %v1156_v49  ;;  %v1241_v52 = vunpack.i.h.s16 %v1188_v58  ;;  %v1243_v37 = vunpack.i.h.s16 %v1192_v59  ;;  %v12919_v47 = vld [vmem:[%s12409_s19 + $0x68] sm:$0xf] }
  0xaf   : > { %v1672_v58 = vrot.slane %v1670_v48, 2  ;;  %1345 = vst.msk [vmem:[#allocation2 + $0x18] sm:$0xf] %vm784_vm4, %v12889_v45 }
  0xb0   : > { %1311 = vst [vmem:[#allocation1 + $0x22] ss:$4 sm:$0xff] %v10103_v19  ;;  %v10106_v22 = vpack.i.b16 %v1192_v59, %v1241_v52  ;;  %v10107_v29 = vpack.i.b16 %v1195_v15, %v1243_v37  ;;  %v12928_v19 = vsel %vm413_vm3, %v12899_v30, %v12904_v0 }
  0xb1   : > { %1313 = vst [vmem:[#allocation1 + $0x23] ss:$4 sm:$0xff] %v10104_v57  ;;  %v12935_v57 = vrot.slane %v12919_v47, 3 }
  0xb3   : > { %v12876_v42 = vld [vmem:[#allocation1] sm:$0xff]  ;;  %v1699_v44 = vsel %vm493_vm0, %v12919_v47, %v12935_v57 }
  0xb4   : > { %1588 = vst [vmem:[#allocation1] ss:$4 sm:$0xff] %v1436_v28  ;;  %v1245_v28 = vunpack.i.h.s16 %v1195_v15  ;;  %v1474_v15 = vunpack.i.h.s16 %v12768_v35  ;;  %v12947_v35 = vld [vmem:[%s12409_s19 + $0x74] sm:$0xf] }
  0xb5   : > { %1590 = vst [vmem:[#allocation1 + $0x1] ss:$4 sm:$0xff] %v10124_v25  ;;  %v1673_v25 = vsel %vm493_vm0, %v10128_v63, %v1656_v6  ;;  %v1476_v6 = vunpack.i.h.s16 %v1394_v16  ;;  %v12972_v48 = vrot.slane %v12947_v35, 3 }
  0xb6   : > { %1592 = vst [vmem:[#allocation1 + $0x2] ss:$4 sm:$0xff] %v10125_v38  ;;  %v1395_v38 = vsel %vm553_vm2, %v12744_v20, %v12749_v23  ;;  %v10108_v39 = vpack.i.b16 %v1198_v12, %v1245_v28  ;;  %v1675_v49 = vrot.slane %v1673_v25, 3  ;;  %v1669_v12 = vrot.slane %v1667_v46, 1 }
  0xb7   : > { %1594 = vst [vmem:[#allocation1 + $0x3] ss:$4 sm:$0xff] %v10126_v36  ;;  %v1397_v55 = vrot.slane %v1395_v38, 2  ;;  %v1400_v20 = vrot.slane %v1398_v56, 3  ;;  %v10117_v52 = vpack.i.b16 %v1394_v16, %v1474_v15  ;;  %v1696_v38 = vsel %vm553_vm2, %v12919_v47, %v12935_v57 }
  0xb8   : > { %v12916_v36 = vld [vmem:[#allocation1 + $0x20] sm:$0xff]  ;;  %v10135_v63 = vpack.i.b16 %v12928_v19, %v1675_v49  ;;  %v1701_v46 = vrot.slane %v1699_v44, 3  ;;  %v1424_v56 = vsel %vm493_vm0, %v12763_v43, %v12780_v51  ;;  %v1730_v4 = vsel %vm413_vm3, %v12947_v35, %v12972_v48 }
  0xb9   : > { %1325 = vst [vmem:[#allocation1 + $0x20] ss:$4 sm:$0xff] %v1185_v60  ;;  %v1478_v23 = vunpack.i.h.s16 %v1397_v55  ;;  %v1421_v60 = vsel %vm553_vm2, %v12763_v43, %v12780_v51  ;;  %v10118_v25 = vpack.i.b16 %v1397_v55, %v1476_v6  ;;  %v1403_v55 = vsel %vm413_vm3, %v12757_v41, %v12772_v62 }
  0xba   : > { %1327 = vst [vmem:[#allocation1 + $0x21] ss:$4 sm:$0xff] %v10106_v22  ;;  %v1693_v22 = vsel %vm549_vm1, %v12919_v47, %v12935_v57  ;;  %v1732_v41 = vsel %vm549_vm1, %v12947_v35, %v12972_v48  ;;  %v1426_v51 = vrot.slane %v1424_v56, 3 }
  0xbb   : > { %1329 = vst [vmem:[#allocation1 + $0x22] ss:$4 sm:$0xff] %v10107_v29  ;;  %v10119_v31 = vpack.i.b16 %v1400_v20, %v1478_v23  ;;  %v12964_v29 = vld [vmem:[%s12409_s19 + $0x70] sm:$0xf]  ;;  %v1431_v23 = vsel %vm549_vm1, %v12807_v33, %v12820_v40 }
  0xbc   : > { %1331 = vst [vmem:[#allocation1 + $0x23] ss:$4 sm:$0xff] %v10108_v39 }
  0xbd   : > { %1347 = vst.msk [vmem:[#allocation2 + $0x40] sm:$0xf] %vm784_vm4, %v12916_v36 }
  0xbe   : > { %v12901_v18 = vld [vmem:[#allocation1] sm:$0xff] }
  0xbf   : > { %1608 = vst [vmem:[#allocation1] ss:$4 sm:$0xff] %v1514_v5  ;;  %v12939_v5 = vrot.slane %v12923_v7, 3 }
  0xc1   : > { %v1704_v37 = vsel %vm413_vm3, %v12923_v7, %v12939_v5  ;;  %v12955_v28 = vsel %vm549_vm1, %v12923_v7, %v12939_v5 }
  0xc2   : > { %v1708_v49 = vrot.slane %v12955_v28, 1  ;;  %v1776_v16 = vunpack.i.h.s16 %v1704_v37  ;;  %v10139_v15 = vpack.i.b16 %v1704_v37, %v1701_v46  ;;  %v1433_v46 = vrot.slane %v1431_v23, 1 }
  0xc3   : > { %v12969_v39 = vld [vmem:[#allocation1 + $0x20] sm:$0xff] }
  0xc4   : > { %1553 = vst [vmem:[#allocation1 + $0x20] ss:$4 sm:$0xff] %v10117_v52  ;;  %v10140_v62 = vpack.i.b16 %v1708_v49, %v1776_v16  ;;  %v13005_v52 = vsel %vm553_vm2, %v12947_v35, %v12972_v48 }
  0xc5   : > { %1556 = vst [vmem:[#allocation1 + $0x21] ss:$4 sm:$0xff] %v10118_v25 }
  0xc6   : > { %v1609_v59 = vld [vmem:[#allocation1] sm:$0xff]  ;;  %1559 = vst [vmem:[#allocation1 + $0x22] ss:$4 sm:$0xff] %v10119_v31  ;;  %v1790_v31 = vunpack.i.h.s16 %v1730_v4 }
  0xc7   : > { %1623 = vrot.lane.b32.xlu1 %v1609_v59, %s16135_s20  ;;  %1829 = vst [vmem:[#allocation1] ss:$4 sm:$0xff] %v1665_v10  ;;  %v1423_v10 = vrot.slane %v1421_v60, 2  ;;  %v1698_v59 = vrot.slane %v1696_v38, 2  ;;  %v13008_v60 = vld [vmem:[%s12409_s19 + $0x78] sm:$0xf]  ;;  %v1429_v38 = vsel %vm413_vm3, %v12807_v33, %v12820_v40 }
  0xc8   : > { %1832 = vst [vmem:[#allocation1 + $0x1] ss:$4 sm:$0xff] %v1669_v12  ;;  %v1695_v12 = vrot.slane %v1693_v22, 1  ;;  %v13023_v56 = vrot.slane %v13008_v60, 3 }
  0xc9   : > { %1835 = vst [vmem:[#allocation1 + $0x2] ss:$4 sm:$0xff] %v1672_v58  ;;  %v12982_v58 = vrot.slane %v12964_v29, 3  ;;  %v1492_v6 = vunpack.i.h.s16 %v1423_v10 }
  0xca   : > { %1838 = vst [vmem:[#allocation1 + $0x3] ss:$4 sm:$0xff] %v10135_v63  ;;  %v1490_v63 = vunpack.i.h.s16 %v1420_v11  ;;  %v1734_v11 = vrot.slane %v1732_v41, 1 }
  0xcb   : > { %1562 = vst [vmem:[#allocation1 + $0x23] ss:$4 sm:$0xff] %v1403_v55  ;;  %v1725_v20 = vsel %vm493_vm0, %v12964_v29, %v12982_v58  ;;  %v10123_v37 = vpack.i.b16 %v1426_v51, %v1492_v6  ;;  %v1722_v25 = vsel %vm553_vm2, %v12964_v29, %v12982_v58  ;;  %v1737_v55 = vrot.slane %v13005_v52, 2 }
  0xcc   : > { %v10122_v44 = vpack.i.b16 %v1423_v10, %v1490_v63  ;;  %v1727_v22 = vrot.slane %v1725_v20, 3  ;;  %v1792_v10 = vunpack.i.h.s16 %v1734_v11  ;;  %v10144_v33 = vpack.i.b16 %v1734_v11, %v1790_v31  ;;  %1349 = vst.msk [vmem:[#allocation2 + $0x68] sm:$0xf] %vm784_vm4, %v12969_v39 }
  0xcd   : > { %v1506_v63 = vunpack.i.h.s16 %v1449_v17  ;;  %v1457_v51 = vsel %vm549_vm1, %v12856_v3, %v12866_v8  ;;  %v1680_v20 = vsel %vm549_vm1, %v12899_v30, %v12904_v0  ;;  %v1455_v11 = vsel %vm413_vm3, %v12856_v3, %v12866_v8 }
  0xce   : > { %v10145_v41 = vpack.i.b16 %v1737_v55, %v1792_v10  ;;  %v1459_v23 = vrot.slane %v1457_v51, 1  ;;  %v1686_v3 = vsel %vm493_vm0, %v12899_v30, %v12904_v0  ;;  %v1719_v28 = vsel %vm549_vm1, %v12964_v29, %v12982_v58 }
  0xcf   : > { %v1745_v52 = vsel %vm549_vm1, %v13008_v60, %v13023_v56 }
  0xd1   : > { %v12991_v43 = vld [vmem:[#allocation1] sm:$0xff] }
  0xd2   : > { %1854 = vst [vmem:[#allocation1] ss:$4 sm:$0xff] %v1695_v12  ;;  %v13016_v16 = vld [vmem:[#allocation1 + $0x20] sm:$0xff]  ;;  %v1450_v12 = vsel %vm493_vm0, %v12793_v1, %v12813_v14  ;;  %v1751_v1 = vsel %vm493_vm0, %v13008_v60, %v13023_v56 }
  0xd3   : > { %1856 = vst [vmem:[#allocation1 + $0x1] ss:$4 sm:$0xff] %v1698_v59  ;;  %v1724_v59 = vrot.slane %v1722_v25, 2  ;;  %v1452_v40 = vrot.slane %v1450_v12, 3  ;;  %v10147_v14 = vld [vmem:[%s12409_s19 + $0x40] sm:$0xf]  ;;  %v1762_v12 = vunpack.i.h.s16 %v12928_v19 }
  0xd4   : > { %1858 = vst [vmem:[#allocation1 + $0x2] ss:$4 sm:$0xff] %v10139_v15  ;;  %v10143_v15 = vpack.i.b16 %v1730_v4, %v1727_v22  ;;  %v1753_v6 = vrot.slane %v1751_v1, 3  ;;  %v1922_v4 = vrot.slane %v10147_v14, 3  ;;  %v1682_v22 = vrot.slane %v1680_v20, 1 }
  0xd5   : > { %1860 = vst [vmem:[#allocation1 + $0x3] ss:$4 sm:$0xff] %v10140_v62  ;;  %v10127_v17 = vpack.i.b16 %v1452_v40, %v1506_v63  ;;  %v13068_v63 = vld [vmem:[%s12409_s19 + $0x48] sm:$0xf] }
  0xd6   : > { %1576 = vst [vmem:[#allocation1 + $0x20] ss:$4 sm:$0xff] %v10122_v44  ;;  %v1683_v44 = vsel %vm553_vm2, %v12899_v30, %v12904_v0  ;;  %v1802_v31 = vunpack.i.l.s16 %v1753_v6  ;;  %v1933_v10 = vsel %vm549_vm1, %v10147_v14, %v1922_v4  ;;  %v1936_v8 = vsel %vm553_vm2, %v10147_v14, %v1922_v4 }
  0xd7   : > { %1578 = vst [vmem:[#allocation1 + $0x21] ss:$4 sm:$0xff] %v10123_v37  ;;  %v1462_v37 = vrot.slane %v1460_v50, 2  ;;  %v1764_v40 = vunpack.i.h.s16 %v1682_v22  ;;  %v1935_v1 = vrot.slane %v1933_v10, 1  ;;  %v1688_v30 = vrot.slane %v1686_v3, 3 }
  0xd8   : > { %1580 = vst [vmem:[#allocation1 + $0x22] ss:$4 sm:$0xff] %v1429_v38  ;;  %v13053_v38 = vld [vmem:[%s12409_s19 + $0x44] sm:$0xf]  ;;  %v1938_v51 = vrot.slane %v1936_v8, 2  ;;  %v10136_v19 = vpack.i.b16 %v1682_v22, %v1762_v12  ;;  %v1691_v3 = vsel %vm413_vm3, %v12919_v47, %v12935_v57 }
  0xd9   : > { %1582 = vst [vmem:[#allocation1 + $0x23] ss:$4 sm:$0xff] %v1433_v46  ;;  %v1685_v46 = vrot.slane %v1683_v44, 2 }
  0xda   : > { %v2024_v44 = vunpack.i.h.s16 %v1938_v51  ;;  %1899 = vst.msk [vmem:[#allocation2 + $0x8] sm:$0xf] %vm784_vm4, %v12991_v43  ;;  %v1059_v43 = vpop.permute.xlu1 %1058 }
  0xdb   : > { %v1766_v0 = vunpack.i.h.s16 %v1685_v46  ;;  %1078 = vst.msk [vmem:[#allocation2 + $0x28] sm:$0xf] %vm1075_vm5, %v1059_v43 }
  0xdc   : > { %v13029_v62 = vld [vmem:[#allocation1] sm:$0xff] }
  0xdd   : > { %1872 = vst [vmem:[#allocation1] ss:$4 sm:$0xff] %v1724_v59  ;;  %v13062_v59 = vrot.slane %v13053_v38, 3 }
  0xde   : > { %1874 = vst [vmem:[#allocation1 + $0x1] ss:$4 sm:$0xff] %v10143_v15  ;;  %v1939_v15 = vsel %vm493_vm0, %v10147_v14, %v1922_v4 }
  0xdf   : > { %1876 = vst [vmem:[#allocation1 + $0x2] ss:$4 sm:$0xff] %v10144_v33  ;;  %v1941_v50 = vrot.slane %v1939_v15, 3  ;;  %v1944_v6 = vsel %vm413_vm3, %v13053_v38, %v13062_v59  ;;  %v1712_v15 = vsel %vm493_vm0, %v12923_v7, %v12939_v5 }
  0xe0   : > { %1878 = vst [vmem:[#allocation1 + $0x3] ss:$4 sm:$0xff] %v10145_v41  ;;  %v13050_v25 = vld [vmem:[#allocation1 + $0x20] sm:$0xff]  ;;  %v1931_v41 = vsel %vm413_vm3, %v10147_v14, %v1922_v4  ;;  %v1709_v14 = vsel %vm553_vm2, %v12923_v7, %v12939_v5  ;;  %v10137_v4 = vpack.i.b16 %v1685_v46, %v1764_v40  ;;  %v2027_v10 = vunpack.i.h.s16 %v1944_v6 }
  0xe1   : > { %1596 = vst [vmem:[#allocation1 + $0x20] ss:$4 sm:$0xff] %v10127_v17  ;;  %v13072_v17 = vrot.slane %v13068_v63, 3  ;;  %v2020_v20 = vunpack.i.h.s16 %v1931_v41  ;;  %v2026_v22 = vunpack.i.h.s16 %v1941_v50  ;;  %v1711_v8 = vrot.slane %v1709_v14, 2 }
  0xe2   : > { %1598 = vst [vmem:[#allocation1 + $0x21] ss:$4 sm:$0xff] %v1455_v11  ;;  %v2022_v11 = vunpack.i.h.s16 %v1935_v1  ;;  %v1778_v7 = vunpack.i.h.s16 %v1708_v49 }
  0xe3   : > { %1600 = vst [vmem:[#allocation1 + $0x22] ss:$4 sm:$0xff] %v1459_v23  ;;  %v10138_v23 = vpack.i.b16 %v1688_v30, %v1766_v0  ;;  %v13091_v12 = vsel %vm549_vm1, %v13068_v63, %v13072_v17  ;;  %v10154_v46 = vpack.i.b16 %v1935_v1, %v2020_v20  ;;  %v1962_v40 = vsel %vm553_vm2, %v13068_v63, %v13072_v17  ;;  %v13111_v20 = vld [vmem:[%s12409_s19 + $0x50] sm:$0xf] }
  0xe4   : > { %1602 = vst [vmem:[#allocation1 + $0x23] ss:$4 sm:$0xff] %v1462_v37  ;;  %v10155_v41 = vpack.i.b16 %v1938_v51, %v2022_v11  ;;  %v1965_v1 = vsel %vm493_vm0, %v13068_v63, %v13072_v17  ;;  %v10156_v30 = vpack.i.b16 %v1941_v50, %v2024_v44  ;;  %v1961_v5 = vrot.slane %v13091_v12, 1 }
  0xe5   : > { %v2072_v0 = vpack.i.b16 %v2027_v10, %v2026_v22  ;;  %v1780_v51 = vunpack.i.h.s16 %v1711_v8  ;;  %v1964_v6 = vrot.slane %v1962_v40, 2  ;;  %v1967_v14 = vrot.slane %v1965_v1, 3  ;;  %1901 = vst.msk [vmem:[#allocation2 + $0x30] sm:$0xf] %vm784_vm4, %v13029_v62 }
  0xe6   : > { %v10141_v49 = vpack.i.b16 %v1711_v8, %v1778_v7  ;;  %v13122_v11 = vrot.slane %v13111_v20, 3  ;;  %v1738_v8 = vsel %vm493_vm0, %v12947_v35, %v12972_v48 }
  0xe7   : > { %v13065_v33 = vld [vmem:[#allocation1] sm:$0xff]  ;;  %v2038_v44 = vunpack.i.h.s16 %v1964_v6  ;;  %v2040_v22 = vunpack.i.h.s16 %v1967_v14  ;;  %v1740_v7 = vrot.slane %v1738_v8, 3 }
  0xe8   : > { %1890 = vst [vmem:[#allocation1] ss:$4 sm:$0xff] %v1802_v31  ;;  %v13083_v31 = vld [vmem:[%s12409_s19 + $0x4c] sm:$0xf]  ;;  %v1991_v35 = vsel %vm493_vm0, %v13111_v20, %v13122_v11 }
  0xe9   : > { %v13102_v57 = vrot.slane %v13083_v31, 3  ;;  %1903 = vst.msk [vmem:[#allocation2 + $0x58] sm:$0xf] %vm784_vm4, %v13065_v33  ;;  %v11850_v33 = vld [vmem:[%s16155_s2 + $0xb8] sm:$0xff] }
  0xea   : > { %3490 = vmatpush.bf16.msra.mxu2 %v11850_v33  ;;  %v13683_v33 = vld [vmem:[%s12409_s19 + $0xc] sm:$0xf] }
  0xeb   : > { %v13080_v37 = vld [vmem:[#allocation1 + $0x20] sm:$0xff]  ;;  %v1970_v50 = vsel %vm413_vm3, %v13083_v31, %v13102_v57 }
  0xec   : > { %1841 = vst [vmem:[#allocation1 + $0x20] ss:$4 sm:$0xff] %v10136_v19  ;;  %v1714_v19 = vrot.slane %v1712_v15, 3  ;;  %v2041_v10 = vunpack.i.h.s16 %v1970_v50  ;;  %v1721_v15 = vrot.slane %v1719_v28, 1 }
  0xed   : > { %1844 = vst [vmem:[#allocation1 + $0x21] ss:$4 sm:$0xff] %v10137_v4  ;;  %v2036_v4 = vunpack.i.h.s16 %v1961_v5 }
  0xee   : > { %1847 = vst [vmem:[#allocation1 + $0x22] ss:$4 sm:$0xff] %v10138_v23  ;;  %v10142_v23 = vpack.i.b16 %v1714_v19, %v1780_v51  ;;  %v2079_v48 = vpack.i.b16 %v2041_v10, %v2040_v22  ;;  %v1743_v22 = vsel %vm413_vm3, %v13008_v60, %v13023_v56  ;;  %v1747_v10 = vrot.slane %v1745_v52, 1 }
  0xef   : > { %v13099_v47 = vld [vmem:[#allocation1] sm:$0xff]  ;;  %1850 = vst [vmem:[#allocation1 + $0x23] ss:$4 sm:$0xff] %v1691_v3  ;;  %v13125_v3 = vld [vmem:[%s12409_s19 + $0x54] sm:$0xf]  ;;  %v10158_v1 = vpack.i.b16 %v1964_v6, %v2036_v4 }
  0xf0   : > { %16152 = vst [vmem:[#allocation11_spill] sm:$0xff] %v13099_v47  ;;  %v13165_v4 = vld [vmem:[%s12409_s19 + $0x58] sm:$0xf] }
  0xf1   : > { %2095 = vst [vmem:[#allocation1] ss:$4 sm:$0xff] %v10154_v46  ;;  %v1717_v46 = vsel %vm413_vm3, %v12964_v29, %v12982_v58  ;;  %v10159_v29 = vpack.i.b16 %v1967_v14, %v2038_v44  ;;  %v13144_v58 = vrot.slane %v13125_v3, 3  ;;  %v1993_v14 = vrot.slane %v1991_v35, 3 }
  0xf2   : > { %2098 = vst [vmem:[#allocation1 + $0x1] ss:$4 sm:$0xff] %v10155_v41  ;;  %v1972_v41 = vsel %vm549_vm1, %v13083_v31, %v13102_v57 }
  0xf3   : > { %2101 = vst [vmem:[#allocation1 + $0x2] ss:$4 sm:$0xff] %v10156_v30  ;;  %v13141_v30 = vsel %vm553_vm2, %v13111_v20, %v13122_v11  ;;  %v1974_v19 = vrot.slane %v1972_v41, 1  ;;  %v1996_v50 = vsel %vm413_vm3, %v13125_v3, %v13144_v58  ;;  %v1998_v8 = vsel %vm549_vm1, %v13125_v3, %v13144_v58 }
  0xf4   : > { %2104 = vst [vmem:[#allocation1 + $0x3] ss:$4 sm:$0xff] %v2072_v0  ;;  %v1794_v0 = vunpack.i.h.s16 %v1737_v55  ;;  %v1990_v6 = vrot.slane %v13141_v30, 2  ;;  %v1748_v55 = vsel %vm553_vm2, %v13008_v60, %v13023_v56  ;;  %v2055_v44 = vunpack.i.h.s16 %v1996_v50 }
  0xf5   : > { %v13176_v41 = vrot.slane %v13165_v4, 3  ;;  %v2000_v60 = vrot.slane %v1998_v8, 1  ;;  %v1957_v56 = vsel %vm413_vm3, %v13068_v63, %v13072_v17  ;;  %v1952_v63 = vsel %vm493_vm0, %v13053_v38, %v13062_v59 }
  0xf6   : > { %v13130_v40 = vld [vmem:[#allocation1 + $0x20] sm:$0xff]  ;;  %v10146_v28 = vpack.i.b16 %v1740_v7, %v1794_v0  ;;  %v1946_v0 = vsel %vm549_vm1, %v13053_v38, %v13062_v59  ;;  %v2034_v17 = vunpack.i.h.s16 %v1957_v56 }
  0xf7   : > { %1862 = vst [vmem:[#allocation1 + $0x20] ss:$4 sm:$0xff] %v10141_v49  ;;  %v2052_v49 = vunpack.i.h.s16 %v1990_v6  ;;  %v2014_v30 = vsel %vm553_vm2, %v13165_v4, %v13176_v41 }
  0xf8   : > { %1864 = vst [vmem:[#allocation1 + $0x21] ss:$4 sm:$0xff] %v10142_v23  ;;  %v2054_v23 = vunpack.i.h.s16 %v1993_v14 }
  0xf9   : > { %1866 = vst [vmem:[#allocation1 + $0x22] ss:$4 sm:$0xff] %v1717_v46  ;;  %v1750_v46 = vrot.slane %v1748_v55, 2  ;;  %v10166_v55 = vld [vmem:[%s12409_s19 + $0x4] sm:$0xf] }
  0xfa   : > { %1868 = vst [vmem:[#allocation1 + $0x23] ss:$4 sm:$0xff] %v1721_v15  ;;  %v2086_v35 = vpack.i.b16 %v2055_v44, %v2054_v23  ;;  %v10157_v23 = vpack.i.b16 %v1961_v5, %v2034_v17 }
  0xfb   : > { %v2117_v51 = vld [vmem:[#allocation1] sm:$0xff]  ;;  %1900 = vst.msk [vmem:[#allocation2 + $0x1c] sm:$0xf] %vm784_vm4, %v13130_v40  ;;  %v2623_v40 = vunpack.i.l.s16 %v2574_v21 }
  0xfc   : > { %2122 = vst [vmem:[#allocation1] ss:$4 sm:$0xff] %v10158_v1  ;;  %2165 = vrot.lane.b32.xlu2 %v2117_v51, %s16135_s20  ;;  %v2001_v1 = vsel %vm553_vm2, %v13125_v3, %v13144_v58  ;;  %v1949_v51 = vsel %vm553_vm2, %v13053_v38, %v13062_v59  ;;  %v2210_v38 = vrot.slane %v10166_v55, 3  ;;  %v13209_v59 = vld [vmem:[%s12409_s19 + $0x8] sm:$0xf] }
  0xfd   : > { %2124 = vst [vmem:[#allocation1 + $0x1] ss:$4 sm:$0xff] %v10159_v29  ;;  %v10162_v29 = vpack.i.b16 %v1993_v14, %v2052_v49  ;;  %v1948_v14 = vrot.slane %v1946_v0, 1  ;;  %v1951_v52 = vrot.slane %v1949_v51, 2  ;;  %v13217_v12 = vrot.slane %v13209_v59, 3 }
  0xfe   : > { %2126 = vst [vmem:[#allocation1 + $0x2] ss:$4 sm:$0xff] %v2079_v48  ;;  %v2003_v48 = vrot.slane %v2001_v1, 2  ;;  %v2227_v5 = vsel %vm493_vm0, %v10166_v55, %v2210_v38  ;;  %v2221_v8 = vsel %vm549_vm1, %v10166_v55, %v2210_v38  ;;  %v1983_v1 = vsel %vm413_vm3, %v13111_v20, %v13122_v11  ;;  %v13232_v0 = vld [vmem:[%s12409_s19 + $0x10] sm:$0xf] }
  0xff   : > { %2128 = vst [vmem:[#allocation1 + $0x3] ss:$4 sm:$0xff] %v1974_v19  ;;  %v13192_v19 = vsel %vm493_vm0, %v13165_v4, %v13176_v41  ;;  %v2229_v56 = vrot.slane %v2227_v5, 3  ;;  %v13237_v51 = vsel %vm413_vm3, %v13209_v59, %v13217_v12  ;;  %v2223_v17 = vrot.slane %v2221_v8, 1  ;;  %v13262_v8 = vld [vmem:[%s12409_s19 + $0x18] sm:$0xf] }
 0x100   : > { %v2019_v50 = vrot.slane %v13192_v19, 3  ;;  %v2240_v19 = vsel %vm493_vm0, %v13209_v59, %v13217_v12 }
 0x101   : > { %v13170_v15 = vld [vmem:[#allocation1 + $0x20] sm:$0xff] }
 0x102   : > { %1880 = vst [vmem:[#allocation1 + $0x20] ss:$4 sm:$0xff] %v10146_v28  ;;  %v1954_v28 = vrot.slane %v1952_v63, 3  ;;  %v2068_v44 = vunpack.i.h.s16 %v2019_v50  ;;  %v2219_v63 = vsel %vm413_vm3, %v10166_v55, %v2210_v38 }
 0x103   : > { %1882 = vst [vmem:[#allocation1 + $0x21] ss:$4 sm:$0xff] %v1743_v22 }
 0x104   : > { %1884 = vst [vmem:[#allocation1 + $0x22] ss:$4 sm:$0xff] %v1747_v10  ;;  %v1985_v10 = vsel %vm549_vm1, %v13111_v20, %v13122_v11  ;;  %v1978_v20 = vsel %vm493_vm0, %v13083_v31, %v13102_v57  ;;  %v2048_v11 = vunpack.i.h.s16 %v1983_v1 }
 0x105   : > { %1886 = vst [vmem:[#allocation1 + $0x23] ss:$4 sm:$0xff] %v1750_v46  ;;  %v1975_v46 = vsel %vm553_vm2, %v13083_v31, %v13102_v57  ;;  %v1980_v31 = vrot.slane %v1978_v20, 3  ;;  %v13288_v20 = vrot.slane %v13262_v8, 3 }
 0x106   : > { %v13184_v7 = vld [vmem:[#allocation1] sm:$0xff]  ;;  %1902 = vst.msk [vmem:[#allocation2 + $0x44] sm:$0xf] %vm784_vm4, %v13170_v15  ;;  %v1063_v15 = vpop.permute.xlu2 %1062 }
 0x107   : > { %2142 = vst [vmem:[#allocation1] ss:$4 sm:$0xff] %v10162_v29  ;;  %v1987_v29 = vrot.slane %v1985_v10, 1  ;;  %v13250_v10 = vrot.slane %v13232_v0, 3 }
 0x108   : > { %2144 = vst [vmem:[#allocation1 + $0x1] ss:$4 sm:$0xff] %v2086_v35  ;;  %v13228_v35 = vld [vmem:[%s12409_s19 + $0xc] sm:$0xf] }
 0x109   : > { %2146 = vst [vmem:[#allocation1 + $0x2] ss:$4 sm:$0xff] %v2000_v60  ;;  %v2224_v60 = vsel %vm553_vm2, %v10166_v55, %v2210_v38  ;;  %v10173_v55 = vpack.i.b16 %v13237_v51, %v2229_v56  ;;  %v10160_v57 = vpack.i.b16 %v1987_v29, %v2048_v11  ;;  %v2258_v1 = vsel %vm413_vm3, %v13232_v0, %v13250_v10 }
 0x10a   : > { %2148 = vst [vmem:[#allocation1 + $0x3] ss:$4 sm:$0xff] %v2003_v48  ;;  %v1977_v48 = vrot.slane %v1975_v46, 2  ;;  %v2011_v46 = vsel %vm549_vm1, %v13165_v4, %v13176_v41 }
 0x10b   : > { %1080 = vst.msk [vmem:[#allocation2 + $0x50] sm:$0xf] %vm1075_vm5, %v1063_v15 }
 0x10c   : > { %v13202_v49 = vld [vmem:[#allocation1 + $0x20] sm:$0xff] }
 0x10d   : > { %2107 = vst [vmem:[#allocation1 + $0x20] ss:$4 sm:$0xff] %v1948_v14 }
 0x10e   : > { %2110 = vst [vmem:[#allocation1 + $0x21] ss:$4 sm:$0xff] %v1951_v52  ;;  %v13244_v52 = vrot.slane %v13228_v35, 3 }
 0x10f   : > { %2113 = vst [vmem:[#allocation1 + $0x22] ss:$4 sm:$0xff] %v1954_v28  ;;  %v2226_v28 = vrot.slane %v2224_v60, 2  ;;  %v13279_v60 = vld [vmem:[%s12409_s19 + $0x14] sm:$0xf] }
 0x110   : > { %2116 = vst [vmem:[#allocation1 + $0x23] ss:$4 sm:$0xff] %v10157_v23  ;;  %v2050_v23 = vunpack.i.h.s16 %v1987_v29  ;;  %v2253_v38 = vsel %vm493_vm0, %v13228_v35, %v13244_v52  ;;  %v13270_v29 = vsel %vm549_vm1, %v13232_v0, %v13250_v10  ;;  %v2250_v56 = vsel %vm553_vm2, %v13228_v35, %v13244_v52 }
 0x111   : > { %v13211_v22 = vld [vmem:[#allocation1] sm:$0xff]  ;;  %v16134_v11 = vrot.slane %v13270_v29, 1  ;;  %1904 = vst.msk [vmem:[#allocation2 + $0x6c] sm:$0xf] %vm784_vm4, %v13202_v49 }
 0x112   : > { %2162 = vst [vmem:[#allocation1] ss:$4 sm:$0xff] %v2068_v44  ;;  %v10161_v5 = vpack.i.b16 %v1990_v6, %v2050_v23  ;;  %v2247_v6 = vsel %vm549_vm1, %v13228_v35, %v13244_v52 }
 0x113   : > { %v2249_v23 = vrot.slane %v2247_v6, 1 }
 0x117   : > { %v2119_v14 = vld [vmem:[#allocation1 + $0x20] sm:$0xff] }
 0x118   : > { %2167 = vrot.lane.b32.xlu0 %v2119_v14, %s16135_s20  ;;  %2130 = vst [vmem:[#allocation1 + $0x20] ss:$4 sm:$0xff] %v1977_v48  ;;  %v2255_v48 = vrot.slane %v2253_v38, 3  ;;  %v2330_v14 = vunpack.i.h.s16 %v2258_v1 }
 0x119   : > { %v13247_v44 = vld [vmem:[#allocation1] sm:$0xff]  ;;  %2132 = vst [vmem:[#allocation1 + $0x21] ss:$4 sm:$0xff] %v1980_v31  ;;  %v2252_v31 = vrot.slane %v2250_v56, 2  ;;  %v2284_v56 = vsel %vm413_vm3, %v13262_v8, %v13288_v20 }
 0x11a   : > { %2383 = vst [vmem:[#allocation1] ss:$4 sm:$0xff] %v2219_v63  ;;  %v2009_v63 = vsel %vm413_vm3, %v13165_v4, %v13176_v41  ;;  %v2004_v4 = vsel %vm493_vm0, %v13125_v3, %v13144_v58 }
 0x11b   : > { %2386 = vst [vmem:[#allocation1 + $0x1] ss:$4 sm:$0xff] %v2223_v17  ;;  %v2013_v17 = vrot.slane %v2011_v46, 1  ;;  %v2062_v41 = vunpack.i.h.s16 %v2009_v63  ;;  %v10178_v46 = vpack.i.b16 %v16134_v11, %v2330_v14  ;;  %v2006_v6 = vrot.slane %v2004_v4, 3  ;;  %v13326_v4 = vld [vmem:[%s12409_s19 + $0x1c] sm:$0xf] }
 0x11c   : > { %2389 = vst [vmem:[#allocation1 + $0x2] ss:$4 sm:$0xff] %v2226_v28  ;;  %v2016_v28 = vrot.slane %v2014_v30, 2 }
 0x11d   : > { %2392 = vst [vmem:[#allocation1 + $0x3] ss:$4 sm:$0xff] %v10173_v55  ;;  %v13294_v55 = vrot.slane %v13279_v60, 3  ;;  %v2064_v38 = vunpack.i.h.s16 %v2013_v17  ;;  %v10163_v58 = vpack.i.b16 %v2013_v17, %v2062_v41  ;;  %v13321_v17 = vsel %vm553_vm2, %v13262_v8, %v13288_v20 }
 0x11e   : > { %2134 = vst [vmem:[#allocation1 + $0x22] ss:$4 sm:$0xff] %v10160_v57  ;;  %v10177_v57 = vpack.i.b16 %v2258_v1, %v2255_v48  ;;  %v2066_v30 = vunpack.i.h.s16 %v2016_v28  ;;  %v2234_v1 = vsel %vm549_vm1, %v13209_v59, %v13217_v12  ;;  %v2291_v11 = vrot.slane %v13321_v17, 2 }
 0x11f   : > { %2136 = vst [vmem:[#allocation1 + $0x23] ss:$4 sm:$0xff] %v10161_v5  ;;  %v2286_v5 = vsel %vm549_vm1, %v13262_v8, %v13288_v20  ;;  %v2279_v3 = vsel %vm493_vm0, %v13279_v60, %v13294_v55  ;;  %v10164_v14 = vpack.i.b16 %v2016_v28, %v2064_v38  ;;  %v2276_v41 = vsel %vm553_vm2, %v13279_v60, %v13294_v55 }
 0x120   : > { %1611 = vrot.lane.b32.xlu0 %v12833_v2, %s16135_s20  ;;  %v2288_v48 = vrot.slane %v2286_v5, 1  ;;  %v2281_v28 = vrot.slane %v2279_v3, 3  ;;  %v2344_v38 = vunpack.i.h.s16 %v2284_v56  ;;  %v2316_v3 = vunpack.i.h.s16 %v13237_v51 }
 0x121   : > { %v2263_v51 = vsel %vm553_vm2, %v13232_v0, %v13250_v10 }
 0x124   : > { %v13304_v2 = vld [vmem:[#allocation1] sm:$0xff] }
 0x125   : > { %2408 = vst [vmem:[#allocation1] ss:$4 sm:$0xff] %v2249_v23  ;;  %v2237_v23 = vsel %vm553_vm2, %v13209_v59, %v13217_v12 }
 0x126   : > { %2410 = vst [vmem:[#allocation1 + $0x1] ss:$4 sm:$0xff] %v2252_v31  ;;  %v2139_v63 = vld [vmem:[#allocation1 + $0x20] sm:$0xff]  ;;  %v10165_v31 = vpack.i.b16 %v2019_v50, %v2066_v30  ;;  %v2239_v5 = vrot.slane %v2237_v23, 2  ;;  %v13337_v50 = vrot.slane %v13326_v4, 3  ;;  %v2278_v30 = vrot.slane %v2276_v41, 2 }
 0x127   : > { %2412 = vst [vmem:[#allocation1 + $0x2] ss:$4 sm:$0xff] %v10177_v57  ;;  %v2236_v57 = vrot.slane %v2234_v1, 1 }
 0x128   : > { %2414 = vst [vmem:[#allocation1 + $0x3] ss:$4 sm:$0xff] %v10178_v46  ;;  %2171 = vrot.lane.b32.xlu0 %v2139_v63, %s16135_s20  ;;  %v2346_v46 = vunpack.i.h.s16 %v2288_v48  ;;  %v10182_v63 = vpack.i.b16 %v2288_v48, %v2344_v38  ;;  %v2320_v23 = vunpack.i.h.s16 %v2239_v5  ;;  %v2305_v59 = vsel %vm493_vm0, %v13326_v4, %v13337_v50 }
 0x129   : > { %2150 = vst [vmem:[#allocation1 + $0x20] ss:$4 sm:$0xff] %v2006_v6  ;;  %v10181_v6 = vpack.i.b16 %v2284_v56, %v2281_v28  ;;  %v2318_v1 = vunpack.i.h.s16 %v2236_v57  ;;  %v10174_v12 = vpack.i.b16 %v2236_v57, %v2316_v3  ;;  %v10185_v28 = vld [vmem:[%s12409_s19 + $0x24] sm:$0xf]  ;;  %v2245_v57 = vsel %vm413_vm3, %v13228_v35, %v13244_v52  ;;  %v13362_v3 = vld [vmem:[%s12409_s19 + $0x28] sm:$0xf] }
 0x12a   : > { %2152 = vst [vmem:[#allocation1 + $0x21] ss:$4 sm:$0xff] %v10163_v58  ;;  %v2242_v58 = vrot.slane %v2240_v19, 3  ;;  %v2265_v38 = vrot.slane %v2263_v51, 2  ;;  %v16153_v19 = vrot.slane %v13270_v29, 1  ;;  %v2302_v17 = vsel %vm553_vm2, %v13326_v4, %v13337_v50 }
 0x12b   : > { %2154 = vst [vmem:[#allocation1 + $0x22] ss:$4 sm:$0xff] %v10164_v14  ;;  %v10183_v14 = vpack.i.b16 %v2291_v11, %v2346_v46  ;;  %v10175_v56 = vpack.i.b16 %v2239_v5, %v2318_v1  ;;  %v2477_v46 = vrot.slane %v10185_v28, 3 }
 0x12c   : > { %2156 = vst [vmem:[#allocation1 + $0x23] ss:$4 sm:$0xff] %v10165_v31  ;;  %v10176_v48 = vpack.i.b16 %v2242_v58, %v2320_v23  ;;  %v2307_v31 = vrot.slane %v2305_v59, 3  ;;  %v2334_v1 = vunpack.i.h.s16 %v2265_v38  ;;  %v13376_v23 = vld [vmem:[%s12409_s19 + $0x2c] sm:$0xf] }
 0x12d   : > { %v2494_v52 = vsel %vm493_vm0, %v10185_v28, %v2477_v46  ;;  %v2488_v58 = vsel %vm549_vm1, %v10185_v28, %v2477_v46  ;;  %2453 = vst.msk [vmem:[#allocation2 + $0xc] sm:$0xf] %vm784_vm4, %v13304_v2  ;;  %v2566_v2 = vsel %vm549_vm1, %v10191_v13, %v2483_v26 }
 0x12e   : > { %v2356_v5 = vunpack.i.l.s16 %v2307_v31  ;;  %v2496_v59 = vrot.slane %v2494_v52, 3  ;;  %v13390_v31 = vld [vmem:[%s12409_s19 + $0x30] sm:$0xf] }
 0x12f   : > { %v13342_v47 = vld [vmem:[#allocation1] sm:$0xff] }
 0x130   : > { %2426 = vst [vmem:[#allocation1] ss:$4 sm:$0xff] %v2278_v30  ;;  %1615 = vrot.lane.b32.xlu0 %v12876_v42, %s16135_s20  ;;  %v2266_v42 = vsel %vm493_vm0, %v13232_v0, %v13250_v10  ;;  %v2332_v30 = vunpack.i.h.s16 %v16153_v19  ;;  %v13368_v0 = vrot.slane %v13362_v3, 3  ;;  %v2273_v10 = vsel %vm549_vm1, %v13279_v60, %v13294_v55 }
 0x131   : > { %2428 = vst [vmem:[#allocation1 + $0x1] ss:$4 sm:$0xff] %v10181_v6  ;;  %v2268_v6 = vrot.slane %v2266_v42, 3  ;;  %v2275_v51 = vrot.slane %v2273_v10, 1 }
 0x132   : > { %2430 = vst [vmem:[#allocation1 + $0x2] ss:$4 sm:$0xff] %v10182_v63  ;;  %v10179_v29 = vpack.i.b16 %v2265_v38, %v2332_v30  ;;  %v2490_v38 = vrot.slane %v2488_v58, 1  ;;  %v2297_v58 = vsel %vm413_vm3, %v13326_v4, %v13337_v50 }
 0x133   : > { %2432 = vst [vmem:[#allocation1 + $0x3] ss:$4 sm:$0xff] %v10183_v14  ;;  %v2159_v41 = vld [vmem:[#allocation1 + $0x20] sm:$0xff]  ;;  %v10180_v63 = vpack.i.b16 %v2268_v6, %v2334_v1  ;;  %v2491_v14 = vsel %vm553_vm2, %v10185_v28, %v2477_v46  ;;  %v11834_v6 = vld [vmem:[%s16155_s2 + $0x38] sm:$0xff] }
 0x134   : > { %2395 = vst [vmem:[#allocation1 + $0x20] ss:$4 sm:$0xff] %v10174_v12  ;;  %v2271_v12 = vsel %vm413_vm3, %v13279_v60, %v13294_v55  ;;  %v13397_v60 = vrot.slane %v13376_v23, 3  ;;  %v2493_v55 = vrot.slane %v2491_v14, 2  ;;  %v13430_v1 = vld [vmem:[%s12409_s19 + $0x38] sm:$0xf]  ;;  %3434 = vmatpush.bf16.msra.mxu0 %v11834_v6 }
 0x135   : > { %2398 = vst [vmem:[#allocation1 + $0x21] ss:$4 sm:$0xff] %v10175_v56 }
 0x136   : > { %2401 = vst [vmem:[#allocation1 + $0x22] ss:$4 sm:$0xff] %v10176_v48  ;;  %v13387_v48 = vsel %vm413_vm3, %v13362_v3, %v13368_v0  ;;  %v2514_v52 = vsel %vm549_vm1, %v13376_v23, %v13397_v60 }
 0x137   : > { %2404 = vst [vmem:[#allocation1 + $0x23] ss:$4 sm:$0xff] %v2245_v57  ;;  %v2486_v57 = vsel %vm413_vm3, %v10185_v28, %v2477_v46  ;;  %v2348_v28 = vunpack.i.h.s16 %v2291_v11  ;;  %v2520_v46 = vsel %vm493_vm0, %v13376_v23, %v13397_v60 }
 0x138   : > { %2175 = vrot.lane.b32.xlu0 %v2159_v41, %s16135_s20  ;;  %v2292_v41 = vsel %vm493_vm0, %v13262_v8, %v13288_v20  ;;  %v13405_v8 = vrot.slane %v13390_v31, 3  ;;  %v2522_v10 = vrot.slane %v2520_v46, 3  ;;  %2455 = vst.msk [vmem:[#allocation2 + $0x34] sm:$0xf] %vm784_vm4, %v13342_v47  ;;  %v2569_v47 = vsel %vm553_vm2, %v10191_v13, %v2483_v26 }
 0x139   : > { %v2294_v20 = vrot.slane %v2292_v41, 3 }
 0x13a   : > { %v13365_v35 = vld [vmem:[#allocation1] sm:$0xff]  ;;  %v2525_v19 = vsel %vm413_vm3, %v13390_v31, %v13405_v8  ;;  %v13421_v11 = vsel %vm549_vm1, %v13390_v31, %v13405_v8 }
 0x13b   : > { %2444 = vst [vmem:[#allocation1] ss:$4 sm:$0xff] %v2356_v5  ;;  %v10192_v5 = vpack.i.b16 %v13387_v48, %v2496_v59  ;;  %v10184_v30 = vpack.i.b16 %v2294_v20, %v2348_v28  ;;  %v2504_v59 = vsel %vm553_vm2, %v13362_v3, %v13368_v0  ;;  %v2529_v41 = vrot.slane %v13421_v11, 1  ;;  %v11830_v11 = vld [vmem:[%s16155_s2 + $0x18] sm:$0xff] }
 0x13c   : > { %v2506_v28 = vrot.slane %v2504_v59, 2  ;;  %2457 = vst.msk [vmem:[#allocation2 + $0x5c] sm:$0xf] %vm784_vm4, %v13365_v35  ;;  %v2564_v35 = vsel %vm413_vm3, %v10191_v13, %v2483_v26  ;;  %v13661_v26 = vld [vmem:[%s12409_s19 + $0x8] sm:$0xf] }
 0x13d   : > { %v13671_v21 = vrot.slane %v13661_v26, 3 }
 0x13e   : > { %v13382_v56 = vld [vmem:[#allocation1 + $0x20] sm:$0xff] }
 0x13f   : > { %2416 = vst [vmem:[#allocation1 + $0x20] ss:$4 sm:$0xff] %v10179_v29  ;;  %v2501_v29 = vsel %vm549_vm1, %v13362_v3, %v13368_v0 }
 0x140   : > { %2418 = vst [vmem:[#allocation1 + $0x21] ss:$4 sm:$0xff] %v10180_v63  ;;  %1619 = vrot.lane.b32.xlu0 %v12901_v18, %s16135_s20  ;;  %v2299_v18 = vsel %vm549_vm1, %v13326_v4, %v13337_v50  ;;  %v2517_v63 = vsel %vm553_vm2, %v13376_v23, %v13397_v60  ;;  %v13457_v4 = vrot.slane %v13430_v1, 3  ;;  %v2516_v50 = vrot.slane %v2514_v52, 1 }
 0x141   : > { %2420 = vst [vmem:[#allocation1 + $0x22] ss:$4 sm:$0xff] %v2271_v12  ;;  %v2301_v14 = vrot.slane %v2299_v18, 1  ;;  %v11833_v12 = vld [vmem:[%s16155_s2 + $0x30] sm:$0xff]  ;;  %v2519_v20 = vrot.slane %v2517_v63, 2  ;;  %v10196_v18 = vpack.i.b16 %v2525_v19, %v2522_v10  ;;  %v2587_v10 = vunpack.i.h.s16 %v2506_v28 }
 0x142   : > { %v13401_v42 = vld [vmem:[#allocation1] sm:$0xff]  ;;  %2422 = vst [vmem:[#allocation1 + $0x23] ss:$4 sm:$0xff] %v2275_v51  ;;  %v13451_v51 = vld [vmem:[%s12409_s19 + $0x34] sm:$0xf]  ;;  %3435 = vmatpush.bf16.msra.mxu0 %v11833_v12  ;;  %v2553_v52 = vsel %vm549_vm1, %v13430_v1, %v13457_v4  ;;  %v13487_v59 = vsel %vm553_vm2, %v13430_v1, %v13457_v4  ;;  %v2559_v39 = vsel %vm493_vm0, %v13430_v1, %v13457_v4 }
 0x143   : > { %16154 = vst [vmem:[#allocation12_spill] sm:$0xff] %v13401_v42  ;;  %v13460_v46 = vrot.slane %v13451_v51, 3  ;;  %v2555_v63 = vrot.slane %v2553_v52, 1  ;;  %v2561_v62 = vrot.slane %v2559_v39, 3 }
 0x144   : > { %2650 = vst [vmem:[#allocation1] ss:$4 sm:$0xff] %v2486_v57  ;;  %v2597_v57 = vunpack.i.h.s16 %v2525_v19 }
 0x145   : > { %2653 = vst [vmem:[#allocation1 + $0x1] ss:$4 sm:$0xff] %v2490_v38  ;;  %v2304_v38 = vrot.slane %v2302_v17, 2  ;;  %v2507_v17 = vsel %vm493_vm0, %v13362_v3, %v13368_v0  ;;  %v11832_v3 = vld [vmem:[%s16155_s2 + $0x28] sm:$0xff] }
 0x146   : > { %2656 = vst [vmem:[#allocation1 + $0x2] ss:$4 sm:$0xff] %v2493_v55  ;;  %v10197_v42 = vpack.i.b16 %v2529_v41, %v2597_v57  ;;  %v2509_v0 = vrot.slane %v2507_v17, 3  ;;  %3436 = vmatpush.bf16.msra.mxu0 %v11832_v3  ;;  %v2543_v57 = vsel %vm553_vm2, %v13451_v51, %v13460_v46  ;;  %v2613_v17 = vunpack.i.h.s16 %v2555_v63 }
 0x147   : > { %2659 = vst [vmem:[#allocation1 + $0x3] ss:$4 sm:$0xff] %v10192_v5  ;;  %v2503_v5 = vrot.slane %v2501_v29, 1  ;;  %v2546_v29 = vsel %vm493_vm0, %v13451_v51, %v13460_v46  ;;  %v2545_v34 = vrot.slane %v2543_v57, 2  ;;  %v416_v57 = vld [vmem:[#allocation3 + $0x4] sm:$0x1] }
 0x148   : > { %2454 = vst.msk [vmem:[#allocation2 + $0x20] sm:$0xf] %vm784_vm4, %v13382_v56 }
 0x149   : > { %v13454_v55 = vld [vmem:[#allocation1 + $0x20] sm:$0xff]  ;;  %v2585_v19 = vunpack.i.h.s16 %v2503_v5 }
 0x14a   : > { %2434 = vst [vmem:[#allocation1 + $0x20] ss:$4 sm:$0xff] %v10184_v30  ;;  %v2583_v30 = vunpack.i.h.s16 %v13387_v48  ;;  %v2551_v48 = vsel %vm413_vm3, %v13430_v1, %v13457_v4  ;;  %v2568_v1 = vrot.slane %v2566_v2, 1  ;;  %v1065_v4 = vpop.permute.xlu2 %1064 }
 0x14b   : > { %2436 = vst [vmem:[#allocation1 + $0x21] ss:$4 sm:$0xff] %v2297_v58  ;;  %v11831_v58 = vld [vmem:[%s16155_s2 + $0x20] sm:$0xff]  ;;  %v10194_v12 = vpack.i.b16 %v2506_v28, %v2585_v19  ;;  %v2558_v28 = vrot.slane %v13487_v59, 2  ;;  %v2533_v19 = vsel %vm493_vm0, %v13390_v31, %v13405_v8  ;;  %v12287_v59 = vmov 0  }
 0x14c   : > { %2438 = vst [vmem:[#allocation1 + $0x22] ss:$4 sm:$0xff] %v2301_v14  ;;  %v10193_v14 = vpack.i.b16 %v2503_v5, %v2583_v30  ;;  %v10195_v5 = vpack.i.b16 %v2509_v0, %v2587_v10  ;;  %3437 = vmatpush.bf16.msra.mxu0 %v11831_v58  ;;  %v11848_v58 = vld [vmem:[%s16155_s2 + $0xa8] sm:$0xff] }
 0x14d   : > { %2440 = vst [vmem:[#allocation1 + $0x23] ss:$4 sm:$0xff] %v2304_v38  ;;  %v2548_v38 = vrot.slane %v2546_v29, 3  ;;  %v10202_v24 = vpack.i.b16 %v2558_v28, %v2613_v17  ;;  %v2538_v29 = vsel %vm413_vm3, %v13451_v51, %v13460_v46  ;;  %v430_v17 = vld [vmem:[#allocation3 + $0x10] sm:$0x1] }
 0x14e   : > { %v2672_v6 = vld [vmem:[#allocation1] sm:$0xff]  ;;  %2456 = vst.msk [vmem:[#allocation2 + $0x48] sm:$0xf] %vm784_vm4, %v13454_v55  ;;  %v1061_v55 = vpop.permute.xlu1 %1060 }
 0x14f   : > { %2720 = vrot.lane.b32.xlu1 %v2672_v6, %s16135_s20  ;;  %2677 = vst [vmem:[#allocation1] ss:$4 sm:$0xff] %v2516_v50  ;;  %v2530_v50 = vsel %vm553_vm2, %v13390_v31, %v13405_v8  ;;  %v2512_v6 = vsel %vm413_vm3, %v13376_v23, %v13397_v60  ;;  %v10200_v52 = vpack.i.b16 %v2551_v48, %v2548_v38  ;;  %v2599_v23 = vunpack.i.h.s16 %v2529_v41  ;;  %v421_v38 = vld [vmem:[#allocation3 + $0x44] sm:$0x1] }
 0x150   : > { %2679 = vst [vmem:[#allocation1 + $0x1] ss:$4 sm:$0xff] %v2519_v20  ;;  %v2611_v20 = vunpack.i.h.s16 %v2551_v48  ;;  %v2532_v30 = vrot.slane %v2530_v50, 2  ;;  %v2535_v60 = vrot.slane %v2533_v19, 3  ;;  %3438 = vmatpush.bf16.msra.mxu0 %v11830_v11 }
 0x151   : > { %2681 = vst [vmem:[#allocation1 + $0x2] ss:$4 sm:$0xff] %v10196_v18 }
 0x152   : > { %2683 = vst [vmem:[#allocation1 + $0x3] ss:$4 sm:$0xff] %v10197_v42  ;;  %v1055_v42 = vpop.permute.xlu0 %1054  ;;  %v10201_v3 = vpack.i.b16 %v2555_v63, %v2611_v20  ;;  %v2601_v10 = vunpack.i.h.s16 %v2532_v30  ;;  %v10198_v31 = vpack.i.b16 %v2532_v30, %v2599_v23  ;;  %v422_v20 = vsel %vm13620_vm7, 0, %v421_v38  ;;  %v436_v30 = vld [vmem:[#allocation3 + $0x20] sm:$0x1] }
 0x153   : > { %1076 = vst.msk [vmem:[#allocation2] sm:$0xf] %vm1075_vm5, %v1055_v42  ;;  %v11847_v42 = vld [vmem:[%s16155_s2 + $0xa0] sm:$0xff]  ;;  %v11841_v38 = vld [vmem:[%s16155_s2 + $0x70] sm:$0xff] }
 0x154   : > { %v13498_v18 = vld [vmem:[#allocation1 + $0x20] sm:$0xff]  ;;  %v10199_v8 = vpack.i.b16 %v2535_v60, %v2601_v10  ;;  %3439 = vmatpush.bf16.msra.mxu0 %v11829_v54  ;;  %1079 = vst.msk [vmem:[#allocation2 + $0x3c] sm:$0xf] %vm1075_vm5, %v1061_v55  ;;  %v13699_v55 = vrot.slane %v13683_v33, 3 }
 0x155   : > { %2662 = vst [vmem:[#allocation1 + $0x20] ss:$4 sm:$0xff] %v10193_v14  ;;  %v11858_v14 = vld [vmem:[%s16155_s2 + $0xf8] sm:$0xff] }
 0x156   : > { %2665 = vst [vmem:[#allocation1 + $0x21] ss:$4 sm:$0xff] %v10194_v12  ;;  %3518 = vmatpush.bf16.msra.mxu3 %v11858_v14 }
 0x157   : > { %1613 = vrot.lane.b32.xlu1 %v13016_v16, %s16135_s20  ;;  %2668 = vst [vmem:[#allocation1 + $0x22] ss:$4 sm:$0xff] %v10195_v5  ;;  %v2540_v16 = vsel %vm549_vm1, %v13451_v51, %v13460_v46  ;;  %v2571_v51 = vrot.slane %v2569_v47, 2  ;;  %v417_v5 = vsel %vm13620_vm7, 0, %v416_v57  ;;  %v2786_v47 = vsel %vm413_vm3, %v13661_v26, %v13671_v21 }
 0x158   : > { %2671 = vst [vmem:[#allocation1 + $0x23] ss:$4 sm:$0xff] %v2512_v6  ;;  %v2542_v48 = vrot.slane %v2540_v16, 1  ;;  %3440 = vmatpush.bf16.msra.mxu0 %v11828_v61  ;;  %v431_v6 = vsel %vm13620_vm7, 0, %v430_v17  ;;  %v442_v16 = vld [vmem:[#allocation3 + $0x30] sm:$0x1]  ;;  %v2869_v57 = vunpack.i.h.s16 %v2786_v47 }
 0x159   : > { %v2692_v0 = vld [vmem:[#allocation1] sm:$0xff]  ;;  %2458 = vst.msk [vmem:[#allocation2 + $0x70] sm:$0xf] %vm784_vm4, %v13498_v18  ;;  %v427_v18 = vld [vmem:[#allocation3 + $0x8] sm:$0x1] }
 0x15a   : > { %2697 = vst [vmem:[#allocation1] ss:$4 sm:$0xff] %v2545_v34  ;;  %v1057_v49 = vpop.permute.xlu0 %1056  ;;  %v433_v34 = vld [vmem:[#allocation3 + $0x18] sm:$0x1] }
 0x15b   : > { %2699 = vst [vmem:[#allocation1 + $0x1] ss:$4 sm:$0xff] %v10200_v52  ;;  %v10245_v52 = vld [vmem:[#allocation2 + $0x28] sm:$0xf]  ;;  %v11819_v19 = vld [vmem:[#allocation2 + $0x38] sm:$0xf0] }
 0x15c   : > { %2701 = vst [vmem:[#allocation1 + $0x2] ss:$4 sm:$0xff] %v10201_v3  ;;  %3441 = vmatpush.bf16.msra.mxu0 %v11827_v53  ;;  %v434_v3 = vsel %vm13620_vm7, 0, %v433_v34  ;;  %v2807_v34 = vsel %vm493_vm0, %v13683_v33, %v13699_v55 }
 0x15d   : > { %2703 = vst [vmem:[#allocation1 + $0x3] ss:$4 sm:$0xff] %v10202_v24  ;;  %v439_v24 = vld [vmem:[#allocation3 + $0x28] sm:$0x1] }
 0x15e   : > { %1077 = vst.msk [vmem:[#allocation2 + $0x14] sm:$0xf] %vm1075_vm5, %v1057_v49  ;;  %v440_v60 = vsel %vm13620_vm7, 0, %v439_v24  ;;  %v11842_v49 = vld [vmem:[%s16155_s2 + $0x78] sm:$0xff] }
 0x15f   : > { %2724 = vrot.lane.b32.xlu1 %v2692_v0, %s16135_s20  ;;  %v2674_v41 = vld [vmem:[#allocation1 + $0x20] sm:$0xff]  ;;  %1081 = vst.msk [vmem:[#allocation2 + $0x64] sm:$0xf] %vm1075_vm5, %v1065_v4  ;;  %v437_v0 = vsel %vm13620_vm7, 0, %v436_v30  ;;  %3462 = vmatpush.bf16.msra.mxu1 %v11842_v49  ;;  %v11845_v4 = vld [vmem:[%s16155_s2 + $0x90] sm:$0xff]  ;;  %v11854_v24 = vld [vmem:[%s16155_s2 + $0xd8] sm:$0xff] }
 0x160   : > { %2722 = vrot.lane.b32.xlu2 %v2674_v41, %s16135_s20  ;;  %2685 = vst [vmem:[#allocation1 + $0x20] ss:$4 sm:$0xff] %v10198_v31  ;;  %v443_v31 = vsel %vm13620_vm7, 0, %v442_v16  ;;  %v11843_v16 = vld [vmem:[%s16155_s2 + $0x80] sm:$0xff] }
 0x161   : > { %2687 = vst [vmem:[#allocation1 + $0x21] ss:$4 sm:$0xff] %v10199_v8 }
 0x162   : > { %2689 = vst [vmem:[#allocation1 + $0x22] ss:$4 sm:$0xff] %v2538_v29  ;;  %v10246_v29 = vor.u32 %v11819_v19, %v10245_v52  ;;  %v13657_v13 = vpop.permute.xlu0 %1066  ;;  %v1350_v19 = vld [vmem:[#allocation2 + $0x7c] sm:$0x1] }
 0x163   : > { %2691 = vst [vmem:[#allocation1 + $0x23] ss:$4 sm:$0xff] %v2542_v48  ;;  %3463 = vmatpush.bf16.msra.mxu1 %v11841_v38  ;;  %v11860_v38 = vld [vmem:[%s16155_s2 + $0x108] sm:$0xff] }
 0x164   : > { %v2712_v45 = vld [vmem:[#allocation1] sm:$0xff]  ;;  %412 = vst [vmem:[#allocation3] sm:$0xf] %v12287_v59 }
 0x165   : > { %2717 = vst [vmem:[#allocation1] ss:$4 sm:$0xff] %v2623_v40 }
 0x166   : > { %420 = vst [vmem:[#allocation3 + $0x40] sm:$0xf] %v12287_v59 }
 0x167   : > { %1617 = vrot.lane.b32.xlu1 %v13050_v25, %s16135_s20  ;;  %v2615_v25 = vunpack.i.h.s16 %v2558_v28  ;;  %418 = vst [vmem:[#allocation3 + $0x4] sm:$0x1] %v417_v5  ;;  %v428_v28 = vsel %vm13620_vm7, 0, %v427_v18  ;;  %v2804_v5 = vsel %vm553_vm2, %v13683_v33, %v13699_v55  ;;  %v13723_v18 = vsel %vm549_vm1, %v13683_v33, %v13699_v55 }
 0x168   : > { %2169 = vrot.lane.b32.xlu2 %v13184_v7, %s16135_s20  ;;  %v11849_v7 = vld [vmem:[%s16155_s2 + $0xb0] sm:$0xff]  ;;  %423 = vst [vmem:[#allocation3 + $0x44] sm:$0x1] %v422_v20  ;;  %v11844_v20 = vld [vmem:[%s16155_s2 + $0x88] sm:$0xff] }
 0x169   : > { %v10203_v56 = vpack.i.b16 %v2561_v62, %v2615_v25  ;;  %3491 = vmatpush.bf16.msra.mxu2 %v11849_v7  ;;  %429 = vst [vmem:[#allocation3 + $0x8] sm:$0x1] %v428_v28  ;;  %v793_v62 = vld [vmem:[#allocation2 + $0x78] sm:$0x1]  ;;  %v11846_v25 = vld [vmem:[%s16155_s2 + $0x98] sm:$0xff] }
 0x16a   : > { %v2694_v36 = vld [vmem:[#allocation1 + $0x20] sm:$0xff]  ;;  %432 = vst [vmem:[#allocation3 + $0x10] sm:$0x1] %v431_v6 }
 0x16b   : > { %2705 = vst [vmem:[#allocation1 + $0x20] ss:$4 sm:$0xff] %v10203_v56  ;;  %v424_v23 = vld [vmem:[#allocation3] sm:$0x1]  ;;  %v794_v56 = vsel %vm13675_vm13, %v12532_v32, %v793_v62  ;;  %v2166_v32 = vpop.permute.xlu2 %2165 }
 0x16c   : > { %2707 = vst [vmem:[#allocation1 + $0x21] ss:$4 sm:$0xff] %v2564_v35  ;;  %v2718_v46 = vld [vmem:[#allocation1] sm:$0xff]  ;;  %v425_v10 = vsel %vm13620_vm7, 0, %v424_v23  ;;  %v11856_v35 = vld [vmem:[%s16155_s2 + $0xe8] sm:$0xff]  ;;  %v2803_v23 = vrot.slane %v13723_v18, 1 }
 0x16d   : > { %2709 = vst [vmem:[#allocation1 + $0x22] ss:$4 sm:$0xff] %v2568_v1  ;;  %2732 = vrot.lane.b32.xlu0 %v2718_v46, %s16135_s20  ;;  %3492 = vmatpush.bf16.msra.mxu2 %v11848_v58  ;;  %v448_v8 = vld [vmem:[#allocation3 + $0x40] sm:$0x1]  ;;  %v10265_v1 = vld [vmem:[#allocation2 + $0x50] sm:$0xf] }
 0x16e   : > { %2711 = vst [vmem:[#allocation1 + $0x23] ss:$4 sm:$0xff] %v2571_v51  ;;  %v449_v11 = vsel %vm13620_vm7, 0, %v448_v8  ;;  %v451_v41 = vld [vmem:[#allocation3 + $0x4] sm:$0x1]  ;;  %v2878_v8 = vunpack.i.h.s16 %v2803_v23 }
 0x16f   : > { %2728 = vrot.lane.b32.xlu1 %v2712_v45, %s16135_s20  ;;  %435 = vst [vmem:[#allocation3 + $0x18] sm:$0x1] %v434_v3  ;;  %v452_v48 = vsel %vm13620_vm7, 0, %v451_v41  ;;  %v475_v54 = vld [vmem:[#allocation3 + $0x44] sm:$0x1]  ;;  %v11840_v3 = vld [vmem:[%s16155_s2 + $0x68] sm:$0xff] }
 0x170   : > { %2726 = vrot.lane.b32.xlu2 %v2694_v36, %s16135_s20  ;;  %438 = vst [vmem:[#allocation3 + $0x20] sm:$0x1] %v437_v0  ;;  %v476_v61 = vsel %vm13620_vm7, 0, %v475_v54  ;;  %v11857_v36 = vld [vmem:[%s16155_s2 + $0xf0] sm:$0xff]  ;;  %v11824_v51 = vld [vmem:[#allocation2 + $0x60] sm:$0xf0]  ;;  %3464 = vmatpush.bf16.msra.mxu1 %v11840_v3 }
 0x171   : > { %3493 = vmatpush.bf16.msra.mxu2 %v11847_v42  ;;  %426 = vst [vmem:[#allocation3] sm:$0x1] %v425_v10  ;;  %3519 = vmatpush.bf16.msra.mxu3 %v11857_v36  ;;  %v13705_v58 = vld [vmem:[%s12409_s19 + $0x10] sm:$0xf]  ;;  %v10266_v42 = vor.u32 %v11824_v51, %v10265_v1  ;;  %v2806_v0 = vrot.slane %v2804_v5, 2  ;;  %v1351_v10 = vsel %vm13675_vm13, %v12777_v27, %v1350_v19  ;;  %v11839_v41 = vld [vmem:[%s16155_s2 + $0x60] sm:$0xff] }
 0x172   : > { %441 = vst [vmem:[#allocation3 + $0x28] sm:$0x1] %v440_v60  ;;  %v13727_v6 = vrot.slane %v13705_v58, 3  ;;  %v2809_v60 = vrot.slane %v2807_v34, 3  ;;  %v13754_v27 = vld [vmem:[%s12409_s19 + $0x14] sm:$0xf] }
 0x173   : > { %444 = vst [vmem:[#allocation3 + $0x30] sm:$0x1] %v443_v31  ;;  %v13761_v54 = vld [vmem:[%s12409_s19 + $0x18] sm:$0xf] }
 0x174   : > { %450 = vst [vmem:[#allocation3 + $0x40] sm:$0x1] %v449_v11  ;;  %v2812_v31 = vsel %vm413_vm3, %v13705_v58, %v13727_v6  ;;  %3465 = vmatpush.bf16.msra.mxu1 %v11839_v41  ;;  %v11838_v36 = vld [vmem:[%s16155_s2 + $0x58] sm:$0xff] }
 0x175   : > { %v2714_v50 = vld [vmem:[#allocation1 + $0x20] sm:$0xff]  ;;  %453 = vst [vmem:[#allocation3 + $0x4] sm:$0x1] %v452_v48  ;;  %3494 = vmatpush.bf16.msra.mxu2 %v11846_v25  ;;  %3520 = vmatpush.bf16.msra.mxu3 %v11856_v35  ;;  %v11853_v48 = vld [vmem:[%s16155_s2 + $0xd0] sm:$0xff]  ;;  %v11852_v25 = vld [vmem:[%s16155_s2 + $0xc8] sm:$0xff] }
 0x176   : > { %477 = vst [vmem:[#allocation3 + $0x44] sm:$0x1] %v476_v61  ;;  %v2882_v61 = vunpack.i.h.s16 %v2809_v60 }
 0x177   : > { %1621 = vrot.lane.b32.xlu1 %v13080_v37, %s16135_s20  ;;  %v10225_v37 = vld [vmem:[#allocation2] sm:$0xf]  ;;  %508 = vst [vmem:[#allocation6 + $0xc] sm:$0x11] %v12287_v59 }
 0x178   : > { %2173 = vrot.lane.b32.xlu2 %v13211_v22, %s16135_s20  ;;  %v11814_v22 = vld [vmem:[#allocation2 + $0x10] sm:$0xf0]  ;;  %510 = vst.msk [vmem:[#allocation6 + $0x14] sm:$0x1] %vm509_vm11, %v12287_v59  ;;  %3466 = vmatpush.bf16.msra.mxu1 %v11838_v36 }
 0x179   : > { %v10226_v63 = vor.u32 %v11814_v22, %v10225_v37  ;;  %514 = vst.msk [vmem:[#allocation6 + $0xc] sm:$0x1] %vm513_vm10, %v12287_v59  ;;  %3495 = vmatpush.bf16.msra.mxu2 %v11845_v4  ;;  %v1624_v4 = vpop.permute.xlu1 %1623  ;;  %vm482_vm10 = vsmask.f32 5376 }
 0x17a   : > { %522 = vst.msk [vmem:[#allocation6 + $0x10] sm:$0x11] %vm521_vm12, %v12287_v59  ;;  %vm16139_vm12 = vcmask 517120  }
 0x17b   : > { %3442 = vmatmul.bf16.vlgmr.msra.gmra.mxu0 %v10226_v63  ;;  %795 = vst [vmem:[#allocation2 + $0x78] sm:$0x1] %v794_v56 }
 0x17c   : > { %2186 = vst.msk [vmem:[#allocation2 + $0x8] sm:$0xf] %vm1075_vm5, %v2166_v32 }
 0x17d   : > { %3496 = vmatpush.bf16.msra.mxu2 %v11844_v20  ;;  %1352 = vst [vmem:[#allocation2 + $0x7c] sm:$0x1] %v1351_v10  ;;  %v2799_v10 = vsel %vm413_vm3, %v13683_v33, %v13699_v55 }
 0x180   : > { %2730 = vrot.lane.b32.xlu2 %v2714_v50, %s16135_s20  ;;  %v11855_v50 = vld [vmem:[%s16155_s2 + $0xe0] sm:$0xff] }
 0x181   : > { %3521 = vmatpush.bf16.msra.mxu3 %v11855_v50  ;;  %3497 = vmatpush.bf16.msra.mxu2 %v11843_v16  ;;  %v2788_v50 = vsel %vm549_vm1, %v13661_v26, %v13671_v21 }
 0x182   : > { %v1084_v49 = vld [vmem:[#allocation2 + $0x78] sm:$0x1] }
 0x183   : > { %v10233_v1 = vld [vmem:[#allocation2 + $0x8] sm:$0xf] }
 0x185   : > { %3522 = vmatpush.bf16.msra.mxu3 %v11854_v24 }
 0x188   : > { %2177 = vrot.lane.b32.xlu2 %v13247_v44, %s16135_s20  ;;  %v10204_v44 = vld [vmem:[%s12409_s19 + $0x4] sm:$0xf]  ;;  %s12289_s20 = smov 32  }
 0x189   : > { %v2764_v53 = vrot.slane %v10204_v44, 3  ;;  %3523 = vmatpush.bf16.msra.mxu3 %v11853_v48  ;;  %v2876_v48 = vunpack.i.h.s16 %v2799_v10 }
 0x18a   : > { %v2168_v63 = vpop.permute.xlu0 %2167 }
 0x18b   : > { %3447 = vmatmul.bf16.gmra.mxu0 %v10246_v29  ;;  %v2775_v45 = vsel %vm549_vm1, %v10204_v44, %v2764_v53  ;;  %v2778_v9 = vsel %vm553_vm2, %v10204_v44, %v2764_v53  ;;  %v2781_v39 = vsel %vm493_vm0, %v10204_v44, %v2764_v53  ;;  %v2773_v40 = vsel %vm413_vm3, %v10204_v44, %v2764_v53  ;;  %v11862_v53 = vld [vmem:[%s16155_s2 + $0x118] sm:$0xff] }
 0x18c   : > { %v2777_v15 = vrot.slane %v2775_v45, 1  ;;  %v2780_v7 = vrot.slane %v2778_v9, 2  ;;  %v2783_v2 = vrot.slane %v2781_v39, 3  ;;  %v2862_v37 = vunpack.i.h.s16 %v2773_v40  ;;  %2187 = vst.msk [vmem:[#allocation2 + $0x1c] sm:$0xf] %vm1075_vm5, %v2168_v63  ;;  %3550 = vmatpush.bf16.msrb.mxu0 %v11862_v53  ;;  %v11837_v63 = vld [vmem:[%s16155_s2 + $0x50] sm:$0xff] }
 0x18d   : > { %v2880_v29 = vunpack.i.h.s16 %v2806_v0  ;;  %v2883_v44 = vunpack.i.h.s16 %v2812_v31  ;;  %v13767_v45 = vrot.slane %v13754_v27, 3  ;;  %v10215_v9 = vpack.i.b16 %v2806_v0, %v2878_v8  ;;  %3524 = vmatpush.bf16.msra.mxu3 %v11852_v25  ;;  %3467 = vmatpush.bf16.msra.mxu1 %v11837_v63  ;;  %v11859_v0 = vld [vmem:[%s16155_s2 + $0x100] sm:$0xff] }
 0x18e   : > { %v2864_v46 = vunpack.i.h.s16 %v2777_v15  ;;  %v2866_v22 = vunpack.i.h.s16 %v2780_v7  ;;  %v2868_v14 = vunpack.i.h.s16 %v2783_v2  ;;  %v10211_v28 = vpack.i.b16 %v2777_v15, %v2862_v37 }
 0x18f   : > { %v2814_v39 = vsel %vm549_vm1, %v13705_v58, %v13727_v6  ;;  %v10216_v62 = vpack.i.b16 %v2809_v60, %v2880_v29  ;;  %v13784_v15 = vrot.slane %v13761_v54, 3  ;;  %v13795_v47 = vsel %vm553_vm2, %v13754_v27, %v13767_v45 }
 0x190   : > { %v10212_v17 = vpack.i.b16 %v2780_v7, %v2864_v46  ;;  %v10213_v30 = vpack.i.b16 %v2783_v2, %v2866_v22  ;;  %v2914_v52 = vpack.i.b16 %v2869_v57, %v2868_v14  ;;  %2937 = vst [vmem:[#allocation1] ss:$4 sm:$0xff] %v10211_v28  ;;  %v2833_v7 = vsel %vm493_vm0, %v13754_v27, %v13767_v45  ;;  %v11861_v2 = vld [vmem:[%s16155_s2 + $0x110] sm:$0xff]  ;;  %v1638_v46 = vld [vmem:[#allocation2 + $0x7c] sm:$0x1]  ;;  %v11836_v28 = vld [vmem:[%s16155_s2 + $0x48] sm:$0xff] }
 0x191   : > { %v2921_v56 = vpack.i.b16 %v2883_v44, %v2882_v61  ;;  %v2816_v37 = vrot.slane %v2814_v39, 1  ;;  %v2835_v32 = vrot.slane %v2833_v7, 3  ;;  %v1085_v14 = vsel %vm13779_vm15, %v13657_v13, %v1084_v49  ;;  %3551 = vmatpush.bf16.msrb.mxu0 %v11861_v2  ;;  %v11851_v57 = vld [vmem:[%s16155_s2 + $0xc0] sm:$0xff]  ;;  %3468 = vmatpush.bf16.msra.mxu1 %v11836_v28 }
 0x192   : > { %2940 = vst [vmem:[#allocation1 + $0x1] ss:$4 sm:$0xff] %v10212_v17  ;;  %v1612_v11 = vpop.permute.xlu0 %1611  ;;  %v2838_v13 = vsel %vm413_vm3, %v13761_v54, %v13784_v15  ;;  %v1639_v20 = vsel %vm13779_vm15, %v1624_v4, %v1638_v46  ;;  %v2791_v17 = vsel %vm553_vm2, %v13661_v26, %v13671_v21  ;;  %3525 = vmatpush.bf16.msra.mxu3 %v11851_v57 }
 0x193   : > { %2943 = vst [vmem:[#allocation1 + $0x2] ss:$4 sm:$0xff] %v10213_v30  ;;  %v11815_v51 = vld [vmem:[#allocation2 + $0x18] sm:$0xf0]  ;;  %v2790_v30 = vrot.slane %v2788_v50, 1  ;;  %v2896_v19 = vunpack.i.h.s16 %v2835_v32  ;;  %v2897_v3 = vunpack.i.h.s16 %v2838_v13  ;;  %v2793_v24 = vrot.slane %v2791_v17, 2 }
 0x194   : > { %2946 = vst [vmem:[#allocation1 + $0x3] ss:$4 sm:$0xff] %v2914_v52  ;;  %v10234_v5 = vor.u32 %v11815_v51, %v10233_v1  ;;  %v2794_v52 = vsel %vm493_vm0, %v13661_v26, %v13671_v21  ;;  %v2840_v60 = vsel %vm549_vm1, %v13761_v54, %v13784_v15  ;;  %v11835_v26 = vld [vmem:[%s16155_s2 + $0x40] sm:$0xff]  ;;  %v2843_v16 = vsel %vm553_vm2, %v13761_v54, %v13784_v15  ;;  %v1905_v13 = vld [vmem:[#allocation2 + $0x80] sm:$0x1] }
 0x195   : > { %1632 = vst.msk [vmem:[#allocation2 + $0x4] sm:$0xf] %vm1075_vm5, %v1612_v11  ;;  %3552 = vmatpush.bf16.msrb.mxu0 %v11860_v38  ;;  %v2796_v21 = vrot.slane %v2794_v52, 3  ;;  %v13847_v11 = vld [vmem:[%s12409_s19 + $0x1c] sm:$0xf]  ;;  %v2928_v41 = vpack.i.b16 %v2897_v3, %v2896_v19  ;;  %v2842_v29 = vrot.slane %v2840_v60, 1  ;;  %3469 = vmatpush.bf16.msra.mxu1 %v11835_v26  ;;  %v10214_v39 = vpack.i.b16 %v2803_v23, %v2876_v48 }
 0x196   : > { %1086 = vst [vmem:[#allocation2 + $0x78] sm:$0x1] %v1085_v14  ;;  %3498 = vmatmul.bf16.vlgmr.msra.gmra.mxu2 %v10234_v5  ;;  %v2845_v61 = vrot.slane %v2843_v16, 2  ;;  %v13851_v33 = vrot.slane %v13847_v11, 3  ;;  %v2827_v49 = vsel %vm549_vm1, %v13754_v27, %v13767_v45  ;;  %v2825_v18 = vsel %vm413_vm3, %v13754_v27, %v13767_v45  ;;  %v3013_v14 = vld [vmem:[#allocation2 + $0x88] sm:$0x1] }
 0x197   : > { %1640 = vst [vmem:[#allocation2 + $0x7c] sm:$0x1] %v1639_v20  ;;  %v2829_v1 = vrot.slane %v2827_v49, 1  ;;  %v2890_v4 = vunpack.i.h.s16 %v2825_v18  ;;  %v2459_v17 = vld [vmem:[#allocation2 + $0x84] sm:$0x1]  ;;  %v16162_v52 = vld [vmem:[#allocation11_spill] sm:$0xff] }
 0x198   : > { %2949 = vst [vmem:[#allocation1 + $0x20] ss:$4 sm:$0xff] %v2790_v30  ;;  %v13858_v53 = vsel %vm493_vm0, %v13847_v11, %v13851_v33  ;;  %v2853_v5 = vsel %vm549_vm1, %v13847_v11, %v13851_v33  ;;  %v1906_v19 = vsel %vm13675_vm13, %v16162_v52, %v1905_v13  ;;  %v2851_v3 = vsel %vm413_vm3, %v13847_v11, %v13851_v33  ;;  %s16167_s19 = smov 64  }
 0x199   : > { %3553 = vmatpush.bf16.msrb.mxu0 %v11859_v0  ;;  %2952 = vst [vmem:[#allocation1 + $0x21] ss:$4 sm:$0xff] %v2793_v24  ;;  %v2861_v7 = vrot.slane %v13858_v53, 3  ;;  %v2855_v0 = vrot.slane %v2853_v5, 1 }
 0x19a   : > { %v2172_v22 = vpop.permute.xlu0 %2171  ;;  %2955 = vst [vmem:[#allocation1 + $0x22] ss:$4 sm:$0xff] %v2796_v21  ;;  %v16163_v21 = vld [vmem:[#allocation12_spill] sm:$0xff] }
 0x19b   : > { %3452 = vmatmul.bf16.gmra.mxu0 %v10266_v42  ;;  %v2959_v35 = vld [vmem:[#allocation1] sm:$0xff]  ;;  %v2832_v42 = vrot.slane %v13795_v47, 2  ;;  %2189 = vst.msk [vmem:[#allocation2 + $0x44] sm:$0xf] %vm1075_vm5, %v2172_v22  ;;  %v2910_v2 = vunpack.i.h.s16 %v2861_v7  ;;  %v2892_v22 = vunpack.i.h.s16 %v2829_v1  ;;  %v2856_v47 = vsel %vm553_vm2, %v13847_v11, %v13851_v33 }
 0x19c   : > { %2962 = vst [vmem:[#allocation1] ss:$4 sm:$0xff] %v10215_v9  ;;  %v2460_v10 = vsel %vm13675_vm13, %v16163_v21, %v2459_v17  ;;  %v2846_v11 = vsel %vm493_vm0, %v13761_v54, %v13784_v15 }
 0x19d   : > { %2964 = vst [vmem:[#allocation1 + $0x1] ss:$4 sm:$0xff] %v10216_v62  ;;  %v2894_v34 = vunpack.i.h.s16 %v2832_v42  ;;  %v10218_v50 = vpack.i.b16 %v2832_v42, %v2892_v22  ;;  %v2848_v33 = vrot.slane %v2846_v11, 3 }
 0x19e   : > { %2966 = vst [vmem:[#allocation1 + $0x2] ss:$4 sm:$0xff] %v2921_v56  ;;  %v13853_v55 = vld [vmem:[#allocation2 + $0x78] sm:$0x11]  ;;  %v2817_v56 = vsel %vm553_vm2, %v13705_v58, %v13727_v6 }
 0x19f   : > { %2968 = vst [vmem:[#allocation1 + $0x3] ss:$4 sm:$0xff] %v2816_v37  ;;  %v10219_v31 = vpack.i.b16 %v2835_v32, %v2894_v34  ;;  %v3164_v36 = vunpack.c.l.b16 %v13853_v55  ;;  %v2819_v46 = vrot.slane %v2817_v56, 2  ;;  %v10217_v32 = vpack.i.b16 %v2829_v1, %v2890_v4 }
 0x1a0   : > { %3007 = vst.msk [vmem:[#allocation2 + $0x10] sm:$0xf] %vm784_vm4, %v2959_v35  ;;  %v2820_v35 = vsel %vm493_vm0, %v13705_v58, %v13727_v6 }
 0x1a1   : > { %v3184_v62 = vpack.c.b16 %v3164_v36, %v3164_v36  ;;  %2958 = vst [vmem:[#allocation1 + $0x23] ss:$4 sm:$0xff] %v10214_v39  ;;  %v2822_v27 = vrot.slane %v2820_v35, 3 }
 0x1a2   : > { %v1616_v8 = vpop.permute.xlu0 %1615  ;;  %v11820_v38 = vld [vmem:[#allocation2 + $0x40] sm:$0xf0]  ;;  %1907 = vst [vmem:[#allocation2 + $0x80] sm:$0x1] %v1906_v19 }
 0x1a3   : > { %1634 = vst.msk [vmem:[#allocation2 + $0x2c] sm:$0xf] %vm1075_vm5, %v1616_v8  ;;  %v2858_v8 = vrot.slane %v2856_v47, 2 }
 0x1a4   : > { %2461 = vst [vmem:[#allocation2 + $0x84] sm:$0x1] %v2460_v10 }
 0x1a6   : > { %v2977_v44 = vld [vmem:[#allocation1] sm:$0xff] }
 0x1a7   : > { %2980 = vst [vmem:[#allocation1] ss:$4 sm:$0xff] %v10219_v31  ;;  %v10241_v30 = vld [vmem:[#allocation2 + $0x10] sm:$0xf]  ;;  %v11812_v31 = vld [vmem:[#allocation2 + $0x4] sm:$0xf] }
 0x1a8   : > { %2982 = vst [vmem:[#allocation1 + $0x1] ss:$4 sm:$0xff] %v2928_v41  ;;  %v2960_v45 = vld [vmem:[#allocation1 + $0x20] sm:$0xff]  ;;  %v2904_v41 = vunpack.i.h.s16 %v2851_v3 }
 0x1a9   : > { %2984 = vst [vmem:[#allocation1 + $0x2] ss:$4 sm:$0xff] %v2842_v29 }
 0x1aa   : > { %2986 = vst [vmem:[#allocation1 + $0x3] ss:$4 sm:$0xff] %v2845_v61  ;;  %v2176_v25 = vpop.permute.xlu0 %2175  ;;  %v2906_v61 = vunpack.i.h.s16 %v2855_v0  ;;  %v10220_v36 = vpack.i.b16 %v2855_v0, %v2904_v41 }
 0x1ab   : > { %3009 = vst.msk [vmem:[#allocation2 + $0x38] sm:$0xf] %vm784_vm4, %v2977_v44  ;;  %3457 = vmatmul.bf16.gmra.mxu0 %v3184_v62  ;;  %v2747_v5 = vld [vmem:[#allocation2 + $0x84] sm:$0x1] }
 0x1ac   : > { %2191 = vst.msk [vmem:[#allocation2 + $0x6c] sm:$0xf] %vm1075_vm5, %v2176_v25  ;;  %v10221_v62 = vpack.i.b16 %v2858_v8, %v2906_v61 }
 0x1ad   : > { %3008 = vst.msk [vmem:[#allocation2 + $0x24] sm:$0xf] %vm784_vm4, %v2960_v45  ;;  %v2192_v45 = vld [vmem:[#allocation2 + $0x80] sm:$0x1] }
 0x1ae   : > { %2970 = vst [vmem:[#allocation1 + $0x20] ss:$4 sm:$0xff] %v2819_v46 }
 0x1af   : > { %2972 = vst [vmem:[#allocation1 + $0x21] ss:$4 sm:$0xff] %v2822_v27 }
 0x1b0   : > { %2974 = vst [vmem:[#allocation1 + $0x22] ss:$4 sm:$0xff] %v10217_v32 }
 0x1b1   : > { %v2995_v51 = vld [vmem:[#allocation1] sm:$0xff]  ;;  %2976 = vst [vmem:[#allocation1 + $0x23] ss:$4 sm:$0xff] %v10218_v50 }
 0x1b2   : > { %2998 = vst [vmem:[#allocation1] ss:$4 sm:$0xff] %v2910_v2  ;;  %v1620_v26 = vpop.permute.xlu0 %1619  ;;  %v10261_v56 = vld [vmem:[#allocation2 + $0x38] sm:$0xf] }
 0x1b3   : > { %3011 = vst.msk [vmem:[#allocation2 + $0x60] sm:$0xf] %vm784_vm4, %v2995_v51  ;;  %v11825_v2 = vld [vmem:[#allocation2 + $0x68] sm:$0xf0] }
 0x1b4   : > { %v11816_v60 = vld [vmem:[#allocation2 + $0x20] sm:$0xf0]  ;;  %1636 = vst.msk [vmem:[#allocation2 + $0x54] sm:$0xf] %vm1075_vm5, %v1620_v26 }
 0x1b5   : > { %v10242_v16 = vor.u32 %v11816_v60, %v10241_v30  ;;  %v3165_v60 = vunpack.c.h.b16 %v13853_v55 }
 0x1b7   : > { %v3185_v21 = vpack.c.b16 %v3165_v60, %v3165_v60  ;;  %v3766_v60 = vld [vmem:[#allocation3 + $0x8] sm:$0xf] }
 0x1b8   : > { %v2978_v39 = vld [vmem:[#allocation1 + $0x20] sm:$0xff] }
 0x1b9   : > { %v2999_v20 = vld [vmem:[#allocation1] sm:$0xff]  ;;  %3010 = vst.msk [vmem:[#allocation2 + $0x4c] sm:$0xf] %vm784_vm4, %v2978_v39 }
 0x1ba   : > { %v2723_v9 = vpop.permute.xlu2 %2722  ;;  %v3014_v34 = vsel %vm13675_vm13, %v2999_v20, %v3013_v14  ;;  %2988 = vst [vmem:[#allocation1 + $0x20] ss:$4 sm:$0xff] %v2848_v33  ;;  %vm483_vm13 = vmand %vm16140_vm9, %vm482_vm10  ;;  %vm503_vm10 = vcmask 519171   ;;  %vm511_vm9 = vcmask 781312  }
 0x1bb   : > { %2742 = vst.msk [vmem:[#allocation2 + $0x20] sm:$0xf] %vm1075_vm5, %v2723_v9  ;;  %10427 = vmatmul.msk.bf16.vlgmr.msrb.gmra.mxu0 %vm16137_vm6, %v10242_v16  ;;  %v2908_v9 = vunpack.i.h.s16 %v2858_v8  ;;  %v11822_v13 = vld [vmem:[#allocation2 + $0x54] sm:$0xf] }
 0x1bc   : > { %3015 = vst [vmem:[#allocation2 + $0x88] sm:$0x1] %v3014_v34 }
 0x1bd   : > { %v10222_v15 = vpack.i.b16 %v2861_v7, %v2908_v9  ;;  %2990 = vst [vmem:[#allocation1 + $0x21] ss:$4 sm:$0xff] %v10220_v36 }
 0x1be   : > { %2992 = vst [vmem:[#allocation1 + $0x22] ss:$4 sm:$0xff] %v10221_v62 }
 0x1bf   : > { %2994 = vst [vmem:[#allocation1 + $0x23] ss:$4 sm:$0xff] %v10222_v15 }
 0x1c0   : > { %v11821_v1 = vld [vmem:[#allocation2 + $0x48] sm:$0xf0] }
 0x1c1   : > { %v2721_v23 = vpop.permute.xlu1 %2720  ;;  %v10262_v51 = vor.u32 %v11821_v1, %v10261_v56 }
 0x1c2   : > { %2741 = vst.msk [vmem:[#allocation2 + $0xc] sm:$0xf] %vm1075_vm5, %v2721_v23  ;;  %v2170_v37 = vpop.permute.xlu2 %2169  ;;  %v10235_v63 = vld [vmem:[#allocation2 + $0x1c] sm:$0xf0] }
 0x1c3   : > { %2188 = vst.msk [vmem:[#allocation2 + $0x30] sm:$0xf] %vm1075_vm5, %v2170_v37  ;;  %v11817_v37 = vld [vmem:[#allocation2 + $0x2c] sm:$0xf]  ;;  %v3036_v30 = vld [vmem:[#allocation2 + $0x88] sm:$0x1] }
 0x1c4   : > { %v3168_v47 = vunpack.c.l.b16 %v3036_v30 }
 0x1c6   : > { %v2996_v27 = vld [vmem:[#allocation1 + $0x20] sm:$0xff]  ;;  %v3188_v3 = vpack.c.b16 %v3168_v47, %v3168_v47 }
 0x1c7   : > { %3012 = vst.msk [vmem:[#allocation2 + $0x74] sm:$0xf] %vm784_vm4, %v2996_v27  ;;  %vm16138_vm4 = vcmask 1043456  }
 0x1c9   : > { %v1614_v58 = vpop.permute.xlu1 %1613  ;;  %v11813_v6 = vld [vmem:[#allocation2 + $0xc] sm:$0xf] }
 0x1ca   : > { %1633 = vst.msk [vmem:[#allocation2 + $0x18] sm:$0xf] %vm1075_vm5, %v1614_v58  ;;  %v10238_v57 = vor.u32 %v11813_v6, %v10235_v63  ;;  %v2727_v28 = vpop.permute.xlu2 %2726  ;;  %v10253_v42 = vld [vmem:[#allocation2 + $0x30] sm:$0xf] }
 0x1cb   : > { %2744 = vst.msk [vmem:[#allocation2 + $0x48] sm:$0xf] %vm1075_vm5, %v2727_v28  ;;  %v10254_v24 = vor.u32 %v11820_v38, %v10253_v42  ;;  %10428 = vmatmul.msk.bf16.gmra.mxu0 %vm16137_vm6, %v10262_v51 }
 0x1cc   : > { %3526 = vmatmul.bf16.vlgmr.msra.gmra.mxu3 %v10238_v57  ;;  %v10281_v57 = vld [vmem:[#allocation2 + $0x60] sm:$0xf] }
 0x1cd   : > { %3503 = vmatmul.bf16.gmra.mxu2 %v10254_v24 }
 0x1ce   : > { %v11826_v38 = vld [vmem:[#allocation2 + $0x70] sm:$0xf0] }
 0x1cf   : > { %v10282_v50 = vor.u32 %v11826_v38, %v10281_v57 }
 0x1d1   : > { %v2725_v29 = vpop.permute.xlu1 %2724  ;;  %v10227_v48 = vld [vmem:[#allocation2 + $0x14] sm:$0xf0] }
 0x1d2   : > { %2743 = vst.msk [vmem:[#allocation2 + $0x34] sm:$0xf] %vm1075_vm5, %v2725_v29  ;;  %v10230_v43 = vor.u32 %v11812_v31, %v10227_v48  ;;  %v2174_v44 = vpop.permute.xlu2 %2173  ;;  %v10255_v54 = vld [vmem:[#allocation2 + $0x44] sm:$0xf0]  ;;  %v13934_v31 = vld [vmem:[%s16124_s3] ss:$0 sm:$0xff] }
 0x1d3   : > { %2190 = vst.msk [vmem:[#allocation2 + $0x58] sm:$0xf] %vm1075_vm5, %v2174_v44 }
 0x1d4   : > { %3470 = vmatmul.bf16.vlgmr.msra.gmra.mxu1 %v10230_v43 }
 0x1d9   : > { %v1618_v25 = vpop.permute.xlu1 %1617  ;;  %v11818_v49 = vld [vmem:[#allocation2 + $0x34] sm:$0xf] }
 0x1da   : > { %1635 = vst.msk [vmem:[#allocation2 + $0x40] sm:$0xf] %vm1075_vm5, %v1618_v25  ;;  %v10258_v18 = vor.u32 %v11818_v49, %v10255_v54  ;;  %v10273_v23 = vld [vmem:[#allocation2 + $0x58] sm:$0xf]  ;;  %v2731_v4 = vpop.permute.xlu2 %2730 }
 0x1db   : > { %v10274_v35 = vor.u32 %v11825_v2, %v10273_v23  ;;  %2746 = vst.msk [vmem:[#allocation2 + $0x70] sm:$0xf] %vm1075_vm5, %v2731_v4  ;;  %10429 = vmatmul.msk.bf16.gmra.mxu0 %vm16137_vm6, %v10282_v50 }
 0x1dc   : > { %3531 = vmatmul.bf16.gmra.mxu3 %v10258_v18 }
 0x1dd   : > { %3508 = vmatmul.bf16.gmra.mxu2 %v10274_v35 }
 0x1df   : > { %v2733_v28 = vpop.permute.xlu0 %2732 }
 0x1e0   : > { %v2748_v34 = vsel %vm13779_vm15, %v2733_v28, %v2747_v5 }
 0x1e1   : > { %v2729_v53 = vpop.permute.xlu1 %2728  ;;  %v10247_v7 = vld [vmem:[#allocation2 + $0x3c] sm:$0xf0]  ;;  %2749 = vst [vmem:[#allocation2 + $0x84] sm:$0x1] %v2748_v34 }
 0x1e2   : > { %2745 = vst.msk [vmem:[#allocation2 + $0x5c] sm:$0xf] %vm1075_vm5, %v2729_v53  ;;  %v10250_v46 = vor.u32 %v11817_v37, %v10247_v7  ;;  %v2178_v22 = vpop.permute.xlu2 %2177  ;;  %v10275_v63 = vld [vmem:[#allocation2 + $0x6c] sm:$0xf0] }
 0x1e3   : > { %v2193_v14 = vsel %vm13779_vm15, %v2178_v22, %v2192_v45 }
 0x1e4   : > { %3475 = vmatmul.bf16.gmra.mxu1 %v10250_v46  ;;  %2194 = vst [vmem:[#allocation2 + $0x80] sm:$0x1] %v2193_v14 }
 0x1e9   : > { %v1622_v32 = vpop.permute.xlu1 %1621  ;;  %v11823_v58 = vld [vmem:[#allocation2 + $0x5c] sm:$0xf] }
 0x1ea   : > { %1637 = vst.msk [vmem:[#allocation2 + $0x68] sm:$0xf] %vm1075_vm5, %v1622_v32  ;;  %v10278_v6 = vor.u32 %v11823_v58, %v10275_v63  ;;  %vm3764_vm5 = vsmask.f32 7938 }
 0x1eb   : > { %v3035_v42 = vld [vmem:[#allocation2 + $0x80] sm:$0x11]  ;;  %10430 = vmatmul.msk.bf16.gmra.mxu0 %vm16137_vm6, %v3188_v3  ;;  %vm13948_vm8 = vmand %vm16138_vm4, %vm3764_vm5  ;;  %vm496_vm5 = vcmask 1047559  }
 0x1ec   : > { %3536 = vmatmul.bf16.gmra.mxu3 %v10278_v6  ;;  %v3166_v52 = vunpack.c.l.b16 %v3035_v42  ;;  %v3167_v19 = vunpack.c.h.b16 %v3035_v42  ;;  %vm495_vm6 = vmand %vm493_vm0, %vm494_vm14 }
 0x1ee   : > { %v3186_v0 = vpack.c.b16 %v3166_v52, %v3166_v52  ;;  %v3187_v24 = vpack.c.b16 %v3167_v19, %v3167_v19 }
 0x1f0   : > { %3513 = vmatmul.bf16.gmra.mxu2 %v3186_v0 }
 0x1f1   : > { %v10267_v20 = vld [vmem:[#allocation2 + $0x64] sm:$0xf0] }
 0x1f2   : > { %v10270_v17 = vor.u32 %v11822_v13, %v10267_v20 }
 0x1f4   : > { %3480 = vmatmul.bf16.gmra.mxu1 %v10270_v17 }
 0x1f8   : > { %v3443_v26 = vpop.f32.mrf.mxu0 }
 0x1f9   : > { %v3444_v44 = vadd.f32 %v13934_v31, %v3443_v26 }
 0x1fc   : > { %3541 = vmatmul.bf16.gmra.mxu3 %v3187_v24 }
 0x200   : > { %v3445_v40 = vpop.f32.mrf.mxu0 }
 0x201   : > { %v3446_v25 = vadd.f32 %v13934_v31, %v3445_v40 }
 0x204   : > { %3485 = vmatmul.bf16.gmra.mxu1 %v3185_v21 }
 0x208   : > { %v3448_v10 = vpop.f32.mrf.mxu0 }
 0x209   : > { %v3449_v32 = vadd.f32 %v13934_v31, %v3448_v10 }
 0x210   : > { %v13929_v16 = vpop.f32.mrf.mxu0 }
 0x218   : > { %v3453_v8 = vpop.f32.mrf.mxu0 }
 0x219   : > { %v13937_v11 = vadd.f32 %v13934_v31, %v3453_v8  ;;  %v3499_v61 = vpop.f32.mrf.mxu2  ;;  %v3451_v8 = vadd.f32 %v13934_v31, %v13929_v16 }
 0x220   : > { %v13939_v55 = vpop.f32.mrf.mxu0 }
 0x221   : > { %v3501_v39 = vpop.f32.mrf.mxu2 }
 0x228   : > { %v3458_v41 = vpop.f32.mrf.mxu0 }
 0x229   : > { %v13942_v29 = vadd.f32 %v13934_v31, %v3458_v41 }
 0x230   : > { %v3460_v48 = vpop.f32.mrf.mxu0 }
 0x238   : > { %v3555_v9 = vpop.f32.mrf.mxu0 }
 0x240   : > { %v3557_v51 = vpop.f32.mrf.mxu0 }
 0x248   : > { %v3560_v58 = vpop.f32.mrf.mxu0 }
 0x24f   : > { %v3527_v43 = vpop.f32.mrf.mxu3 }
 0x250   : > { %v3504_v4 = vpop.f32.mrf.mxu2  ;;  %v3562_v26 = vpop.f32.mrf.mxu0 }
 0x251   : > { %v3471_v33 = vpop.f32.mrf.mxu1 }
 0x252   : > { %v3472_v36 = vadd.f32 %v3471_v33, %v3444_v44 }
 0x254   : > { %v3500_v62 = vadd.f32 %v3499_v61, %v3472_v36 }
 0x256   : > { %v3528_v54 = vadd.f32 %v3527_v43, %v3500_v62 }
 0x257   : > { %v3529_v15 = vpop.f32.mrf.mxu3 }
 0x258   : > { %v3556_v49 = vadd.f32 %v3555_v9, %v3528_v54  ;;  %v3506_v57 = vpop.f32.mrf.mxu2 }
 0x259   : > { %v3473_v2 = vpop.f32.mrf.mxu1 }
 0x25a   : > { %v3574_v18 = vmax.f32 %v3556_v49, 0.0  ;;  %v3474_v23 = vadd.f32 %v3473_v2, %v3446_v25 }
 0x25c   : > { %v3588_v56 = vrot.slane %v3574_v18, 1  ;;  %v3589_v35 = vrot.slane %v3574_v18, 2  ;;  %v3590_v1 = vrot.slane %v3574_v18, 3  ;;  %3630 = vst [vmem:[#allocation1] ss:$9 sm:$0xff] %v3574_v18  ;;  %v3591_v37 = vrot.slane %v3574_v18, 4 }
 0x25d   : > { %v3502_v53 = vadd.f32 %v3501_v39, %v3474_v23  ;;  %v3592_v7 = vrot.slane %v3574_v18, 5  ;;  %v3593_v46 = vrot.slane %v3574_v18, 6  ;;  %v3594_v50 = vrot.slane %v3574_v18, 7 }
 0x25e   : > { %3632 = vst [vmem:[#allocation1 + $0x1] ss:$9 sm:$0xff] %v3588_v56 }
 0x25f   : > { %3634 = vst [vmem:[#allocation1 + $0x2] ss:$9 sm:$0xff] %v3589_v35  ;;  %v3530_v27 = vadd.f32 %v3529_v15, %v3502_v53  ;;  %v3532_v45 = vpop.f32.mrf.mxu3  ;;  %v3565_v15 = vpop.f32.mrf.mxu0 }
 0x260   : > { %3636 = vst [vmem:[#allocation1 + $0x3] ss:$9 sm:$0xff] %v3590_v1  ;;  %v3509_v40 = vpop.f32.mrf.mxu2 }
 0x261   : > { %3638 = vst [vmem:[#allocation1 + $0x4] ss:$9 sm:$0xff] %v3591_v37  ;;  %v3558_v22 = vadd.f32 %v3557_v51, %v3530_v27  ;;  %v3476_v63 = vpop.f32.mrf.mxu1  ;;  %v3769_v51 = vld [vmem:[#allocation3 + $0x10] sm:$0xf] }
 0x262   : > { %3640 = vst [vmem:[#allocation1 + $0x5] ss:$9 sm:$0xff] %v3592_v7  ;;  %v3477_v6 = vadd.f32 %v3476_v63, %v3449_v32 }
 0x263   : > { %3642 = vst [vmem:[#allocation1 + $0x6] ss:$9 sm:$0xff] %v3593_v46  ;;  %v3575_v14 = vmax.f32 %v3558_v22, 0.0 }
 0x264   : > { %v3505_v28 = vadd.f32 %v3504_v4, %v3477_v6 }
 0x265   : > { %v3595_v13 = vrot.slane %v3575_v14, 1  ;;  %v3596_v20 = vrot.slane %v3575_v14, 2  ;;  %v3597_v34 = vrot.slane %v3575_v14, 3  ;;  %v3598_v30 = vrot.slane %v3575_v14, 4 }
 0x266   : > { %v3599_v42 = vrot.slane %v3575_v14, 5  ;;  %v3533_v52 = vadd.f32 %v3532_v45, %v3505_v28  ;;  %v3600_v44 = vrot.slane %v3575_v14, 6  ;;  %v3601_v33 = vrot.slane %v3575_v14, 7 }
 0x267   : > { %v3534_v38 = vpop.f32.mrf.mxu3  ;;  %v13964_v45 = vpop.f32.mrf.mxu0 }
 0x268   : > { %v3561_v41 = vadd.f32 %v3560_v58, %v3533_v52  ;;  %v13956_v16 = vpop.f32.mrf.mxu2  ;;  %v3772_v52 = vld [vmem:[#allocation3 + $0x18] sm:$0xf] }
 0x269   : > { %v3478_v19 = vpop.f32.mrf.mxu1 }
 0x26a   : > { %v3643_v5 = vld [vmem:[#allocation1] sm:$0xff]  ;;  %v3479_v61 = vadd.f32 %v3478_v19, %v3451_v8  ;;  %v3576_v43 = vmax.f32 %v3561_v41, 0.0 }
 0x26b   : > { %3644 = vst [vmem:[#allocation1] ss:$9 sm:$0xff] %v3594_v50  ;;  %v3699_v17 = vpack.c.bf16 %v3643_v5, %v3643_v5 }
 0x26c   : > { %3645 = vst [vmem:[#allocation1 + $0x1] ss:$9 sm:$0xff] %v3575_v14  ;;  %v3507_v36 = vadd.f32 %v3506_v57, %v3479_v61  ;;  %v3602_v54 = vrot.slane %v3576_v43, 1  ;;  %v3603_v49 = vrot.slane %v3576_v43, 2  ;;  %v3604_v18 = vrot.slane %v3576_v43, 3  ;;  %v11897_v61 = vld [vmem:[%s16125_s4 + $0x38] sm:$0xff] }
 0x26d   : > { %v3707_v47 = vshrl.u32 %v3699_v17, 16  ;;  %3646 = vst [vmem:[#allocation1 + $0x2] ss:$9 sm:$0xff] %v3595_v13  ;;  %v3710_v3 = vshll.u32 %v3699_v17, 16  ;;  %v3605_v1 = vrot.slane %v3576_v43, 4  ;;  %v3606_v32 = vrot.slane %v3576_v43, 5  ;;  %6937 = vmatpush.bf16.msrb.mxu1 %v11897_v61 }
 0x26e   : > { %3647 = vst [vmem:[#allocation1 + $0x3] ss:$9 sm:$0xff] %v3596_v20  ;;  %v3535_v23 = vadd.f32 %v3534_v38, %v3507_v36  ;;  %v3607_v14 = vrot.slane %v3576_v43, 6  ;;  %v3608_v57 = vrot.slane %v3576_v43, 7 }
 0x26f   : > { %v3709_v0 = vrot.slane %v3707_v47, 7  ;;  %3648 = vst [vmem:[#allocation1 + $0x4] ss:$9 sm:$0xff] %v3597_v34  ;;  %v3537_v10 = vpop.f32.mrf.mxu3 }
 0x270   : > { %3649 = vst [vmem:[#allocation1 + $0x5] ss:$9 sm:$0xff] %v3598_v30  ;;  %v3563_v4 = vadd.f32 %v3562_v26, %v3535_v23  ;;  %v11894_v23 = vld [vmem:[%s16125_s4 + $0x20] sm:$0xff] }
 0x271   : > { %v3712_v21 = vor.u32 %v3710_v3, %v3709_v0  ;;  %3650 = vst [vmem:[#allocation1 + $0x6] ss:$9 sm:$0xff] %v3599_v42  ;;  %v3481_v39 = vpop.f32.mrf.mxu1 }
 0x272   : > { %v3577_v27 = vmax.f32 %v3563_v4, 0.0  ;;  %v3482_v22 = vadd.f32 %v3481_v39, %v13937_v11  ;;  %v13971_v11 = vpop.f32.mrf.mxu0 }
 0x273   : > { %v3767_v48 = vsel %vm13948_vm8, %v3712_v21, %v3766_v60  ;;  %v13962_v46 = vpop.f32.mrf.mxu2  ;;  %v3456_v60 = vadd.f32 %v13934_v31, %v13939_v55 }
 0x274   : > { %3768 = vst [vmem:[#allocation3 + $0x8] sm:$0xf] %v3767_v48  ;;  %v3609_v6 = vrot.slane %v3577_v27, 1  ;;  %v3510_v50 = vadd.f32 %v3509_v40, %v3482_v22  ;;  %v3610_v13 = vrot.slane %v3577_v27, 2  ;;  %v3611_v20 = vrot.slane %v3577_v27, 3 }
 0x275   : > { %v3612_v8 = vrot.slane %v3577_v27, 4  ;;  %v3613_v48 = vrot.slane %v3577_v27, 5 }
 0x276   : > { %v3538_v47 = vadd.f32 %v3537_v10, %v3510_v50 }
 0x277   : > { %v13958_v2 = vpop.f32.mrf.mxu3 }
 0x278   : > { %v3651_v9 = vld [vmem:[#allocation1] sm:$0xff]  ;;  %v3566_v0 = vadd.f32 %v3565_v15, %v3538_v47 }
 0x279   : > { %3652 = vst [vmem:[#allocation1] ss:$9 sm:$0xff] %v3600_v44  ;;  %v3700_v62 = vpack.c.bf16 %v3651_v9, %v3651_v9  ;;  %v3483_v7 = vpop.f32.mrf.mxu1 }
 0x27a   : > { %3653 = vst [vmem:[#allocation1 + $0x1] ss:$9 sm:$0xff] %v3601_v33  ;;  %v3484_v26 = vadd.f32 %v3483_v7, %v3456_v60  ;;  %v3572_v40 = vpop.f32.mrf.mxu0  ;;  %v3578_v41 = vmax.f32 %v3566_v0, 0.0  ;;  %v3615_v33 = vrot.slane %v3577_v27, 7 }
 0x27b   : > { %v3714_v25 = vshrl.u32 %v3700_v62, 16  ;;  %v3717_v56 = vshll.u32 %v3700_v62, 16  ;;  %3654 = vst [vmem:[#allocation1 + $0x2] ss:$9 sm:$0xff] %v3576_v43  ;;  %v3516_v28 = vpop.f32.mrf.mxu2  ;;  %v3614_v43 = vrot.slane %v3577_v27, 6  ;;  %v11896_v62 = vld [vmem:[%s16125_s4 + $0x30] sm:$0xff] }
 0x27c   : > { %3655 = vst [vmem:[#allocation1 + $0x3] ss:$9 sm:$0xff] %v3602_v54  ;;  %v3512_v9 = vadd.f32 %v13956_v16, %v3484_v26  ;;  %v3616_v31 = vrot.slane %v3578_v41, 1  ;;  %v3617_v55 = vrot.slane %v3578_v41, 2  ;;  %6938 = vmatpush.bf16.msrb.mxu1 %v11896_v62  ;;  %v11895_v16 = vld [vmem:[%s16125_s4 + $0x28] sm:$0xff]  ;;  %v3621_v7 = vrot.slane %v3578_v41, 6 }
 0x27d   : > { %v3716_v35 = vrot.slane %v3714_v25, 7  ;;  %3656 = vst [vmem:[#allocation1 + $0x4] ss:$9 sm:$0xff] %v3603_v49  ;;  %v3775_v25 = vld [vmem:[#allocation3 + $0x20] sm:$0xf]  ;;  %v11891_v28 = vld [vmem:[%s16125_s4 + $0x8] sm:$0xff] }
 0x27e   : > { %3657 = vst [vmem:[#allocation1 + $0x5] ss:$9 sm:$0xff] %v3604_v18  ;;  %v3540_v39 = vadd.f32 %v13958_v2, %v3512_v9 }
 0x27f   : > { %v3719_v37 = vor.u32 %v3717_v56, %v3716_v35  ;;  %3658 = vst [vmem:[#allocation1 + $0x6] ss:$9 sm:$0xff] %v3605_v1  ;;  %v13967_v63 = vpop.f32.mrf.mxu3  ;;  %v3618_v56 = vrot.slane %v3578_v41, 3  ;;  %v3619_v1 = vrot.slane %v3578_v41, 4 }
 0x280   : > { %v3568_v18 = vadd.f32 %v13964_v45, %v3540_v39  ;;  %6939 = vmatpush.bf16.msrb.mxu1 %v11895_v16  ;;  %v3622_v45 = vrot.slane %v3578_v41, 7 }
 0x281   : > { %v3770_v53 = vsel %vm13948_vm8, %v3719_v37, %v3769_v51  ;;  %v13969_v17 = vpop.f32.mrf.mxu1  ;;  %v3620_v37 = vrot.slane %v3578_v41, 5 }
 0x282   : > { %3771 = vst [vmem:[#allocation3 + $0x10] sm:$0xf] %v3770_v53  ;;  %v13994_v35 = vmax.f32 %v3568_v18, 0.0  ;;  %v3788_v53 = vld [vmem:[#allocation3 + $0x8] sm:$0xf] }
 0x284   : > { %6940 = vmatpush.bf16.msrb.mxu1 %v11894_v23  ;;  %v3623_v22 = vrot.slane %v13994_v35, 1  ;;  %v3624_v47 = vrot.slane %v13994_v35, 2  ;;  %v3626_v60 = vrot.slane %v13994_v35, 4  ;;  %v3628_v61 = vrot.slane %v13994_v35, 6 }
 0x286   : > { %v3659_v58 = vld [vmem:[#allocation1] sm:$0xff] }
 0x287   : > { %3660 = vst [vmem:[#allocation1] ss:$9 sm:$0xff] %v3606_v32  ;;  %v3701_v38 = vpack.c.bf16 %v3659_v58, %v3659_v58  ;;  %v3544_v42 = vpop.f32.mrf.mxu3 }
 0x288   : > { %3661 = vst [vmem:[#allocation1 + $0x1] ss:$9 sm:$0xff] %v3607_v14  ;;  %v3487_v14 = vadd.f32 %v13969_v17, %v13942_v29 }
 0x289   : > { %3662 = vst [vmem:[#allocation1 + $0x2] ss:$9 sm:$0xff] %v3608_v57  ;;  %v3721_v5 = vshrl.u32 %v3701_v38, 16  ;;  %v3724_v34 = vshll.u32 %v3701_v38, 16  ;;  %v3488_v21 = vpop.f32.mrf.mxu1  ;;  %v3778_v57 = vld [vmem:[#allocation3 + $0x28] sm:$0xf] }
 0x28a   : > { %3664 = vst [vmem:[#allocation1 + $0x4] ss:$9 sm:$0xff] %v3609_v6  ;;  %v3802_v38 = vrot.slane %v3788_v53, 3  ;;  %v3787_v21 = vld [vmem:[#allocation3] sm:$0xf] }
 0x28b   : > { %v3723_v30 = vrot.slane %v3721_v5, 7  ;;  %3663 = vst [vmem:[#allocation1 + $0x3] ss:$9 sm:$0xff] %v3577_v27  ;;  %v11893_v27 = vld [vmem:[%s16125_s4 + $0x18] sm:$0xff]  ;;  %v11892_v5 = vld [vmem:[%s16125_s4 + $0x10] sm:$0xff] }
 0x28c   : > { %3665 = vst [vmem:[#allocation1 + $0x5] ss:$9 sm:$0xff] %v3610_v13  ;;  %6941 = vmatpush.bf16.msrb.mxu1 %v11893_v27  ;;  %v3515_v13 = vadd.f32 %v13962_v46, %v3487_v14  ;;  %v3828_v17 = vsel %vm553_vm2, %v3788_v53, %v3802_v38  ;;  %v14016_v46 = vsel %vm413_vm3, %v3788_v53, %v3802_v38 }
 0x28d   : > { %v3726_v19 = vor.u32 %v3724_v34, %v3723_v30  ;;  %3666 = vst [vmem:[#allocation1 + $0x6] ss:$9 sm:$0xff] %v3611_v20  ;;  %v3825_v20 = vsel %vm549_vm1, %v3788_v53, %v3802_v38  ;;  %v3830_v42 = vrot.slane %v3828_v17, 2  ;;  %v3907_v40 = vunpack.i.h.s16 %v14016_v46 }
 0x28e   : > { %v3543_v34 = vadd.f32 %v13967_v63, %v3515_v13  ;;  %v3827_v30 = vrot.slane %v3825_v20, 1 }
 0x28f   : > { %v3773_v3 = vsel %vm13948_vm8, %v3726_v19, %v3772_v52  ;;  %v3625_v52 = vrot.slane %v13994_v35, 3 }
 0x290   : > { %3774 = vst [vmem:[#allocation3 + $0x18] sm:$0xf] %v3773_v3  ;;  %6942 = vmatpush.bf16.msrb.mxu1 %v11892_v5  ;;  %v11890_v3 = vld [vmem:[%s16125_s4] sm:$0xff]  ;;  %v3571_v26 = vadd.f32 %v13971_v11, %v3543_v34  ;;  %v3629_v11 = vrot.slane %v13994_v35, 7 }
 0x294   : > { %v3667_v10 = vld [vmem:[#allocation1] sm:$0xff]  ;;  %6943 = vmatpush.bf16.msrb.mxu1 %v11891_v28 }
 0x295   : > { %3668 = vst [vmem:[#allocation1] ss:$9 sm:$0xff] %v3612_v8  ;;  %v3702_v44 = vpack.c.bf16 %v3667_v10, %v3667_v10  ;;  %v3627_v8 = vrot.slane %v13994_v35, 5  ;;  %v3909_v10 = vunpack.i.h.s16 %v3827_v30  ;;  %v11902_v28 = vld [vmem:[%s16125_s4 + $0x60] sm:$0xff] }
 0x296   : > { %3669 = vst [vmem:[#allocation1 + $0x1] ss:$9 sm:$0xff] %v3613_v48  ;;  %v14030_v48 = vld [vmem:[#allocation3 + $0x10] sm:$0xf] }
 0x297   : > { %3670 = vst [vmem:[#allocation1 + $0x2] ss:$9 sm:$0xff] %v3614_v43  ;;  %v3728_v36 = vshrl.u32 %v3702_v44, 16  ;;  %v3731_v54 = vshll.u32 %v3702_v44, 16  ;;  %v14023_v0 = vld [vmem:[#allocation3 + $0x18] sm:$0xf] }
 0x298   : > { %3671 = vst [vmem:[#allocation1 + $0x3] ss:$9 sm:$0xff] %v3615_v33  ;;  %v3781_v44 = vld [vmem:[#allocation3 + $0x30] sm:$0xf]  ;;  %v3911_v33 = vunpack.i.h.s16 %v3830_v42  ;;  %v14034_v9 = vrot.slane %v14023_v0, 3  ;;  %6944 = vmatpush.bf16.msrb.mxu1 %v11890_v3 }
 0x299   : > { %3672 = vst [vmem:[#allocation1 + $0x4] ss:$9 sm:$0xff] %v3578_v41  ;;  %v3730_v15 = vrot.slane %v3728_v36, 7  ;;  %v3831_v41 = vsel %vm493_vm0, %v3788_v53, %v3802_v38  ;;  %v3580_v36 = vmax.f32 %v3571_v26, 0.0 }
 0x29a   : > { %3673 = vst [vmem:[#allocation1 + $0x5] ss:$9 sm:$0xff] %v3616_v31  ;;  %v3801_v31 = vrot.slane %v3787_v21, 3  ;;  %v3833_v62 = vrot.slane %v3831_v41, 3  ;;  %v14047_v23 = vsel %vm549_vm1, %v14023_v0, %v14034_v9 }
 0x29b   : > { %3674 = vst [vmem:[#allocation1 + $0x6] ss:$9 sm:$0xff] %v3617_v55  ;;  %v3733_v49 = vor.u32 %v3731_v54, %v3730_v15  ;;  %v10432_v54 = vpack.i.b16 %v3827_v30, %v3907_v40  ;;  %v14038_v15 = vrot.slane %v14030_v48, 3  ;;  %v11901_v40 = vld [vmem:[%s16125_s4 + $0x58] sm:$0xff] }
 0x29c   : > { %v3812_v18 = vsel %vm549_vm1, %v3787_v21, %v3801_v31 }
 0x29d   : > { %v3776_v2 = vsel %vm13948_vm8, %v3733_v49, %v3775_v25  ;;  %v11905_v25 = vld [vmem:[%s16125_s4 + $0x78] sm:$0xff]  ;;  %v10433_v49 = vpack.i.b16 %v3830_v42, %v3909_v10  ;;  %v3814_v53 = vrot.slane %v3812_v18, 1  ;;  %v3838_v3 = vsel %vm549_vm1, %v14030_v48, %v14038_v15 }
 0x29e   : > { %3777 = vst [vmem:[#allocation3 + $0x20] sm:$0xf] %v3776_v2  ;;  %v10434_v2 = vpack.i.b16 %v3833_v62, %v3911_v33  ;;  %6965 = vmatpush.bf16.msrb.mxu2 %v11905_v25 }
 0x2a2   : > { %v3675_v51 = vld [vmem:[#allocation1] sm:$0xff] }
 0x2a3   : > { %3676 = vst [vmem:[#allocation1] ss:$9 sm:$0xff] %v3618_v56  ;;  %v3703_v4 = vpack.c.bf16 %v3675_v51, %v3675_v51  ;;  %v3818_v56 = vsel %vm493_vm0, %v3787_v21, %v3801_v31  ;;  %v11904_v51 = vld [vmem:[%s16125_s4 + $0x70] sm:$0xff] }
 0x2a4   : > { %3677 = vst [vmem:[#allocation1 + $0x1] ss:$9 sm:$0xff] %v3619_v1  ;;  %6966 = vmatpush.bf16.msrb.mxu2 %v11904_v51 }
 0x2a5   : > { %3678 = vst [vmem:[#allocation1 + $0x2] ss:$9 sm:$0xff] %v3620_v37  ;;  %v3735_v32 = vshrl.u32 %v3703_v4, 16  ;;  %v3738_v58 = vshll.u32 %v3703_v4, 16  ;;  %v3815_v37 = vsel %vm553_vm2, %v3787_v21, %v3801_v31  ;;  %v3836_v4 = vsel %vm413_vm3, %v14030_v48, %v14038_v15  ;;  %v14066_v14 = vld [vmem:[#allocation3 + $0x20] sm:$0xf] }
 0x2a6   : > { %3679 = vst [vmem:[#allocation1 + $0x3] ss:$9 sm:$0xff] %v3621_v7  ;;  %v3853_v7 = vrot.slane %v14047_v23, 1  ;;  %v14080_v5 = vrot.slane %v14066_v14, 3  ;;  %v11899_v23 = vld [vmem:[%s16125_s4 + $0x48] sm:$0xff] }
 0x2a7   : > { %3680 = vst [vmem:[#allocation1 + $0x4] ss:$9 sm:$0xff] %v3622_v45  ;;  %v3737_v6 = vrot.slane %v3735_v32, 7  ;;  %v3810_v45 = vsel %vm413_vm3, %v3787_v21, %v3801_v31 }
 0x2a8   : > { %3681 = vst [vmem:[#allocation1 + $0x5] ss:$9 sm:$0xff] %v13994_v35  ;;  %v3854_v35 = vsel %vm553_vm2, %v14023_v0, %v14034_v9  ;;  %v3923_v13 = vunpack.i.h.s16 %v3853_v7 }
 0x2a9   : > { %3682 = vst [vmem:[#allocation1 + $0x6] ss:$9 sm:$0xff] %v3623_v22  ;;  %v3740_v50 = vor.u32 %v3738_v58, %v3737_v6  ;;  %v3820_v22 = vrot.slane %v3818_v56, 3  ;;  %v3856_v32 = vrot.slane %v3854_v35, 2  ;;  %v3817_v58 = vrot.slane %v3815_v37, 2  ;;  %v11903_v6 = vld [vmem:[%s16125_s4 + $0x68] sm:$0xff] }
 0x2aa   : > { %6967 = vmatpush.bf16.msrb.mxu2 %v11903_v6  ;;  %v14142_v35 = vld [vmem:[#allocation3 + $0x8] sm:$0xf] }
 0x2ab   : > { %v3779_v29 = vsel %vm13948_vm8, %v3740_v50, %v3778_v57  ;;  %v3857_v50 = vsel %vm493_vm0, %v14023_v0, %v14034_v9  ;;  %v3925_v20 = vunpack.i.h.s16 %v3856_v32  ;;  %v10437_v42 = vpack.i.b16 %v3856_v32, %v3923_v13 }
 0x2ac   : > { %3780 = vst [vmem:[#allocation3 + $0x28] sm:$0xf] %v3779_v29  ;;  %v10431_v29 = vpack.i.b16 %v14016_v46, %v3820_v22  ;;  %v3859_v17 = vrot.slane %v3857_v50, 3  ;;  %v3864_v46 = vsel %vm549_vm1, %v14066_v14, %v14080_v5  ;;  %v11898_v22 = vld [vmem:[%s16125_s4 + $0x40] sm:$0xff]  ;;  %v3867_v50 = vsel %vm553_vm2, %v14066_v14, %v14080_v5 }
 0x2ad   : > { %v3866_v41 = vrot.slane %v3864_v46, 1 }
 0x2ae   : > { %6968 = vmatpush.bf16.msrb.mxu2 %v11902_v28 }
 0x2b0   : > { %v3683_v19 = vld [vmem:[#allocation1] sm:$0xff] }
 0x2b1   : > { %3684 = vst [vmem:[#allocation1] ss:$9 sm:$0xff] %v3624_v47  ;;  %v3704_v63 = vpack.c.bf16 %v3683_v19, %v3683_v19  ;;  %v10438_v19 = vpack.i.b16 %v3859_v17, %v3925_v20  ;;  %v4068_v20 = vrot.slane %v14142_v35, 3 }
 0x2b2   : > { %3685 = vst [vmem:[#allocation1 + $0x1] ss:$9 sm:$0xff] %v3625_v52  ;;  %v445_v52 = vld [vmem:[#allocation3 + $0x38] sm:$0x1]  ;;  %6969 = vmatpush.bf16.msrb.mxu2 %v11901_v40 }
 0x2b3   : > { %3686 = vst [vmem:[#allocation1 + $0x2] ss:$9 sm:$0xff] %v3626_v60  ;;  %v3742_v43 = vshrl.u32 %v3704_v63, 16  ;;  %v3745_v55 = vshll.u32 %v3704_v63, 16  ;;  %v14063_v27 = vld [vmem:[#allocation3 + $0x28] sm:$0xf]  ;;  %v3844_v60 = vsel %vm493_vm0, %v14030_v48, %v14038_v15  ;;  %v3849_v63 = vsel %vm413_vm3, %v14023_v0, %v14034_v9 }
 0x2b4   : > { %3687 = vst [vmem:[#allocation1 + $0x3] ss:$9 sm:$0xff] %v3627_v8  ;;  %v14072_v57 = vrot.slane %v14063_v27, 3  ;;  %v3862_v8 = vsel %vm413_vm3, %v14066_v14, %v14080_v5  ;;  %v446_v10 = vsel %vm13620_vm7, 0, %v445_v52  ;;  %v3840_v9 = vrot.slane %v3838_v3, 1 }
 0x2b5   : > { %3688 = vst [vmem:[#allocation1 + $0x4] ss:$9 sm:$0xff] %v3628_v61  ;;  %v3744_v39 = vrot.slane %v3742_v43, 7  ;;  %v3841_v61 = vsel %vm553_vm2, %v14030_v48, %v14038_v15  ;;  %v3921_v43 = vunpack.i.h.s16 %v3849_v63  ;;  %v11900_v48 = vld [vmem:[%s16125_s4 + $0x50] sm:$0xff]  ;;  %v4091_v52 = vsel %vm549_vm1, %v14142_v35, %v4068_v20 }
 0x2b6   : > { %3689 = vst [vmem:[#allocation1 + $0x5] ss:$9 sm:$0xff] %v3629_v11  ;;  %v14089_v34 = vsel %vm553_vm2, %v14063_v27, %v14072_v57  ;;  %v3846_v11 = vrot.slane %v3844_v60, 3  ;;  %v3877_v25 = vsel %vm549_vm1, %v14063_v27, %v14072_v57  ;;  %6970 = vmatpush.bf16.msrb.mxu2 %v11900_v48  ;;  %v4094_v3 = vsel %vm553_vm2, %v14142_v35, %v4068_v20 }
 0x2b7   : > { %3690 = vst [vmem:[#allocation1 + $0x6] ss:$9 sm:$0xff] %v3580_v36  ;;  %v3747_v16 = vor.u32 %v3745_v55, %v3744_v39  ;;  %v3882_v21 = vrot.slane %v14089_v34, 2  ;;  %v3843_v36 = vrot.slane %v3841_v61, 2  ;;  %v10436_v15 = vpack.i.b16 %v3853_v7, %v3921_v43  ;;  %v14188_v61 = vld [vmem:[#allocation3 + $0x20] sm:$0xf] }
 0x2b8   : > { %3986 = vst [vmem:[#allocation1 + $0x20] ss:$4 sm:$0xff] %v10432_v54  ;;  %v10435_v62 = vpack.i.b16 %v3849_v63, %v3846_v11  ;;  %v3879_v51 = vrot.slane %v3877_v25, 1  ;;  %v3875_v7 = vsel %vm413_vm3, %v14063_v27, %v14072_v57  ;;  %v4097_v40 = vsel %vm493_vm0, %v14142_v35, %v4068_v20 }
 0x2b9   : > { %3989 = vst [vmem:[#allocation1 + $0x21] ss:$4 sm:$0xff] %v10433_v49  ;;  %v3782_v1 = vsel %vm13948_vm8, %v3747_v16, %v3781_v44  ;;  %v3883_v44 = vsel %vm493_vm0, %v14063_v27, %v14072_v57  ;;  %v3939_v31 = vunpack.i.h.s16 %v3882_v21 }
 0x2ba   : > { %3992 = vst [vmem:[#allocation1 + $0x22] ss:$4 sm:$0xff] %v10434_v2  ;;  %v3885_v54 = vrot.slane %v3883_v44, 3  ;;  %6971 = vmatpush.bf16.msrb.mxu2 %v11899_v23  ;;  %v3937_v17 = vunpack.i.h.s16 %v3879_v51  ;;  %v4099_v44 = vrot.slane %v4097_v40, 3 }
 0x2bb   : > { %3995 = vst [vmem:[#allocation1 + $0x23] ss:$4 sm:$0xff] %v3836_v4 }
 0x2bc   : > { %3783 = vst [vmem:[#allocation3 + $0x30] sm:$0xf] %v3782_v1  ;;  %v10442_v2 = vpack.i.b16 %v3885_v54, %v3939_v31  ;;  %v14144_v1 = vld [vmem:[#allocation3 + $0x10] sm:$0xf] }
 0x2bd   : > { %447 = vst [vmem:[#allocation3 + $0x38] sm:$0x1] %v446_v10  ;;  %v14164_v13 = vrot.slane %v14144_v1, 3  ;;  %v4093_v10 = vrot.slane %v4091_v52, 1 }
 0x2be   : > { %v3691_v38 = vld [vmem:[#allocation1] sm:$0xff]  ;;  %6972 = vmatpush.bf16.msrb.mxu2 %v11898_v22 }
 0x2bf   : > { %3974 = vst [vmem:[#allocation1] ss:$4 sm:$0xff] %v3810_v45  ;;  %v3705_v47 = vpack.c.bf16 %v3691_v38, %v3691_v38  ;;  %v4102_v24 = vsel %vm413_vm3, %v14144_v1, %v14164_v13  ;;  %v4110_v52 = vsel %vm493_vm0, %v14144_v1, %v14164_v13 }
 0x2c0   : > { %3977 = vst [vmem:[#allocation1 + $0x1] ss:$4 sm:$0xff] %v3814_v53 }
 0x2c1   : > { %3980 = vst [vmem:[#allocation1 + $0x2] ss:$4 sm:$0xff] %v3817_v58  ;;  %v3749_v0 = vshrl.u32 %v3705_v47, 16  ;;  %v3752_v16 = vshll.u32 %v3705_v47, 16  ;;  %v3870_v58 = vsel %vm493_vm0, %v14066_v14, %v14080_v5  ;;  %v4053_v5 = vld [vmem:[#allocation3] sm:$0xf] }
 0x2c2   : > { %3983 = vst [vmem:[#allocation1 + $0x3] ss:$4 sm:$0xff] %v10431_v29  ;;  %v3997_v30 = vld [vmem:[#allocation1 + $0x20] sm:$0xff]  ;;  %v3935_v29 = vunpack.i.h.s16 %v3875_v7  ;;  %v3872_v28 = vrot.slane %v3870_v58, 3  ;;  %v4067_v63 = vrot.slane %v4053_v5, 3 }
 0x2c3   : > { %4045 = vst [vmem:[#allocation4 + $0x24] sm:$0xf] %v3997_v30  ;;  %v14103_v26 = vld [vmem:[#allocation3 + $0x30] sm:$0xf]  ;;  %v3751_v39 = vrot.slane %v3749_v0, 7  ;;  %v3869_v30 = vrot.slane %v3867_v50, 2 }
 0x2c4   : > { %4007 = vst [vmem:[#allocation1 + $0x20] ss:$4 sm:$0xff] %v10437_v42  ;;  %v14121_v33 = vrot.slane %v14103_v26, 3  ;;  %v3784_v32 = vld [vmem:[#allocation3 + $0x38] sm:$0xf]  ;;  %v10439_v14 = vpack.i.b16 %v3875_v7, %v3872_v28  ;;  %v14173_v42 = vsel %vm549_vm1, %v14144_v1, %v14164_v13  ;;  %v10440_v46 = vpack.i.b16 %v3879_v51, %v3935_v29 }
 0x2c5   : > { %4009 = vst [vmem:[#allocation1 + $0x21] ss:$4 sm:$0xff] %v10438_v19  ;;  %v3754_v56 = vor.u32 %v3752_v16, %v3751_v39  ;;  %v10441_v19 = vpack.i.b16 %v3882_v21, %v3937_v17  ;;  %v4078_v21 = vsel %vm549_vm1, %v4053_v5, %v4067_v63  ;;  %v4096_v0 = vrot.slane %v4094_v3, 2 }
 0x2c6   : > { %4011 = vst [vmem:[#allocation1 + $0x22] ss:$4 sm:$0xff] %v3862_v8  ;;  %v3890_v49 = vsel %vm549_vm1, %v14103_v26, %v14121_v33  ;;  %v3893_v18 = vsel %vm553_vm2, %v14103_v26, %v14121_v33  ;;  %v3888_v37 = vsel %vm413_vm3, %v14103_v26, %v14121_v33  ;;  %v3896_v60 = vsel %vm493_vm0, %v14103_v26, %v14121_v33  ;;  %v14191_v33 = vld [vmem:[#allocation3 + $0x18] sm:$0xf] }
 0x2c7   : > { %4013 = vst [vmem:[#allocation1 + $0x23] ss:$4 sm:$0xff] %v3866_v41  ;;  %v3892_v4 = vrot.slane %v3890_v49, 1  ;;  %v3895_v45 = vrot.slane %v3893_v18, 2  ;;  %v3785_v57 = vsel %vm13948_vm8, %v3754_v56, %v3784_v32  ;;  %v4106_v8 = vrot.slane %v14173_v42, 1 }
 0x2c8   : > { %3786 = vst [vmem:[#allocation3 + $0x38] sm:$0xf] %v3785_v57  ;;  %v4179_v41 = vunpack.i.h.s16 %v4102_v24  ;;  %v3898_v43 = vrot.slane %v3896_v60, 3  ;;  %v4081_v26 = vsel %vm553_vm2, %v4053_v5, %v4067_v63  ;;  %v4076_v11 = vsel %vm413_vm3, %v4053_v5, %v4067_v63  ;;  %v14233_v60 = vld [vmem:[#allocation3 + $0x28] sm:$0xf] }
 0x2c9   : > { %v3996_v55 = vld [vmem:[#allocation1] sm:$0xff]  ;;  %v4080_v31 = vrot.slane %v4078_v21, 1  ;;  %v4084_v39 = vsel %vm493_vm0, %v4053_v5, %v4067_v63  ;;  %v4165_v49 = vunpack.i.h.s16 %v4076_v11  ;;  %v4089_v51 = vsel %vm413_vm3, %v14142_v35, %v4068_v20 }
 0x2ca   : > { %4044 = vst [vmem:[#allocation4] sm:$0xf] %v3996_v55  ;;  %v11867_v38 = vld [vmem:[#allocation4 + $0x20] sm:$0xf0]  ;;  %v14197_v55 = vrot.slane %v14188_v61, 3  ;;  %v3947_v54 = vunpack.i.l.s16 %v3898_v43  ;;  %v4086_v18 = vrot.slane %v4084_v39, 3  ;;  %v4107_v17 = vsel %vm553_vm2, %v14144_v1, %v14164_v13 }
 0x2cb   : > { %3999 = vst [vmem:[#allocation1] ss:$4 sm:$0xff] %v3840_v9  ;;  %v10446_v9 = vpack.i.b16 %v4106_v8, %v4179_v41  ;;  %v10443_v7 = vpack.i.b16 %v4080_v31, %v4165_v49  ;;  %v4059_v20 = vld [vmem:[#allocation3 + $0x30] sm:$0xf]  ;;  %v460_v1 = vld [vmem:[#allocation3 + $0x1c] sm:$0x1]  ;;  %v4181_v21 = vunpack.i.h.s16 %v4106_v8 }
 0x2cc   : > { %4001 = vst [vmem:[#allocation1 + $0x1] ss:$4 sm:$0xff] %v3843_v36  ;;  %v4083_v36 = vrot.slane %v4081_v26, 2  ;;  %v4130_v23 = vsel %vm549_vm1, %v14188_v61, %v14197_v55  ;;  %v4171_v32 = vunpack.i.h.s16 %v4086_v18  ;;  %v14222_v57 = vsel %vm553_vm2, %v14188_v61, %v14197_v55  ;;  %v463_v26 = vld [vmem:[#allocation3 + $0x24] sm:$0x1] }
 0x2cd   : > { %4003 = vst [vmem:[#allocation1 + $0x2] ss:$4 sm:$0xff] %v10435_v62  ;;  %v14201_v62 = vrot.slane %v14191_v33, 3  ;;  %v4132_v22 = vrot.slane %v4130_v23, 1  ;;  %v4135_v5 = vrot.slane %v14222_v57, 2  ;;  %v4073_v24 = vrot.slane %v4059_v20, 3 }
 0x2ce   : > { %4005 = vst [vmem:[#allocation1 + $0x3] ss:$4 sm:$0xff] %v10436_v15  ;;  %v4015_v53 = vld [vmem:[#allocation1 + $0x20] sm:$0xff]  ;;  %v4169_v56 = vunpack.i.h.s16 %v4083_v36  ;;  %v4112_v13 = vrot.slane %v4110_v52, 3  ;;  %v461_v43 = vsel %vm13620_vm7, 0, %v460_v1  ;;  %v464_v11 = vsel %vm13620_vm7, 0, %v463_v26 }
 0x2cf   : > { %4047 = vst [vmem:[#allocation4 + $0x6c] sm:$0xf] %v4015_v53  ;;  %v4115_v41 = vsel %vm413_vm3, %v14191_v33, %v14201_v62  ;;  %v4154_v39 = vsel %vm413_vm3, %v4059_v20, %v4073_v24  ;;  %v4117_v49 = vsel %vm549_vm1, %v14191_v33, %v14201_v62  ;;  %vm497_vm8 = vsmask.f32 7966 }
 0x2d0   : > { %4025 = vst [vmem:[#allocation1 + $0x20] ss:$4 sm:$0xff] %v10442_v2  ;;  %v4167_v2 = vunpack.i.h.s16 %v4080_v31  ;;  %v10445_v50 = vpack.i.b16 %v4086_v18, %v4169_v56  ;;  %v466_v31 = vld [vmem:[#allocation3 + $0x2c] sm:$0x1]  ;;  %vm498_vm4 = vmand %vm496_vm5, %vm497_vm8  ;;  %vm8282_vm8 = vcmask 781825  }
 0x2d1   : > { %v10541_v6 = vld [vmem:[#allocation4] sm:$0xf]  ;;  %4027 = vst [vmem:[#allocation1 + $0x21] ss:$4 sm:$0xff] %v3888_v37  ;;  %v4120_v37 = vsel %vm553_vm2, %v14191_v33, %v14201_v62  ;;  %v467_v8 = vsel %vm13620_vm7, 0, %v466_v31 }
 0x2d2   : > { %v10542_v27 = vor.u32 %v11867_v38, %v10541_v6  ;;  %4029 = vst [vmem:[#allocation1 + $0x22] ss:$4 sm:$0xff] %v3892_v4  ;;  %v454_v4 = vld [vmem:[#allocation3 + $0xc] sm:$0x1]  ;;  %v10444_v58 = vpack.i.b16 %v4083_v36, %v4167_v2  ;;  %v4172_v6 = vunpack.i.h.s16 %v4089_v51  ;;  %v4122_v35 = vrot.slane %v4120_v37, 2 }
 0x2d3   : > { %4031 = vst [vmem:[#allocation1 + $0x23] ss:$4 sm:$0xff] %v3895_v45  ;;  %v455_v53 = vsel %vm13620_vm7, 0, %v454_v4  ;;  %v4128_v45 = vsel %vm413_vm3, %v14188_v61, %v14197_v55  ;;  %v4072_v36 = vrot.slane %v14233_v60, 3  ;;  %v4207_v51 = vunpack.i.h.s16 %v4154_v39  ;;  %v4321_v31 = vld [vmem:[#allocation3 + $0x8] sm:$0xe] }
 0x2d4   : > { %6945 = vmatmul.bf16.vlgmr.msrb.gmra.mxu1 %v10542_v27  ;;  %456 = vst [vmem:[#allocation3 + $0xc] sm:$0x1] %v455_v53  ;;  %v4123_v27 = vsel %vm493_vm0, %v14191_v33, %v14201_v62  ;;  %v4193_v29 = vunpack.i.h.s16 %v4128_v45  ;;  %v4119_v37 = vrot.slane %v4117_v49, 1  ;;  %v4162_v4 = vsel %vm493_vm0, %v4059_v20, %v4073_v24 }
 0x2d5   : > { %v4014_v47 = vld [vmem:[#allocation1] sm:$0xff]  ;;  %462 = vst [vmem:[#allocation3 + $0x1c] sm:$0x1] %v461_v43  ;;  %v4149_v56 = vsel %vm493_vm0, %v14233_v60, %v4072_v36  ;;  %v4136_v33 = vsel %vm493_vm0, %v14188_v61, %v14197_v55 }
 0x2d6   : > { %4046 = vst [vmem:[#allocation4 + $0x48] sm:$0xf] %v4014_v47  ;;  %v11876_v15 = vld [vmem:[#allocation4 + $0x68] sm:$0xf0]  ;;  %v4217_v47 = vpack.i.b16 %v4172_v6, %v4171_v32  ;;  %v10449_v3 = vpack.i.b16 %v4132_v22, %v4193_v29  ;;  %v4151_v45 = vrot.slane %v4149_v56, 3  ;;  %v4141_v32 = vsel %vm413_vm3, %v14233_v60, %v4072_v36 }
 0x2d7   : > { %4017 = vst [vmem:[#allocation1] ss:$4 sm:$0xff] %v3869_v30  ;;  %v4195_v30 = vunpack.i.h.s16 %v4132_v22  ;;  %v469_v22 = vld [vmem:[#allocation3 + $0x34] sm:$0x1]  ;;  %v4197_v29 = vunpack.i.h.s16 %v4135_v5 }
 0x2d8   : > { %4019 = vst [vmem:[#allocation1 + $0x1] ss:$4 sm:$0xff] %v10439_v14  ;;  %v4125_v14 = vrot.slane %v4123_v27, 3 }
 0x2d9   : > { %4021 = vst [vmem:[#allocation1 + $0x2] ss:$4 sm:$0xff] %v10440_v46  ;;  %v457_v46 = vld [vmem:[#allocation3 + $0x14] sm:$0x1]  ;;  %v10450_v63 = vpack.i.b16 %v4135_v5, %v4195_v30  ;;  %v4146_v5 = vsel %vm553_vm2, %v14233_v60, %v4072_v36 }
 0x2da   : > { %4023 = vst [vmem:[#allocation1 + $0x3] ss:$4 sm:$0xff] %v10441_v19  ;;  %v4033_v34 = vld [vmem:[#allocation1 + $0x20] sm:$0xff]  ;;  %v4109_v19 = vrot.slane %v4107_v17, 2  ;;  %v458_v40 = vsel %vm13620_vm7, 0, %v457_v46  ;;  %v4200_v17 = vunpack.i.h.s16 %v4141_v32 }
 0x2db   : > { %4049 = vst [vmem:[#allocation4 + $0xb4] sm:$0xf] %v4033_v34 }
 0x2dc   : > { %4252 = vst [vmem:[#allocation1 + $0x20] ss:$4 sm:$0xff] %v4093_v10 }
 0x2dd   : > { %4255 = vst [vmem:[#allocation1 + $0x21] ss:$4 sm:$0xff] %v4096_v0  ;;  %v10577_v48 = vld [vmem:[#allocation4 + $0x48] sm:$0xf]  ;;  %v4156_v0 = vsel %vm549_vm1, %v4059_v20, %v4073_v24 }
 0x2de   : > { %4258 = vst [vmem:[#allocation1 + $0x22] ss:$4 sm:$0xff] %v4099_v44  ;;  %v10578_v16 = vor.u32 %v11876_v15, %v10577_v48  ;;  %v4183_v44 = vunpack.i.h.s16 %v4109_v19  ;;  %v4186_v48 = vunpack.i.h.s16 %v4115_v41  ;;  %v4185_v15 = vunpack.i.h.s16 %v4112_v13 }
 0x2df   : > { %4261 = vst [vmem:[#allocation1 + $0x23] ss:$4 sm:$0xff] %v10446_v9  ;;  %v4159_v9 = vsel %vm553_vm2, %v4059_v20, %v4073_v24  ;;  %v470_v20 = vsel %vm13620_vm7, 0, %v469_v22  ;;  %v4143_v24 = vsel %vm549_vm1, %v14233_v60, %v4072_v36 }
 0x2e0   : > { %459 = vst [vmem:[#allocation3 + $0x14] sm:$0x1] %v458_v40  ;;  %v10448_v2 = vpack.i.b16 %v4112_v13, %v4183_v44  ;;  %v4224_v23 = vpack.i.b16 %v4186_v48, %v4185_v15  ;;  %v4326_v48 = vld [vmem:[#allocation3 + $0x1c] sm:$0x1] }
 0x2e1   : > { %v4032_v25 = vld [vmem:[#allocation1] sm:$0xff]  ;;  %465 = vst [vmem:[#allocation3 + $0x24] sm:$0x1] %v464_v11 }
 0x2e2   : > { %4035 = vst [vmem:[#allocation1] ss:$4 sm:$0xff] %v3947_v54  ;;  %v11885_v34 = vld [vmem:[#allocation4 + $0xb0] sm:$0xf0]  ;;  %v4158_v54 = vrot.slane %v4156_v0, 1 }
 0x2e3   : > { %4048 = vst [vmem:[#allocation4 + $0x90] sm:$0xf] %v4032_v25  ;;  %v10447_v25 = vpack.i.b16 %v4109_v19, %v4181_v21  ;;  %v4145_v19 = vrot.slane %v4143_v24, 1  ;;  %v4319_v21 = vld [vmem:[#allocation3] sm:$0xe] }
 0x2e4   : > { %6950 = vmatmul.bf16.gmra.mxu1 %v10578_v16  ;;  %v4161_v16 = vrot.slane %v4159_v9, 2  ;;  %468 = vst [vmem:[#allocation3 + $0x2c] sm:$0x1] %v467_v8  ;;  %v4209_v53 = vunpack.i.h.s16 %v4158_v54  ;;  %v10452_v6 = vpack.i.b16 %v4158_v54, %v4207_v51  ;;  %v4316_v0 = vld [vmem:[#allocation4 + $0xdc] sm:$0x1] }
 0x2e5   : > { %471 = vst [vmem:[#allocation3 + $0x34] sm:$0x1] %v470_v20 }
 0x2e6   : > { %v4263_v38 = vld [vmem:[#allocation1 + $0x20] sm:$0xff]  ;;  %v4211_v62 = vunpack.i.h.s16 %v4161_v16 }
 0x2e7   : > { %4311 = vst [vmem:[#allocation4 + $0x28] sm:$0xf] %v4263_v38  ;;  %v4138_v38 = vrot.slane %v4136_v33, 3  ;;  %v4324_v26 = vld [vmem:[#allocation3 + $0x14] sm:$0x1] }
 0x2e8   : > { %4273 = vst [vmem:[#allocation1 + $0x20] ss:$4 sm:$0xff] %v4122_v35  ;;  %v4050_v35 = vld [vmem:[#allocation4 + $0xd8] sm:$0x1] }
 0x2e9   : > { %v14224_v28 = vld [vmem:[#allocation1] sm:$0xff]  ;;  %4275 = vst [vmem:[#allocation1 + $0x21] ss:$4 sm:$0xff] %v4125_v14  ;;  %v4199_v14 = vunpack.i.h.s16 %v4138_v38  ;;  %v10451_v57 = vpack.i.b16 %v4138_v38, %v4197_v29 }
 0x2ea   : > { %4240 = vst [vmem:[#allocation1] ss:$4 sm:$0xff] %v10443_v7  ;;  %v10613_v10 = vld [vmem:[#allocation4 + $0x90] sm:$0xf] }
 0x2eb   : > { %4243 = vst [vmem:[#allocation1 + $0x1] ss:$4 sm:$0xff] %v10444_v58  ;;  %v10614_v42 = vor.u32 %v11885_v34, %v10613_v10  ;;  %v4164_v58 = vrot.slane %v4162_v4, 3  ;;  %v4231_v52 = vpack.i.b16 %v4200_v17, %v4199_v14  ;;  %v4322_v10 = vld [vmem:[#allocation3 + $0xc] sm:$0x1] }
 0x2ec   : > { %4246 = vst [vmem:[#allocation1 + $0x2] ss:$4 sm:$0xff] %v10445_v50  ;;  %v10453_v50 = vpack.i.b16 %v4161_v16, %v4209_v53  ;;  %v4325_v53 = vld [vmem:[#allocation3 + $0x18] sm:$0xe]  ;;  %v4329_v14 = vld [vmem:[#allocation3 + $0x28] sm:$0xe] }
 0x2ed   : > { %4249 = vst [vmem:[#allocation1 + $0x3] ss:$4 sm:$0xff] %v4217_v47  ;;  %v10454_v61 = vpack.i.b16 %v4164_v58, %v4211_v62  ;;  %v4051_v47 = vsel %vm13620_vm7, %v14224_v28, %v4050_v35  ;;  %v4213_v41 = vunpack.i.h.s16 %v4164_v58  ;;  %v4327_v58 = vld [vmem:[#allocation3 + $0x20] sm:$0xe] }
 0x2ee   : > { %4277 = vst [vmem:[#allocation1 + $0x22] ss:$4 sm:$0xff] %v10449_v3  ;;  %v10543_v27 = vld [vmem:[#allocation4 + $0x24] sm:$0xf0]  ;;  %v4320_v3 = vld [vmem:[#allocation3 + $0x4] sm:$0x1] }
 0x2ef   : > { %4279 = vst [vmem:[#allocation1 + $0x23] ss:$4 sm:$0xff] %v10450_v63  ;;  %v4148_v63 = vrot.slane %v4146_v5, 2 }
 0x2f0   : > { %4052 = vst [vmem:[#allocation4 + $0xd8] sm:$0x1] %v4051_v47 }
 0x2f4   : > { %6955 = vmatmul.bf16.gmra.mxu1 %v10614_v42  ;;  %v4262_v18 = vld [vmem:[#allocation1] sm:$0xff] }
 0x2f5   : > { %4310 = vst [vmem:[#allocation4 + $0x4] sm:$0xf] %v4262_v18  ;;  %v4323_v18 = vld [vmem:[#allocation3 + $0x10] sm:$0xe] }
 0x2f6   : > { %4265 = vst [vmem:[#allocation1] ss:$4 sm:$0xff] %v10447_v25  ;;  %v4281_v7 = vld [vmem:[#allocation1 + $0x20] sm:$0xff] }
 0x2f7   : > { %4267 = vst [vmem:[#allocation1 + $0x1] ss:$4 sm:$0xff] %v10448_v2  ;;  %v4328_v2 = vld [vmem:[#allocation3 + $0x24] sm:$0x1] }
 0x2f8   : > { %4269 = vst [vmem:[#allocation1 + $0x2] ss:$4 sm:$0xff] %v4224_v23 }
 0x2f9   : > { %4271 = vst [vmem:[#allocation1 + $0x3] ss:$4 sm:$0xff] %v4119_v37 }
 0x2fa   : > { %4313 = vst [vmem:[#allocation4 + $0x70] sm:$0xf] %v4281_v7  ;;  %v4330_v7 = vld [vmem:[#allocation3 + $0x2c] sm:$0x1] }
 0x2fb   : > { %4291 = vst [vmem:[#allocation1 + $0x20] ss:$4 sm:$0xff] %v4151_v45 }
 0x2fc   : > { %v11863_v55 = vld [vmem:[#allocation4 + $0x4] sm:$0xf]  ;;  %4293 = vst [vmem:[#allocation1 + $0x21] ss:$4 sm:$0xff] %v10452_v6  ;;  %v4332_v6 = vld [vmem:[#allocation3 + $0x34] sm:$0x1] }
 0x2fd   : > { %v10546_v30 = vor.u32 %v11863_v55, %v10543_v27  ;;  %4295 = vst [vmem:[#allocation1 + $0x22] ss:$4 sm:$0xff] %v10453_v50 }
 0x2fe   : > { %4297 = vst [vmem:[#allocation1 + $0x23] ss:$4 sm:$0xff] %v10454_v61  ;;  %v11913_v61 = vld [vmem:[%s16125_s4 + $0xb8] sm:$0xff] }
 0x2ff   : > { %6973 = vmatmul.bf16.vlgmr.msrb.gmra.mxu2 %v10546_v30  ;;  %6993 = vmatpush.bf16.msrb.mxu3 %v11913_v61  ;;  %v11912_v30 = vld [vmem:[%s16125_s4 + $0xb0] sm:$0xff]  ;;  %v11919_v61 = vld [vmem:[%s16125_s4 + $0xe8] sm:$0xff] }
 0x300   : > { %v4280_v46 = vld [vmem:[#allocation1] sm:$0xff] }
 0x301   : > { %4312 = vst [vmem:[#allocation4 + $0x4c] sm:$0xf] %v4280_v46  ;;  %v10579_v34 = vld [vmem:[#allocation4 + $0x6c] sm:$0xf0] }
 0x302   : > { %4283 = vst [vmem:[#allocation1] ss:$4 sm:$0xff] %v10451_v57 }
 0x303   : > { %4285 = vst [vmem:[#allocation1 + $0x1] ss:$4 sm:$0xff] %v4231_v52  ;;  %6994 = vmatpush.bf16.msrb.mxu3 %v11912_v30  ;;  %v11911_v52 = vld [vmem:[%s16125_s4 + $0xa8] sm:$0xff] }
 0x304   : > { %4287 = vst [vmem:[#allocation1 + $0x2] ss:$4 sm:$0xff] %v4145_v19 }
 0x305   : > { %4289 = vst [vmem:[#allocation1 + $0x3] ss:$4 sm:$0xff] %v4148_v63  ;;  %v4299_v28 = vld [vmem:[#allocation1 + $0x20] sm:$0xff] }
 0x306   : > { %4336 = vst [vmem:[#allocation1 + $0x20] sm:$0xff] %v4320_v3  ;;  %v11910_v3 = vld [vmem:[%s16125_s4 + $0xa0] sm:$0xff] }
 0x307   : > { %4315 = vst [vmem:[#allocation4 + $0xb8] sm:$0xf] %v4299_v28  ;;  %6995 = vmatpush.bf16.msrb.mxu3 %v11911_v52 }
 0x308   : > { %v11872_v40 = vld [vmem:[#allocation4 + $0x4c] sm:$0xf] }
 0x309   : > { %v10582_v60 = vor.u32 %v11872_v40, %v10579_v34  ;;  %v4331_v40 = vld [vmem:[#allocation3 + $0x30] sm:$0xe] }
 0x30b   : > { %6996 = vmatpush.bf16.msrb.mxu3 %v11910_v3 }
 0x30c   : > { %v4298_v1 = vld [vmem:[#allocation1] sm:$0xff] }
 0x30d   : > { %4301 = vst [vmem:[#allocation1] ss:$4 sm:$0xff] %v4213_v41  ;;  %v14276_v13 = vld [vmem:[#allocation1 + $0x20] ss:$4 sm:$0xff] }
 0x30e   : > { %4352 = vst [vmem:[#allocation1 + $0x20] sm:$0xff] %v4322_v10  ;;  %v10615_v36 = vld [vmem:[#allocation4 + $0xb4] sm:$0xf0] }
 0x30f   : > { %6978 = vmatmul.bf16.gmra.mxu2 %v10582_v60  ;;  %4314 = vst [vmem:[#allocation4 + $0x94] sm:$0xf] %v4298_v1  ;;  %v11909_v60 = vld [vmem:[%s16125_s4 + $0x98] sm:$0xff] }
 0x310   : > { %6997 = vmatpush.bf16.msrb.mxu3 %v11909_v60 }
 0x314   : > { %v4302_v43 = vld [vmem:[#allocation1] sm:$0xff] }
 0x315   : > { %v4317_v44 = vsel %vm13620_vm7, %v4302_v43, %v4316_v0  ;;  %4334 = vst [vmem:[#allocation1] sm:$0xff] %v4319_v21  ;;  %v4359_v9 = vld [vmem:[#allocation1 + $0x20] ss:$4 sm:$0xff] }
 0x316   : > { %4318 = vst [vmem:[#allocation4 + $0xdc] sm:$0x1] %v4317_v44  ;;  %v11881_v11 = vld [vmem:[#allocation4 + $0x94] sm:$0xf] }
 0x317   : > { %4364 = vst [vmem:[#allocation1 + $0x20] sm:$0xff] %v4324_v26  ;;  %v10618_v15 = vor.u32 %v11881_v11, %v10615_v36  ;;  %v11908_v43 = vld [vmem:[%s16125_s4 + $0x90] sm:$0xff]  ;;  %v4576_v26 = vld [vmem:[#allocation3 + $0x10] sm:$0xf] }
 0x318   : > { %6998 = vmatpush.bf16.msrb.mxu3 %v11908_v43  ;;  %v4590_v36 = vrot.slane %v4576_v26, 3  ;;  %v14411_v43 = vld [vmem:[#allocation3 + $0x30] sm:$0xf] }
 0x31c   : > { %v14280_v42 = vld [vmem:[#allocation1 + $0x1] ss:$4 sm:$0xff]  ;;  %v14282_v8 = vld [vmem:[#allocation1 + $0x2] ss:$4 sm:$0xff]  ;;  %v14284_v39 = vld [vmem:[#allocation1 + $0x3] ss:$4 sm:$0xff] }
 0x31d   : > { %4350 = vst [vmem:[#allocation1] sm:$0xff] %v4321_v31  ;;  %v6182_v54 = vld [vmem:[#allocation4 + $0xd8] sm:$0x11] }
 0x31e   : > { %v14286_v25 = vld [vmem:[#allocation1 + $0x20] ss:$4 sm:$0xff]  ;;  %v6424_v49 = vunpack.c.l.b16 %v6182_v54  ;;  %v6425_v4 = vunpack.c.h.b16 %v6182_v54 }
 0x31f   : > { %4376 = vst [vmem:[#allocation1 + $0x20] sm:$0xff] %v4326_v48  ;;  %6983 = vmatmul.bf16.gmra.mxu2 %v10618_v15  ;;  %v11906_v15 = vld [vmem:[%s16125_s4 + $0x80] sm:$0xff] }
 0x320   : > { %v6460_v16 = vpack.c.b16 %v6424_v49, %v6424_v49  ;;  %v6461_v22 = vpack.c.b16 %v6425_v4, %v6425_v4 }
 0x322   : > { %6960 = vmatmul.bf16.gmra.mxu1 %v6460_v16  ;;  %v4613_v16 = vsel %vm549_vm1, %v4576_v26, %v4590_v36 }
 0x324   : > { %v14288_v23 = vld [vmem:[#allocation1 + $0x1] ss:$4 sm:$0xff]  ;;  %v4355_v56 = vld [vmem:[#allocation1 + $0x2] ss:$4 sm:$0xff]  ;;  %v4357_v51 = vld [vmem:[#allocation1 + $0x3] ss:$4 sm:$0xff] }
 0x325   : > { %4362 = vst [vmem:[#allocation1] sm:$0xff] %v4323_v18  ;;  %v4431_v35 = vunpack.i.h.s16 %v4355_v56  ;;  %v4433_v29 = vunpack.i.h.s16 %v4357_v51  ;;  %v4429_v47 = vunpack.i.h.s16 %v14288_v23  ;;  %v10455_v48 = vpack.i.b16 %v14288_v23, %v14276_v13  ;;  %v14345_v18 = vld [vmem:[#allocation3 + $0x20] sm:$0xf]  ;;  %v11921_v23 = vld [vmem:[%s16125_s4 + $0xf8] sm:$0xff] }
 0x326   : > { %v4383_v37 = vld [vmem:[#allocation1 + $0x20] ss:$4 sm:$0xff]  ;;  %v4616_v13 = vsel %vm553_vm2, %v4576_v26, %v4590_v36  ;;  %7021 = vmatpush.bf16.msra.mxu0 %v11921_v23  ;;  %v14357_v4 = vrot.slane %v14345_v18, 3 }
 0x327   : > { %4388 = vst [vmem:[#allocation1 + $0x20] sm:$0xff] %v4328_v2  ;;  %v10457_v20 = vpack.i.b16 %v4357_v51, %v4431_v35  ;;  %v10458_v17 = vpack.i.b16 %v4359_v9, %v4433_v29  ;;  %v10456_v46 = vpack.i.b16 %v4355_v56, %v4429_v47  ;;  %v4615_v2 = vrot.slane %v4613_v16, 1 }
 0x328   : > { %v4618_v56 = vrot.slane %v4616_v13, 2 }
 0x32c   : > { %v4365_v33 = vld [vmem:[#allocation1 + $0x1] ss:$4 sm:$0xff]  ;;  %v14290_v62 = vld [vmem:[#allocation1 + $0x2] ss:$4 sm:$0xff]  ;;  %v14292_v45 = vld [vmem:[#allocation1 + $0x3] ss:$4 sm:$0xff] }
 0x32d   : > { %4374 = vst [vmem:[#allocation1] sm:$0xff] %v4325_v53 }
 0x32e   : > { %v14294_v32 = vld [vmem:[#allocation1 + $0x20] ss:$4 sm:$0xff] }
 0x32f   : > { %4400 = vst [vmem:[#allocation1 + $0x20] sm:$0xff] %v4330_v7  ;;  %6988 = vmatmul.bf16.gmra.mxu2 %v6461_v22  ;;  %v4619_v22 = vsel %vm493_vm0, %v4576_v26, %v4590_v36 }
 0x330   : > { %v4621_v35 = vrot.slane %v4619_v22, 3 }
 0x334   : > { %v14296_v38 = vld [vmem:[#allocation1 + $0x1] ss:$4 sm:$0xff]  ;;  %v14298_v50 = vld [vmem:[#allocation1 + $0x2] ss:$4 sm:$0xff]  ;;  %v4381_v27 = vld [vmem:[#allocation1 + $0x3] ss:$4 sm:$0xff] }
 0x335   : > { %4386 = vst [vmem:[#allocation1] sm:$0xff] %v4327_v58  ;;  %v4445_v63 = vunpack.i.h.s16 %v14298_v50  ;;  %v4447_v28 = vunpack.i.h.s16 %v4381_v27  ;;  %v4697_v58 = vunpack.i.h.s16 %v4615_v2 }
 0x336   : > { %v4407_v55 = vld [vmem:[#allocation1 + $0x20] ss:$4 sm:$0xff] }
 0x337   : > { %4412 = vst [vmem:[#allocation1 + $0x20] sm:$0xff] %v4332_v6  ;;  %v10461_v1 = vpack.i.b16 %v4381_v27, %v4445_v63  ;;  %v10462_v21 = vpack.i.b16 %v4383_v37, %v4447_v28  ;;  %v10459_v37 = vpack.i.b16 %v14296_v38, %v14286_v25  ;;  %v11920_v25 = vld [vmem:[%s16125_s4 + $0xf0] sm:$0xff]  ;;  %v4642_v27 = vsel %vm553_vm2, %v14345_v18, %v14357_v4 }
 0x338   : > { %4517 = vst [vmem:[#allocation1 + $0x23] ss:$4 sm:$0xff] %v4365_v33  ;;  %v14362_v33 = vld [vmem:[#allocation3 + $0x18] sm:$0xf]  ;;  %7022 = vmatpush.bf16.msra.mxu0 %v11920_v25  ;;  %v10469_v29 = vpack.i.b16 %v4618_v56, %v4697_v58  ;;  %v4645_v28 = vsel %vm493_vm0, %v14345_v18, %v14357_v4 }
 0x339   : > { %4511 = vst [vmem:[#allocation1 + $0x21] ss:$4 sm:$0xff] %v10457_v20  ;;  %v14369_v6 = vrot.slane %v14362_v33, 3 }
 0x33a   : > { %4514 = vst [vmem:[#allocation1 + $0x22] ss:$4 sm:$0xff] %v10458_v17  ;;  %v14383_v17 = vld [vmem:[#allocation3 + $0x28] sm:$0xf] }
 0x33b   : > { %v14396_v3 = vrot.slane %v14383_v17, 3 }
 0x33c   : > { %v4389_v24 = vld [vmem:[#allocation1 + $0x1] ss:$4 sm:$0xff]  ;;  %v4391_v57 = vld [vmem:[#allocation1 + $0x2] ss:$4 sm:$0xff]  ;;  %v14307_v5 = vld [vmem:[#allocation1 + $0x3] ss:$4 sm:$0xff]  ;;  %7023 = vmatpush.bf16.msra.mxu0 %v11919_v61 }
 0x33d   : > { %4398 = vst [vmem:[#allocation1] sm:$0xff] %v4329_v14  ;;  %v4624_v14 = vsel %vm413_vm3, %v14362_v33, %v14369_v6  ;;  %v11928_v61 = vld [vmem:[%s16125_s4 + $0x130] sm:$0xff] }
 0x33e   : > { %v14312_v19 = vld [vmem:[#allocation1 + $0x20] ss:$4 sm:$0xff] }
 0x33f   : > { %4508 = vst [vmem:[#allocation1 + $0x20] ss:$4 sm:$0xff] %v10456_v46 }
 0x344   : > { %v14318_v41 = vld [vmem:[#allocation1 + $0x1] ss:$4 sm:$0xff]  ;;  %v14320_v10 = vld [vmem:[#allocation1 + $0x2] ss:$4 sm:$0xff]  ;;  %v14322_v34 = vld [vmem:[#allocation1 + $0x3] ss:$4 sm:$0xff] }
 0x345   : > { %4410 = vst [vmem:[#allocation1] sm:$0xff] %v4331_v40  ;;  %v4461_v31 = vunpack.i.h.s16 %v14322_v34  ;;  %v4457_v20 = vunpack.i.h.s16 %v14318_v41  ;;  %v4459_v47 = vunpack.i.h.s16 %v14320_v10  ;;  %v10463_v46 = vpack.i.b16 %v14318_v41, %v14294_v32 }
 0x346   : > { %4496 = vst [vmem:[#allocation1] ss:$4 sm:$0xff] %v14280_v42  ;;  %v4519_v0 = vld [vmem:[#allocation1 + $0x20] sm:$0xff]  ;;  %v11907_v42 = vld [vmem:[%s16125_s4 + $0x88] sm:$0xff] }
 0x347   : > { %4529 = vst [vmem:[#allocation1 + $0x20] ss:$4 sm:$0xff] %v10461_v1  ;;  %6999 = vmatpush.bf16.msrb.mxu3 %v11907_v42  ;;  %v10466_v54 = vpack.i.b16 %v4407_v55, %v4461_v31  ;;  %v10464_v63 = vpack.i.b16 %v14320_v10, %v4457_v20  ;;  %v10465_v32 = vpack.i.b16 %v14322_v34, %v4459_v47  ;;  %v4647_v10 = vrot.slane %v4645_v28, 3  ;;  %v11916_v31 = vld [vmem:[%s16125_s4 + $0xd0] sm:$0xff] }
 0x348   : > { %4531 = vst [vmem:[#allocation1 + $0x21] ss:$4 sm:$0xff] %v10462_v21  ;;  %v4652_v34 = vsel %vm549_vm1, %v14383_v17, %v14396_v3 }
 0x349   : > { %4533 = vst [vmem:[#allocation1 + $0x22] ss:$4 sm:$0xff] %v4389_v24  ;;  %v4644_v24 = vrot.slane %v4642_v27, 2  ;;  %v4654_v42 = vrot.slane %v4652_v34, 1  ;;  %v11926_v34 = vld [vmem:[%s16125_s4 + $0x120] sm:$0xff] }
 0x34a   : > { %4535 = vst [vmem:[#allocation1 + $0x23] ss:$4 sm:$0xff] %v4391_v57  ;;  %v11918_v57 = vld [vmem:[%s16125_s4 + $0xe0] sm:$0xff] }
 0x34b   : > { %4567 = vst [vmem:[#allocation4 + $0x2c] sm:$0xf] %v4519_v0  ;;  %7000 = vmatpush.bf16.msrb.mxu3 %v11906_v15  ;;  %7024 = vmatpush.bf16.msra.mxu0 %v11918_v57  ;;  %v4713_v41 = vunpack.i.h.s16 %v4644_v24  ;;  %v4469_v15 = vunpack.i.l.s16 %v14312_v19 }
 0x34c   : > { %v4413_v44 = vld [vmem:[#allocation1 + $0x1] ss:$4 sm:$0xff]  ;;  %v4415_v9 = vld [vmem:[#allocation1 + $0x2] ss:$4 sm:$0xff]  ;;  %v4417_v11 = vld [vmem:[#allocation1 + $0x3] ss:$4 sm:$0xff] }
 0x34d   : > { %4499 = vst [vmem:[#allocation1 + $0x1] ss:$4 sm:$0xff] %v14282_v8  ;;  %v4443_v8 = vunpack.i.h.s16 %v14296_v38 }
 0x34e   : > { %4502 = vst [vmem:[#allocation1 + $0x2] ss:$4 sm:$0xff] %v14284_v39  ;;  %v14348_v39 = vsel %vm413_vm3, %v4576_v26, %v4590_v36  ;;  %v4650_v36 = vsel %vm413_vm3, %v14383_v17, %v14396_v3 }
 0x34f   : > { %4505 = vst [vmem:[#allocation1 + $0x3] ss:$4 sm:$0xff] %v10455_v48  ;;  %v4695_v53 = vunpack.i.h.s16 %v14348_v39  ;;  %v10460_v7 = vpack.i.b16 %v14298_v50, %v4443_v8  ;;  %v14422_v48 = vrot.slane %v14411_v43, 3 }
 0x351   : > { %v4537_v49 = vld [vmem:[#allocation1 + $0x20] sm:$0xff]  ;;  %v10468_v38 = vpack.i.b16 %v4615_v2, %v4695_v53  ;;  %v14409_v0 = vpop.f32.mrf.mxu1  ;;  %v14434_v8 = vsel %vm553_vm2, %v14411_v43, %v14422_v48  ;;  %v4671_v27 = vsel %vm493_vm0, %v14411_v43, %v14422_v48 }
 0x352   : > { %4547 = vst [vmem:[#allocation1 + $0x20] ss:$4 sm:$0xff] %v10466_v54  ;;  %v11868_v60 = vld [vmem:[#allocation4 + $0x28] sm:$0xf0]  ;;  %v4575_v54 = vld [vmem:[#allocation3 + $0x8] sm:$0xf] }
 0x353   : > { %4549 = vst [vmem:[#allocation1 + $0x21] ss:$4 sm:$0xff] %v4413_v44  ;;  %v10474_v44 = vpack.i.b16 %v4647_v10, %v4713_v41  ;;  %v4589_v13 = vrot.slane %v4575_v54, 3  ;;  %v4670_v19 = vrot.slane %v14434_v8, 2  ;;  %v14477_v41 = vld [vmem:[#allocation3 + $0x18] sm:$0xf]  ;;  %v4632_v10 = vsel %vm493_vm0, %v14362_v33, %v14369_v6 }
 0x354   : > { %4551 = vst [vmem:[#allocation1 + $0x22] ss:$4 sm:$0xff] %v4415_v9 }
 0x355   : > { %4553 = vst [vmem:[#allocation1 + $0x23] ss:$4 sm:$0xff] %v4417_v11  ;;  %v14416_v11 = vld [vmem:[#allocation3 + $0x38] sm:$0xf]  ;;  %v4606_v53 = vsel %vm493_vm0, %v4575_v54, %v4589_v13  ;;  %v4603_v22 = vsel %vm553_vm2, %v4575_v54, %v4589_v13 }
 0x356   : > { %v4518_v51 = vld [vmem:[#allocation1] sm:$0xff]  ;;  %4569 = vst [vmem:[#allocation4 + $0x74] sm:$0xf] %v4537_v49  ;;  %v14429_v49 = vrot.slane %v14416_v11, 3  ;;  %v4608_v47 = vrot.slane %v4606_v53, 3  ;;  %v4605_v57 = vrot.slane %v4603_v22, 2 }
 0x357   : > { %4521 = vst [vmem:[#allocation1] ss:$4 sm:$0xff] %v14290_v62  ;;  %v4699_v62 = vunpack.i.h.s16 %v4618_v56  ;;  %v14528_v53 = vld [vmem:[#allocation3 + $0x28] sm:$0xf] }
 0x358   : > { %4523 = vst [vmem:[#allocation1 + $0x1] ss:$4 sm:$0xff] %v14292_v45  ;;  %v14374_v45 = vsel %vm549_vm1, %v14345_v18, %v14357_v4  ;;  %v4678_v2 = vsel %vm549_vm1, %v14416_v11, %v14429_v49  ;;  %v4676_v58 = vsel %vm413_vm3, %v14416_v11, %v14429_v49 }
 0x359   : > { %4525 = vst [vmem:[#allocation1 + $0x2] ss:$4 sm:$0xff] %v10459_v37  ;;  %v10470_v55 = vpack.i.b16 %v4621_v35, %v4699_v62  ;;  %v4641_v30 = vrot.slane %v14374_v45, 1  ;;  %v14439_v23 = vpop.f32.mrf.mxu1  ;;  %v4600_v37 = vsel %vm549_vm1, %v4575_v54, %v4589_v13  ;;  %v4680_v25 = vrot.slane %v4678_v2, 1 }
 0x35a   : > { %4527 = vst [vmem:[#allocation1 + $0x3] ss:$4 sm:$0xff] %v10460_v7  ;;  %v11929_v7 = vld [vmem:[%s16125_s4 + $0x138] sm:$0xff]  ;;  %v4602_v20 = vrot.slane %v4600_v37, 1  ;;  %v4665_v2 = vsel %vm549_vm1, %v14411_v43, %v14422_v48 }
 0x35b   : > { %4566 = vst [vmem:[#allocation4 + $0x8] sm:$0xf] %v4518_v51  ;;  %v4711_v40 = vunpack.i.h.s16 %v4641_v30  ;;  %v11915_v51 = vld [vmem:[%s16125_s4 + $0xc8] sm:$0xff]  ;;  %7049 = vmatpush.bf16.msra.mxu1 %v11929_v7 }
 0x35c   : > { %v4555_v50 = vld [vmem:[#allocation1 + $0x20] sm:$0xff] }
 0x35d   : > { %4774 = vst [vmem:[#allocation1 + $0x20] ss:$4 sm:$0xff] %v10468_v38  ;;  %v10473_v26 = vpack.i.b16 %v4644_v24, %v4711_v40  ;;  %v11877_v35 = vld [vmem:[#allocation4 + $0x70] sm:$0xf0]  ;;  %v11914_v38 = vld [vmem:[%s16125_s4 + $0xc0] sm:$0xff]  ;;  %v4727_v24 = vunpack.i.h.s16 %v4670_v19  ;;  %v11927_v40 = vld [vmem:[%s16125_s4 + $0x128] sm:$0xff] }
 0x35e   : > { %4777 = vst [vmem:[#allocation1 + $0x21] ss:$4 sm:$0xff] %v10469_v29 }
 0x35f   : > { %4780 = vst [vmem:[#allocation1 + $0x22] ss:$4 sm:$0xff] %v10470_v55  ;;  %7050 = vmatpush.bf16.msra.mxu1 %v11928_v61 }
 0x360   : > { %4783 = vst [vmem:[#allocation1 + $0x23] ss:$4 sm:$0xff] %v4624_v14  ;;  %v4681_v14 = vsel %vm553_vm2, %v14416_v11, %v14429_v49 }
 0x361   : > { %v4536_v52 = vld [vmem:[#allocation1] sm:$0xff]  ;;  %4571 = vst [vmem:[#allocation4 + $0xbc] sm:$0xf] %v4555_v50  ;;  %v4598_v50 = vsel %vm413_vm3, %v4575_v54, %v4589_v13  ;;  %v4683_v28 = vrot.slane %v4681_v14, 2  ;;  %v4655_v14 = vsel %vm553_vm2, %v14383_v17, %v14396_v3 }
 0x362   : > { %4539 = vst [vmem:[#allocation1] ss:$4 sm:$0xff] %v14307_v5  ;;  %v10549_v1 = vld [vmem:[#allocation4 + $0x8] sm:$0xf]  ;;  %v11917_v5 = vld [vmem:[%s16125_s4 + $0xd8] sm:$0xff] }
 0x363   : > { %4541 = vst [vmem:[#allocation1 + $0x1] ss:$4 sm:$0xff] %v10463_v46  ;;  %v10550_v21 = vor.u32 %v11868_v60, %v10549_v1  ;;  %7025 = vmatpush.bf16.msra.mxu0 %v11917_v5  ;;  %v4673_v46 = vrot.slane %v4671_v27, 3  ;;  %v14473_v60 = vpop.f32.mrf.mxu1  ;;  %v4626_v5 = vsel %vm549_vm1, %v14362_v33, %v14369_v6  ;;  %7051 = vmatpush.bf16.msra.mxu1 %v11927_v40 }
 0x364   : > { %4543 = vst [vmem:[#allocation1 + $0x2] ss:$4 sm:$0xff] %v10464_v63  ;;  %v4572_v63 = vld [vmem:[#allocation4 + $0xe0] sm:$0x1]  ;;  %v4663_v27 = vsel %vm413_vm3, %v14411_v43, %v14422_v48  ;;  %v14556_v43 = vld [vmem:[#allocation3 + $0x20] sm:$0xf] }
 0x365   : > { %4545 = vst [vmem:[#allocation1 + $0x3] ss:$4 sm:$0xff] %v10465_v32  ;;  %7001 = vmatmul.bf16.vlgmr.msrb.gmra.mxu3 %v10550_v21  ;;  %v10478_v1 = vpack.i.b16 %v4673_v46, %v4727_v24  ;;  %v14482_v21 = vld [vmem:[#allocation3 + $0x10] sm:$0xf]  ;;  %v4723_v48 = vunpack.i.h.s16 %v4663_v27 }
 0x366   : > { %4568 = vst [vmem:[#allocation4 + $0x50] sm:$0xf] %v4536_v52  ;;  %v10467_v52 = vpack.i.b16 %v14348_v39, %v4608_v47  ;;  %v4637_v39 = vsel %vm413_vm3, %v14345_v18, %v14357_v4  ;;  %v4629_v18 = vsel %vm553_vm2, %v14362_v33, %v14369_v6  ;;  %v14497_v4 = vrot.slane %v14477_v41, 3  ;;  %v11925_v33 = vld [vmem:[%s16125_s4 + $0x118] sm:$0xff] }
 0x367   : > { %v4785_v9 = vld [vmem:[#allocation1 + $0x20] sm:$0xff]  ;;  %7026 = vmatpush.bf16.msra.mxu0 %v11916_v31  ;;  %v4628_v31 = vrot.slane %v4626_v5, 1  ;;  %7052 = vmatpush.bf16.msra.mxu1 %v11926_v34 }
 0x368   : > { %4795 = vst [vmem:[#allocation1 + $0x20] ss:$4 sm:$0xff] %v10473_v26  ;;  %v4709_v26 = vunpack.i.h.s16 %v4637_v39  ;;  %v14516_v13 = vsel %vm549_vm1, %v14477_v41, %v14497_v4  ;;  %v11886_v7 = vld [vmem:[#allocation4 + $0xb8] sm:$0xf0]  ;;  %v11922_v34 = vld [vmem:[%s16125_s4 + $0x100] sm:$0xff] }
 0x369   : > { %4797 = vst [vmem:[#allocation1 + $0x21] ss:$4 sm:$0xff] %v10474_v44  ;;  %v14502_v44 = vld [vmem:[%s16126_s5] ss:$0 sm:$0xff] }
 0x36a   : > { %4799 = vst [vmem:[#allocation1 + $0x22] ss:$4 sm:$0xff] %v4650_v36  ;;  %v4634_v36 = vrot.slane %v4632_v10, 3 }
 0x36b   : > { %4801 = vst [vmem:[#allocation1 + $0x23] ss:$4 sm:$0xff] %v4654_v42  ;;  %7027 = vmatpush.bf16.msra.mxu0 %v11915_v51  ;;  %v4631_v42 = vrot.slane %v4629_v18, 2  ;;  %v6947_v51 = vadd.f32 %v14502_v44, %v14409_v0  ;;  %7053 = vmatpush.bf16.msra.mxu1 %v11925_v33 }
 0x36c   : > { %v4554_v16 = vld [vmem:[#allocation1] sm:$0xff]  ;;  %4833 = vst [vmem:[#allocation4 + $0x30] sm:$0xf] %v4785_v9  ;;  %v14505_v9 = vrot.slane %v14482_v21, 3  ;;  %v10471_v6 = vpack.i.b16 %v4637_v39, %v4634_v36 }
 0x36d   : > { %4557 = vst [vmem:[#allocation1] ss:$4 sm:$0xff] %v4469_v15  ;;  %v10585_v56 = vld [vmem:[#allocation4 + $0x50] sm:$0xf] }
 0x36e   : > { %4570 = vst [vmem:[#allocation4 + $0x98] sm:$0xf] %v4554_v16  ;;  %v10586_v29 = vor.u32 %v11877_v35, %v10585_v56  ;;  %v4890_v16 = vsel %vm413_vm3, %v14477_v41, %v14497_v4  ;;  %v10472_v56 = vpack.i.b16 %v4641_v30, %v4709_v26  ;;  %v4879_v37 = vsel %vm549_vm1, %v14482_v21, %v14505_v9  ;;  %v14536_v30 = vpop.f32.mrf.mxu1  ;;  %v11924_v35 = vld [vmem:[%s16125_s4 + $0x110] sm:$0xff] }
 0x36f   : > { %7028 = vmatpush.bf16.msra.mxu0 %v11914_v38  ;;  %v4885_v45 = vsel %vm493_vm0, %v14482_v21, %v14505_v9  ;;  %v4894_v38 = vrot.slane %v14516_v13, 1  ;;  %v4881_v61 = vrot.slane %v4879_v37, 1  ;;  %7054 = vmatpush.bf16.msra.mxu1 %v11924_v35 }
 0x370   : > { %v4887_v24 = vrot.slane %v4885_v45, 3 }
 0x372   : > { %v4803_v62 = vld [vmem:[#allocation1 + $0x20] sm:$0xff] }
 0x373   : > { %4815 = vst [vmem:[#allocation1 + $0x21] ss:$4 sm:$0xff] %v4676_v58 }
 0x374   : > { %v4558_v55 = vld [vmem:[#allocation1] sm:$0xff]  ;;  %4817 = vst [vmem:[#allocation1 + $0x22] ss:$4 sm:$0xff] %v4680_v25  ;;  %v4882_v25 = vsel %vm553_vm2, %v14482_v21, %v14505_v9 }
 0x375   : > { %4762 = vst [vmem:[#allocation1] ss:$4 sm:$0xff] %v4598_v50  ;;  %7006 = vmatmul.bf16.gmra.mxu3 %v10586_v29  ;;  %v4573_v32 = vsel %vm13620_vm7, %v4558_v55, %v4572_v63  ;;  %v10621_v15 = vld [vmem:[#allocation4 + $0x98] sm:$0xf]  ;;  %v4967_v50 = vunpack.i.h.s16 %v4890_v16  ;;  %v4667_v29 = vrot.slane %v4665_v2, 1  ;;  %v14548_v55 = vrot.slane %v14528_v53, 3 }
 0x376   : > { %4765 = vst [vmem:[#allocation1 + $0x1] ss:$4 sm:$0xff] %v4602_v20  ;;  %v10622_v0 = vor.u32 %v11886_v7, %v10621_v15  ;;  %v4658_v20 = vsel %vm493_vm0, %v14383_v17, %v14396_v3  ;;  %v4884_v47 = vrot.slane %v4882_v25, 2  ;;  %v4657_v3 = vrot.slane %v4655_v14, 2  ;;  %v14582_v33 = vpop.f32.mrf.mxu1 }
 0x377   : > { %4768 = vst [vmem:[#allocation1 + $0x2] ss:$4 sm:$0xff] %v4605_v57  ;;  %v11923_v57 = vld [vmem:[%s16125_s4 + $0x108] sm:$0xff]  ;;  %v10482_v46 = vpack.i.b16 %v4894_v38, %v4967_v50  ;;  %v4725_v63 = vunpack.i.h.s16 %v4667_v29  ;;  %v4918_v17 = vsel %vm549_vm1, %v14528_v53, %v14548_v55  ;;  %v10476_v5 = vpack.i.b16 %v4667_v29, %v4723_v48  ;;  %v14608_v48 = vld [vmem:[#allocation3 + $0x30] sm:$0xf] }
 0x378   : > { %4771 = vst [vmem:[#allocation1 + $0x3] ss:$4 sm:$0xff] %v10467_v52  ;;  %v4660_v52 = vrot.slane %v4658_v20, 3  ;;  %7055 = vmatpush.bf16.msra.mxu1 %v11923_v57  ;;  %v4916_v18 = vsel %vm413_vm3, %v14528_v53, %v14548_v55  ;;  %v4920_v26 = vrot.slane %v4918_v17, 1  ;;  %v4877_v17 = vsel %vm413_vm3, %v14482_v21, %v14505_v9 }
 0x379   : > { %4819 = vst [vmem:[#allocation1 + $0x23] ss:$4 sm:$0xff] %v4683_v28  ;;  %v14567_v28 = vrot.slane %v14556_v43, 3  ;;  %v4981_v15 = vunpack.i.h.s16 %v4916_v18 }
 0x37a   : > { %4813 = vst [vmem:[#allocation1 + $0x20] ss:$4 sm:$0xff] %v10478_v1  ;;  %v10475_v40 = vpack.i.b16 %v4663_v27, %v4660_v52 }
 0x37b   : > { %4835 = vst [vmem:[#allocation4 + $0x78] sm:$0xf] %v4803_v62  ;;  %v4911_v8 = vsel %vm493_vm0, %v14556_v43, %v14567_v28  ;;  %v10485_v25 = vpack.i.b16 %v4920_v26, %v4981_v15 }
 0x37c   : > { %4574 = vst [vmem:[#allocation4 + $0xe0] sm:$0x1] %v4573_v32  ;;  %v10551_v32 = vld [vmem:[#allocation4 + $0x2c] sm:$0xf0]  ;;  %7056 = vmatpush.bf16.msra.mxu1 %v11922_v34  ;;  %v4913_v37 = vrot.slane %v4911_v8, 3 }
 0x37e   : > { %v14606_v14 = vpop.f32.mrf.mxu1 }
 0x37f   : > { %v4784_v54 = vld [vmem:[#allocation1] sm:$0xff] }
 0x380   : > { %4787 = vst [vmem:[#allocation1] ss:$4 sm:$0xff] %v4628_v31  ;;  %v10477_v31 = vpack.i.b16 %v4670_v19, %v4725_v63  ;;  %v14593_v19 = vsel %vm553_vm2, %v14528_v53, %v14548_v55 }
 0x381   : > { %4789 = vst [vmem:[#allocation1 + $0x1] ss:$4 sm:$0xff] %v4631_v42  ;;  %v4821_v58 = vld [vmem:[#allocation1 + $0x20] sm:$0xff]  ;;  %v4841_v42 = vld [vmem:[#allocation3 + $0x8] sm:$0xf]  ;;  %v4923_v7 = vrot.slane %v14593_v19, 2 }
 0x382   : > { %4791 = vst [vmem:[#allocation1 + $0x2] ss:$4 sm:$0xff] %v10471_v6  ;;  %v6974_v22 = vpop.f32.mrf.mxu2  ;;  %v4908_v6 = vsel %vm553_vm2, %v14556_v43, %v14567_v28 }
 0x383   : > { %4793 = vst [vmem:[#allocation1 + $0x3] ss:$4 sm:$0xff] %v10472_v56  ;;  %v14538_v62 = vadd.f32 %v6974_v22, %v6947_v51  ;;  %v4910_v56 = vrot.slane %v4908_v6, 2  ;;  %v6952_v51 = vadd.f32 %v14502_v44, %v14473_v60  ;;  %v4847_v22 = vld [vmem:[#allocation3 + $0x38] sm:$0xf] }
 0x384   : > { %4832 = vst [vmem:[#allocation4 + $0xc] sm:$0xf] %v4784_v54  ;;  %v4684_v54 = vsel %vm493_vm0, %v14416_v11, %v14429_v49  ;;  %v4855_v11 = vrot.slane %v4841_v42, 3  ;;  %v4983_v49 = vunpack.i.h.s16 %v4920_v26  ;;  %v4861_v60 = vrot.slane %v4847_v22, 3 }
 0x385   : > { %7011 = vmatmul.bf16.gmra.mxu3 %v10622_v0  ;;  %4837 = vst [vmem:[#allocation4 + $0xc0] sm:$0xf] %v4821_v58  ;;  %v4686_v16 = vrot.slane %v4684_v54, 3 }
 0x386   : > { %5040 = vst [vmem:[#allocation1 + $0x20] ss:$4 sm:$0xff] %v4881_v61  ;;  %v4866_v0 = vsel %vm549_vm1, %v4841_v42, %v4855_v11  ;;  %v10486_v35 = vpack.i.b16 %v4923_v7, %v4983_v49  ;;  %v4869_v27 = vsel %vm553_vm2, %v4841_v42, %v4855_v11  ;;  %v4864_v61 = vsel %vm413_vm3, %v4841_v42, %v4855_v11 }
 0x387   : > { %5043 = vst [vmem:[#allocation1 + $0x21] ss:$4 sm:$0xff] %v4884_v47  ;;  %v4735_v50 = vunpack.i.l.s16 %v4686_v16  ;;  %v4868_v20 = vrot.slane %v4866_v0, 1  ;;  %v4872_v47 = vsel %vm493_vm0, %v4841_v42, %v4855_v11  ;;  %v4953_v57 = vunpack.i.h.s16 %v4864_v61 }
 0x388   : > { %5046 = vst [vmem:[#allocation1 + $0x22] ss:$4 sm:$0xff] %v4887_v24  ;;  %v4871_v24 = vrot.slane %v4869_v27, 2  ;;  %v4874_v63 = vrot.slane %v4872_v47, 3  ;;  %v4942_v18 = vsel %vm413_vm3, %v4847_v22, %v4861_v60  ;;  %v472_v47 = vld [vmem:[#allocation3 + $0x3c] sm:$0x1] }
 0x389   : > { %5049 = vst [vmem:[#allocation1 + $0x23] ss:$4 sm:$0xff] %v10482_v46  ;;  %v4944_v46 = vsel %vm549_vm1, %v4847_v22, %v4861_v60  ;;  %v10479_v42 = vpack.i.b16 %v4868_v20, %v4953_v57  ;;  %v4995_v49 = vunpack.i.h.s16 %v4942_v18 }
 0x38a   : > { %v4802_v1 = vld [vmem:[#allocation1] sm:$0xff]  ;;  %v14569_v39 = vpop.f32.mrf.mxu2  ;;  %v4957_v34 = vunpack.i.h.s16 %v4871_v24  ;;  %v4946_v26 = vrot.slane %v4944_v46, 1  ;;  %v4959_v21 = vunpack.i.h.s16 %v4874_v63 }
 0x38b   : > { %4805 = vst [vmem:[#allocation1] ss:$4 sm:$0xff] %v4657_v3  ;;  %v11864_v10 = vld [vmem:[#allocation4 + $0xc] sm:$0xf]  ;;  %v4955_v3 = vunpack.i.h.s16 %v4868_v20 }
 0x38c   : > { %4807 = vst [vmem:[#allocation1 + $0x1] ss:$4 sm:$0xff] %v10475_v40  ;;  %v10554_v36 = vor.u32 %v11864_v10, %v10551_v32  ;;  %v4947_v32 = vsel %vm553_vm2, %v4847_v22, %v4861_v60  ;;  %v4838_v10 = vld [vmem:[#allocation4 + $0xe4] sm:$0x1]  ;;  %v10488_v61 = vpack.i.b16 %v4946_v26, %v4995_v49  ;;  %v4985_v49 = vunpack.i.h.s16 %v4923_v7 }
 0x38d   : > { %4809 = vst [vmem:[#allocation1 + $0x2] ss:$4 sm:$0xff] %v10476_v5  ;;  %v10587_v5 = vld [vmem:[#allocation4 + $0x74] sm:$0xf0]  ;;  %v4949_v9 = vrot.slane %v4947_v32, 2  ;;  %v10480_v15 = vpack.i.b16 %v4871_v24, %v4955_v3  ;;  %v4969_v24 = vunpack.i.h.s16 %v4894_v38  ;;  %v4905_v38 = vsel %vm549_vm1, %v14556_v43, %v14567_v28 }
 0x38e   : > { %4811 = vst [vmem:[#allocation1 + $0x3] ss:$4 sm:$0xff] %v10477_v31  ;;  %7029 = vmatmul.bf16.vlgmr.msra.gmra.mxu0 %v10554_v36  ;;  %v4960_v36 = vunpack.i.h.s16 %v4877_v17 }
 0x38f   : > { %4834 = vst [vmem:[#allocation4 + $0x54] sm:$0xf] %v4802_v1  ;;  %v14617_v1 = vrot.slane %v14608_v48, 3 }
 0x390   : > { %v5051_v2 = vld [vmem:[#allocation1 + $0x20] sm:$0xff] }
 0x391   : > { %5099 = vst [vmem:[#allocation4 + $0x34] sm:$0xf] %v5051_v2  ;;  %v4937_v11 = vsel %vm493_vm0, %v14608_v48, %v14617_v1  ;;  %v4895_v2 = vsel %vm553_vm2, %v14477_v41, %v14497_v4 }
 0x392   : > { %v6979_v58 = vpop.f32.mrf.mxu2  ;;  %5061 = vst [vmem:[#allocation1 + $0x20] ss:$4 sm:$0xff] %v4910_v56  ;;  %v10481_v56 = vpack.i.b16 %v4874_v63, %v4957_v34  ;;  %v4939_v0 = vrot.slane %v4937_v11, 3 }
 0x393   : > { %v14598_v45 = vadd.f32 %v6979_v58, %v6952_v51  ;;  %5063 = vst [vmem:[#allocation1 + $0x21] ss:$4 sm:$0xff] %v4913_v37  ;;  %v4997_v51 = vunpack.i.h.s16 %v4946_v26  ;;  %v5005_v37 = vpack.i.b16 %v4960_v36, %v4959_v21  ;;  %v14630_v58 = vsel %vm493_vm0, %v4847_v22, %v4861_v60 }
 0x394   : > { %5065 = vst [vmem:[#allocation1 + $0x22] ss:$4 sm:$0xff] %v10485_v25  ;;  %v6957_v25 = vadd.f32 %v14502_v44, %v14582_v33  ;;  %v4952_v22 = vrot.slane %v14630_v58, 3  ;;  %v4903_v33 = vsel %vm413_vm3, %v14556_v43, %v14567_v28  ;;  %v4924_v21 = vsel %vm493_vm0, %v14528_v53, %v14548_v55 }
 0x395   : > { %v4820_v29 = vld [vmem:[#allocation1] sm:$0xff]  ;;  %5067 = vst [vmem:[#allocation1 + $0x23] ss:$4 sm:$0xff] %v10486_v35  ;;  %v4999_v35 = vunpack.i.h.s16 %v4949_v9  ;;  %v10489_v60 = vpack.i.b16 %v4949_v9, %v4997_v51  ;;  %v4974_v3 = vunpack.i.h.s16 %v4903_v33  ;;  %v4929_v28 = vsel %vm413_vm3, %v14608_v48, %v14617_v1 }
 0x396   : > { %4823 = vst [vmem:[#allocation1] ss:$4 sm:$0xff] %v4735_v50  ;;  %v11873_v52 = vld [vmem:[#allocation4 + $0x54] sm:$0xf]  ;;  %v4897_v50 = vrot.slane %v4895_v2, 2  ;;  %v4926_v9 = vrot.slane %v4924_v21, 3  ;;  %v4988_v53 = vunpack.i.h.s16 %v4929_v28  ;;  %v4931_v51 = vsel %vm549_vm1, %v14608_v48, %v14617_v1 }
 0x397   : > { %4836 = vst [vmem:[#allocation4 + $0x9c] sm:$0xf] %v4820_v29  ;;  %v10590_v31 = vor.u32 %v11873_v52, %v10587_v5  ;;  %v4898_v29 = vsel %vm493_vm0, %v14477_v41, %v14497_v4  ;;  %v473_v41 = vsel %vm13620_vm7, 0, %v472_v47  ;;  %v10490_v4 = vpack.i.b16 %v4952_v22, %v4999_v35  ;;  %v5110_v35 = vld [vmem:[#allocation3 + $0x14] sm:$0x1] }
 0x398   : > { %v4900_v57 = vrot.slane %v4898_v29, 3  ;;  %v4971_v52 = vunpack.i.h.s16 %v4897_v50  ;;  %474 = vst [vmem:[#allocation3 + $0x3c] sm:$0x1] %v473_v41  ;;  %v11869_v11 = vld [vmem:[#allocation4 + $0x30] sm:$0xf0]  ;;  %v4933_v19 = vrot.slane %v4931_v51, 1 }
 0x399   : > { %v5104_v41 = vld [vmem:[#allocation4 + $0xe8] sm:$0x1]  ;;  %v5113_v28 = vld [vmem:[#allocation3 + $0x20] sm:$0xe]  ;;  %v11937_v51 = vld [vmem:[%s16125_s4 + $0x178] sm:$0xff] }
 0x39a   : > { %v14614_v40 = vpop.f32.mrf.mxu2  ;;  %v4973_v34 = vunpack.i.h.s16 %v4900_v57  ;;  %v10484_v18 = vpack.i.b16 %v4900_v57, %v4971_v52  ;;  %7077 = vmatpush.bf16.msra.mxu2 %v11937_v51 }
 0x39c   : > { %v5069_v54 = vld [vmem:[#allocation1 + $0x20] sm:$0xff]  ;;  %v5012_v36 = vpack.i.b16 %v4974_v3, %v4973_v34 }
 0x39d   : > { %v4824_v6 = vld [vmem:[#allocation1] sm:$0xff]  ;;  %5101 = vst [vmem:[#allocation4 + $0x7c] sm:$0xf] %v5069_v54  ;;  %v4907_v54 = vrot.slane %v4905_v38, 1 }
 0x39e   : > { %7034 = vmatmul.bf16.gmra.mxu0 %v10590_v31  ;;  %v4839_v8 = vsel %vm13620_vm7, %v4824_v6, %v4838_v10  ;;  %5028 = vst [vmem:[#allocation1] ss:$4 sm:$0xff] %v10479_v42  ;;  %v11882_v5 = vld [vmem:[#allocation4 + $0x9c] sm:$0xf]  ;;  %v10483_v10 = vpack.i.b16 %v4897_v50, %v4969_v24  ;;  %v10623_v31 = vld [vmem:[#allocation4 + $0xbc] sm:$0xf0] }
 0x39f   : > { %4840 = vst [vmem:[#allocation4 + $0xe4] sm:$0x1] %v4839_v8  ;;  %v6961_v16 = vpop.f32.mrf.mxu1  ;;  %v10626_v42 = vor.u32 %v11882_v5, %v10623_v31  ;;  %v5108_v6 = vld [vmem:[#allocation3 + $0xc] sm:$0x1]  ;;  %v5118_v31 = vld [vmem:[#allocation3 + $0x34] sm:$0x1] }
 0x3a0   : > { %5031 = vst [vmem:[#allocation1 + $0x1] ss:$4 sm:$0xff] %v10480_v15  ;;  %v6962_v8 = vadd.f32 %v14502_v44, %v6961_v16  ;;  %v4987_v44 = vunpack.i.h.s16 %v4926_v9  ;;  %v10487_v16 = vpack.i.b16 %v4926_v9, %v4985_v49  ;;  %v5116_v3 = vld [vmem:[#allocation3 + $0x2c] sm:$0x1]  ;;  %v5120_v9 = vld [vmem:[#allocation3 + $0x3c] sm:$0x1] }
 0x3a1   : > { %5034 = vst [vmem:[#allocation1 + $0x2] ss:$4 sm:$0xff] %v10481_v56 }
 0x3a2   : > { %5037 = vst [vmem:[#allocation1 + $0x3] ss:$4 sm:$0xff] %v5005_v37  ;;  %v6984_v27 = vpop.f32.mrf.mxu2  ;;  %v4934_v37 = vsel %vm553_vm2, %v14608_v48, %v14617_v1  ;;  %v5001_v1 = vunpack.i.h.s16 %v4952_v22  ;;  %v5109_v22 = vld [vmem:[#allocation3 + $0x10] sm:$0xe] }
 0x3a3   : > { %v14637_v20 = vadd.f32 %v6984_v27, %v6957_v25  ;;  %5079 = vst [vmem:[#allocation1 + $0x20] ss:$4 sm:$0xff] %v4939_v0  ;;  %v5019_v0 = vpack.i.b16 %v4988_v53, %v4987_v44  ;;  %v4936_v7 = vrot.slane %v4934_v37, 2  ;;  %v5115_v37 = vld [vmem:[#allocation3 + $0x28] sm:$0xe] }
 0x3a4   : > { %5081 = vst [vmem:[#allocation1 + $0x21] ss:$4 sm:$0xff] %v10488_v61  ;;  %v11878_v33 = vld [vmem:[#allocation4 + $0x78] sm:$0xf0] }
 0x3a5   : > { %5083 = vst [vmem:[#allocation1 + $0x22] ss:$4 sm:$0xff] %v10489_v60  ;;  %v5112_v60 = vld [vmem:[#allocation3 + $0x1c] sm:$0x1] }
 0x3a6   : > { %v6183_v46 = vld [vmem:[#allocation4 + $0xe0] sm:$0x11]  ;;  %5085 = vst [vmem:[#allocation1 + $0x23] ss:$4 sm:$0xff] %v10490_v4  ;;  %v5107_v4 = vld [vmem:[#allocation3 + $0x8] sm:$0xe] }
 0x3a7   : > { %v6426_v63 = vunpack.c.l.b16 %v6183_v46  ;;  %v6963_v17 = vpop.f32.mrf.mxu1  ;;  %v6427_v50 = vunpack.c.h.b16 %v6183_v46  ;;  %v5114_v46 = vld [vmem:[#allocation3 + $0x24] sm:$0x1] }
 0x3a9   : > { %v6462_v32 = vpack.c.b16 %v6426_v63, %v6426_v63  ;;  %v5050_v13 = vld [vmem:[#allocation1] sm:$0xff]  ;;  %v6463_v61 = vpack.c.b16 %v6427_v50, %v6427_v50 }
 0x3aa   : > { %5098 = vst [vmem:[#allocation4 + $0x10] sm:$0xf] %v5050_v13  ;;  %v14652_v26 = vpop.f32.mrf.mxu2 }
 0x3ab   : > { %7016 = vmatmul.bf16.gmra.mxu3 %v6462_v32  ;;  %5053 = vst [vmem:[#allocation1] ss:$4 sm:$0xff] %v10483_v10 }
 0x3ac   : > { %5055 = vst [vmem:[#allocation1 + $0x1] ss:$4 sm:$0xff] %v10484_v18  ;;  %v5111_v18 = vld [vmem:[#allocation3 + $0x18] sm:$0xe] }
 0x3ad   : > { %5057 = vst [vmem:[#allocation1 + $0x2] ss:$4 sm:$0xff] %v5012_v36  ;;  %v5087_v43 = vld [vmem:[#allocation1 + $0x20] sm:$0xff] }
 0x3ae   : > { %7039 = vmatmul.bf16.gmra.mxu0 %v10626_v42  ;;  %5059 = vst [vmem:[#allocation1 + $0x3] ss:$4 sm:$0xff] %v4907_v54 }
 0x3af   : > { %5103 = vst [vmem:[#allocation4 + $0xc4] sm:$0xf] %v5087_v43 }
 0x3b0   : > { %5124 = vst [vmem:[#allocation1 + $0x20] sm:$0xff] %v5108_v6 }
 0x3b1   : > { %v10557_v15 = vld [vmem:[#allocation4 + $0x10] sm:$0xf] }
 0x3b2   : > { %v10558_v2 = vor.u32 %v11869_v11, %v10557_v15  ;;  %v6989_v55 = vpop.f32.mrf.mxu2 }
 0x3b3   : > { %v14663_v56 = vadd.f32 %v6989_v55, %v6962_v8 }
 0x3b4   : > { %7057 = vmatmul.bf16.vlgmr.msra.gmra.mxu1 %v10558_v2 }
 0x3b5   : > { %v5068_v25 = vld [vmem:[#allocation1] sm:$0xff] }
 0x3b6   : > { %5100 = vst [vmem:[#allocation4 + $0x58] sm:$0xf] %v5068_v25  ;;  %v11887_v32 = vld [vmem:[#allocation4 + $0xc0] sm:$0xf0] }
 0x3b7   : > { %5071 = vst [vmem:[#allocation1] ss:$4 sm:$0xff] %v10487_v16  ;;  %v14671_v27 = vld [vmem:[#allocation1 + $0x20] ss:$4 sm:$0xff] }
 0x3b8   : > { %5073 = vst [vmem:[#allocation1 + $0x1] ss:$4 sm:$0xff] %v5019_v0 }
 0x3b9   : > { %5075 = vst [vmem:[#allocation1 + $0x2] ss:$4 sm:$0xff] %v4933_v19 }
 0x3ba   : > { %5077 = vst [vmem:[#allocation1 + $0x3] ss:$4 sm:$0xff] %v4936_v7  ;;  %v6991_v29 = vpop.f32.mrf.mxu2  ;;  %v11936_v7 = vld [vmem:[%s16125_s4 + $0x170] sm:$0xff] }
 0x3bb   : > { %5140 = vst [vmem:[#allocation1 + $0x20] sm:$0xff] %v5110_v35  ;;  %7078 = vmatpush.bf16.msra.mxu2 %v11936_v7  ;;  %v11935_v29 = vld [vmem:[%s16125_s4 + $0x168] sm:$0xff] }
 0x3bd   : > { %v10593_v48 = vld [vmem:[#allocation4 + $0x58] sm:$0xf] }
 0x3be   : > { %7044 = vmatmul.bf16.gmra.mxu0 %v6463_v61  ;;  %v10594_v24 = vor.u32 %v11878_v33, %v10593_v48  ;;  %v5117_v61 = vld [vmem:[#allocation3 + $0x30] sm:$0xe] }
 0x3bf   : > { %7079 = vmatpush.bf16.msra.mxu2 %v11935_v29 }
 0x3c1   : > { %v5086_v47 = vld [vmem:[#allocation1] sm:$0xff] }
 0x3c2   : > { %5089 = vst [vmem:[#allocation1] ss:$4 sm:$0xff] %v5001_v1  ;;  %v5147_v57 = vld [vmem:[#allocation1 + $0x20] ss:$4 sm:$0xff] }
 0x3c3   : > { %5102 = vst [vmem:[#allocation4 + $0xa0] sm:$0xf] %v5086_v47 }
 0x3c4   : > { %7062 = vmatmul.bf16.gmra.mxu1 %v10594_v24  ;;  %5152 = vst [vmem:[#allocation1 + $0x20] sm:$0xff] %v5112_v60 }
 0x3c9   : > { %v5090_v52 = vld [vmem:[#allocation1] sm:$0xff] }
 0x3ca   : > { %5122 = vst [vmem:[#allocation1] sm:$0xff] %v5107_v4  ;;  %v5105_v63 = vsel %vm13620_vm7, %v5090_v52, %v5104_v41  ;;  %v10629_v58 = vld [vmem:[#allocation4 + $0xa0] sm:$0xf]  ;;  %v11934_v41 = vld [vmem:[%s16125_s4 + $0x160] sm:$0xff]  ;;  %v5119_v52 = vld [vmem:[#allocation3 + $0x38] sm:$0xe] }
 0x3cb   : > { %v14677_v17 = vld [vmem:[#allocation1 + $0x20] ss:$4 sm:$0xff]  ;;  %5106 = vst [vmem:[#allocation4 + $0xe8] sm:$0x1] %v5105_v63  ;;  %v10630_v38 = vor.u32 %v11887_v32, %v10629_v58  ;;  %7080 = vmatpush.bf16.msra.mxu2 %v11934_v41 }
 0x3cc   : > { %5164 = vst [vmem:[#allocation1 + $0x20] sm:$0xff] %v5114_v46  ;;  %v11933_v46 = vld [vmem:[%s16125_s4 + $0x158] sm:$0xff]  ;;  %v11932_v32 = vld [vmem:[%s16125_s4 + $0x150] sm:$0xff] }
 0x3cf   : > { %7081 = vmatpush.bf16.msra.mxu2 %v11933_v46 }
 0x3d1   : > { %v14679_v5 = vld [vmem:[#allocation1 + $0x1] ss:$4 sm:$0xff]  ;;  %v14681_v10 = vld [vmem:[#allocation1 + $0x2] ss:$4 sm:$0xff]  ;;  %v14683_v13 = vld [vmem:[#allocation1 + $0x3] ss:$4 sm:$0xff] }
 0x3d2   : > { %5138 = vst [vmem:[#allocation1] sm:$0xff] %v5109_v22 }
 0x3d3   : > { %v5171_v34 = vld [vmem:[#allocation1 + $0x20] ss:$4 sm:$0xff]  ;;  %7082 = vmatpush.bf16.msra.mxu2 %v11932_v32 }
 0x3d4   : > { %5176 = vst [vmem:[#allocation1 + $0x20] sm:$0xff] %v5116_v3  ;;  %7067 = vmatmul.bf16.gmra.mxu1 %v10630_v38 }
 0x3d9   : > { %v14685_v36 = vld [vmem:[#allocation1 + $0x1] ss:$4 sm:$0xff]  ;;  %v5143_v42 = vld [vmem:[#allocation1 + $0x2] ss:$4 sm:$0xff]  ;;  %v5145_v54 = vld [vmem:[#allocation1 + $0x3] ss:$4 sm:$0xff] }
 0x3da   : > { %5150 = vst [vmem:[#allocation1] sm:$0xff] %v5111_v18  ;;  %v5219_v21 = vunpack.i.h.s16 %v5143_v42  ;;  %v5221_v43 = vunpack.i.h.s16 %v5145_v54  ;;  %v5217_v55 = vunpack.i.h.s16 %v14685_v36 }
 0x3db   : > { %v14687_v6 = vld [vmem:[#allocation1 + $0x20] ss:$4 sm:$0xff] }
 0x3dc   : > { %5188 = vst [vmem:[#allocation1 + $0x20] sm:$0xff] %v5118_v31  ;;  %v10493_v49 = vpack.i.b16 %v5145_v54, %v5219_v21  ;;  %v10494_v2 = vpack.i.b16 %v5147_v57, %v5221_v43  ;;  %v10492_v44 = vpack.i.b16 %v5143_v42, %v5217_v55  ;;  %v11931_v31 = vld [vmem:[%s16125_s4 + $0x148] sm:$0xff]  ;;  %v10491_v43 = vpack.i.b16 %v14685_v36, %v14671_v27  ;;  %v14749_v27 = vld [vmem:[#allocation3 + $0x28] sm:$0xf]  ;;  %v14758_v55 = vld [vmem:[#allocation3 + $0x20] sm:$0xf] }
 0x3dd   : > { %7083 = vmatpush.bf16.msra.mxu2 %v11931_v31  ;;  %v11945_v36 = vld [vmem:[%s16125_s4 + $0x1b8] sm:$0xff]  ;;  %v14761_v51 = vrot.slane %v14749_v27, 3 }
 0x3de   : > { %7105 = vmatpush.bf16.msra.mxu3 %v11945_v36 }
 0x3e1   : > { %v5153_v8 = vld [vmem:[#allocation1 + $0x1] ss:$4 sm:$0xff]  ;;  %v14689_v15 = vld [vmem:[#allocation1 + $0x2] ss:$4 sm:$0xff]  ;;  %v14691_v11 = vld [vmem:[#allocation1 + $0x3] ss:$4 sm:$0xff] }
 0x3e2   : > { %5162 = vst [vmem:[#allocation1] sm:$0xff] %v5113_v28 }
 0x3e3   : > { %v5195_v53 = vld [vmem:[#allocation1 + $0x20] ss:$4 sm:$0xff] }
 0x3e4   : > { %5200 = vst [vmem:[#allocation1 + $0x20] sm:$0xff] %v5120_v9  ;;  %v11930_v9 = vld [vmem:[%s16125_s4 + $0x140] sm:$0xff] }
 0x3e5   : > { %5299 = vst [vmem:[#allocation1 + $0x21] ss:$4 sm:$0xff] %v10493_v49  ;;  %7084 = vmatpush.bf16.msra.mxu2 %v11930_v9 }
 0x3e6   : > { %5302 = vst [vmem:[#allocation1 + $0x22] ss:$4 sm:$0xff] %v10494_v2 }
 0x3e7   : > { %5305 = vst [vmem:[#allocation1 + $0x23] ss:$4 sm:$0xff] %v5153_v8 }
 0x3e8   : > { %v7002_v57 = vpop.f32.mrf.mxu3 }
 0x3e9   : > { %v14697_v16 = vld [vmem:[#allocation1 + $0x1] ss:$4 sm:$0xff]  ;;  %v14699_v25 = vld [vmem:[#allocation1 + $0x2] ss:$4 sm:$0xff]  ;;  %v5169_v0 = vld [vmem:[#allocation1 + $0x3] ss:$4 sm:$0xff]  ;;  %v14716_v4 = vadd.f32 %v7002_v57, %v14538_v62  ;;  %v14781_v57 = vsel %vm549_vm1, %v14749_v27, %v14761_v51 }
 0x3ea   : > { %5174 = vst [vmem:[#allocation1] sm:$0xff] %v5115_v37  ;;  %v5233_v35 = vunpack.i.h.s16 %v14699_v25  ;;  %v5235_v50 = vunpack.i.h.s16 %v5169_v0  ;;  %v10495_v29 = vpack.i.b16 %v14697_v16, %v14677_v17  ;;  %v5430_v46 = vrot.slane %v14781_v57, 1 }
 0x3eb   : > { %v14701_v19 = vld [vmem:[#allocation1 + $0x20] ss:$4 sm:$0xff] }
 0x3ec   : > { %5296 = vst [vmem:[#allocation1 + $0x20] ss:$4 sm:$0xff] %v10492_v44  ;;  %v10497_v48 = vpack.i.b16 %v5169_v0, %v5233_v35  ;;  %v10498_v47 = vpack.i.b16 %v5171_v34, %v5235_v50  ;;  %v5365_v34 = vld [vmem:[#allocation3 + $0x18] sm:$0xf]  ;;  %v11944_v50 = vld [vmem:[%s16125_s4 + $0x1b0] sm:$0xff] }
 0x3ed   : > { %v5379_v42 = vrot.slane %v5365_v34, 3  ;;  %7106 = vmatpush.bf16.msra.mxu3 %v11944_v50 }
 0x3ef   : > { %v5402_v8 = vsel %vm549_vm1, %v5365_v34, %v5379_v42  ;;  %v5405_v2 = vsel %vm553_vm2, %v5365_v34, %v5379_v42  ;;  %v5408_v0 = vsel %vm493_vm0, %v5365_v34, %v5379_v42 }
 0x3f0   : > { %v14729_v3 = vpop.f32.mrf.mxu3 }
 0x3f1   : > { %v5177_v1 = vld [vmem:[#allocation1 + $0x1] ss:$4 sm:$0xff]  ;;  %v5179_v60 = vld [vmem:[#allocation1 + $0x2] ss:$4 sm:$0xff]  ;;  %v14710_v33 = vld [vmem:[#allocation1 + $0x3] ss:$4 sm:$0xff] }
 0x3f2   : > { %5186 = vst [vmem:[#allocation1] sm:$0xff] %v5117_v61 }
 0x3f3   : > { %v5307_v24 = vld [vmem:[#allocation1 + $0x20] sm:$0xff] }
 0x3f4   : > { %5317 = vst [vmem:[#allocation1 + $0x20] ss:$4 sm:$0xff] %v10497_v48 }
 0x3f5   : > { %5319 = vst [vmem:[#allocation1 + $0x21] ss:$4 sm:$0xff] %v10498_v47 }
 0x3f6   : > { %5321 = vst [vmem:[#allocation1 + $0x22] ss:$4 sm:$0xff] %v5177_v1  ;;  %v14776_v1 = vrot.slane %v14758_v55, 3 }
 0x3f7   : > { %5323 = vst [vmem:[#allocation1 + $0x23] ss:$4 sm:$0xff] %v5179_v60 }
 0x3f8   : > { %5355 = vst [vmem:[#allocation4 + $0x38] sm:$0xf] %v5307_v24  ;;  %v7007_v28 = vpop.f32.mrf.mxu3  ;;  %v5410_v24 = vrot.slane %v5408_v0, 3 }
 0x3f9   : > { %v14721_v63 = vld [vmem:[#allocation1 + $0x1] ss:$4 sm:$0xff]  ;;  %v14723_v58 = vld [vmem:[#allocation1 + $0x2] ss:$4 sm:$0xff]  ;;  %v14725_v22 = vld [vmem:[#allocation1 + $0x3] ss:$4 sm:$0xff]  ;;  %v14746_v49 = vadd.f32 %v7007_v28, %v14598_v45  ;;  %v5231_v45 = vunpack.i.h.s16 %v14697_v16 }
 0x3fa   : > { %5198 = vst [vmem:[#allocation1] sm:$0xff] %v5119_v52  ;;  %v5249_v62 = vunpack.i.h.s16 %v14725_v22  ;;  %v14793_v52 = vld [vmem:[#allocation3 + $0x30] sm:$0xf]  ;;  %v5245_v32 = vunpack.i.h.s16 %v14721_v63 }
 0x3fb   : > { %5284 = vst [vmem:[#allocation1] ss:$4 sm:$0xff] %v14679_v5  ;;  %v10496_v48 = vpack.i.b16 %v14699_v25, %v5231_v45  ;;  %v11943_v25 = vld [vmem:[%s16125_s4 + $0x1a8] sm:$0xff] }
 0x3fc   : > { %v10502_v38 = vpack.i.b16 %v5195_v53, %v5249_v62  ;;  %v5407_v53 = vrot.slane %v5405_v2, 2  ;;  %7107 = vmatpush.bf16.msra.mxu3 %v11943_v25  ;;  %v10500_v2 = vpack.i.b16 %v14723_v58, %v5245_v32 }
 0x3fe   : > { %v5325_v18 = vld [vmem:[#allocation1 + $0x20] sm:$0xff]  ;;  %v5488_v61 = vunpack.i.h.s16 %v5407_v53 }
 0x3ff   : > { %5335 = vst [vmem:[#allocation1 + $0x20] ss:$4 sm:$0xff] %v10502_v38  ;;  %v10559_v0 = vld [vmem:[#allocation4 + $0x34] sm:$0xf0] }
 0x400   : > { %5357 = vst [vmem:[#allocation4 + $0x80] sm:$0xf] %v5325_v18  ;;  %v14765_v35 = vpop.f32.mrf.mxu3  ;;  %v10506_v41 = vpack.i.b16 %v5410_v24, %v5488_v61  ;;  %v5247_v18 = vunpack.i.h.s16 %v14723_v58 }
 0x401   : > { %v5201_v54 = vld [vmem:[#allocation1 + $0x1] ss:$4 sm:$0xff]  ;;  %v5203_v21 = vld [vmem:[#allocation1 + $0x2] ss:$4 sm:$0xff]  ;;  %v5205_v5 = vld [vmem:[#allocation1 + $0x3] ss:$4 sm:$0xff] }
 0x402   : > { %5287 = vst [vmem:[#allocation1 + $0x1] ss:$4 sm:$0xff] %v14681_v10  ;;  %v14752_v10 = vsel %vm413_vm3, %v5365_v34, %v5379_v42  ;;  %v11942_v34 = vld [vmem:[%s16125_s4 + $0x1a0] sm:$0xff]  ;;  %v14806_v42 = vld [vmem:[#allocation3 + $0x38] sm:$0xf]  ;;  %v10501_v36 = vpack.i.b16 %v14725_v22, %v5247_v18 }
 0x403   : > { %5290 = vst [vmem:[#allocation1 + $0x2] ss:$4 sm:$0xff] %v14683_v13  ;;  %v5404_v13 = vrot.slane %v5402_v8, 1  ;;  %v5484_v37 = vunpack.i.h.s16 %v14752_v10  ;;  %7108 = vmatpush.bf16.msra.mxu3 %v11942_v34  ;;  %v14820_v8 = vld [vmem:[#allocation3 + $0x40] sm:$0xf]  ;;  %v11953_v34 = vld [vmem:[%s16125_s4 + $0x1f8] sm:$0xff] }
 0x404   : > { %5293 = vst [vmem:[#allocation1 + $0x3] ss:$4 sm:$0xff] %v10491_v43  ;;  %v14838_v58 = vrot.slane %v14820_v8, 3  ;;  %7133 = vmatpush.bf16.msrb.mxu0 %v11953_v34 }
 0x405   : > { %5337 = vst [vmem:[#allocation1 + $0x21] ss:$4 sm:$0xff] %v5201_v54  ;;  %v5486_v7 = vunpack.i.h.s16 %v5404_v13  ;;  %v10504_v17 = vpack.i.b16 %v5404_v13, %v5484_v37  ;;  %v14809_v54 = vrot.slane %v14793_v52, 3  ;;  %v11941_v13 = vld [vmem:[%s16125_s4 + $0x198] sm:$0xff] }
 0x406   : > { %5339 = vst [vmem:[#allocation1 + $0x22] ss:$4 sm:$0xff] %v5203_v21  ;;  %v5434_v21 = vsel %vm493_vm0, %v14749_v27, %v14761_v51 }
 0x407   : > { %5341 = vst [vmem:[#allocation1 + $0x23] ss:$4 sm:$0xff] %v5205_v5  ;;  %v10505_v16 = vpack.i.b16 %v5407_v53, %v5486_v7  ;;  %v5500_v5 = vunpack.i.h.s16 %v5430_v46  ;;  %v14829_v53 = vrot.slane %v14806_v42, 3  ;;  %v5436_v45 = vrot.slane %v5434_v21, 3  ;;  %7109 = vmatpush.bf16.msra.mxu3 %v11941_v13  ;;  %v14883_v13 = vld [vmem:[#allocation3 + $0x18] sm:$0xf] }
 0x408   : > { %v7012_v38 = vpop.f32.mrf.mxu3  ;;  %v5439_v7 = vsel %vm413_vm3, %v14793_v52, %v14809_v54 }
 0x409   : > { %v14804_v31 = vadd.f32 %v7012_v38, %v14637_v20  ;;  %v10499_v20 = vpack.i.b16 %v14721_v63, %v14687_v6  ;;  %v5441_v6 = vsel %vm549_vm1, %v14793_v52, %v14809_v54 }
 0x40a   : > { %v5443_v50 = vrot.slane %v5441_v6, 1 }
 0x40b   : > { %v5306_v44 = vld [vmem:[#allocation1] sm:$0xff]  ;;  %v7030_v60 = vpop.f32.mrf.mxu0 }
 0x40c   : > { %5309 = vst [vmem:[#allocation1] ss:$4 sm:$0xff] %v14689_v15  ;;  %v14784_v15 = vadd.f32 %v7030_v60, %v14716_v4  ;;  %v5413_v4 = vsel %vm413_vm3, %v14758_v55, %v14776_v1 }
 0x40d   : > { %5311 = vst [vmem:[#allocation1 + $0x1] ss:$4 sm:$0xff] %v14691_v11  ;;  %v5431_v11 = vsel %vm553_vm2, %v14749_v27, %v14761_v51 }
 0x40e   : > { %5313 = vst [vmem:[#allocation1 + $0x2] ss:$4 sm:$0xff] %v10495_v29  ;;  %v5343_v47 = vld [vmem:[#allocation1 + $0x20] sm:$0xff]  ;;  %v5433_v62 = vrot.slane %v5431_v11, 2  ;;  %v14846_v29 = vsel %vm553_vm2, %v14806_v42, %v14829_v53  ;;  %v5467_v11 = vsel %vm549_vm1, %v14820_v8, %v14838_v58 }
 0x40f   : > { %5315 = vst [vmem:[#allocation1 + $0x3] ss:$4 sm:$0xff] %v10496_v48  ;;  %v5364_v48 = vld [vmem:[#allocation3 + $0x10] sm:$0xf]  ;;  %v5469_v32 = vrot.slane %v5467_v11, 1 }
 0x410   : > { %5563 = vst [vmem:[#allocation1 + $0x20] ss:$4 sm:$0xff] %v10504_v17  ;;  %v5502_v9 = vunpack.i.h.s16 %v5433_v62  ;;  %v10509_v63 = vpack.i.b16 %v5433_v62, %v5500_v5  ;;  %v5459_v17 = vrot.slane %v14846_v29, 2  ;;  %v5378_v25 = vrot.slane %v5364_v48, 3  ;;  %v10595_v11 = vld [vmem:[#allocation4 + $0x7c] sm:$0xf0] }
 0x411   : > { %5566 = vst [vmem:[#allocation1 + $0x21] ss:$4 sm:$0xff] %v10505_v16  ;;  %v5257_v16 = vunpack.i.l.s16 %v14701_v19  ;;  %v5460_v62 = vsel %vm493_vm0, %v14806_v42, %v14829_v53  ;;  %v5465_v19 = vsel %vm413_vm3, %v14820_v8, %v14838_v58 }
 0x412   : > { %5569 = vst [vmem:[#allocation1 + $0x22] ss:$4 sm:$0xff] %v10506_v41  ;;  %v10510_v22 = vpack.i.b16 %v5436_v45, %v5502_v9  ;;  %v5470_v41 = vsel %vm553_vm2, %v14820_v8, %v14838_v58  ;;  %v5516_v38 = vunpack.i.h.s16 %v5459_v17  ;;  %v5389_v21 = vsel %vm549_vm1, %v5364_v48, %v5378_v25 }
 0x413   : > { %5572 = vst [vmem:[#allocation1 + $0x23] ss:$4 sm:$0xff] %v5413_v4  ;;  %v14816_v43 = vpop.f32.mrf.mxu0  ;;  %v5472_v18 = vrot.slane %v5470_v41, 2  ;;  %v5395_v5 = vsel %vm493_vm0, %v5364_v48, %v5378_v25  ;;  %v5391_v45 = vrot.slane %v5389_v21, 1  ;;  %v5392_v6 = vsel %vm553_vm2, %v5364_v48, %v5378_v25  ;;  %v11950_v41 = vld [vmem:[%s16125_s4 + $0x1e0] sm:$0xff] }
 0x414   : > { %5354 = vst [vmem:[#allocation4 + $0x14] sm:$0xf] %v5306_v44 }
 0x415   : > { %5359 = vst [vmem:[#allocation4 + $0xc8] sm:$0xf] %v5343_v47  ;;  %v11939_v47 = vld [vmem:[%s16125_s4 + $0x188] sm:$0xff] }
 0x416   : > { %v5324_v28 = vld [vmem:[#allocation1] sm:$0xff] }
 0x417   : > { %5327 = vst [vmem:[#allocation1] ss:$4 sm:$0xff] %v14710_v33  ;;  %v11940_v33 = vld [vmem:[%s16125_s4 + $0x190] sm:$0xff] }
 0x418   : > { %5329 = vst [vmem:[#allocation1 + $0x1] ss:$4 sm:$0xff] %v10499_v20  ;;  %7110 = vmatpush.bf16.msra.mxu3 %v11940_v33  ;;  %v5462_v20 = vrot.slane %v5460_v62, 3  ;;  %v5397_v33 = vrot.slane %v5395_v5, 3 }
 0x419   : > { %5331 = vst [vmem:[#allocation1 + $0x2] ss:$4 sm:$0xff] %v10500_v2  ;;  %v11952_v2 = vld [vmem:[%s16125_s4 + $0x1f0] sm:$0xff] }
 0x41a   : > { %5333 = vst [vmem:[#allocation1 + $0x3] ss:$4 sm:$0xff] %v10501_v36  ;;  %v5574_v37 = vld [vmem:[#allocation1 + $0x20] sm:$0xff]  ;;  %v14885_v36 = vpop.f32.mrf.mxu3  ;;  %7134 = vmatpush.bf16.msrb.mxu0 %v11952_v2 }
 0x41b   : > { %5584 = vst [vmem:[#allocation1 + $0x20] ss:$4 sm:$0xff] %v10509_v63  ;;  %v11865_v44 = vld [vmem:[#allocation4 + $0x14] sm:$0xf]  ;;  %v7035_v60 = vpop.f32.mrf.mxu0  ;;  %v10514_v63 = vpack.i.b16 %v5462_v20, %v5516_v38 }
 0x41c   : > { %5586 = vst [vmem:[#allocation1 + $0x21] ss:$4 sm:$0xff] %v10510_v22  ;;  %v10562_v61 = vor.u32 %v11865_v44, %v10559_v0  ;;  %v14852_v24 = vadd.f32 %v7035_v60, %v14746_v49  ;;  %7111 = vmatpush.bf16.msra.mxu3 %v11939_v47  ;;  %v11938_v49 = vld [vmem:[%s16125_s4 + $0x180] sm:$0xff]  ;;  %v5360_v22 = vld [vmem:[#allocation4 + $0xec] sm:$0x1]  ;;  %v5387_v0 = vsel %vm413_vm3, %v5364_v48, %v5378_v25 }
 0x41d   : > { %5588 = vst [vmem:[#allocation1 + $0x22] ss:$4 sm:$0xff] %v5439_v7  ;;  %v14895_v60 = vld [vmem:[#allocation3 + $0x20] sm:$0xf]  ;;  %v10503_v47 = vpack.i.b16 %v14752_v10, %v5397_v33 }
 0x41e   : > { %5590 = vst [vmem:[#allocation1 + $0x23] ss:$4 sm:$0xff] %v5443_v50  ;;  %7085 = vmatmul.bf16.vlgmr.msra.gmra.mxu2 %v10562_v61  ;;  %v11951_v50 = vld [vmem:[%s16125_s4 + $0x1e8] sm:$0xff]  ;;  %v5394_v61 = vrot.slane %v5392_v6, 2 }
 0x41f   : > { %5356 = vst [vmem:[#allocation4 + $0x5c] sm:$0xf] %v5324_v28  ;;  %7135 = vmatpush.bf16.msrb.mxu0 %v11951_v50 }
 0x420   : > { %5622 = vst [vmem:[#allocation4 + $0x3c] sm:$0xf] %v5574_v37  ;;  %7112 = vmatpush.bf16.msra.mxu3 %v11938_v49  ;;  %v14889_v37 = vrot.slane %v14883_v13, 3 }
 0x421   : > { %v5342_v4 = vld [vmem:[#allocation1] sm:$0xff] }
 0x422   : > { %5345 = vst [vmem:[#allocation1] ss:$4 sm:$0xff] %v5257_v16  ;;  %v5668_v10 = vsel %vm549_vm1, %v14883_v13, %v14889_v37  ;;  %v5674_v34 = vsel %vm493_vm0, %v14883_v13, %v14889_v37 }
 0x423   : > { %5358 = vst [vmem:[#allocation4 + $0xa4] sm:$0xf] %v5342_v4  ;;  %v14878_v9 = vpop.f32.mrf.mxu0  ;;  %v14904_v4 = vrot.slane %v14895_v60, 3  ;;  %v5670_v5 = vrot.slane %v5668_v10, 1  ;;  %7136 = vmatpush.bf16.msrb.mxu0 %v11950_v41  ;;  %v5676_v6 = vrot.slane %v5674_v34, 3  ;;  %v11947_v34 = vld [vmem:[%s16125_s4 + $0x1c8] sm:$0xff] }
 0x425   : > { %v5592_v28 = vld [vmem:[#allocation1 + $0x20] sm:$0xff]  ;;  %v5679_v20 = vsel %vm413_vm3, %v14895_v60, %v14904_v4 }
 0x426   : > { %5604 = vst [vmem:[#allocation1 + $0x21] ss:$4 sm:$0xff] %v5465_v19  ;;  %v11874_v7 = vld [vmem:[#allocation4 + $0x5c] sm:$0xf]  ;;  %v5671_v19 = vsel %vm553_vm2, %v14883_v13, %v14889_v37 }
 0x427   : > { %5606 = vst [vmem:[#allocation1 + $0x22] ss:$4 sm:$0xff] %v5469_v32  ;;  %v10598_v16 = vor.u32 %v11874_v7, %v10595_v11  ;;  %v5426_v32 = vsel %vm413_vm3, %v14749_v27, %v14761_v51  ;;  %v5418_v27 = vsel %vm553_vm2, %v14758_v55, %v14776_v1  ;;  %v5673_v51 = vrot.slane %v5671_v19, 2 }
 0x428   : > { %5608 = vst [vmem:[#allocation1 + $0x23] ss:$4 sm:$0xff] %v5472_v18  ;;  %v5421_v18 = vsel %vm493_vm0, %v14758_v55, %v14776_v1  ;;  %v5498_v2 = vunpack.i.h.s16 %v5426_v32  ;;  %v5420_v33 = vrot.slane %v5418_v27, 2 }
 0x429   : > { %v5346_v44 = vld [vmem:[#allocation1] sm:$0xff]  ;;  %5602 = vst [vmem:[#allocation1 + $0x20] ss:$4 sm:$0xff] %v10514_v63  ;;  %v11949_v63 = vld [vmem:[%s16125_s4 + $0x1d8] sm:$0xff] }
 0x42a   : > { %5551 = vst [vmem:[#allocation1] ss:$4 sm:$0xff] %v5387_v0  ;;  %v5361_v48 = vsel %vm13620_vm7, %v5346_v44, %v5360_v22  ;;  %v5756_v0 = vunpack.i.h.s16 %v5679_v20  ;;  %7137 = vmatpush.bf16.msrb.mxu0 %v11949_v63  ;;  %v10508_v11 = vpack.i.b16 %v5430_v46, %v5498_v2  ;;  %v11883_v19 = vld [vmem:[#allocation4 + $0xa4] sm:$0xf] }
 0x42b   : > { %5554 = vst [vmem:[#allocation1 + $0x1] ss:$4 sm:$0xff] %v5391_v45  ;;  %v7040_v25 = vpop.f32.mrf.mxu0  ;;  %v11946_v20 = vld [vmem:[%s16125_s4 + $0x1c0] sm:$0xff] }
 0x42c   : > { %5557 = vst [vmem:[#allocation1 + $0x2] ss:$4 sm:$0xff] %v5394_v61  ;;  %v14910_v49 = vadd.f32 %v7040_v25, %v14804_v31  ;;  %v5415_v31 = vsel %vm549_vm1, %v14758_v55, %v14776_v1  ;;  %v5423_v1 = vrot.slane %v5421_v18, 3  ;;  %v14953_v61 = vld [vmem:[#allocation3 + $0x30] sm:$0xf]  ;;  %v5447_v18 = vsel %vm493_vm0, %v14793_v52, %v14809_v54 }
 0x42d   : > { %5560 = vst [vmem:[#allocation1 + $0x3] ss:$4 sm:$0xff] %v10503_v47  ;;  %v5417_v55 = vrot.slane %v5415_v31, 1  ;;  %v5454_v47 = vsel %vm549_vm1, %v14806_v42, %v14829_v53  ;;  %v14966_v10 = vrot.slane %v14953_v61, 3  ;;  %v14976_v31 = vld [vmem:[#allocation3 + $0x28] sm:$0xf] }
 0x42e   : > { %5624 = vst [vmem:[#allocation4 + $0x84] sm:$0xf] %v5592_v28  ;;  %7090 = vmatmul.bf16.gmra.mxu2 %v10598_v16  ;;  %v7017_v62 = vpop.f32.mrf.mxu3  ;;  %v14939_v28 = vsel %vm549_vm1, %v14895_v60, %v14904_v4  ;;  %v10507_v7 = vpack.i.b16 %v5426_v32, %v5423_v1  ;;  %v5456_v57 = vrot.slane %v5454_v47, 1  ;;  %v14991_v2 = vrot.slane %v14976_v31, 3  ;;  %v11870_v47 = vld [vmem:[#allocation4 + $0x38] sm:$0xf0] }
 0x42f   : > { %5362 = vst [vmem:[#allocation4 + $0xec] sm:$0x1] %v5361_v48  ;;  %v14919_v38 = vadd.f32 %v7017_v62, %v14663_v56  ;;  %v5683_v44 = vrot.slane %v14939_v28, 1  ;;  %v5452_v62 = vsel %vm413_vm3, %v14806_v42, %v14829_v53  ;;  %v10631_v42 = vld [vmem:[#allocation4 + $0xc4] sm:$0xf0]  ;;  %v5444_v53 = vsel %vm553_vm2, %v14793_v52, %v14809_v54 }
 0x430   : > { %v5610_v21 = vld [vmem:[#allocation1 + $0x20] sm:$0xff]  ;;  %v5707_v27 = vsel %vm549_vm1, %v14953_v61, %v14966_v10  ;;  %v5446_v54 = vrot.slane %v5444_v53, 2  ;;  %v5705_v63 = vsel %vm413_vm3, %v14953_v61, %v14966_v10  ;;  %v15019_v29 = vsel %vm553_vm2, %v14953_v61, %v14966_v10 }
 0x431   : > { %v7058_v56 = vpop.f32.mrf.mxu1  ;;  %5626 = vst [vmem:[#allocation4 + $0xcc] sm:$0xf] %v5610_v21  ;;  %v10518_v41 = vpack.i.b16 %v5683_v44, %v5756_v0  ;;  %v5512_v21 = vunpack.i.h.s16 %v5452_v62  ;;  %v5713_v28 = vsel %vm493_vm0, %v14953_v61, %v14966_v10 }
 0x432   : > { %v14942_v45 = vadd.f32 %v7058_v56, %v14784_v15  ;;  %5829 = vst [vmem:[#allocation1 + $0x20] ss:$4 sm:$0xff] %v5670_v5  ;;  %v11948_v15 = vld [vmem:[%s16125_s4 + $0x1d0] sm:$0xff]  ;;  %v10634_v5 = vor.u32 %v11883_v19, %v10631_v42  ;;  %v5514_v56 = vunpack.i.h.s16 %v5456_v57 }
 0x433   : > { %5832 = vst [vmem:[#allocation1 + $0x21] ss:$4 sm:$0xff] %v5673_v51  ;;  %v14948_v50 = vpop.f32.mrf.mxu0  ;;  %7138 = vmatpush.bf16.msrb.mxu0 %v11948_v15 }
 0x434   : > { %v5573_v22 = vld [vmem:[#allocation1] sm:$0xff]  ;;  %5835 = vst [vmem:[#allocation1 + $0x22] ss:$4 sm:$0xff] %v5676_v6  ;;  %v14993_v6 = vld [vmem:[#allocation3 + $0x40] sm:$0xf] }
 0x435   : > { %5576 = vst [vmem:[#allocation1] ss:$4 sm:$0xff] %v5417_v55  ;;  %v5449_v55 = vrot.slane %v5447_v18, 3 }
 0x436   : > { %5578 = vst [vmem:[#allocation1 + $0x1] ss:$4 sm:$0xff] %v5420_v33  ;;  %v14960_v16 = vld [vmem:[#allocation4 + $0xe8] sm:$0x11]  ;;  %v7019_v48 = vpop.f32.mrf.mxu3  ;;  %v5709_v33 = vrot.slane %v5707_v27, 1 }
 0x437   : > { %5580 = vst [vmem:[#allocation1 + $0x2] ss:$4 sm:$0xff] %v10507_v7  ;;  %v6428_v25 = vunpack.c.l.b16 %v14960_v16  ;;  %7139 = vmatpush.bf16.msrb.mxu0 %v11947_v34  ;;  %v10511_v0 = vpack.i.b16 %v5452_v62, %v5449_v55  ;;  %v10512_v7 = vpack.i.b16 %v5456_v57, %v5512_v21  ;;  %v5700_v57 = vsel %vm493_vm0, %v14976_v31, %v14991_v2 }
 0x438   : > { %5582 = vst [vmem:[#allocation1 + $0x3] ss:$4 sm:$0xff] %v10508_v11  ;;  %v5650_v11 = vrot.slane %v14993_v6, 3  ;;  %v5702_v53 = vrot.slane %v5700_v57, 3  ;;  %v5712_v21 = vrot.slane %v15019_v29, 2  ;;  %v6429_v55 = vunpack.c.h.b16 %v14960_v16 }
 0x439   : > { %5621 = vst [vmem:[#allocation4 + $0x18] sm:$0xf] %v5573_v22  ;;  %v6464_v46 = vpack.c.b16 %v6428_v25, %v6428_v25  ;;  %v14971_v32 = vpop.f32.mrf.mxu1  ;;  %v5473_v22 = vsel %vm493_vm0, %v14820_v8, %v14838_v58  ;;  %v5630_v58 = vld [vmem:[#allocation3 + $0x10] sm:$0xf] }
 0x43a   : > { %5838 = vst [vmem:[#allocation1 + $0x23] ss:$4 sm:$0xff] %v10518_v41  ;;  %v5697_v41 = vsel %vm553_vm2, %v14976_v31, %v14991_v2  ;;  %v5475_v19 = vrot.slane %v5473_v22, 3  ;;  %v5644_v42 = vrot.slane %v5630_v58, 3 }
 0x43b   : > { %7072 = vmatmul.bf16.gmra.mxu1 %v6464_v46  ;;  %v7045_v51 = vpop.f32.mrf.mxu0  ;;  %7140 = vmatpush.bf16.msrb.mxu0 %v11946_v20  ;;  %v5772_v46 = vunpack.i.h.s16 %v5709_v33  ;;  %v5699_v34 = vrot.slane %v5697_v41, 2 }
 0x43c   : > { %v14996_v52 = vadd.f32 %v7045_v51, %v14919_v38  ;;  %v10513_v38 = vpack.i.b16 %v5459_v17, %v5514_v56  ;;  %v5770_v17 = vunpack.i.h.s16 %v5705_v63  ;;  %v5731_v51 = vsel %vm413_vm3, %v14993_v6, %v5650_v11 }
 0x43d   : > { %v10522_v56 = vpack.i.b16 %v5712_v21, %v5772_v46  ;;  %v5655_v63 = vsel %vm549_vm1, %v5630_v58, %v5644_v42  ;;  %v5653_v16 = vsel %vm413_vm3, %v5630_v58, %v5644_v42 }
 0x43e   : > { %7095 = vmatmul.bf16.gmra.mxu2 %v10634_v5  ;;  %v15024_v5 = vld [vmem:[#allocation3 + $0x38] sm:$0xf]  ;;  %v10521_v27 = vpack.i.b16 %v5709_v33, %v5770_v17  ;;  %v5736_v33 = vsel %vm553_vm2, %v14993_v6, %v5650_v11  ;;  %v15047_v17 = vsel %vm493_vm0, %v14993_v6, %v5650_v11 }
 0x43f   : > { %v5591_v1 = vld [vmem:[#allocation1] sm:$0xff]  ;;  %v15035_v22 = vrot.slane %v15024_v5, 3 }
 0x440   : > { %v10565_v15 = vld [vmem:[#allocation4 + $0x18] sm:$0xf]  ;;  %5623 = vst [vmem:[#allocation4 + $0x60] sm:$0xf] %v5591_v1 }
 0x441   : > { %v10566_v48 = vor.u32 %v11870_v47, %v10565_v15  ;;  %5594 = vst [vmem:[#allocation1] ss:$4 sm:$0xff] %v5446_v54  ;;  %v7063_v25 = vpop.f32.mrf.mxu1  ;;  %v5840_v62 = vld [vmem:[#allocation1 + $0x20] sm:$0xff]  ;;  %v5524_v54 = vunpack.i.l.s16 %v5475_v19  ;;  %v5726_v57 = vsel %vm493_vm0, %v15024_v5, %v15035_v22  ;;  %v5720_v10 = vsel %vm549_vm1, %v15024_v5, %v15035_v22 }
 0x442   : > { %5596 = vst [vmem:[#allocation1 + $0x1] ss:$4 sm:$0xff] %v10511_v0  ;;  %v15011_v8 = vadd.f32 %v7063_v25, %v14852_v24  ;;  %v5733_v24 = vsel %vm549_vm1, %v14993_v6, %v5650_v11  ;;  %v5658_v0 = vsel %vm553_vm2, %v5630_v58, %v5644_v42  ;;  %v5738_v25 = vrot.slane %v5736_v33, 2 }
 0x443   : > { %7113 = vmatmul.bf16.vlgmr.msra.gmra.mxu3 %v10566_v48  ;;  %5598 = vst [vmem:[#allocation1 + $0x2] ss:$4 sm:$0xff] %v10512_v7  ;;  %v7047_v18 = vpop.f32.mrf.mxu0  ;;  %v5735_v20 = vrot.slane %v5733_v24, 1  ;;  %v5784_v7 = vunpack.i.h.s16 %v5731_v51  ;;  %v5657_v48 = vrot.slane %v5655_v63, 1  ;;  %v5660_v41 = vrot.slane %v5658_v0, 2 }
 0x444   : > { %5600 = vst [vmem:[#allocation1 + $0x3] ss:$4 sm:$0xff] %v10513_v38  ;;  %v6465_v38 = vpack.c.b16 %v6429_v55, %v6429_v55  ;;  %v5742_v24 = vunpack.i.h.s16 %v5653_v16  ;;  %v5741_v51 = vrot.slane %v15047_v17, 3  ;;  %v5788_v55 = vunpack.i.h.s16 %v5738_v25 }
 0x445   : > { %5888 = vst [vmem:[#allocation4 + $0x40] sm:$0xf] %v5840_v62  ;;  %v5786_v47 = vunpack.i.h.s16 %v5735_v20  ;;  %v5661_v62 = vsel %vm493_vm0, %v5630_v58, %v5644_v42  ;;  %v10524_v19 = vpack.i.b16 %v5735_v20, %v5784_v7  ;;  %v5744_v58 = vunpack.i.h.s16 %v5657_v48  ;;  %v5627_v7 = vld [vmem:[#allocation4 + $0xf0] sm:$0x1] }
 0x446   : > { %5850 = vst [vmem:[#allocation1 + $0x20] ss:$4 sm:$0xff] %v5699_v34  ;;  %v5666_v34 = vsel %vm413_vm3, %v14883_v13, %v14889_v37  ;;  %v5728_v42 = vrot.slane %v5726_v57, 3  ;;  %v5746_v6 = vunpack.i.h.s16 %v5660_v41  ;;  %v10515_v13 = vpack.i.b16 %v5657_v48, %v5742_v24 }
 0x447   : > { %5852 = vst [vmem:[#allocation1 + $0x21] ss:$4 sm:$0xff] %v5702_v53  ;;  %v10601_v46 = vld [vmem:[#allocation4 + $0x60] sm:$0xf]  ;;  %v10525_v18 = vpack.i.b16 %v5738_v25, %v5786_v47  ;;  %v11879_v53 = vld [vmem:[#allocation4 + $0x80] sm:$0xf0]  ;;  %v5749_v63 = vunpack.i.h.s16 %v5666_v34  ;;  %v10516_v0 = vpack.i.b16 %v5660_v41, %v5744_v58  ;;  %v5684_v47 = vsel %vm553_vm2, %v14895_v60, %v14904_v4 }
 0x448   : > { %5854 = vst [vmem:[#allocation1 + $0x22] ss:$4 sm:$0xff] %v10521_v27  ;;  %v5663_v27 = vrot.slane %v5661_v62, 3  ;;  %v5686_v48 = vrot.slane %v5684_v47, 2  ;;  %v5687_v25 = vsel %vm493_vm0, %v14895_v60, %v14904_v4  ;;  %v5692_v41 = vsel %vm413_vm3, %v14976_v31, %v14991_v2  ;;  %v11888_v4 = vld [vmem:[#allocation4 + $0xc8] sm:$0xf0] }
 0x449   : > { %v15031_v1 = vpop.f32.mrf.mxu1  ;;  %5856 = vst [vmem:[#allocation1 + $0x23] ss:$4 sm:$0xff] %v10522_v56  ;;  %v5758_v62 = vunpack.i.h.s16 %v5683_v44  ;;  %v5689_v57 = vrot.slane %v5687_v25, 3  ;;  %v5722_v29 = vrot.slane %v5720_v10, 1  ;;  %vm8244_vm0 = vsmask.f32 3334 }
 0x44a   : > { %v5748_v33 = vunpack.i.h.s16 %v5663_v27 }
 0x44b   : > { %v5609_v15 = vld [vmem:[#allocation1] sm:$0xff]  ;;  %v10519_v24 = vpack.i.b16 %v5686_v48, %v5758_v62  ;;  %v5762_v60 = vunpack.i.h.s16 %v5689_v57 }
 0x44c   : > { %5625 = vst [vmem:[#allocation4 + $0xa8] sm:$0xf] %v5609_v15  ;;  %v10526_v15 = vpack.i.b16 %v5741_v51, %v5788_v55  ;;  %v5897_v55 = vld [vmem:[#allocation3 + $0x14] sm:$0x1]  ;;  %v5896_v62 = vld [vmem:[#allocation3 + $0x10] sm:$0xe] }
 0x44d   : > { %5612 = vst [vmem:[#allocation1] ss:$4 sm:$0xff] %v5524_v54  ;;  %v10602_v54 = vor.u32 %v11879_v53, %v10601_v46  ;;  %v5760_v46 = vunpack.i.h.s16 %v5686_v48  ;;  %v5694_v53 = vsel %vm549_vm1, %v14976_v31, %v14991_v2  ;;  %v5718_v31 = vsel %vm413_vm3, %v15024_v5, %v15035_v22 }
 0x44e   : > { %7100 = vmatmul.bf16.gmra.mxu2 %v6465_v38  ;;  %v10517_v38 = vpack.i.b16 %v5663_v27, %v5746_v6  ;;  %v5715_v2 = vrot.slane %v5713_v28, 3  ;;  %vm7207_vm1 = vcmask 400384  }
 0x44f   : > { %v10520_v27 = vpack.i.b16 %v5689_v57, %v5760_v46  ;;  %v5903_v57 = vld [vmem:[#allocation3 + $0x2c] sm:$0x1] }
 0x450   : > { %v5858_v56 = vld [vmem:[#allocation1 + $0x20] sm:$0xff] }
 0x451   : > { %v7068_v11 = vpop.f32.mrf.mxu1  ;;  %5890 = vst [vmem:[#allocation4 + $0x88] sm:$0xf] %v5858_v56  ;;  %v5696_v56 = vrot.slane %v5694_v53, 1 }
 0x452   : > { %v15054_v20 = vadd.f32 %v7068_v11, %v14910_v49  ;;  %5868 = vst [vmem:[#allocation1 + $0x20] ss:$4 sm:$0xff] %v5728_v42  ;;  %v5794_v49 = vpack.i.b16 %v5749_v63, %v5748_v33  ;;  %v10567_v11 = vld [vmem:[#allocation4 + $0x3c] sm:$0xf0]  ;;  %v5777_v63 = vunpack.i.h.s16 %v5718_v31 }
 0x453   : > { %7118 = vmatmul.bf16.gmra.mxu3 %v10602_v54  ;;  %5870 = vst [vmem:[#allocation1 + $0x21] ss:$4 sm:$0xff] %v10524_v19  ;;  %v5763_v19 = vunpack.i.h.s16 %v5692_v41  ;;  %v10637_v34 = vld [vmem:[#allocation4 + $0xa8] sm:$0xf]  ;;  %v5774_v54 = vunpack.i.h.s16 %v5712_v21  ;;  %v5893_v41 = vld [vmem:[#allocation4 + $0xf4] sm:$0x1] }
 0x454   : > { %v5613_v37 = vld [vmem:[#allocation1] sm:$0xff]  ;;  %5872 = vst [vmem:[#allocation1 + $0x22] ss:$4 sm:$0xff] %v10525_v18  ;;  %v10638_v58 = vor.u32 %v11888_v4, %v10637_v34  ;;  %v5905_v34 = vld [vmem:[#allocation3 + $0x34] sm:$0x1] }
 0x455   : > { %5817 = vst [vmem:[#allocation1] ss:$4 sm:$0xff] %v10515_v13  ;;  %v5628_v16 = vsel %vm13620_vm7, %v5613_v37, %v5627_v7  ;;  %v5801_v42 = vpack.i.b16 %v5763_v19, %v5762_v60  ;;  %v5776_v13 = vunpack.i.h.s16 %v5715_v2  ;;  %v5723_v37 = vsel %vm553_vm2, %v15024_v5, %v15035_v22 }
 0x456   : > { %5820 = vst [vmem:[#allocation1 + $0x1] ss:$4 sm:$0xff] %v10516_v0  ;;  %v10523_v33 = vpack.i.b16 %v5715_v2, %v5774_v54  ;;  %v5725_v21 = vrot.slane %v5723_v37, 2  ;;  %v5902_v37 = vld [vmem:[#allocation3 + $0x28] sm:$0xe]  ;;  %vm478_vm2 = vcmask 1041408  }
 0x457   : > { %5823 = vst [vmem:[#allocation1 + $0x2] ss:$4 sm:$0xff] %v10517_v38  ;;  %v5808_v0 = vpack.i.b16 %v5777_v63, %v5776_v13  ;;  %v5790_v38 = vunpack.i.h.s16 %v5741_v51  ;;  %v5898_v51 = vld [vmem:[#allocation3 + $0x18] sm:$0xe] }
 0x458   : > { %5826 = vst [vmem:[#allocation1 + $0x3] ss:$4 sm:$0xff] %v5794_v49  ;;  %v5901_v49 = vld [vmem:[#allocation3 + $0x24] sm:$0x1]  ;;  %v10603_v22 = vld [vmem:[#allocation4 + $0x84] sm:$0xf0] }
 0x459   : > { %5874 = vst [vmem:[#allocation1 + $0x23] ss:$4 sm:$0xff] %v10526_v15  ;;  %v5899_v15 = vld [vmem:[#allocation3 + $0x1c] sm:$0x1] }
 0x45a   : > { %5629 = vst [vmem:[#allocation4 + $0xf0] sm:$0x1] %v5628_v16 }
 0x45f   : > { %v5839_v18 = vld [vmem:[#allocation1] sm:$0xff] }
 0x460   : > { %5887 = vst [vmem:[#allocation4 + $0x1c] sm:$0xf] %v5839_v18  ;;  %v5876_v44 = vld [vmem:[#allocation1 + $0x20] sm:$0xff] }
 0x461   : > { %5842 = vst [vmem:[#allocation1] ss:$4 sm:$0xff] %v10519_v24 }
 0x462   : > { %5844 = vst [vmem:[#allocation1 + $0x1] ss:$4 sm:$0xff] %v10520_v27 }
 0x463   : > { %7123 = vmatmul.bf16.gmra.mxu3 %v10638_v58  ;;  %5846 = vst [vmem:[#allocation1 + $0x2] ss:$4 sm:$0xff] %v5801_v42 }
 0x464   : > { %5848 = vst [vmem:[#allocation1 + $0x3] ss:$4 sm:$0xff] %v5696_v56 }
 0x465   : > { %5892 = vst [vmem:[#allocation4 + $0xd0] sm:$0xf] %v5876_v44  ;;  %v5900_v44 = vld [vmem:[#allocation3 + $0x20] sm:$0xe] }
 0x466   : > { %5913 = vst [vmem:[#allocation1 + $0x20] sm:$0xff] %v5897_v55  ;;  %v5907_v55 = vld [vmem:[#allocation3 + $0x3c] sm:$0x1] }
 0x467   : > { %v11866_v6 = vld [vmem:[#allocation4 + $0x1c] sm:$0xf] }
 0x468   : > { %v10570_v61 = vor.u32 %v11866_v6, %v10567_v11  ;;  %v11961_v11 = vld [vmem:[%s16125_s4 + $0x238] sm:$0xff] }
 0x469   : > { %7161 = vmatpush.bf16.msrb.mxu1 %v11961_v11 }
 0x46a   : > { %7141 = vmatmul.bf16.vlgmr.msrb.gmra.mxu0 %v10570_v61  ;;  %v11960_v61 = vld [vmem:[%s16125_s4 + $0x230] sm:$0xff] }
 0x46b   : > { %v5857_v7 = vld [vmem:[#allocation1] sm:$0xff] }
 0x46c   : > { %5860 = vst [vmem:[#allocation1] ss:$4 sm:$0xff] %v10523_v33  ;;  %v10639_v27 = vld [vmem:[#allocation4 + $0xcc] sm:$0xf0]  ;;  %v5909_v33 = vld [vmem:[#allocation3 + $0x44] sm:$0x1] }
 0x46d   : > { %5862 = vst [vmem:[#allocation1 + $0x1] ss:$4 sm:$0xff] %v5808_v0  ;;  %v15088_v47 = vld [vmem:[#allocation1 + $0x20] ss:$4 sm:$0xff]  ;;  %7162 = vmatpush.bf16.msrb.mxu1 %v11960_v61  ;;  %v5908_v61 = vld [vmem:[#allocation3 + $0x40] sm:$0xe] }
 0x46e   : > { %5864 = vst [vmem:[#allocation1 + $0x2] ss:$4 sm:$0xff] %v5722_v29  ;;  %v11959_v0 = vld [vmem:[%s16125_s4 + $0x228] sm:$0xff] }
 0x46f   : > { %5866 = vst [vmem:[#allocation1 + $0x3] ss:$4 sm:$0xff] %v5725_v21 }
 0x470   : > { %5889 = vst [vmem:[#allocation4 + $0x64] sm:$0xf] %v5857_v7 }
 0x471   : > { %5929 = vst [vmem:[#allocation1 + $0x20] sm:$0xff] %v5899_v15  ;;  %7163 = vmatpush.bf16.msrb.mxu1 %v11959_v0 }
 0x476   : > { %v5875_v16 = vld [vmem:[#allocation1] sm:$0xff] }
 0x477   : > { %5878 = vst [vmem:[#allocation1] ss:$4 sm:$0xff] %v5790_v38  ;;  %v11875_v5 = vld [vmem:[#allocation4 + $0x64] sm:$0xf] }
 0x478   : > { %v10606_v48 = vor.u32 %v11875_v5, %v10603_v22  ;;  %5891 = vst [vmem:[#allocation4 + $0xac] sm:$0xf] %v5875_v16  ;;  %v5936_v25 = vld [vmem:[#allocation1 + $0x20] ss:$4 sm:$0xff] }
 0x479   : > { %5941 = vst [vmem:[#allocation1 + $0x20] sm:$0xff] %v5901_v49  ;;  %v11958_v22 = vld [vmem:[%s16125_s4 + $0x220] sm:$0xff] }
 0x47a   : > { %7146 = vmatmul.bf16.gmra.mxu0 %v10606_v48  ;;  %v5904_v48 = vld [vmem:[#allocation3 + $0x30] sm:$0xe]  ;;  %7164 = vmatpush.bf16.msrb.mxu1 %v11958_v22 }
 0x47e   : > { %v5879_v46 = vld [vmem:[#allocation1] sm:$0xff] }
 0x47f   : > { %5911 = vst [vmem:[#allocation1] sm:$0xff] %v5896_v62  ;;  %v5894_v19 = vsel %vm13620_vm7, %v5879_v46, %v5893_v41  ;;  %v11884_v24 = vld [vmem:[#allocation4 + $0xac] sm:$0xf] }
 0x480   : > { %5895 = vst [vmem:[#allocation4 + $0xf4] sm:$0x1] %v5894_v19  ;;  %v15094_v17 = vld [vmem:[#allocation1 + $0x20] ss:$4 sm:$0xff]  ;;  %v10642_v56 = vor.u32 %v11884_v24, %v10639_v27  ;;  %v5906_v27 = vld [vmem:[#allocation3 + $0x38] sm:$0xe] }
 0x481   : > { %5953 = vst [vmem:[#allocation1 + $0x20] sm:$0xff] %v5903_v57  ;;  %v11956_v24 = vld [vmem:[%s16125_s4 + $0x210] sm:$0xff] }
 0x486   : > { %v15096_v18 = vld [vmem:[#allocation1 + $0x1] ss:$4 sm:$0xff]  ;;  %v15098_v53 = vld [vmem:[#allocation1 + $0x2] ss:$4 sm:$0xff]  ;;  %v15100_v60 = vld [vmem:[#allocation1 + $0x3] ss:$4 sm:$0xff] }
 0x487   : > { %5927 = vst [vmem:[#allocation1] sm:$0xff] %v5898_v51  ;;  %v6185_v4 = vld [vmem:[#allocation4 + $0xf0] sm:$0x11] }
 0x488   : > { %v6430_v58 = vunpack.c.l.b16 %v6185_v4  ;;  %v15102_v42 = vld [vmem:[#allocation1 + $0x20] ss:$4 sm:$0xff]  ;;  %v6431_v13 = vunpack.c.h.b16 %v6185_v4 }
 0x489   : > { %5965 = vst [vmem:[#allocation1 + $0x20] sm:$0xff] %v5905_v34 }
 0x48a   : > { %v6466_v28 = vpack.c.b16 %v6430_v58, %v6430_v58  ;;  %7151 = vmatmul.bf16.gmra.mxu0 %v10642_v56  ;;  %v6467_v16 = vpack.c.b16 %v6431_v13, %v6431_v13  ;;  %v11955_v58 = vld [vmem:[%s16125_s4 + $0x208] sm:$0xff] }
 0x48c   : > { %7128 = vmatmul.bf16.gmra.mxu3 %v6466_v28 }
 0x48e   : > { %v15104_v31 = vld [vmem:[#allocation1 + $0x1] ss:$4 sm:$0xff]  ;;  %v5932_v2 = vld [vmem:[#allocation1 + $0x2] ss:$4 sm:$0xff]  ;;  %v5934_v54 = vld [vmem:[#allocation1 + $0x3] ss:$4 sm:$0xff] }
 0x48f   : > { %5939 = vst [vmem:[#allocation1] sm:$0xff] %v5900_v44  ;;  %v6008_v63 = vunpack.i.h.s16 %v5932_v2  ;;  %v6010_v10 = vunpack.i.h.s16 %v5934_v54  ;;  %v6006_v5 = vunpack.i.h.s16 %v15104_v31  ;;  %v10527_v22 = vpack.i.b16 %v15104_v31, %v15088_v47  ;;  %v15174_v47 = vld [vmem:[%s16126_s5] ss:$0 sm:$0xff] }
 0x490   : > { %v15106_v6 = vld [vmem:[#allocation1 + $0x20] ss:$4 sm:$0xff] }
 0x491   : > { %5977 = vst [vmem:[#allocation1 + $0x20] sm:$0xff] %v5907_v55  ;;  %v10529_v15 = vpack.i.b16 %v5934_v54, %v6008_v63  ;;  %v10530_v38 = vpack.i.b16 %v5936_v25, %v6010_v10  ;;  %v10528_v41 = vpack.i.b16 %v5932_v2, %v6006_v5  ;;  %v11957_v25 = vld [vmem:[%s16125_s4 + $0x218] sm:$0xff]  ;;  %v11954_v63 = vld [vmem:[%s16125_s4 + $0x200] sm:$0xff] }
 0x492   : > { %7165 = vmatpush.bf16.msrb.mxu1 %v11957_v25 }
 0x496   : > { %v5942_v7 = vld [vmem:[#allocation1 + $0x1] ss:$4 sm:$0xff]  ;;  %v15117_v29 = vld [vmem:[#allocation1 + $0x2] ss:$4 sm:$0xff]  ;;  %v15119_v21 = vld [vmem:[#allocation1 + $0x3] ss:$4 sm:$0xff]  ;;  %7166 = vmatpush.bf16.msrb.mxu1 %v11956_v24 }
 0x497   : > { %5951 = vst [vmem:[#allocation1] sm:$0xff] %v5902_v37 }
 0x498   : > { %v15121_v49 = vld [vmem:[#allocation1 + $0x20] ss:$4 sm:$0xff] }
 0x499   : > { %5989 = vst [vmem:[#allocation1 + $0x20] sm:$0xff] %v5909_v33  ;;  %v7070_v33 = vpop.f32.mrf.mxu1 }
 0x49a   : > { %6088 = vst [vmem:[#allocation1 + $0x21] ss:$4 sm:$0xff] %v10529_v15  ;;  %7156 = vmatmul.bf16.gmra.mxu0 %v6467_v16  ;;  %7167 = vmatpush.bf16.msrb.mxu1 %v11955_v58 }
 0x49b   : > { %6091 = vst [vmem:[#allocation1 + $0x22] ss:$4 sm:$0xff] %v10530_v38 }
 0x49c   : > { %6094 = vst [vmem:[#allocation1 + $0x23] ss:$4 sm:$0xff] %v5942_v7 }
 0x49e   : > { %v15130_v62 = vld [vmem:[#allocation1 + $0x1] ss:$4 sm:$0xff]  ;;  %v15132_v57 = vld [vmem:[#allocation1 + $0x2] ss:$4 sm:$0xff]  ;;  %v5958_v46 = vld [vmem:[#allocation1 + $0x3] ss:$4 sm:$0xff]  ;;  %7168 = vmatpush.bf16.msrb.mxu1 %v11954_v63 }
 0x49f   : > { %5963 = vst [vmem:[#allocation1] sm:$0xff] %v5904_v48  ;;  %v6022_v4 = vunpack.i.h.s16 %v15132_v57  ;;  %v6024_v56 = vunpack.i.h.s16 %v5958_v46  ;;  %v6020_v25 = vunpack.i.h.s16 %v15130_v62 }
 0x4a0   : > { %v15134_v19 = vld [vmem:[#allocation1 + $0x20] ss:$4 sm:$0xff] }
 0x4a1   : > { %v7086_v51 = vpop.f32.mrf.mxu2  ;;  %6085 = vst [vmem:[#allocation1 + $0x20] ss:$4 sm:$0xff] %v10528_v41  ;;  %v10534_v11 = vpack.i.b16 %v15102_v42, %v6024_v56  ;;  %v10532_v24 = vpack.i.b16 %v15132_v57, %v6020_v25 }
 0x4a2   : > { %v15137_v34 = vadd.f32 %v7086_v51, %v14942_v45  ;;  %v10533_v45 = vpack.i.b16 %v5958_v46, %v6022_v4  ;;  %v10531_v46 = vpack.i.b16 %v15130_v62, %v15094_v17 }
 0x4a6   : > { %v5966_v28 = vld [vmem:[#allocation1 + $0x1] ss:$4 sm:$0xff]  ;;  %v5968_v44 = vld [vmem:[#allocation1 + $0x2] ss:$4 sm:$0xff]  ;;  %v15146_v55 = vld [vmem:[#allocation1 + $0x3] ss:$4 sm:$0xff] }
 0x4a7   : > { %5975 = vst [vmem:[#allocation1] sm:$0xff] %v5906_v27 }
 0x4a8   : > { %v6096_v2 = vld [vmem:[#allocation1 + $0x20] sm:$0xff] }
 0x4a9   : > { %v15148_v54 = vpop.f32.mrf.mxu2  ;;  %6144 = vst [vmem:[#allocation4 + $0x44] sm:$0xf] %v6096_v2 }
 0x4aa   : > { %6106 = vst [vmem:[#allocation1 + $0x20] ss:$4 sm:$0xff] %v10533_v45 }
 0x4ab   : > { %6110 = vst [vmem:[#allocation1 + $0x22] ss:$4 sm:$0xff] %v5966_v28 }
 0x4ac   : > { %6112 = vst [vmem:[#allocation1 + $0x23] ss:$4 sm:$0xff] %v5968_v44 }
 0x4ad   : > { %6108 = vst [vmem:[#allocation1 + $0x21] ss:$4 sm:$0xff] %v10534_v11 }
 0x4ae   : > { %v15154_v10 = vld [vmem:[#allocation1 + $0x1] ss:$4 sm:$0xff]  ;;  %v15156_v13 = vld [vmem:[#allocation1 + $0x2] ss:$4 sm:$0xff]  ;;  %v5982_v37 = vld [vmem:[#allocation1 + $0x3] ss:$4 sm:$0xff] }
 0x4af   : > { %5987 = vst [vmem:[#allocation1] sm:$0xff] %v5908_v61  ;;  %v6038_v15 = vunpack.i.h.s16 %v5982_v37  ;;  %v6034_v57 = vunpack.i.h.s16 %v15154_v10  ;;  %v10535_v44 = vpack.i.b16 %v15154_v10, %v15106_v6 }
 0x4b0   : > { %6073 = vst [vmem:[#allocation1] ss:$4 sm:$0xff] %v15096_v18 }
 0x4b1   : > { %v7091_v42 = vpop.f32.mrf.mxu2  ;;  %v10538_v41 = vpack.i.b16 %v15121_v49, %v6038_v15 }
 0x4b2   : > { %v15160_v0 = vadd.f32 %v7091_v42, %v15011_v8  ;;  %v6046_v42 = vunpack.i.l.s16 %v15134_v19 }
 0x4b4   : > { %v6114_v7 = vld [vmem:[#allocation1 + $0x20] sm:$0xff] }
 0x4b5   : > { %6146 = vst [vmem:[#allocation4 + $0x8c] sm:$0xf] %v6114_v7 }
 0x4b6   : > { %v5990_v38 = vld [vmem:[#allocation1 + $0x1] ss:$4 sm:$0xff]  ;;  %v5992_v16 = vld [vmem:[#allocation1 + $0x2] ss:$4 sm:$0xff]  ;;  %v5994_v5 = vld [vmem:[#allocation1 + $0x3] ss:$4 sm:$0xff] }
 0x4b7   : > { %6076 = vst [vmem:[#allocation1 + $0x1] ss:$4 sm:$0xff] %v15098_v53  ;;  %v6959_v53 = vadd.f32 %v15174_v47, %v14606_v14 }
 0x4b8   : > { %v7073_v48 = vpop.f32.mrf.mxu1  ;;  %6079 = vst [vmem:[#allocation1 + $0x2] ss:$4 sm:$0xff] %v15100_v60 }
 0x4b9   : > { %v7074_v18 = vadd.f32 %v7073_v48, %v14996_v52  ;;  %6082 = vst [vmem:[#allocation1 + $0x3] ss:$4 sm:$0xff] %v10527_v22  ;;  %v15168_v8 = vpop.f32.mrf.mxu2  ;;  %v6987_v49 = vadd.f32 %v14652_v26, %v6959_v53 }
 0x4ba   : > { %6126 = vst [vmem:[#allocation1 + $0x21] ss:$4 sm:$0xff] %v5990_v38 }
 0x4bb   : > { %6128 = vst [vmem:[#allocation1 + $0x22] ss:$4 sm:$0xff] %v5992_v16  ;;  %v7015_v4 = vadd.f32 %v14885_v36, %v6987_v49 }
 0x4bc   : > { %6130 = vst [vmem:[#allocation1 + $0x23] ss:$4 sm:$0xff] %v5994_v5  ;;  %v11880_v7 = vld [vmem:[#allocation4 + $0x88] sm:$0xf0] }
 0x4bd   : > { %6124 = vst [vmem:[#allocation1 + $0x20] ss:$4 sm:$0xff] %v10538_v41  ;;  %v7043_v27 = vadd.f32 %v14948_v50, %v7015_v4  ;;  %v10536_v50 = vpack.i.b16 %v15156_v13, %v6034_v57 }
 0x4bf   : > { %v7071_v17 = vadd.f32 %v7070_v33, %v7043_v27 }
 0x4c0   : > { %v6095_v52 = vld [vmem:[#allocation1] sm:$0xff]  ;;  %v7075_v60 = vpop.f32.mrf.mxu1 }
 0x4c1   : > { %6143 = vst [vmem:[#allocation4 + $0x20] sm:$0xf] %v6095_v52  ;;  %v7096_v31 = vpop.f32.mrf.mxu2 }
 0x4c2   : > { %6098 = vst [vmem:[#allocation1] ss:$4 sm:$0xff] %v15117_v29  ;;  %v7097_v51 = vadd.f32 %v7096_v31, %v15054_v20  ;;  %v11871_v29 = vld [vmem:[#allocation4 + $0x40] sm:$0xf0] }
 0x4c3   : > { %6100 = vst [vmem:[#allocation1 + $0x1] ss:$4 sm:$0xff] %v15119_v21  ;;  %v6036_v21 = vunpack.i.h.s16 %v15156_v13 }
 0x4c4   : > { %6102 = vst [vmem:[#allocation1 + $0x2] ss:$4 sm:$0xff] %v10531_v46  ;;  %v6132_v14 = vld [vmem:[#allocation1 + $0x20] sm:$0xff] }
 0x4c5   : > { %6104 = vst [vmem:[#allocation1 + $0x3] ss:$4 sm:$0xff] %v10532_v24  ;;  %v10537_v45 = vpack.i.b16 %v5982_v37, %v6036_v21  ;;  %v6149_v37 = vld [vmem:[#allocation4 + $0xf8] sm:$0x1] }
 0x4c6   : > { %v7114_v58 = vpop.f32.mrf.mxu3  ;;  %6148 = vst [vmem:[#allocation4 + $0xd4] sm:$0xf] %v6132_v14 }
 0x4c7   : > { %v7115_v26 = vadd.f32 %v7114_v58, %v15137_v34 }
 0x4c8   : > { %v10573_v62 = vld [vmem:[#allocation4 + $0x20] sm:$0xf] }
 0x4c9   : > { %v10574_v56 = vor.u32 %v11871_v29, %v10573_v62  ;;  %v7098_v20 = vpop.f32.mrf.mxu2 }
 0x4ca   : > { %v7099_v28 = vadd.f32 %v7098_v20, %v7071_v17 }
 0x4cb   : > { %7169 = vmatmul.bf16.vlgmr.msrb.gmra.mxu1 %v10574_v56  ;;  %v6949_v56 = vadd.f32 %v15174_v47, %v14439_v23 }
 0x4cc   : > { %v6113_v36 = vld [vmem:[#allocation1] sm:$0xff] }
 0x4cd   : > { %6145 = vst [vmem:[#allocation4 + $0x68] sm:$0xf] %v6113_v36  ;;  %v11889_v48 = vld [vmem:[#allocation4 + $0xd0] sm:$0xf0]  ;;  %v6977_v20 = vadd.f32 %v14569_v39, %v6949_v56  ;;  %v11992_v56 = vld [vmem:[%s16127_s6 + $0x60] sm:$0xff] }
 0x4ce   : > { %6116 = vst [vmem:[#allocation1] ss:$4 sm:$0xff] %v15146_v55  ;;  %v7116_v34 = vpop.f32.mrf.mxu3 }
 0x4cf   : > { %6118 = vst [vmem:[#allocation1 + $0x1] ss:$4 sm:$0xff] %v10535_v44  ;;  %v7005_v57 = vadd.f32 %v14729_v3, %v6977_v20  ;;  %v12002_v20 = vld [vmem:[%s16127_s6 + $0xb0] sm:$0xff] }
 0x4d0   : > { %6120 = vst [vmem:[#allocation1 + $0x2] ss:$4 sm:$0xff] %v10536_v50 }
 0x4d1   : > { %6122 = vst [vmem:[#allocation1 + $0x3] ss:$4 sm:$0xff] %v10537_v45  ;;  %v7101_v2 = vpop.f32.mrf.mxu2 }
 0x4d2   : > { %v7102_v11 = vadd.f32 %v7101_v2, %v7074_v18 }
 0x4d4   : > { %v10609_v63 = vld [vmem:[#allocation4 + $0x68] sm:$0xf] }
 0x4d5   : > { %v10610_v10 = vor.u32 %v11880_v7, %v10609_v63  ;;  %v6954_v63 = vadd.f32 %v15174_v47, %v14536_v30 }
 0x4d6   : > { %v7119_v61 = vpop.f32.mrf.mxu3 }
 0x4d7   : > { %v7120_v33 = vadd.f32 %v7119_v61, %v15160_v0  ;;  %v6982_v23 = vadd.f32 %v14614_v40, %v6954_v63  ;;  %v11989_v63 = vld [vmem:[%s16127_s6 + $0x48] sm:$0xff] }
 0x4d8   : > { %v6131_v6 = vld [vmem:[#allocation1] sm:$0xff] }
 0x4d9   : > { %6134 = vst [vmem:[#allocation1] ss:$4 sm:$0xff] %v6046_v42  ;;  %v7103_v13 = vpop.f32.mrf.mxu2  ;;  %v7010_v3 = vadd.f32 %v14765_v35, %v6982_v23  ;;  %v11999_v23 = vld [vmem:[%s16127_s6 + $0x98] sm:$0xff] }
 0x4da   : > { %6147 = vst [vmem:[#allocation4 + $0xb0] sm:$0xf] %v6131_v6 }
 0x4db   : > { %7174 = vmatmul.bf16.gmra.mxu1 %v10610_v10 }
 0x4de   : > { %v7121_v55 = vpop.f32.mrf.mxu3 }
 0x4e0   : > { %v6135_v15 = vld [vmem:[#allocation1] sm:$0xff] }
 0x4e1   : > { %v6150_v38 = vsel %vm13620_vm7, %v6135_v15, %v6149_v37  ;;  %v10645_v16 = vld [vmem:[#allocation4 + $0xb0] sm:$0xf]  ;;  %vm479_vm7 = vsmask.f32 1280 }
 0x4e2   : > { %6151 = vst [vmem:[#allocation4 + $0xf8] sm:$0x1] %v6150_v38  ;;  %v10646_v18 = vor.u32 %v11889_v48, %v10645_v16  ;;  %vm480_vm11 = vmand %vm478_vm2, %vm479_vm7 }
 0x4e3   : > { %vm484_vm15 = vmor %vm483_vm13, %vm480_vm11  ;;  %vm515_vm11 = vcmask 1044224   ;;  %vm516_vm13 = vcmask 523268  }
 0x4e6   : > { %v7124_v5 = vpop.f32.mrf.mxu3 }
 0x4e7   : > { %v7142_v22 = vpop.f32.mrf.mxu0  ;;  %v7125_v0 = vadd.f32 %v7124_v5, %v7097_v51 }
 0x4e8   : > { %v7143_v19 = vadd.f32 %v7142_v22, %v7115_v26 }
 0x4e9   : > { %v6186_v52 = vld [vmem:[#allocation4 + $0xf8] sm:$0x1] }
 0x4ea   : > { %v6432_v60 = vunpack.c.l.b16 %v6186_v52  ;;  %v11965_v52 = vld [vmem:[%s16166_s1 + $0x18] sm:$0xff] }
 0x4eb   : > { %7179 = vmatmul.bf16.gmra.mxu1 %v10646_v18 }
 0x4ec   : > { %v6468_v46 = vpack.c.b16 %v6432_v60, %v6432_v60  ;;  %v11970_v60 = vld [vmem:[%s16166_s1 + $0x40] sm:$0xff] }
 0x4ee   : > { %v7126_v41 = vpop.f32.mrf.mxu3 }
 0x4ef   : > { %v7144_v25 = vpop.f32.mrf.mxu0  ;;  %v7127_v53 = vadd.f32 %v7126_v41, %v7099_v28  ;;  %v7033_v28 = vadd.f32 %v14816_v43, %v7005_v57  ;;  %v11962_v41 = vld [vmem:[%s16166_s1] sm:$0xff]  ;;  %v11981_v57 = vld [vmem:[%s16127_s6 + $0x8] sm:$0xff] }
 0x4f1   : > { %v7061_v36 = vadd.f32 %v14971_v32, %v7033_v28  ;;  %v7038_v32 = vadd.f32 %v14878_v9, %v7010_v3  ;;  %v11991_v28 = vld [vmem:[%s16127_s6 + $0x58] sm:$0xff]  ;;  %v12017_v3 = vld [vmem:[%s16127_s6 + $0x128] sm:$0xff] }
 0x4f3   : > { %v7089_v44 = vadd.f32 %v15148_v54, %v7061_v36  ;;  %v7066_v54 = vadd.f32 %v15031_v1, %v7038_v32  ;;  %v12011_v36 = vld [vmem:[%s16127_s6 + $0xf8] sm:$0xff]  ;;  %v11998_v32 = vld [vmem:[%s16127_s6 + $0x90] sm:$0xff] }
 0x4f5   : > { %v7117_v50 = vadd.f32 %v7116_v34, %v7089_v44  ;;  %v7094_v34 = vadd.f32 %v15168_v8, %v7066_v54  ;;  %v7212_v8 = vsel %vm413_vm3, 65535, %v12287_v59  ;;  %v11980_v44 = vld [vmem:[%s16127_s6] sm:$0xff] }
 0x4f6   : > { %v12016_v54 = vld [vmem:[%s16127_s6 + $0x120] sm:$0xff] }
 0x4f7   : > { %v7147_v31 = vpop.f32.mrf.mxu0  ;;  %v7145_v45 = vadd.f32 %v7144_v25, %v7117_v50  ;;  %v7122_v7 = vadd.f32 %v7121_v55, %v7094_v34  ;;  %v11963_v25 = vld [vmem:[%s16166_s1 + $0x8] sm:$0xff]  ;;  %v11990_v50 = vld [vmem:[%s16127_s6 + $0x50] sm:$0xff] }
 0x4f8   : > { %v7148_v49 = vadd.f32 %v7147_v31, %v7120_v33  ;;  %v11987_v31 = vld [vmem:[%s16127_s6 + $0x38] sm:$0xff]  ;;  %v12026_v34 = vld [vmem:[%s16127_s6 + $0x170] sm:$0xff] }
 0x4f9   : > { %8102 = vmatpush.bf16.msra.mxu1 %v11987_v31 }
 0x4fb   : > { %7184 = vmatmul.bf16.gmra.mxu1 %v6468_v46  ;;  %v11985_v46 = vld [vmem:[%s16127_s6 + $0x28] sm:$0xff] }
 0x4ff   : > { %v7149_v12 = vpop.f32.mrf.mxu0 }
 0x500   : > { %v7150_v6 = vadd.f32 %v7149_v12, %v7122_v7  ;;  %v11966_v12 = vld [vmem:[%s16166_s1 + $0x20] sm:$0xff] }
 0x507   : > { %v7152_v24 = vpop.f32.mrf.mxu0 }
 0x508   : > { %v7153_v4 = vadd.f32 %v7152_v24, %v7125_v0  ;;  %v11967_v24 = vld [vmem:[%s16166_s1 + $0x28] sm:$0xff] }
 0x50f   : > { %v7129_v14 = vpop.f32.mrf.mxu3  ;;  %v7154_v27 = vpop.f32.mrf.mxu0 }
 0x510   : > { %v7130_v58 = vadd.f32 %v7129_v14, %v7102_v11  ;;  %v7155_v51 = vadd.f32 %v7154_v27, %v7127_v53  ;;  %v11964_v53 = vld [vmem:[%s16166_s1 + $0x10] sm:$0xff]  ;;  %v11969_v27 = vld [vmem:[%s16166_s1 + $0x38] sm:$0xff] }
 0x511   : > { %v11968_v14 = vld [vmem:[%s16166_s1 + $0x30] sm:$0xff] }
 0x517   : > { %v7131_v17 = vpop.f32.mrf.mxu3  ;;  %v7157_v26 = vpop.f32.mrf.mxu0 }
 0x518   : > { %v7158_v62 = vadd.f32 %v7157_v26, %v7130_v58  ;;  %v11984_v58 = vld [vmem:[%s16127_s6 + $0x20] sm:$0xff]  ;;  %v11983_v17 = vld [vmem:[%s16127_s6 + $0x18] sm:$0xff]  ;;  %v11993_v26 = vld [vmem:[%s16127_s6 + $0x68] sm:$0xff] }
 0x51f   : > { %v7159_v29 = vpop.f32.mrf.mxu0 }
 0x520   : > { %v11982_v29 = vld [vmem:[%s16127_s6 + $0x10] sm:$0xff] }
 0x548   : > { %v7170_v21 = vpop.f32.mrf.mxu1 }
 0x549   : > { %v7171_v2 = vadd.f32 %v7170_v21, %v7143_v19  ;;  %v12001_v21 = vld [vmem:[%s16127_s6 + $0xa8] sm:$0xff] }
 0x54b   : > { %v7189_v39 = vmax.f32 %v7171_v2, 0.0  ;;  %v12000_v2 = vld [vmem:[%s16127_s6 + $0xa0] sm:$0xff] }
 0x550   : > { %v7172_v11 = vpop.f32.mrf.mxu1 }
 0x551   : > { %v7173_v61 = vadd.f32 %v7172_v11, %v7145_v45  ;;  %v12019_v45 = vld [vmem:[%s16127_s6 + $0x138] sm:$0xff]  ;;  %v12010_v11 = vld [vmem:[%s16127_s6 + $0xf0] sm:$0xff] }
 0x553   : > { %v7190_v33 = vmax.f32 %v7173_v61, 0.0  ;;  %v12018_v61 = vld [vmem:[%s16127_s6 + $0x130] sm:$0xff] }
 0x555   : > { %v15209_v43 = vpack.c.bf16 %v7190_v33, %v7189_v39  ;;  %v12009_v39 = vld [vmem:[%s16127_s6 + $0xe8] sm:$0xff]  ;;  %v11988_v33 = vld [vmem:[%s16127_s6 + $0x40] sm:$0xff] }
 0x558   : > { %v7175_v42 = vpop.f32.mrf.mxu1 }
 0x559   : > { %v7176_v10 = vadd.f32 %v7175_v42, %v7148_v49  ;;  %v11986_v49 = vld [vmem:[%s16127_s6 + $0x30] sm:$0xff]  ;;  %v12008_v42 = vld [vmem:[%s16127_s6 + $0xe0] sm:$0xff] }
 0x55a   : > { %8103 = vmatpush.bf16.msra.mxu1 %v11986_v49 }
 0x55b   : > { %v7191_v13 = vmax.f32 %v7176_v10, 0.0 }
 0x55e   : > { %8104 = vmatpush.bf16.msra.mxu1 %v11985_v46 }
 0x560   : > { %v7177_v30 = vpop.f32.mrf.mxu1 }
 0x561   : > { %v7178_v47 = vadd.f32 %v7177_v30, %v7150_v6 }
 0x562   : > { %8105 = vmatpush.bf16.msra.mxu1 %v11984_v58  ;;  %v12051_v58 = vld [vmem:[%s16127_s6 + $0x238] sm:$0xff] }
 0x563   : > { %v7192_v40 = vmax.f32 %v7178_v47, 0.0  ;;  %v11997_v47 = vld [vmem:[%s16127_s6 + $0x88] sm:$0xff] }
 0x565   : > { %v15214_v37 = vpack.c.bf16 %v7192_v40, %v7191_v13  ;;  %v12007_v13 = vld [vmem:[%s16127_s6 + $0xd8] sm:$0xff] }
 0x566   : > { %8106 = vmatpush.bf16.msra.mxu1 %v11983_v17  ;;  %v12015_v40 = vld [vmem:[%s16127_s6 + $0x118] sm:$0xff] }
 0x568   : > { %v7180_v15 = vpop.f32.mrf.mxu1 }
 0x569   : > { %v7181_v35 = vadd.f32 %v7180_v15, %v7153_v4  ;;  %v11995_v4 = vld [vmem:[%s16127_s6 + $0x78] sm:$0xff]  ;;  %v11996_v15 = vld [vmem:[%s16127_s6 + $0x80] sm:$0xff] }
 0x56a   : > { %8107 = vmatpush.bf16.msra.mxu1 %v11982_v29  ;;  %v12050_v29 = vld [vmem:[%s16127_s6 + $0x230] sm:$0xff] }
 0x56b   : > { %v7193_v5 = vmax.f32 %v7181_v35, 0.0  ;;  %v12006_v35 = vld [vmem:[%s16127_s6 + $0xd0] sm:$0xff] }
 0x56e   : > { %8108 = vmatpush.bf16.msra.mxu1 %v11981_v57 }
 0x570   : > { %v7182_v38 = vpop.f32.mrf.mxu1 }
 0x571   : > { %v7183_v16 = vadd.f32 %v7182_v38, %v7155_v51  ;;  %v11994_v51 = vld [vmem:[%s16127_s6 + $0x70] sm:$0xff]  ;;  %v12035_v38 = vld [vmem:[%s16127_s6 + $0x1b8] sm:$0xff] }
 0x572   : > { %8109 = vmatpush.bf16.msra.mxu1 %v11980_v44 }
 0x573   : > { %v7194_v9 = vmax.f32 %v7183_v16, 0.0  ;;  %v12014_v16 = vld [vmem:[%s16127_s6 + $0x110] sm:$0xff] }
 0x575   : > { %v7198_v22 = vpack.c.bf16 %v7194_v9, %v7193_v5  ;;  %v12024_v5 = vld [vmem:[%s16127_s6 + $0x160] sm:$0xff] }
 0x576   : > { %8158 = vmatpush.bf16.msrb.mxu1 %v12019_v45 }
 0x578   : > { %v7185_v0 = vpop.f32.mrf.mxu1 }
 0x579   : > { %v7186_v1 = vadd.f32 %v7185_v0, %v7158_v62  ;;  %v12003_v62 = vld [vmem:[%s16127_s6 + $0xb8] sm:$0xff] }
 0x57a   : > { %8159 = vmatpush.bf16.msrb.mxu1 %v12018_v61  ;;  %v12048_v61 = vld [vmem:[%s16127_s6 + $0x220] sm:$0xff] }
 0x57b   : > { %v7195_v48 = vmax.f32 %v7186_v1, 0.0 }
 0x57d   : > { %v7199_v55 = vpack.c.bf16 %v7195_v48, %v7195_v48  ;;  %v12005_v48 = vld [vmem:[%s16127_s6 + $0xc8] sm:$0xff] }
 0x57e   : > { %8160 = vmatpush.bf16.msrb.mxu1 %v12017_v3 }
 0x57f   : > { %v7214_v19 = vand.u32 %v7212_v8, %v7199_v55  ;;  %v12034_v8 = vld [vmem:[%s16127_s6 + $0x1b0] sm:$0xff]  ;;  %v12013_v55 = vld [vmem:[%s16127_s6 + $0x108] sm:$0xff] }
 0x580   : > { %v7187_v18 = vpop.f32.mrf.mxu1 }
 0x581   : > { %7220 = vmatpush.bf16.msrb.mxu2 %v7214_v19  ;;  %7249 = vmatpush.bf16.msrb.mxu3 %v7214_v19  ;;  %v12004_v18 = vld [vmem:[%s16127_s6 + $0xc0] sm:$0xff] }
 0x582   : > { %7452 = vmatpush.bf16.msra.mxu0 %v7214_v19  ;;  %8161 = vmatpush.bf16.msrb.mxu1 %v12016_v54 }
 0x585   : > { %7221 = vmatpush.bf16.msrb.mxu2 %v7198_v22  ;;  %7250 = vmatpush.bf16.msrb.mxu3 %v7198_v22 }
 0x586   : > { %7453 = vmatpush.bf16.msra.mxu0 %v7198_v22  ;;  %8162 = vmatpush.bf16.msrb.mxu1 %v12015_v40 }
 0x589   : > { %7222 = vmatpush.bf16.msrb.mxu2 %v15214_v37  ;;  %7251 = vmatpush.bf16.msrb.mxu3 %v15214_v37 }
 0x58a   : > { %7454 = vmatpush.bf16.msra.mxu0 %v15214_v37  ;;  %8163 = vmatpush.bf16.msrb.mxu1 %v12014_v16 }
 0x58d   : > { %7223 = vmatpush.bf16.msrb.mxu2 %v15209_v43  ;;  %7252 = vmatpush.bf16.msrb.mxu3 %v15209_v43 }
 0x58e   : > { %7455 = vmatpush.bf16.msra.mxu0 %v15209_v43  ;;  %8164 = vmatpush.bf16.msrb.mxu1 %v12013_v55 }
 0x590   : > { %10939 = vmatmul.msk.bf16.vlgmr.msrb.gmra.mxu2 %vm7207_vm1, %v11962_v41  ;;  %10946 = vmatmul.msk.bf16.vlgmr.msrb.gmra.mxu3 %vm7207_vm1, %v11963_v25  ;;  %v12033_v41 = vld [vmem:[%s16127_s6 + $0x1a8] sm:$0xff]  ;;  %v12043_v25 = vld [vmem:[%s16127_s6 + $0x1f8] sm:$0xff] }
 0x591   : > { %7278 = vmatpush.bf16.msra.mxu2 %v7214_v19  ;;  %7307 = vmatpush.bf16.msra.mxu3 %v7214_v19 }
 0x592   : > { %10995 = vmatmul.msk.bf16.vlgmr.msra.gmra.mxu0 %vm7207_vm1, %v11970_v60 }
 0x593   : > { %8144 = vmatpush.bf16.msrb.mxu0 %v12011_v36 }
 0x595   : > { %7279 = vmatpush.bf16.msra.mxu2 %v7198_v22  ;;  %7308 = vmatpush.bf16.msra.mxu3 %v7198_v22 }
 0x597   : > { %8145 = vmatpush.bf16.msrb.mxu0 %v12010_v11  ;;  %v12040_v11 = vld [vmem:[%s16127_s6 + $0x1e0] sm:$0xff] }
 0x599   : > { %7280 = vmatpush.bf16.msra.mxu2 %v15214_v37  ;;  %7309 = vmatpush.bf16.msra.mxu3 %v15214_v37 }
 0x59b   : > { %8146 = vmatpush.bf16.msrb.mxu0 %v12009_v39  ;;  %v12039_v39 = vld [vmem:[%s16127_s6 + $0x1d8] sm:$0xff] }
 0x59d   : > { %7281 = vmatpush.bf16.msra.mxu2 %v15209_v43  ;;  %7310 = vmatpush.bf16.msra.mxu3 %v15209_v43 }
 0x59f   : > { %8147 = vmatpush.bf16.msrb.mxu0 %v12008_v42 }
 0x5a0   : > { %10953 = vmatmul.msk.bf16.vlgmr.msra.gmra.mxu2 %vm7207_vm1, %v11964_v53  ;;  %10960 = vmatmul.msk.bf16.vlgmr.msra.gmra.mxu3 %vm7207_vm1, %v11965_v52  ;;  %v12012_v53 = vld [vmem:[%s16127_s6 + $0x100] sm:$0xff]  ;;  %v12022_v52 = vld [vmem:[%s16127_s6 + $0x150] sm:$0xff] }
 0x5a1   : > { %7336 = vmatpush.bf16.msrb.mxu2 %v7214_v19  ;;  %7365 = vmatpush.bf16.msrb.mxu3 %v7214_v19 }
 0x5a2   : > { %8165 = vmatpush.bf16.msrb.mxu1 %v12012_v53 }
 0x5a3   : > { %8148 = vmatpush.bf16.msrb.mxu0 %v12007_v13  ;;  %v12038_v13 = vld [vmem:[%s16127_s6 + $0x1d0] sm:$0xff] }
 0x5a5   : > { %7337 = vmatpush.bf16.msrb.mxu2 %v7198_v22  ;;  %7366 = vmatpush.bf16.msrb.mxu3 %v7198_v22 }
 0x5a7   : > { %8149 = vmatpush.bf16.msrb.mxu0 %v12006_v35  ;;  %v12037_v35 = vld [vmem:[%s16127_s6 + $0x1c8] sm:$0xff] }
 0x5a9   : > { %7338 = vmatpush.bf16.msrb.mxu2 %v15214_v37  ;;  %7367 = vmatpush.bf16.msrb.mxu3 %v15214_v37 }
 0x5ab   : > { %8150 = vmatpush.bf16.msrb.mxu0 %v12005_v48 }
 0x5ad   : > { %7339 = vmatpush.bf16.msrb.mxu2 %v15209_v43  ;;  %7368 = vmatpush.bf16.msrb.mxu3 %v15209_v43 }
 0x5af   : > { %8151 = vmatpush.bf16.msrb.mxu0 %v12004_v18 }
 0x5b0   : > { %10967 = vmatmul.msk.bf16.vlgmr.msrb.gmra.mxu2 %vm7207_vm1, %v11966_v12  ;;  %10974 = vmatmul.msk.bf16.vlgmr.msrb.gmra.mxu3 %vm7207_vm1, %v11967_v24 }
 0x5b1   : > { %7394 = vmatpush.bf16.msra.mxu2 %v7214_v19  ;;  %7423 = vmatpush.bf16.msra.mxu3 %v7214_v19  ;;  %v12023_v19 = vld [vmem:[%s16127_s6 + $0x158] sm:$0xff] }
 0x5b3   : > { %8200 = vmatpush.bf16.msra.mxu0 %v12043_v25 }
 0x5b5   : > { %7395 = vmatpush.bf16.msra.mxu2 %v7198_v22  ;;  %7424 = vmatpush.bf16.msra.mxu3 %v7198_v22 }
 0x5b9   : > { %7396 = vmatpush.bf16.msra.mxu2 %v15214_v37  ;;  %7425 = vmatpush.bf16.msra.mxu3 %v15214_v37  ;;  %v12025_v37 = vld [vmem:[%s16127_s6 + $0x168] sm:$0xff] }
 0x5bd   : > { %7397 = vmatpush.bf16.msra.mxu2 %v15209_v43  ;;  %7426 = vmatpush.bf16.msra.mxu3 %v15209_v43  ;;  %v12027_v43 = vld [vmem:[%s16127_s6 + $0x178] sm:$0xff] }
 0x5c0   : > { %10981 = vmatmul.msk.bf16.vlgmr.msra.gmra.mxu2 %vm7207_vm1, %v11968_v14  ;;  %10988 = vmatmul.msk.bf16.vlgmr.msra.gmra.mxu3 %vm7207_vm1, %v11969_v27  ;;  %vm489_vm1 = vmand %vm16139_vm12, %vm479_vm7 }
 0x5c1   : > { %8116 = vmatpush.bf16.msrb.mxu2 %v11995_v4  ;;  %8130 = vmatpush.bf16.msrb.mxu3 %v12003_v62  ;;  %v12021_v62 = vld [vmem:[%s16127_s6 + $0x148] sm:$0xff]  ;;  %vm504_vm12 = vmand %vm503_vm10, %vm494_vm14  ;;  %vm8270_vm14 = vcmask 519425  }
 0x5c2   : > { %vm8271_vm5 = vmand %vm8270_vm14, %vm8244_vm0  ;;  %vm8778_vm14 = vcmask 1042432  }
 0x5c3   : > { %vm8283_vm10 = vmand %vm8282_vm8, %vm8244_vm0  ;;  %vm16142_vm8 = vcmask 257026  }
 0x5c5   : > { %8117 = vmatpush.bf16.msrb.mxu2 %v11994_v51  ;;  %8131 = vmatpush.bf16.msrb.mxu3 %v12002_v20  ;;  %v12032_v51 = vld [vmem:[%s16127_s6 + $0x1a0] sm:$0xff]  ;;  %v12041_v20 = vld [vmem:[%s16127_s6 + $0x1e8] sm:$0xff] }
 0x5c9   : > { %8118 = vmatpush.bf16.msrb.mxu2 %v11993_v26  ;;  %8132 = vmatpush.bf16.msrb.mxu3 %v12001_v21  ;;  %v12042_v26 = vld [vmem:[%s16127_s6 + $0x1f0] sm:$0xff] }
 0x5ca   : > { %8201 = vmatpush.bf16.msra.mxu0 %v12042_v26 }
 0x5cd   : > { %8119 = vmatpush.bf16.msrb.mxu2 %v11992_v56  ;;  %8133 = vmatpush.bf16.msrb.mxu3 %v12000_v2  ;;  %v12031_v56 = vld [vmem:[%s16127_s6 + $0x198] sm:$0xff]  ;;  %v12030_v2 = vld [vmem:[%s16127_s6 + $0x190] sm:$0xff] }
 0x5ce   : > { %8202 = vmatpush.bf16.msra.mxu0 %v12041_v20 }
 0x5d1   : > { %8120 = vmatpush.bf16.msrb.mxu2 %v11991_v28  ;;  %8134 = vmatpush.bf16.msrb.mxu3 %v11999_v23  ;;  %v12020_v28 = vld [vmem:[%s16127_s6 + $0x140] sm:$0xff]  ;;  %v12029_v23 = vld [vmem:[%s16127_s6 + $0x188] sm:$0xff] }
 0x5d2   : > { %8203 = vmatpush.bf16.msra.mxu0 %v12040_v11 }
 0x5d5   : > { %8121 = vmatpush.bf16.msrb.mxu2 %v11990_v50  ;;  %8135 = vmatpush.bf16.msrb.mxu3 %v11998_v32  ;;  %v12049_v50 = vld [vmem:[%s16127_s6 + $0x228] sm:$0xff] }
 0x5d6   : > { %8204 = vmatpush.bf16.msra.mxu0 %v12039_v39 }
 0x5d9   : > { %8122 = vmatpush.bf16.msrb.mxu2 %v11989_v63  ;;  %8136 = vmatpush.bf16.msrb.mxu3 %v11997_v47  ;;  %v12028_v47 = vld [vmem:[%s16127_s6 + $0x180] sm:$0xff] }
 0x5da   : > { %8205 = vmatpush.bf16.msra.mxu0 %v12038_v13 }
 0x5dd   : > { %8123 = vmatpush.bf16.msrb.mxu2 %v11988_v33  ;;  %8137 = vmatpush.bf16.msrb.mxu3 %v11996_v15  ;;  %v12046_v15 = vld [vmem:[%s16127_s6 + $0x210] sm:$0xff] }
 0x5de   : > { %8206 = vmatpush.bf16.msra.mxu0 %v12037_v35 }
 0x5e1   : > { %8172 = vmatpush.bf16.msra.mxu2 %v12027_v43  ;;  %8186 = vmatpush.bf16.msra.mxu3 %v12035_v38 }
 0x5e5   : > { %8173 = vmatpush.bf16.msra.mxu2 %v12026_v34  ;;  %8187 = vmatpush.bf16.msra.mxu3 %v12034_v8  ;;  %v12047_v34 = vld [vmem:[%s16127_s6 + $0x218] sm:$0xff] }
 0x5e9   : > { %8174 = vmatpush.bf16.msra.mxu2 %v12025_v37  ;;  %8188 = vmatpush.bf16.msra.mxu3 %v12033_v41 }
 0x5ed   : > { %8175 = vmatpush.bf16.msra.mxu2 %v12024_v5  ;;  %8189 = vmatpush.bf16.msra.mxu3 %v12032_v51 }
 0x5f1   : > { %8176 = vmatpush.bf16.msra.mxu2 %v12023_v19  ;;  %8190 = vmatpush.bf16.msra.mxu3 %v12031_v56 }
 0x5f5   : > { %8177 = vmatpush.bf16.msra.mxu2 %v12022_v52  ;;  %8191 = vmatpush.bf16.msra.mxu3 %v12030_v2 }
 0x5f9   : > { %8178 = vmatpush.bf16.msra.mxu2 %v12021_v62  ;;  %8192 = vmatpush.bf16.msra.mxu3 %v12029_v23  ;;  %v490_v23 = vld [vmem:[#allocation6 + $0x8] sm:$0x3] }
 0x5fd   : > { %8179 = vmatpush.bf16.msra.mxu2 %v12020_v28  ;;  %8193 = vmatpush.bf16.msra.mxu3 %v12028_v47 }
 0x60f   : > { %v7457_v45 = vpop.f32.mrf.mxu0 }
 0x610   : > { %v7462_v63 = vpack.c.bf16 %v7457_v45, %v7457_v45 }
 0x612   : > { %7464 = vst [vmem:[#allocation5 + $0x20] sm:$0xf] %v7462_v63 }
 0x613   : > { %v7225_v7 = vpop.f32.mrf.mxu2  ;;  %v7254_v6 = vpop.f32.mrf.mxu3 }
 0x614   : > { %v7230_v10 = vpack.c.bf16 %v7225_v7, %v7225_v7  ;;  %v7259_v30 = vpack.c.bf16 %v7254_v6, %v7254_v6 }
 0x616   : > { %7232 = vst [vmem:[#allocation5] sm:$0xf] %v7230_v10 }
 0x617   : > { %7261 = vst [vmem:[#allocation5 + $0x4] sm:$0xf] %v7259_v30  ;;  %v7459_v30 = vpop.f32.mrf.mxu0 }
 0x618   : > { %v7463_v37 = vpack.c.bf16 %v7459_v30, %v7459_v30 }
 0x61a   : > { %7465 = vst [vmem:[#allocation5 + $0x44] sm:$0xf] %v7463_v37 }
 0x61b   : > { %v7227_v9 = vpop.f32.mrf.mxu2  ;;  %v7256_v22 = vpop.f32.mrf.mxu3 }
 0x61c   : > { %v7231_v0 = vpack.c.bf16 %v7227_v9, %v7227_v9  ;;  %v7260_v1 = vpack.c.bf16 %v7256_v22, %v7256_v22  ;;  %v12045_v9 = vld [vmem:[%s16127_s6 + $0x208] sm:$0xff] }
 0x61d   : > { %v10998_v24 = vld [vmem:[#allocation5] sm:$0xf] }
 0x61e   : > { %7233 = vst [vmem:[#allocation5 + $0x24] sm:$0xf] %v7231_v0  ;;  %v11971_v46 = vld [vmem:[#allocation5 + $0x4] sm:$0xf]  ;;  %v12036_v0 = vld [vmem:[%s16127_s6 + $0x1c0] sm:$0xff] }
 0x61f   : > { %7262 = vst [vmem:[#allocation5 + $0x28] sm:$0xf] %v7260_v1  ;;  %v12044_v1 = vld [vmem:[%s16127_s6 + $0x200] sm:$0xff]  ;;  %8207 = vmatpush.bf16.msra.mxu0 %v12036_v0 }
 0x623   : > { %v7283_v60 = vpop.f32.mrf.mxu2  ;;  %v7312_v49 = vpop.f32.mrf.mxu3 }
 0x624   : > { %v7288_v31 = vpack.c.bf16 %v7283_v60, %v7283_v60  ;;  %v7317_v12 = vpack.c.bf16 %v7312_v49, %v7312_v49 }
 0x625   : > { %v11975_v4 = vld [vmem:[#allocation5 + $0x20] sm:$0xf0] }
 0x626   : > { %7290 = vst [vmem:[#allocation5 + $0x8] sm:$0xf] %v7288_v31  ;;  %v11000_v14 = vld [vmem:[#allocation5 + $0x24] sm:$0xf0]  ;;  %v10999_v27 = vor.u32 %v11975_v4, %v10998_v24  ;;  %v11030_v24 = vld [vmem:[#allocation5 + $0x20] sm:$0xf] }
 0x627   : > { %7319 = vst [vmem:[#allocation5 + $0xc] sm:$0xf] %v7317_v12  ;;  %v11003_v17 = vor.u32 %v11971_v46, %v11000_v14  ;;  %v11979_v4 = vld [vmem:[#allocation5 + $0x40] sm:$0xf0] }
 0x628   : > { %8110 = vmatmul.bf16.vlgmr.msra.gmra.mxu1 %v10999_v27  ;;  %v11031_v14 = vor.u32 %v11979_v4, %v11030_v24 }
 0x629   : > { %8124 = vmatmul.bf16.vlgmr.msrb.gmra.mxu2 %v11003_v17  ;;  %8214 = vmatpush.bf16.msra.mxu1 %v12051_v58 }
 0x62b   : > { %v7285_v57 = vpop.f32.mrf.mxu2  ;;  %v7314_v36 = vpop.f32.mrf.mxu3 }
 0x62c   : > { %v7289_v21 = vpack.c.bf16 %v7285_v57, %v7285_v57  ;;  %v7318_v44 = vpack.c.bf16 %v7314_v36, %v7314_v36 }
 0x62d   : > { %8215 = vmatpush.bf16.msra.mxu1 %v12050_v29  ;;  %v11006_v42 = vld [vmem:[#allocation5 + $0x8] sm:$0xf] }
 0x62e   : > { %7291 = vst [vmem:[#allocation5 + $0x2c] sm:$0xf] %v7289_v21  ;;  %v11972_v43 = vld [vmem:[#allocation5 + $0xc] sm:$0xf]  ;;  %v12217_v21 = vld [vmem:[%s16128_s7] ss:$0 sm:$0xff] }
 0x62f   : > { %7320 = vst [vmem:[#allocation5 + $0x30] sm:$0xf] %v7318_v44 }
 0x631   : > { %8216 = vmatpush.bf16.msra.mxu1 %v12049_v50 }
 0x633   : > { %v7341_v33 = vpop.f32.mrf.mxu2  ;;  %v7370_v32 = vpop.f32.mrf.mxu3 }
 0x634   : > { %v7346_v3 = vpack.c.bf16 %v7341_v33, %v7341_v33  ;;  %v7375_v7 = vpack.c.bf16 %v7370_v32, %v7370_v32 }
 0x635   : > { %v11976_v54 = vld [vmem:[#allocation5 + $0x28] sm:$0xf0]  ;;  %8217 = vmatpush.bf16.msra.mxu1 %v12048_v61 }
 0x636   : > { %7348 = vst [vmem:[#allocation5 + $0x10] sm:$0xf] %v7346_v3  ;;  %v11007_v6 = vor.u32 %v11976_v54, %v11006_v42  ;;  %v11008_v10 = vld [vmem:[#allocation5 + $0x2c] sm:$0xf0]  ;;  %v485_v61 = vld [vmem:[#allocation6] sm:$0x33] }
 0x637   : > { %v11011_v40 = vor.u32 %v11972_v43, %v11008_v10  ;;  %7377 = vst [vmem:[#allocation5 + $0x14] sm:$0xf] %v7375_v7  ;;  %v486_v3 = vsel %vm484_vm15, 0, %v485_v61  ;;  %v491_v42 = vsel %vm489_vm1, 0, %v490_v23  ;;  %v500_v54 = vld [vmem:[#allocation6] sm:$0x88]  ;;  %vm499_vm15 = vmor %vm498_vm4, %vm495_vm6 }
 0x638   : > { %8138 = vmatmul.bf16.vlgmr.msrb.gmra.mxu3 %v11007_v6  ;;  %487 = vst [vmem:[#allocation6] sm:$0x33] %v486_v3  ;;  %v501_v10 = vsel %vm499_vm15, 0, %v500_v54  ;;  %vm517_vm1 = vmor %vm516_vm13, %vm515_vm11  ;;  %vm8254_vm6 = vcmask 257025   ;;  %vm8289_vm11 = vcmask 783364  }
 0x639   : > { %8152 = vmatmul.bf16.vlgmr.msrb.gmra.mxu0 %v11011_v40  ;;  %8218 = vmatpush.bf16.msra.mxu1 %v12047_v34  ;;  %492 = vst [vmem:[#allocation6 + $0x8] sm:$0x3] %v491_v42  ;;  %v505_v34 = vld [vmem:[#allocation6 + $0x8] sm:$0x8]  ;;  %vm8255_vm4 = vmand %vm8254_vm6, %vm8244_vm0  ;;  %vm8652_vm13 = vsmask.f32 3328 }
 0x63a   : > { %502 = vst [vmem:[#allocation6] sm:$0x88] %v501_v10  ;;  %v506_v13 = vsel %vm504_vm12, 0, %v505_v34  ;;  %vm15522_vm15 = vmor %vm8289_vm11, %vm478_vm2  ;;  %vm16144_vm2 = vcmask 519170   ;;  %vm8760_vm6 = vcmask 1044484   ;;  %vm8302_vm11 = vcmask 785414  }
 0x63b   : > { %v7343_v38 = vpop.f32.mrf.mxu2  ;;  %v7372_v5 = vpop.f32.mrf.mxu3  ;;  %507 = vst [vmem:[#allocation6 + $0x8] sm:$0x8] %v506_v13 }
 0x63c   : > { %v7347_v16 = vpack.c.bf16 %v7343_v38, %v7343_v38  ;;  %v7376_v22 = vpack.c.bf16 %v7372_v5, %v7372_v5  ;;  %512 = vst.msk [vmem:[#allocation6] sm:$0xf] %vm511_vm9, %v12287_v59  ;;  %vm8243_vm9 = vcmask 1044225  }
 0x63d   : > { %8219 = vmatpush.bf16.msra.mxu1 %v12046_v15  ;;  %v11014_v18 = vld [vmem:[#allocation5 + $0x10] sm:$0xf]  ;;  %518 = vst.msk [vmem:[#allocation6 + $0x4] sm:$0xff] %vm517_vm1, %v12287_v59  ;;  %vm8245_vm12 = vmand %vm8243_vm9, %vm8244_vm0  ;;  %vm8653_vm1 = vsmask.f32 7440  ;;  %vm16141_vm9 = vcmask 254976  }
 0x63e   : > { %7349 = vst [vmem:[#allocation5 + $0x34] sm:$0xf] %v7347_v16  ;;  %v11973_v19 = vld [vmem:[#allocation5 + $0x14] sm:$0xf]  ;;  %vm15532_vm0 = vmor %vm8652_vm13, %vm8653_vm1  ;;  %vm16145_vm13 = vcmask 785408  }
 0x63f   : > { %7378 = vst [vmem:[#allocation5 + $0x38] sm:$0xf] %v7376_v22 }
 0x641   : > { %8220 = vmatpush.bf16.msra.mxu1 %v12045_v9 }
 0x643   : > { %v7399_v48 = vpop.f32.mrf.mxu2  ;;  %v7428_v55 = vpop.f32.mrf.mxu3 }
 0x644   : > { %v7404_v8 = vpack.c.bf16 %v7399_v48, %v7399_v48  ;;  %v7433_v25 = vpack.c.bf16 %v7428_v55, %v7428_v55  ;;  %v8256_v4 = vld [vmem:[#allocation6 + $0x4] sm:$0xe]  ;;  %v8381_v61 = vld [vmem:[#allocation6 + $0x8] sm:$0x7] }
 0x645   : > { %v11977_v41 = vld [vmem:[#allocation5 + $0x30] sm:$0xf0]  ;;  %8221 = vmatpush.bf16.msra.mxu1 %v12044_v1  ;;  %v8392_v3 = vshrl.u32 %v8381_v61, 16 }
 0x646   : > { %7406 = vst [vmem:[#allocation5 + $0x18] sm:$0xf] %v7404_v8  ;;  %v11015_v53 = vor.u32 %v11977_v41, %v11014_v18  ;;  %v11016_v52 = vld [vmem:[#allocation5 + $0x34] sm:$0xf0] }
 0x647   : > { %7435 = vst [vmem:[#allocation5 + $0x1c] sm:$0xf] %v7433_v25  ;;  %v11019_v60 = vor.u32 %v11973_v19, %v11016_v52 }
 0x648   : > { %8166 = vmatmul.bf16.vlgmr.msrb.gmra.mxu1 %v11015_v53 }
 0x649   : > { %8180 = vmatmul.bf16.vlgmr.msra.gmra.mxu2 %v11019_v60 }
 0x64b   : > { %v7401_v31 = vpop.f32.mrf.mxu2  ;;  %v7430_v46 = vpop.f32.mrf.mxu3 }
 0x64c   : > { %v7405_v49 = vpack.c.bf16 %v7401_v31, %v7401_v31  ;;  %v7434_v12 = vpack.c.bf16 %v7430_v46, %v7430_v46 }
 0x64d   : > { %v11022_v27 = vld [vmem:[#allocation5 + $0x18] sm:$0xf] }
 0x64e   : > { %7407 = vst [vmem:[#allocation5 + $0x3c] sm:$0xf] %v7405_v49  ;;  %v11974_v51 = vld [vmem:[#allocation5 + $0x1c] sm:$0xf] }
 0x64f   : > { %7436 = vst [vmem:[#allocation5 + $0x40] sm:$0xf] %v7434_v12 }
 0x655   : > { %v11978_v58 = vld [vmem:[#allocation5 + $0x38] sm:$0xf0] }
 0x656   : > { %v11023_v17 = vor.u32 %v11978_v58, %v11022_v27  ;;  %v11024_v26 = vld [vmem:[#allocation5 + $0x3c] sm:$0xf0] }
 0x657   : > { %v11027_v62 = vor.u32 %v11974_v51, %v11024_v26 }
 0x658   : > { %8194 = vmatmul.bf16.vlgmr.msra.gmra.mxu3 %v11023_v17  ;;  %8222 = vmatmul.bf16.vlgmr.msra.gmra.mxu1 %v11031_v14 }
 0x659   : > { %8208 = vmatmul.bf16.vlgmr.msra.gmra.mxu0 %v11027_v62 }
 0x6a5   : > { %v8111_v29 = vpop.f32.mrf.mxu1 }
 0x6a6   : > { %v8112_v50 = vadd.f32 %v12217_v21, %v8111_v29 }
 0x6ac   : > { %v8125_v20 = vpop.f32.mrf.mxu2 }
 0x6ad   : > { %v8113_v56 = vpop.f32.mrf.mxu1  ;;  %v8126_v45 = vadd.f32 %v8125_v20, %v8112_v50  ;;  %v8246_v50 = vld [vmem:[#allocation6] sm:$0xe] }
 0x6ae   : > { %v8114_v43 = vadd.f32 %v12217_v21, %v8113_v56  ;;  %v8321_v21 = vld [vmem:[#allocation6 + $0x8] sm:$0x3] }
 0x6b4   : > { %v8127_v44 = vpop.f32.mrf.mxu2 }
 0x6b5   : > { %v8128_v7 = vadd.f32 %v8127_v44, %v8114_v43  ;;  %v8325_v44 = vrot.slane %v8321_v21, 6  ;;  %v8523_v43 = vld [vmem:[#allocation6 + $0x8] sm:$0xe] }
 0x6b6   : > { %v8153_v28 = vpop.f32.mrf.mxu0  ;;  %v8534_v42 = vshrl.u32 %v8523_v43, 16  ;;  %v8537_v54 = vshll.u32 %v8523_v43, 16 }
 0x6b8   : > { %v8536_v10 = vrot.slane %v8534_v42, 5 }
 0x6bb   : > { %v8139_v57 = vpop.f32.mrf.mxu3 }
 0x6bc   : > { %v8140_v2 = vadd.f32 %v8139_v57, %v8126_v45 }
 0x6be   : > { %v8155_v63 = vpop.f32.mrf.mxu0  ;;  %v8154_v32 = vadd.f32 %v8153_v28, %v8140_v2 }
 0x6c3   : > { %v8141_v11 = vpop.f32.mrf.mxu3 }
 0x6c4   : > { %v8142_v47 = vadd.f32 %v8141_v11, %v8128_v7  ;;  %v8475_v11 = vld [vmem:[#allocation6 + $0x8] sm:$0x6]  ;;  %v8394_v7 = vrot.slane %v8392_v3, 4 }
 0x6c5   : > { %v8167_v36 = vpop.f32.mrf.mxu1  ;;  %v8479_v23 = vrot.slane %v8475_v11, 7 }
 0x6c6   : > { %v8168_v6 = vadd.f32 %v8167_v36, %v8154_v32  ;;  %v8156_v35 = vadd.f32 %v8155_v63, %v8142_v47  ;;  %v8306_v36 = vld [vmem:[#allocation6 + $0x8] sm:$0x3]  ;;  %v8395_v32 = vshll.u32 %v8381_v61, 16 }
 0x6c7   : > { %v8553_v63 = vld [vmem:[#allocation6 + $0x8] sm:$0xe] }
 0x6cc   : > { %v8181_v33 = vpop.f32.mrf.mxu2 }
 0x6cd   : > { %v8169_v39 = vpop.f32.mrf.mxu1  ;;  %v8182_v30 = vadd.f32 %v8181_v33, %v8168_v6  ;;  %v8565_v33 = vshll.u32 %v8553_v63, 16  ;;  %v8397_v6 = vrot.slane %v8395_v32, 5 }
 0x6ce   : > { %v8170_v9 = vadd.f32 %v8169_v39, %v8156_v35  ;;  %v8562_v39 = vshrl.u32 %v8553_v63, 16  ;;  %v8593_v35 = vld [vmem:[#allocation6 + $0x8] sm:$0xc] }
 0x6cf   : > { %v8398_v13 = vor.u32 %v8397_v6, %v8394_v7  ;;  %v12143_v6 = vld [vmem:[%s16129_s8 + $0x270] sm:$0xff] }
 0x6d0   : > { %v8564_v34 = vrot.slane %v8562_v39, 7 }
 0x6d2   : > { %v8567_v47 = vor.u32 %v8565_v33, %v8564_v34 }
 0x6d4   : > { %v8183_v5 = vpop.f32.mrf.mxu2 }
 0x6d5   : > { %v8223_v16 = vpop.f32.mrf.mxu1  ;;  %v8184_v0 = vadd.f32 %v8183_v5, %v8170_v9 }
 0x6d6   : > { %v8209_v37 = vpop.f32.mrf.mxu0 }
 0x6db   : > { %v8195_v40 = vpop.f32.mrf.mxu3 }
 0x6dc   : > { %v8196_v15 = vadd.f32 %v8195_v40, %v8182_v30  ;;  %v8539_v30 = vrot.slane %v8537_v54, 6 }
 0x6dd   : > { %v8225_v31 = vpop.f32.mrf.mxu1 }
 0x6de   : > { %v8210_v38 = vadd.f32 %v8209_v37, %v8196_v15  ;;  %v8211_v19 = vpop.f32.mrf.mxu0  ;;  %v8540_v40 = vor.u32 %v8539_v30, %v8536_v10  ;;  %v8399_v37 = vrot.slane %v8398_v13, 4 }
 0x6e0   : > { %v8224_v22 = vadd.f32 %v8223_v16, %v8210_v38  ;;  %v8541_v15 = vrot.slane %v8540_v40, 4  ;;  %v11325_v38 = vrot.slane %v8593_v35, 10 }
 0x6e2   : > { %v8228_v1 = vmax.f32 %v8224_v22, 0.0 }
 0x6e3   : > { %v8197_v48 = vpop.f32.mrf.mxu3 }
 0x6e4   : > { %v8230_v8 = vpack.c.bf16 %v8228_v1, %v8228_v1  ;;  %v8198_v55 = vadd.f32 %v8197_v48, %v8184_v0 }
 0x6e6   : > { %v8233_v18 = vshrl.u32 %v8230_v8, 16  ;;  %v8236_v41 = vshll.u32 %v8230_v8, 16  ;;  %v8212_v25 = vadd.f32 %v8211_v19, %v8198_v55 }
 0x6e8   : > { %v8235_v53 = vrot.slane %v8233_v18, 6  ;;  %v8238_v52 = vrot.slane %v8236_v41, 7  ;;  %v8249_v59 = vrot.slane %v8233_v18, 4  ;;  %v8250_v60 = vrot.slane %v8236_v41, 5 }
 0x6e9   : > { %v8226_v49 = vadd.f32 %v8225_v31, %v8212_v25 }
 0x6ea   : > { %v8251_v46 = vor.u32 %v8250_v60, %v8249_v59  ;;  %v8239_v12 = vor.u32 %v8238_v52, %v8235_v53 }
 0x6eb   : > { %v8229_v24 = vmax.f32 %v8226_v49, 0.0 }
 0x6ec   : > { %v8252_v14 = vrot.slane %v8251_v46, 4  ;;  %8240 = vrot.lane.b32.xlu2 %v8239_v12, %s12288_s0 }
 0x6ed   : > { %v8231_v27 = vpack.c.bf16 %v8229_v24, %v8229_v24 }
 0x6ee   : > { %v8257_v58 = vsel %vm8255_vm4, %v8252_v14, %v8256_v4  ;;  %vm15543_vm4 = vmor %vm413_vm3, %vm8760_vm6  ;;  %vm8626_vm3 = vsmask.f32 5392  ;;  %vm8443_vm6 = vcmask 1041920  }
 0x6ef   : > { %v8260_v51 = vshrl.u32 %v8231_v27, 16  ;;  %v8263_v17 = vshll.u32 %v8231_v27, 16  ;;  %8258 = vst [vmem:[#allocation6 + $0x4] sm:$0xe] %v8257_v58 }
 0x6f1   : > { %v8262_v26 = vrot.slane %v8260_v51, 6  ;;  %v8265_v62 = vrot.slane %v8263_v17, 7  ;;  %v8275_v29 = vrot.slane %v8260_v51, 4  ;;  %v8276_v56 = vrot.slane %v8263_v17, 5  ;;  %v8721_v51 = vld [vmem:[#allocation6 + $0x8] sm:$0xc] }
 0x6f2   : > { %v8723_v17 = vld [vmem:[#allocation6 + $0x14] sm:$0x1] }
 0x6f3   : > { %v8266_v20 = vor.u32 %v8265_v62, %v8262_v26  ;;  %v8277_v57 = vor.u32 %v8276_v56, %v8275_v29 }
 0x6f4   : > { %8311 = vrot.lane.b32.xlu2 %v8306_v36, %s16167_s19  ;;  %v8742_v36 = vshll.u32 %v8721_v51, 16 }
 0x6f5   : > { %8267 = vrot.lane.b32.xlu1 %v8266_v20, %s12289_s20  ;;  %v8278_v28 = vrot.slane %v8277_v57, 4  ;;  %v8739_v20 = vshrl.u32 %v8721_v51, 16 }
 0x6f6   : > { %v8272_v5 = vld [vmem:[#allocation6 + $0x4] sm:$0xe]  ;;  %v8744_v11 = vrot.slane %v8742_v36, 5  ;;  %v8678_v36 = vld [vmem:[#allocation6 + $0x8] sm:$0xc] }
 0x6f7   : > { %8279 = vrot.lane.b32.xlu0 %v8278_v28, %s16167_s19 }
 0x6fc   : > { %8570 = vrot.lane.b32.xlu2 %v8567_v47, %s16167_s19 }
 0x6fd   : > { %8328 = vrot.lane.b32.xlu1 %v8325_v44, %s12289_s20  ;;  %v8748_v44 = vshll.u32 %v8723_v17, 16 }
 0x6ff   : > { %8544 = vrot.lane.b32.xlu0 %v8541_v15, %s12288_s0  ;;  %v8750_v32 = vrot.slane %v8748_v44, 5  ;;  %v12072_v44 = vld [vmem:[%s16129_s8 + $0x38] sm:$0xff] }
 0x700   : > { %9712 = vmatpush.bf16.msrb.mxu2 %v12072_v44 }
 0x704   : > { %8602 = vrot.lane.b32.xlu2 %v11325_v38, %s16167_s19 }
 0x705   : > { %8482 = vrot.lane.b32.xlu1 %v8479_v23, %s12288_s0 }
 0x70d   : > { %8402 = vrot.lane.b32.xlu1 %v8399_v37, %s12289_s20 }
 0x746   : > { %v8241_v45 = vpop.permute.xlu2 %8240 }
 0x747   : > { %v8247_v2 = vsel %vm8245_vm12, %v8241_v45, %v8246_v50  ;;  %v8741_v50 = vrot.slane %v8739_v20, 4  ;;  %vm15559_vm12 = vmor %vm479_vm7, %vm8626_vm3  ;;  %vm16143_vm3 = vcmask 261120  }
 0x748   : > { %8248 = vst [vmem:[#allocation6] sm:$0xe] %v8247_v2 }
 0x749   : > { %v8745_v43 = vor.u32 %v8744_v11, %v8741_v50 }
 0x74b   : > { %v8746_v34 = vrot.slane %v8745_v43, 4  ;;  %v8699_v43 = vshll.u32 %v8678_v36, 16 }
 0x74d   : > { %v8751_v40 = vsel %vm15532_vm0, %v8746_v34, %v8750_v32  ;;  %v12075_v32 = vld [vmem:[%s16129_s8 + $0x50] sm:$0xff] }
 0x74e   : > { %8755 = vst.msk [vmem:[#allocation7 + $0x5c] sm:$0xc] %vm16144_vm2, %v8751_v40 }
 0x767   : > { %v8268_v16 = vpop.permute.xlu1 %8267 }
 0x768   : > { %v8273_v9 = vsel %vm8271_vm5, %v8268_v16, %v8272_v5  ;;  %vm8779_vm5 = vcmask 1046532  }
 0x769   : > { %8274 = vst [vmem:[#allocation6 + $0x4] sm:$0xe] %v8273_v9  ;;  %v8280_v22 = vpop.permute.xlu0 %8279  ;;  %vm15570_vm7 = vmor %vm8778_vm14, %vm8779_vm5  ;;  %vm16183_vm5 = vcmask 517120  }
 0x770   : > { %v8284_v0 = vld [vmem:[#allocation6 + $0x4] sm:$0xe] }
 0x771   : > { %v8285_v1 = vsel %vm8283_vm10, %v8280_v22, %v8284_v0  ;;  %v8794_v0 = vld [vmem:[#allocation6 + $0x8] sm:$0x8]  ;;  %vm8301_vm10 = vcmask 1043458  }
 0x772   : > { %8286 = vst [vmem:[#allocation6 + $0x4] sm:$0xe] %v8285_v1  ;;  %v8796_v1 = vld [vmem:[#allocation6 + $0x14] sm:$0x1]  ;;  %vm15670_vm1 = vmor %vm8302_vm11, %vm8301_vm10  ;;  %vm8374_vm10 = vcmask 1044226   ;;  %vm8375_vm11 = vcmask 1047558  }
 0x779   : > { %v8305_v48 = vld [vmem:[#allocation6] sm:$0x33]  ;;  %v8592_v41 = vld [vmem:[#allocation6] sm:$0xcc] }
 0x77a   : > { %v8320_v8 = vld [vmem:[#allocation6] sm:$0x33]  ;;  %8309 = vrot.lane.b32.xlu1 %v8305_v48, %s16167_s19  ;;  %v11324_v49 = vrot.slane %v8592_v41, 10  ;;  %v8650_v13 = vld [vmem:[#allocation6] sm:$0xcc] }
 0x77b   : > { %v8292_v55 = vld [vmem:[#allocation6] sm:$0x33]  ;;  %v8324_v19 = vrot.slane %v8320_v8, 6  ;;  %v8677_v15 = vld [vmem:[#allocation6] sm:$0xcc]  ;;  %v8656_v16 = vshrl.u32 %v8650_v13, 16 }
 0x77c   : > { %v8294_v18 = vrot.slane %v8292_v55, 6  ;;  %v8359_v25 = vld [vmem:[#allocation6] sm:$0x77]  ;;  %v8659_v5 = vshll.u32 %v8650_v13, 16  ;;  %v8682_v8 = vshrl.u32 %v8677_v15, 16  ;;  %v8685_v55 = vshll.u32 %v8677_v15, 16 }
 0x77d   : > { %8326 = vrot.lane.b32.xlu0 %v8324_v19, %s12289_s20  ;;  %v8380_v53 = vld [vmem:[#allocation6] sm:$0x77]  ;;  %v8361_v46 = vshrl.u32 %v8359_v25, 16  ;;  %v8364_v12 = vshll.u32 %v8359_v25, 16  ;;  %v11329_v19 = vrot.slane %v8794_v0, 11  ;;  %v12146_v25 = vld [vmem:[%s16129_s8 + $0x288] sm:$0xff] }
 0x77e   : > { %8295 = vrot.lane.b32.xlu2 %v8294_v18, %s12288_s0  ;;  %v8383_v52 = vshrl.u32 %v8380_v53, 16  ;;  %v8386_v59 = vshll.u32 %v8380_v53, 16  ;;  %v8474_v60 = vld [vmem:[#allocation6] sm:$0x66]  ;;  %v8807_v18 = vrot.slane %v8796_v1, 7 }
 0x77f   : > { %v8433_v31 = vld [vmem:[#allocation6] sm:$0x66]  ;;  %v8478_v24 = vrot.slane %v8474_v60, 7  ;;  %v8363_v26 = vrot.slane %v8361_v46, 6  ;;  %v8366_v62 = vrot.slane %v8364_v12, 7 }
 0x780   : > { %v11320_v4 = vrot.slane %v8433_v31, 9  ;;  %v8385_v14 = vrot.slane %v8383_v52, 4  ;;  %v8388_v27 = vrot.slane %v8386_v59, 5  ;;  %v8337_v58 = vld [vmem:[#allocation6] sm:$0x77]  ;;  %v8658_v52 = vrot.slane %v8656_v16, 4 }
 0x781   : > { %v8552_v29 = vld [vmem:[#allocation6] sm:$0xee]  ;;  %v8339_v56 = vshrl.u32 %v8337_v58, 16  ;;  %v8342_v21 = vshll.u32 %v8337_v58, 16  ;;  %v8367_v45 = vor.u32 %v8366_v62, %v8363_v26  ;;  %v8651_v41 = vld [vmem:[#allocation6 + $0xc] sm:$0x11]  ;;  %v8808_v31 = vsel %vm15543_vm4, %v11329_v19, %v8807_v18 }
 0x782   : > { %8600 = vrot.lane.b32.xlu1 %v11324_v49, %s16167_s19  ;;  %v8448_v57 = vld [vmem:[#allocation6] sm:$0x66]  ;;  %v8389_v28 = vor.u32 %v8388_v27, %v8385_v14  ;;  %v8555_v2 = vshrl.u32 %v8552_v29, 16  ;;  %v8558_v10 = vshll.u32 %v8552_v29, 16  ;;  %v8661_v59 = vrot.slane %v8659_v5, 5 }
 0x783   : > { %v8450_v61 = vrot.slane %v8448_v57, 7  ;;  %v8341_v23 = vrot.slane %v8339_v56, 4  ;;  %v8522_v39 = vld [vmem:[#allocation6] sm:$0xee]  ;;  %v8344_v3 = vrot.slane %v8342_v21, 5  ;;  %v8687_v14 = vrot.slane %v8685_v55, 7 }
 0x784   : > { %v8390_v33 = vrot.slane %v8389_v28, 4  ;;  %v8287_v42 = vld [vmem:[#allocation6] sm:$0x33]  ;;  %v8557_v54 = vrot.slane %v8555_v2, 7  ;;  %v8525_v7 = vshrl.u32 %v8522_v39, 16  ;;  %v8528_v47 = vshll.u32 %v8522_v39, 16 }
 0x785   : > { %8480 = vrot.lane.b32.xlu0 %v8478_v24, %s12288_s0  ;;  %8291 = vst.msk [vmem:[#allocation7] sm:$0x33] %vm15522_vm15, %v8287_v42  ;;  %v8345_v30 = vor.u32 %v8344_v3, %v8341_v23  ;;  %v8584_v35 = vld [vmem:[#allocation6] sm:$0xcc]  ;;  %v8679_v60 = vld [vmem:[#allocation6 + $0xc] sm:$0x11]  ;;  %v8662_v51 = vor.u32 %v8661_v59, %v8658_v52 }
 0x786   : > { %8437 = vrot.lane.b32.xlu2 %v11320_v4, %s16167_s19  ;;  %v8560_v37 = vor.u32 %v8558_v10, %v8557_v54  ;;  %v8527_v38 = vrot.slane %v8525_v7, 5  ;;  %v8530_v22 = vrot.slane %v8528_v47, 6  ;;  %v8492_v48 = vld [vmem:[#allocation6] sm:$0xee]  ;;  %v8611_v49 = vld [vmem:[#allocation6 + $0x8] sm:$0xc] }
 0x787   : > { %v8346_v9 = vrot.slane %v8345_v30, 4  ;;  %v8578_v53 = vld [vmem:[#allocation6] sm:$0xcc]  ;;  %v8494_v12 = vshrl.u32 %v8492_v48, 16  ;;  %v8497_v24 = vshll.u32 %v8492_v48, 16  ;;  %v8684_v4 = vrot.slane %v8682_v8, 6 }
 0x788   : > { %v8531_v46 = vor.u32 %v8530_v22, %v8527_v38  ;;  %8812 = vst.msk [vmem:[#allocation7 + $0x64] sm:$0x3] %vm16141_vm9, %v8808_v31  ;;  %v8624_v27 = vld [vmem:[#allocation6] sm:$0xcc]  ;;  %v11323_v58 = vrot.slane %v8578_v53, 10  ;;  %v8665_v17 = vshll.u32 %v8651_v41, 16 }
 0x789   : > { %v8691_v26 = vshll.u32 %v8679_v60, 16  ;;  %v8496_v29 = vrot.slane %v8494_v12, 5  ;;  %v8499_v56 = vrot.slane %v8497_v24, 6  ;;  %v8629_v20 = vshrl.u32 %v8624_v27, 16  ;;  %v8610_v57 = vld [vmem:[#allocation6] sm:$0xcc] }
 0x78a   : > { %8368 = vrot.lane.b32.xlu1 %v8367_v45, %s16167_s19  ;;  %8583 = vst.msk [vmem:[#allocation7 + $0x1c] sm:$0x33] %vm15522_vm15, %v11323_v58  ;;  %v8532_v62 = vrot.slane %v8531_v46, 4  ;;  %v8688_v28 = vor.u32 %v8687_v14, %v8684_v4  ;;  %v8632_v21 = vshll.u32 %v8624_v27, 16  ;;  %v8663_v50 = vrot.slane %v8662_v51, 4  ;;  %v15589_v27 = vpop.permute.xlu2 %8311  ;;  %v12071_v51 = vld [vmem:[%s16129_s8 + $0x30] sm:$0xff] }
 0x78b   : > { %v8667_v45 = vrot.slane %v8665_v17, 5  ;;  %v8500_v2 = vor.u32 %v8499_v56, %v8496_v29  ;;  %v8693_v11 = vrot.slane %v8691_v26, 7  ;;  %v8625_v39 = vld [vmem:[#allocation6 + $0xc] sm:$0x11]  ;;  %v8696_v3 = vshrl.u32 %v8678_v36, 16  ;;  %v12080_v17 = vld [vmem:[%s16129_s8 + $0x78] sm:$0xff]  ;;  %9713 = vmatpush.bf16.msrb.mxu2 %v12071_v51 }
 0x78c   : > { %v8689_v23 = vrot.slane %v8688_v28, 4  ;;  %v8775_v54 = vld [vmem:[#allocation6 + $0xc] sm:$0x11]  ;;  %v8774_v7 = vld [vmem:[#allocation6] sm:$0x88]  ;;  %v8638_v10 = vshll.u32 %v8625_v39, 16  ;;  %9726 = vmatpush.bf16.msrb.mxu3 %v12080_v17 }
 0x78d   : > { %8451 = vrot.lane.b32.xlu0 %v8450_v61, %s12289_s20  ;;  %v8631_v61 = vrot.slane %v8629_v20, 6  ;;  %v8668_v42 = vsel %vm15532_vm0, %v8663_v50, %v8667_v45  ;;  %v8501_v34 = vrot.slane %v8500_v2, 4  ;;  %v8815_v13 = vld [vmem:[#allocation6 + $0xc] sm:$0x11]  ;;  %v8698_v40 = vrot.slane %v8696_v3, 6  ;;  %v12069_v29 = vld [vmem:[%s16129_s8 + $0x20] sm:$0xff] }
 0x78e   : > { %8400 = vrot.lane.b32.xlu2 %v8390_v33, %s12289_s20  ;;  %v8634_v33 = vrot.slane %v8632_v21, 7  ;;  %v8694_v30 = vsel %vm15559_vm12, %v8689_v23, %v8693_v11  ;;  %v8813_v15 = vld [vmem:[#allocation6] sm:$0x88]  ;;  %v11327_v38 = vrot.slane %v8774_v7, 9  ;;  %v8783_v16 = vrot.slane %v8775_v54, 5  ;;  %v12070_v26 = vld [vmem:[%s16129_s8 + $0x28] sm:$0xff] }
 0x78f   : > { %v8823_v22 = vrot.slane %v8815_v13, 5  ;;  %v11330_v1 = vrot.slane %v8813_v15, 9  ;;  %v8756_v52 = vld [vmem:[#allocation6] sm:$0x88]  ;;  %v8757_v59 = vld [vmem:[#allocation6 + $0xc] sm:$0x11]  ;;  %9714 = vmatpush.bf16.msrb.mxu2 %v12070_v26 }
 0x790   : > { %v8635_v47 = vor.u32 %v8634_v33, %v8631_v61  ;;  %v8784_v55 = vsel %vm15570_vm7, %v11327_v38, %v8783_v16  ;;  %v11326_v31 = vrot.slane %v8756_v52, 11  ;;  %v8814_v46 = vld [vmem:[#allocation6 + $0x8] sm:$0x8]  ;;  %v8816_v12 = vld [vmem:[#allocation6 + $0x14] sm:$0x1]  ;;  %v12096_v28 = vld [vmem:[%s16129_s8 + $0xf8] sm:$0xff] }
 0x791   : > { %v8824_v18 = vsel %vm15570_vm7, %v11330_v1, %v8823_v22  ;;  %v11331_v4 = vrot.slane %v8814_v46, 9  ;;  %v8827_v14 = vrot.slane %v8816_v12, 5  ;;  %v12079_v56 = vld [vmem:[%s16129_s8 + $0x70] sm:$0xff]  ;;  %v12078_v21 = vld [vmem:[%s16129_s8 + $0x68] sm:$0xff]  ;;  %v12068_v36 = vld [vmem:[%s16129_s8 + $0x18] sm:$0xff]  ;;  %9754 = vmatpush.bf16.msrb.mxu1 %v12096_v28  ;;  %v15724_v46 = vpop.permute.xlu0 %8544 }
 0x792   : > { %8568 = vrot.lane.b32.xlu1 %v8560_v37, %s16167_s19  ;;  %v8701_v37 = vrot.slane %v8699_v43, 7  ;;  %v8636_v0 = vrot.slane %v8635_v47, 4  ;;  %v15611_v20 = vpop.permute.xlu2 %8570  ;;  %9727 = vmatpush.bf16.msrb.mxu3 %v12079_v56  ;;  %v12067_v50 = vld [vmem:[%s16129_s8 + $0x10] sm:$0xff]  ;;  %v12077_v45 = vld [vmem:[%s16129_s8 + $0x60] sm:$0xff]  ;;  %v12066_v23 = vld [vmem:[%s16129_s8 + $0x8] sm:$0xff] }
 0x793   : > { %v8828_v58 = vsel %vm15570_vm7, %v11331_v4, %v8827_v14  ;;  %9715 = vmatpush.bf16.msrb.mxu2 %v12069_v29  ;;  %v12087_v2 = vld [vmem:[%s16129_s8 + $0xb0] sm:$0xff]  ;;  %v12076_v39 = vld [vmem:[%s16129_s8 + $0x58] sm:$0xff]  ;;  %v12086_v33 = vld [vmem:[%s16129_s8 + $0xa8] sm:$0xff]  ;;  %vm8353_vm7 = vcmask 1042176  }
 0x794   : > { %v8702_v48 = vor.u32 %v8701_v37, %v8698_v40  ;;  %v12095_v61 = vld [vmem:[%s16129_s8 + $0xf0] sm:$0xff]  ;;  %v12094_v3 = vld [vmem:[%s16129_s8 + $0xe8] sm:$0xff]  ;;  %v12065_v43 = vld [vmem:[%s16129_s8] sm:$0xff] }
 0x795   : > { %8347 = vrot.lane.b32.xlu0 %v8346_v9, %s12288_s0  ;;  %v8640_v9 = vrot.slane %v8638_v10, 7  ;;  %9755 = vmatpush.bf16.msrb.mxu1 %v12095_v61  ;;  %v12104_v7 = vld [vmem:[%s16129_s8 + $0x138] sm:$0xff]  ;;  %v12074_v47 = vld [vmem:[%s16129_s8 + $0x48] sm:$0xff]  ;;  %v12103_v15 = vld [vmem:[%s16129_s8 + $0x130] sm:$0xff] }
 0x796   : > { %8586 = vrot.lane.b32.xlu2 %v8584_v35, %s12288_s0  ;;  %v8680_v35 = vld [vmem:[#allocation6 + $0x14] sm:$0x1]  ;;  %v8703_v41 = vrot.slane %v8702_v48, 4  ;;  %9728 = vmatpush.bf16.msrb.mxu3 %v12078_v21  ;;  %v12084_v13 = vld [vmem:[%s16129_s8 + $0x98] sm:$0xff]  ;;  %v8463_v5 = vld [vmem:[#allocation6 + $0x8] sm:$0x6] }
 0x797   : > { %v8705_v8 = vshll.u32 %v8680_v35, 16  ;;  %v8641_v19 = vsel %vm15559_vm12, %v8636_v0, %v8640_v9  ;;  %9716 = vmatpush.bf16.msrb.mxu2 %v12068_v36  ;;  %v12092_v40 = vld [vmem:[%s16129_s8 + $0xd8] sm:$0xff]  ;;  %v8412_v35 = vld [vmem:[#allocation6 + $0x8] sm:$0x7]  ;;  %v11322_v0 = vrot.slane %v8463_v5, 9  ;;  %v12073_v1 = vld [vmem:[%s16129_s8 + $0x40] sm:$0xff] }
 0x798   : > { %v8422_v38 = vshrl.u32 %v8412_v35, 16  ;;  %v8425_v16 = vshll.u32 %v8412_v35, 16  ;;  %v12083_v48 = vld [vmem:[%s16129_s8 + $0x90] sm:$0xff]  ;;  %v12082_v52 = vld [vmem:[%s16129_s8 + $0x88] sm:$0xff]  ;;  %v12081_v12 = vld [vmem:[%s16129_s8 + $0x80] sm:$0xff] }
 0x799   : > { %v8707_v53 = vrot.slane %v8705_v8, 7  ;;  %9756 = vmatpush.bf16.msrb.mxu1 %v12094_v3  ;;  %v12091_v8 = vld [vmem:[%s16129_s8 + $0xd0] sm:$0xff]  ;;  %8473 = vst.msk [vmem:[#allocation7 + $0x48] sm:$0x3] %vm16141_vm9, %v11322_v0  ;;  %v12100_v4 = vld [vmem:[%s16129_s8 + $0x118] sm:$0xff]  ;;  %v12110_v14 = vld [vmem:[%s16129_s8 + $0x168] sm:$0xff] }
 0x79a   : > { %8616 = vrot.lane.b32.xlu1 %v8611_v49, %s12289_s20  ;;  %v8764_v49 = vrot.slane %v8757_v59, 7  ;;  %v15638_v11 = vpop.permute.xlu2 %8602  ;;  %9729 = vmatpush.bf16.msrb.mxu3 %v12077_v45  ;;  %v8424_v9 = vrot.slane %v8422_v38, 6  ;;  %v8427_v22 = vrot.slane %v8425_v16, 7  ;;  %v12090_v59 = vld [vmem:[%s16129_s8 + $0xc8] sm:$0xff]  ;;  %v12120_v17 = vld [vmem:[%s16129_s8 + $0x1b8] sm:$0xff]  ;;  %v12099_v36 = vld [vmem:[%s16129_s8 + $0x110] sm:$0xff] }
 0x79b   : > { %v8708_v60 = vsel %vm15559_vm12, %v8703_v41, %v8707_v53  ;;  %9717 = vmatpush.bf16.msrb.mxu2 %v12067_v50  ;;  %v12128_v26 = vld [vmem:[%s16129_s8 + $0x1f8] sm:$0xff]  ;;  %v8411_v56 = vld [vmem:[#allocation6] sm:$0x77]  ;;  %vm16180_vm12 = vcmask 1045508   ;;  %v12119_v61 = vld [vmem:[%s16129_s8 + $0x1b0] sm:$0xff] }
 0x79c   : > { %v8765_v24 = vsel %vm15543_vm4, %v11326_v31, %v8764_v49  ;;  %v8428_v41 = vor.u32 %v8427_v22, %v8424_v9  ;;  %v12111_v31 = vld [vmem:[%s16129_s8 + $0x170] sm:$0xff]  ;;  %vm15745_vm14 = vmor %vm16180_vm12, %vm8443_vm6  ;;  %v12109_v50 = vld [vmem:[%s16129_s8 + $0x160] sm:$0xff]  ;;  %v8414_v45 = vshrl.u32 %v8411_v56, 16 }
 0x79d   : > { %8614 = vrot.lane.b32.xlu0 %v8610_v57, %s12289_s20  ;;  %v12088_v57 = vld [vmem:[%s16129_s8 + $0xb8] sm:$0xff]  ;;  %vm16184_vm6 = vmmov %vm16180_vm12  ;;  %v12097_v5 = vld [vmem:[%s16129_s8 + $0x100] sm:$0xff] }
 0x79e   : > { %8542 = vrot.lane.b32.xlu2 %v8532_v62, %s12288_s0  ;;  %v15603_v62 = vpop.permute.xlu1 %8328  ;;  %9740 = vmatpush.bf16.msrb.mxu0 %v12088_v57  ;;  %8432 = vst.msk [vmem:[#allocation7 + $0x40] sm:$0xc] %vm16144_vm2, %v8428_v41  ;;  %vm15781_vm12 = vmor %vm16184_vm6, %vm8353_vm7  ;;  %v12107_v9 = vld [vmem:[%s16129_s8 + $0x150] sm:$0xff]  ;;  %vm16197_vm2 = vcmask 1045508  }
 0x79f   : > { %9718 = vmatpush.bf16.msrb.mxu2 %v12066_v23  ;;  %9730 = vmatpush.bf16.msrb.mxu3 %v12076_v39  ;;  %v12127_v23 = vld [vmem:[%s16129_s8 + $0x1f0] sm:$0xff] }
 0x7a0   : > { %v12151_v10 = vld [vmem:[%s16129_s8 + $0x2b0] sm:$0xff] }
 0x7a2   : > { %8669 = vrot.lane.b32.xlu1 %v8668_v42, %s16167_s19  ;;  %9741 = vmatpush.bf16.msrb.mxu0 %v12087_v2  ;;  %v12085_v42 = vld [vmem:[%s16129_s8 + $0xa0] sm:$0xff]  ;;  %v8417_v2 = vshll.u32 %v8411_v56, 16 }
 0x7a3   : > { %9719 = vmatpush.bf16.msrb.mxu2 %v12065_v43  ;;  %9731 = vmatpush.bf16.msrb.mxu3 %v12075_v32  ;;  %v12098_v43 = vld [vmem:[%s16129_s8 + $0x108] sm:$0xff]  ;;  %v12108_v32 = vld [vmem:[%s16129_s8 + $0x158] sm:$0xff] }
 0x7a5   : > { %8502 = vrot.lane.b32.xlu0 %v8501_v34, %s12289_s20  ;;  %v12093_v34 = vld [vmem:[%s16129_s8 + $0xe0] sm:$0xff] }
 0x7a6   : > { %8709 = vrot.lane.b32.xlu2 %v8694_v30, %s12289_s20  ;;  %v15625_v44 = vpop.permute.xlu1 %8482  ;;  %9742 = vmatpush.bf16.msrb.mxu0 %v12086_v33  ;;  %v8314_v33 = vrot.slane %v15589_v27, 4  ;;  %v12118_v27 = vld [vmem:[%s16129_s8 + $0x1a8] sm:$0xff] }
 0x7a7   : > { %8491 = vst.msk [vmem:[#allocation7 + $0x48] sm:$0xc] %vm16142_vm8, %v15625_v44  ;;  %9757 = vmatpush.bf16.msrb.mxu1 %v12093_v34  ;;  %9768 = vmatpush.bf16.msra.mxu2 %v12104_v7  ;;  %vm15792_vm8 = vmor %vm8375_vm11, %vm8374_vm10  ;;  %vm8507_vm10 = vcmask 1041664  }
 0x7a8   : > { %9732 = vmatpush.bf16.msrb.mxu3 %v12074_v47  ;;  %v8331_v47 = vrot.slane %v15603_v62, 4  ;;  %v12158_v62 = vld [vmem:[%s16129_s8 + $0x2e8] sm:$0xff] }
 0x7aa   : > { %8785 = vrot.lane.b32.xlu1 %v8784_v55, %s12289_s20  ;;  %9743 = vmatpush.bf16.msrb.mxu0 %v12085_v42  ;;  %v12102_v55 = vld [vmem:[%s16129_s8 + $0x128] sm:$0xff]  ;;  %v8416_v42 = vrot.slane %v8414_v45, 6  ;;  %v12115_v45 = vld [vmem:[%s16129_s8 + $0x190] sm:$0xff] }
 0x7ab   : > { %9758 = vmatpush.bf16.msrb.mxu1 %v12092_v40  ;;  %9769 = vmatpush.bf16.msra.mxu2 %v12103_v15 }
 0x7ac   : > { %9733 = vmatpush.bf16.msrb.mxu3 %v12073_v1 }
 0x7ad   : > { %8642 = vrot.lane.b32.xlu0 %v8641_v19, %s12288_s0  ;;  %v12112_v19 = vld [vmem:[%s16129_s8 + $0x178] sm:$0xff] }
 0x7ae   : > { %8829 = vrot.lane.b32.xlu2 %v8824_v18, %s12288_s0  ;;  %9744 = vmatpush.bf16.msrb.mxu0 %v12084_v13  ;;  %v8403_v49 = vpop.permute.xlu1 %8402  ;;  %v12139_v13 = vld [vmem:[%s16129_s8 + $0x250] sm:$0xff] }
 0x7af   : > { %9759 = vmatpush.bf16.msrb.mxu1 %v12091_v8  ;;  %9770 = vmatpush.bf16.msra.mxu2 %v12102_v55  ;;  %v12125_v8 = vld [vmem:[%s16129_s8 + $0x1e0] sm:$0xff] }
 0x7b0   : > { %9782 = vmatpush.bf16.msra.mxu3 %v12112_v19  ;;  %v8605_v19 = vrot.slane %v15638_v11, 4  ;;  %v12116_v11 = vld [vmem:[%s16129_s8 + $0x198] sm:$0xff] }
 0x7b2   : > { %8711 = vrot.lane.b32.xlu1 %v8708_v60, %s12289_s20  ;;  %9745 = vmatpush.bf16.msrb.mxu0 %v12083_v48  ;;  %v12101_v60 = vld [vmem:[%s16129_s8 + $0x120] sm:$0xff]  ;;  %s10001_s20 = scalar_lea.hbm %s16133_s12, %s12377_s25 }
 0x7b3   : > { %9760 = vmatpush.bf16.msrb.mxu1 %v12090_v59  ;;  %9771 = vmatpush.bf16.msra.mxu2 %v12101_v60  ;;  %v12117_v48 = vld [vmem:[%s16129_s8 + $0x1a0] sm:$0xff]  ;;  %v8485_v59 = vrot.slane %v15625_v44, 4 }
 0x7b4   : > { %9783 = vmatpush.bf16.msra.mxu3 %v12111_v31 }
 0x7b5   : > { %8766 = vrot.lane.b32.xlu0 %v8765_v24, %s16167_s19  ;;  %v12089_v24 = vld [vmem:[%s16129_s8 + $0xc0] sm:$0xff] }
 0x7b6   : > { %9746 = vmatpush.bf16.msrb.mxu0 %v12082_v52  ;;  %v12106_v52 = vld [vmem:[%s16129_s8 + $0x148] sm:$0xff] }
 0x7b7   : > { %9761 = vmatpush.bf16.msrb.mxu1 %v12089_v24  ;;  %9772 = vmatpush.bf16.msra.mxu2 %v12100_v4  ;;  %v8547_v24 = vrot.slane %v15724_v46, 4  ;;  %v12149_v46 = vld [vmem:[%s16129_s8 + $0x2a0] sm:$0xff] }
 0x7b8   : > { %9784 = vmatpush.bf16.msra.mxu3 %v12110_v14 }
 0x7ba   : > { %9747 = vmatpush.bf16.msrb.mxu0 %v12081_v12  ;;  %v12124_v12 = vld [vmem:[%s16129_s8 + $0x1d8] sm:$0xff] }
 0x7bb   : > { %9810 = vmatpush.bf16.msra.mxu1 %v12128_v26  ;;  %9773 = vmatpush.bf16.msra.mxu2 %v12099_v36 }
 0x7bc   : > { %9785 = vmatpush.bf16.msra.mxu3 %v12109_v50  ;;  %v12136_v50 = vld [vmem:[%s16129_s8 + $0x238] sm:$0xff] }
 0x7bd   : > { %8831 = vrot.lane.b32.xlu0 %v8828_v58, %s12288_s0  ;;  %v8462_v58 = vld [vmem:[#allocation6] sm:$0x66]  ;;  %s10005_s0 = sshll.u32 %s10001_s20, 4  ;;  %s10006_s0 = int_to_ptr.hbm [resolvable:$true] %s10005_s0 }
 0x7be   : > { %v11321_v28 = vrot.slane %v8462_v58, 9  ;;  %9796 = vmatpush.bf16.msra.mxu0 %v12120_v17  ;;  %s12236_s1 = sshra.s32 %s10006_s0, 4  ;;  %s12237_s1 = int_to_ptr.hbm [resolvable:$true] %s12236_s1 }
 0x7bf   : > { %9811 = vmatpush.bf16.msra.mxu1 %v12127_v23  ;;  %9774 = vmatpush.bf16.msra.mxu2 %v12098_v43  ;;  %s12238_s2 = scalar_lea.hbm %s12237_s1, 1  ;;  %p12243_p0 = scmp.lt.s32.totalorder %s12237_s1, %s16133_s12 }
 0x7c0   : > { %9786 = vmatpush.bf16.msra.mxu3 %v12108_v32  ;;  %v12135_v32 = vld [vmem:[%s16129_s8 + $0x230] sm:$0xff]  ;;  %p12239_p11 = scmp.ne.s32.totalorder %s12237_s1, %s12238_s2  ;;  %p12244_p1 = scmp.lt.s32.totalorder %s12242_s28, %s12238_s2 }
 0x7c2   : > { %9797 = vmatpush.bf16.msra.mxu0 %v12119_v61  ;;  %v12123_v61 = vld [vmem:[%s16129_s8 + $0x1d0] sm:$0xff]  ;;  %p12240_p12 = pnand %p12239_p11, %p12394_p5  ;;  %p12245_p2 = por %p12244_p1, %p12243_p0 }
 0x7c3   : > { %9775 = vmatpush.bf16.msra.mxu2 %v12097_v5 }
 0x7c4   : > { %9787 = vmatpush.bf16.msra.mxu3 %v12107_v9  ;;  %p12241_p13 = pneg %p12240_p12 }
 0x7c6   : > { %9798 = vmatpush.bf16.msra.mxu0 %v12118_v27  ;;  %p12246_p3 = pnand %p12245_p2, %p12241_p13 }
 0x7c8   : > { %9788 = vmatpush.bf16.msra.mxu3 %v12106_v52 }
 0x7ca   : > { %9799 = vmatpush.bf16.msra.mxu0 %v12117_v48 }
 0x7ce   : > { %9800 = vmatpush.bf16.msra.mxu0 %v12116_v11 }
 0x7d2   : > { %9801 = vmatpush.bf16.msra.mxu0 %v12115_v45 }
 0x7d8   : > { %v8296_v54 = vpop.permute.xlu2 %8295 }
 0x7d9   : > { %v8297_v30 = vrot.slane %v8296_v54, 4 }
 0x7db   : > { %v8299_v37 = vsel %vm16145_vm13, %v8296_v54, %v8297_v30  ;;  %v8419_v54 = vrot.slane %v8417_v2, 7  ;;  %v12126_v30 = vld [vmem:[%s16129_s8 + $0x1e8] sm:$0xff] }
 0x7dc   : > { %8304 = vst.msk [vmem:[#allocation7] sm:$0xcc] %vm15670_vm1, %v8299_v37  ;;  %9812 = vmatpush.bf16.msra.mxu1 %v12126_v30  ;;  %v12122_v30 = vld [vmem:[%s16129_s8 + $0x1c8] sm:$0xff] }
 0x7dd   : > { %v8420_v22 = vor.u32 %v8419_v54, %v8416_v42  ;;  %v12114_v42 = vld [vmem:[%s16129_s8 + $0x188] sm:$0xff] }
 0x7de   : > { %9802 = vmatpush.bf16.msra.mxu0 %v12114_v42 }
 0x7e0   : > { %v15704_v18 = vpop.permute.xlu2 %8437  ;;  %9813 = vmatpush.bf16.msra.mxu1 %v12125_v8 }
 0x7e1   : > { %v8439_v53 = vrot.slane %v15704_v18, 4 }
 0x7e3   : > { %8447 = vst.msk [vmem:[#allocation7 + $0x14] sm:$0x3] %vm16141_vm9, %v8439_v53  ;;  %vm16188_vm9 = vcmask 523264  }
 0x7e4   : > { %9814 = vmatpush.bf16.msra.mxu1 %v12124_v12 }
 0x7e8   : > { %v8401_v51 = vpop.permute.xlu2 %8400  ;;  %9815 = vmatpush.bf16.msra.mxu1 %v12123_v61 }
 0x7e9   : > { %v8404_v29 = vrot.slane %v8401_v51, 4 }
 0x7eb   : > { %v8406_v21 = vsel %vm16143_vm3, %v8404_v29, %v8403_v49  ;;  %v8405_v38 = vsel %vm16143_vm3, %v8404_v29, %v8401_v51  ;;  %v8510_v49 = vld [vmem:[#allocation6] sm:$0xee]  ;;  %v11334_v29 = vld [vmem:[#allocation7] sm:$0xf] }
 0x7ec   : > { %8410 = vst.msk [vmem:[#allocation7 + $0x40] sm:$0x3] %vm16183_vm5, %v8406_v21  ;;  %v8310_v39 = vpop.permute.xlu1 %8309  ;;  %vm16187_vm5 = vcmask 1043456   ;;  %v8512_v56 = vshrl.u32 %v8510_v49, 16  ;;  %9816 = vmatpush.bf16.msra.mxu1 %v12122_v30 }
 0x7ed   : > { %8472 = vst.msk [vmem:[#allocation7 + $0x40] sm:$0x33] %vm15745_vm14, %v11321_v28  ;;  %v8313_v3 = vrot.slane %v8310_v39, 4  ;;  %vm16191_vm7 = vmmov %vm16187_vm5  ;;  %v12105_v28 = vld [vmem:[%s16129_s8 + $0x140] sm:$0xff] }
 0x7ee   : > { %vm16192_vm6 = vmmov %vm16187_vm5  ;;  %9789 = vmatpush.bf16.msra.mxu3 %v12105_v28 }
 0x7ef   : > { %v8327_v34 = vpop.permute.xlu0 %8326  ;;  %v8315_v40 = vsel %vm16187_vm5, %v8313_v3, %v8314_v33  ;;  %vm16193_vm5 = vcmask 523264   ;;  %v8514_v33 = vrot.slane %v8512_v56, 7 }
 0x7f0   : > { %v8587_v7 = vpop.permute.xlu2 %8586  ;;  %v8330_v37 = vrot.slane %v8327_v34, 4  ;;  %v8317_v35 = vsel %vm16188_vm9, %v8310_v39, %v8315_v40  ;;  %vm8457_vm9 = vcmask 1043970  }
 0x7f1   : > { %v8588_v15 = vrot.slane %v8587_v7, 4  ;;  %8319 = vst.msk [vmem:[#allocation7 + $0x34] sm:$0x33] %vm15522_vm15, %v8317_v35 }
 0x7f2   : > { %v8332_v16 = vsel %vm16191_vm7, %v8330_v37, %v8331_v47  ;;  %8409 = vst.msk [vmem:[#allocation7 + $0x38] sm:$0x33] %vm15781_vm12, %v8405_v38  ;;  %vm15835_vm7 = vmor %vm8375_vm11, %vm8457_vm9  ;;  %vm16201_vm9 = vcmask 785408   ;;  %v8720_v47 = vld [vmem:[#allocation6] sm:$0xcc]  ;;  %v12134_v38 = vld [vmem:[%s16129_s8 + $0x228] sm:$0xff] }
 0x7f3   : > { %v8334_v0 = vsel %vm16143_vm3, %v8327_v34, %v8332_v16  ;;  %v8589_v1 = vsel %vm16145_vm13, %v8587_v7, %v8588_v15  ;;  %vm16196_vm3 = vmmov %vm16192_vm6  ;;  %v8515_v34 = vshll.u32 %v8510_v49, 16  ;;  %v12113_v16 = vld [vmem:[%s16129_s8 + $0x180] sm:$0xff]  ;;  %v8725_v5 = vshrl.u32 %v8720_v47, 16  ;;  %v12132_v49 = vld [vmem:[%s16129_s8 + $0x218] sm:$0xff] }
 0x7f4   : > { %8336 = vst.msk [vmem:[#allocation7 + $0x34] sm:$0xcc] %vm15670_vm1, %v8334_v0  ;;  %v8601_v55 = vpop.permute.xlu1 %8600  ;;  %vm15844_vm13 = vmor %vm16197_vm2, %vm8507_vm10  ;;  %vm8519_vm2 = vcmask 1043714   ;;  %vm16204_vm10 = vcmask 519170   ;;  %v8728_v9 = vshll.u32 %v8720_v47, 16  ;;  %9803 = vmatpush.bf16.msra.mxu0 %v12113_v16 }
 0x7f5   : > { %8431 = vst.msk [vmem:[#allocation7 + $0x38] sm:$0xcc] %vm15792_vm8, %v8420_v22  ;;  %v8604_v41 = vrot.slane %v8601_v55, 4  ;;  %v8517_v37 = vor.u32 %v8515_v34, %v8514_v33  ;;  %v12121_v22 = vld [vmem:[%s16129_s8 + $0x1c0] sm:$0xff]  ;;  %v12130_v33 = vld [vmem:[%s16129_s8 + $0x208] sm:$0xff] }
 0x7f6   : > { %8591 = vst.msk [vmem:[#allocation7 + $0x1c] sm:$0xcc] %vm15670_vm1, %v8589_v1  ;;  %v8573_v1 = vrot.slane %v15611_v20, 4  ;;  %9817 = vmatpush.bf16.msra.mxu1 %v12121_v22 }
 0x7f7   : > { %v8481_v60 = vpop.permute.xlu0 %8480  ;;  %v8606_v4 = vsel %vm16192_vm6, %v8604_v41, %v8605_v19  ;;  %vm16200_vm6 = vmmov %vm16196_vm3  ;;  %v8727_v19 = vrot.slane %v8725_v5, 4  ;;  %v8730_v41 = vrot.slane %v8728_v9, 5  ;;  %v12142_v5 = vld [vmem:[%s16129_s8 + $0x268] sm:$0xff] }
 0x7f8   : > { %v8543_v31 = vpop.permute.xlu2 %8542  ;;  %v8484_v14 = vrot.slane %v8481_v60, 4  ;;  %v8607_v58 = vsel %vm16193_vm5, %v8601_v55, %v8606_v4  ;;  %v12133_v55 = vld [vmem:[%s16129_s8 + $0x220] sm:$0xff]  ;;  %v12150_v9 = vld [vmem:[%s16129_s8 + $0x2a8] sm:$0xff] }
 0x7f9   : > { %v8546_v44 = vrot.slane %v8543_v31, 4  ;;  %8609 = vst.msk [vmem:[#allocation7 + $0x50] sm:$0x33] %vm15522_vm15, %v8607_v58  ;;  %vm16202_vm15 = vmmov %vm16201_vm9  ;;  %v8731_v11 = vor.u32 %v8730_v41, %v8727_v19  ;;  %v12131_v58 = vld [vmem:[%s16129_s8 + $0x210] sm:$0xff] }
 0x7fa   : > { %v8486_v17 = vsel %vm16196_vm3, %v8484_v14, %v8485_v59  ;;  %vm16203_vm3 = vmmov %vm16193_vm5 }
 0x7fb   : > { %v8548_v26 = vsel %vm16200_vm6, %v8546_v44, %v8547_v24  ;;  %v8487_v63 = vsel %vm16201_vm9, %v8481_v60, %v8486_v17  ;;  %v12058_v36 = vld [vmem:[#allocation7 + $0x30] sm:$0xf0]  ;;  %vm15885_vm5 = vmor %vm8375_vm11, %vm8519_vm2  ;;  %vm16207_vm6 = vcmask 261120   ;;  %vm16208_vm9 = vcmask 257026  }
 0x7fc   : > { %v8549_v21 = vsel %vm16202_vm15, %v8543_v31, %v8548_v26  ;;  %8490 = vst.msk [vmem:[#allocation7 + $0x40] sm:$0xcc] %vm15835_vm7, %v8487_v63  ;;  %v11335_v2 = vor.u32 %v12058_v36, %v11334_v29  ;;  %v8369_v23 = vpop.permute.xlu1 %8368  ;;  %vm16209_vm15 = vmmov %vm16207_vm6  ;;  %vm16210_vm11 = vcmask 1043456   ;;  %v8722_v60 = vld [vmem:[#allocation6 + $0xc] sm:$0x11]  ;;  %v8732_v17 = vrot.slane %v8731_v11, 4 }
 0x7fd   : > { %8551 = vst.msk [vmem:[#allocation7 + $0x48] sm:$0x33] %vm15844_vm13, %v8549_v21  ;;  %v8370_v39 = vrot.slane %v8369_v23, 4  ;;  %vm16211_vm2 = vmmov %vm16203_vm3  ;;  %v8734_v12 = vshll.u32 %v8722_v60, 16  ;;  %v11336_v56 = vld [vmem:[#allocation7 + $0x34] sm:$0xf0] }
 0x7fe   : > { %9720 = vmatmul.bf16.vlgmr.msrb.gmra.mxu2 %v11335_v2  ;;  %v12059_v28 = vld [vmem:[#allocation7 + $0x38] sm:$0xf0]  ;;  %v12148_v11 = vld [vmem:[%s16129_s8 + $0x298] sm:$0xff] }
 0x7ff   : > { %v8452_v3 = vpop.permute.xlu0 %8451  ;;  %9824 = vmatpush.bf16.msrb.mxu2 %v12136_v50  ;;  %v8371_v54 = vsel %vm16203_vm3, %v8370_v39, %v8369_v23  ;;  %8379 = vst.msk [vmem:[#allocation7 + $0xc] sm:$0xc] %vm16204_vm10, %v8370_v39  ;;  %vm16212_vm3 = vcmask 785408   ;;  %vm16213_vm10 = vmmov %vm16211_vm2  ;;  %v8736_v26 = vrot.slane %v8734_v12, 5  ;;  %v12152_v50 = vld [vmem:[%s16129_s8 + $0x2b8] sm:$0xff] }
 0x800   : > { %v15867_v43 = vpop.permute.xlu2 %8709  ;;  %v8453_v7 = vrot.slane %v8452_v3, 4  ;;  %8377 = vst.msk [vmem:[#allocation7 + $0x4] sm:$0xcc] %vm15792_vm8, %v8371_v54  ;;  %v8440_v24 = vsel %vm16213_vm10, %v8439_v53, %v15704_v18  ;;  %v12144_v18 = vld [vmem:[%s16129_s8 + $0x278] sm:$0xff]  ;;  %vm16227_vm10 = vcmask 254976  }
 0x801   : > { %v8713_v27 = vrot.slane %v15867_v43, 4  ;;  %v12160_v39 = vld [vmem:[%s16129_s8 + $0x2f8] sm:$0xff] }
 0x802   : > { %v8454_v15 = vsel %vm16207_vm6, %v8453_v7, %v8452_v3  ;;  %8461 = vst.msk [vmem:[#allocation7 + $0x14] sm:$0xc] %vm16208_vm9, %v8453_v7  ;;  %vm16214_vm6 = vcmask 517120   ;;  %vm16216_vm9 = vmmov %vm16209_vm15  ;;  %v8737_v3 = vsel %vm15532_vm0, %v8732_v17, %v8736_v26  ;;  %v12055_v26 = vld [vmem:[#allocation7 + $0x1c] sm:$0xf] }
 0x803   : > { %v8714_v35 = vsel %vm16209_vm15, %v8713_v27, %v15867_v43  ;;  %8459 = vst.msk [vmem:[#allocation7 + $0xc] sm:$0xcc] %vm15835_vm7, %v8454_v15  ;;  %9825 = vmatpush.bf16.msrb.mxu2 %v12135_v32  ;;  %v11344_v36 = vld [vmem:[#allocation7 + $0x3c] sm:$0xf0]  ;;  %v12060_v23 = vld [vmem:[#allocation7 + $0x40] sm:$0xf0]  ;;  %vm16217_vm0 = vmmov %vm16211_vm2 }
 0x804   : > { %8521 = vst.msk [vmem:[#allocation7 + $0x14] sm:$0xcc] %vm15885_vm5, %v8517_v37  ;;  %v8569_v0 = vpop.permute.xlu1 %8568  ;;  %v12159_v15 = vld [vmem:[%s16129_s8 + $0x2f0] sm:$0xff]  ;;  %vm16219_vm15 = vmmov %vm16216_vm9 }
 0x805   : > { %8718 = vst.msk [vmem:[#allocation7 + $0x54] sm:$0x33] %vm15781_vm12, %v8714_v35  ;;  %v8572_v48 = vrot.slane %v8569_v0, 4  ;;  %v12129_v35 = vld [vmem:[%s16129_s8 + $0x200] sm:$0xff] }
 0x807   : > { %v8348_v8 = vpop.permute.xlu0 %8347  ;;  %9826 = vmatpush.bf16.msrb.mxu2 %v12134_v38  ;;  %v8574_v52 = vsel %vm16210_vm11, %v8572_v48, %v8573_v1  ;;  %v12162_v38 = vld [vmem:[%s16129_s8 + $0x308] sm:$0xff]  ;;  %v12141_v48 = vld [vmem:[%s16129_s8 + $0x260] sm:$0xff] }
 0x808   : > { %v8349_v59 = vrot.slane %v8348_v8, 4  ;;  %v8575_v31 = vsel %vm16211_vm2, %v8569_v0, %v8574_v52  ;;  %v12161_v0 = vld [vmem:[%s16129_s8 + $0x300] sm:$0xff]  ;;  %vm16223_vm2 = vmmov %vm16214_vm6 }
 0x809   : > { %8577 = vst.msk [vmem:[#allocation7 + $0x48] sm:$0xcc] %vm15885_vm5, %v8575_v31  ;;  %vm16215_vm5 = vmmov %vm16210_vm11  ;;  %v12157_v31 = vld [vmem:[%s16129_s8 + $0x2e0] sm:$0xff] }
 0x80a   : > { %v8350_v20 = vsel %vm16212_vm3, %v8349_v59, %v8348_v8  ;;  %8358 = vst.msk [vmem:[#allocation7 + $0xc] sm:$0x3] %vm16214_vm6, %v8349_v59  ;;  %v8793_v8 = vld [vmem:[#allocation6] sm:$0x88]  ;;  %vm16222_vm11 = vmmov %vm16212_vm3 }
 0x80b   : > { %8356 = vst.msk [vmem:[#allocation7 + $0x4] sm:$0x33] %vm15781_vm12, %v8350_v20  ;;  %9827 = vmatpush.bf16.msrb.mxu2 %v12133_v55  ;;  %v8795_v55 = vld [vmem:[#allocation6 + $0xc] sm:$0x11]  ;;  %vm16229_vm6 = vmmov %vm16215_vm5 }
 0x80c   : > { %8445 = vst.msk [vmem:[#allocation7 + $0xc] sm:$0x33] %vm15745_vm14, %v8440_v24  ;;  %v8617_v4 = vpop.permute.xlu1 %8616 }
 0x80d   : > { %v8619_v14 = vrot.slane %v8617_v4, 4 }
 0x80f   : > { %v8615_v44 = vpop.permute.xlu0 %8614  ;;  %9828 = vmatpush.bf16.msrb.mxu2 %v12132_v49  ;;  %v12140_v49 = vld [vmem:[%s16129_s8 + $0x258] sm:$0xff] }
 0x810   : > { %v8618_v29 = vrot.slane %v8615_v44, 4  ;;  %v11352_v59 = vld [vmem:[#allocation7 + $0x44] sm:$0xf0]  ;;  %v12061_v60 = vld [vmem:[#allocation7 + $0x48] sm:$0xf0] }
 0x812   : > { %v8620_v53 = vsel %vm16215_vm5, %v8618_v29, %v8619_v14  ;;  %v12052_v63 = vld [vmem:[#allocation7 + $0x4] sm:$0xf]  ;;  %v11342_v21 = vld [vmem:[#allocation7 + $0x8] sm:$0xf]  ;;  %v11328_v14 = vrot.slane %v8793_v8, 11  ;;  %vm16230_vm5 = vmmov %vm16222_vm11 }
 0x813   : > { %v8621_v45 = vsel %vm16216_vm9, %v8615_v44, %v8620_v53  ;;  %v11339_v2 = vor.u32 %v12052_v63, %v11336_v56  ;;  %v11343_v61 = vor.u32 %v12059_v28, %v11342_v21  ;;  %9829 = vmatpush.bf16.msrb.mxu2 %v12131_v58  ;;  %v12053_v32 = vld [vmem:[#allocation7 + $0xc] sm:$0xf]  ;;  %v11350_v42 = vld [vmem:[#allocation7 + $0x10] sm:$0xf]  ;;  %v8803_v44 = vrot.slane %v8795_v55, 7  ;;  %v12156_v29 = vld [vmem:[%s16129_s8 + $0x2d8] sm:$0xff] }
 0x814   : > { %8623 = vst.msk [vmem:[#allocation7 + $0x50] sm:$0xcc] %vm15670_vm1, %v8621_v45  ;;  %v8670_v54 = vpop.permute.xlu1 %8669  ;;  %v11347_v34 = vor.u32 %v12053_v32, %v11344_v36  ;;  %v11351_v7 = vor.u32 %v12060_v23, %v11350_v42  ;;  %vm16218_vm1 = vcmask 519170   ;;  %v12147_v53 = vld [vmem:[%s16129_s8 + $0x290] sm:$0xff]  ;;  %v12138_v36 = vld [vmem:[%s16129_s8 + $0x248] sm:$0xff]  ;;  %v8830_v23 = vpop.permute.xlu2 %8829 }
 0x815   : > { %8754 = vst.msk [vmem:[#allocation7 + $0x54] sm:$0xcc] %vm15792_vm8, %v8737_v3  ;;  %9734 = vmatmul.bf16.vlgmr.msrb.gmra.mxu3 %v11339_v2  ;;  %9748 = vmatmul.bf16.vlgmr.msrb.gmra.mxu0 %v11343_v61  ;;  %v8671_v30 = vrot.slane %v8670_v54, 4  ;;  %v8804_v63 = vsel %vm15543_vm4, %v11328_v14, %v8803_v44  ;;  %vm16226_vm4 = vmmov %vm16217_vm0  ;;  %v12145_v3 = vld [vmem:[%s16129_s8 + $0x280] sm:$0xff]  ;;  %v8833_v57 = vrot.slane %v8830_v23, 4 }
 0x816   : > { %9838 = vmatpush.bf16.msrb.mxu3 %v12144_v18  ;;  %9852 = vmatpush.bf16.msrb.mxu0 %v12152_v50 }
 0x817   : > { %9762 = vmatmul.bf16.vlgmr.msrb.gmra.mxu1 %v11347_v34  ;;  %9776 = vmatmul.bf16.vlgmr.msra.gmra.mxu2 %v11351_v7  ;;  %v8503_v47 = vpop.permute.xlu0 %8502  ;;  %v8672_v40 = vsel %vm16217_vm0, %v8671_v30, %v8670_v54  ;;  %8676 = vst.msk [vmem:[#allocation7 + $0x28] sm:$0xc] %vm16218_vm1, %v8671_v30  ;;  %v12153_v34 = vld [vmem:[%s16129_s8 + $0x2c0] sm:$0xff]  ;;  %vm9990_vm0 = vcmask 16384  }
 0x818   : > { %v8504_v37 = vrot.slane %v8503_v47, 4  ;;  %9866 = vmatpush.bf16.msrb.mxu1 %v12160_v39  ;;  %9830 = vmatpush.bf16.msrb.mxu2 %v12130_v33  ;;  %8675 = vst.msk [vmem:[#allocation7 + $0x20] sm:$0xcc] %vm15792_vm8, %v8672_v40  ;;  %vm16220_vm8 = vmmov %vm16216_vm9  ;;  %v12154_v39 = vld [vmem:[%s16129_s8 + $0x2c8] sm:$0xff]  ;;  %v12137_v33 = vld [vmem:[%s16129_s8 + $0x240] sm:$0xff] }
 0x819   : > { %vm16224_vm3 = vmmov %vm16220_vm8 }
 0x81a   : > { %v8505_v16 = vsel %vm16219_vm15, %v8504_v37, %v8503_v47  ;;  %9839 = vmatpush.bf16.msrb.mxu3 %v12143_v6  ;;  %9853 = vmatpush.bf16.msrb.mxu0 %v12151_v10  ;;  %vm16231_vm9 = vmmov %vm16224_vm3 }
 0x81b   : > { %8509 = vst.msk [vmem:[#allocation7 + $0x14] sm:$0x33] %vm15844_vm13, %v8505_v16  ;;  %vm16221_vm13 = vcmask 257026   ;;  %v11360_v20 = vld [vmem:[#allocation7 + $0x4c] sm:$0xf0] }
 0x81c   : > { %9867 = vmatpush.bf16.msrb.mxu1 %v12159_v15  ;;  %9831 = vmatpush.bf16.msrb.mxu2 %v12129_v35  ;;  %v8786_v22 = vpop.permute.xlu1 %8785  ;;  %v11363_v28 = vor.u32 %v12055_v26, %v11360_v20  ;;  %v12062_v2 = vld [vmem:[#allocation7 + $0x50] sm:$0xf0]  ;;  %v11368_v30 = vld [vmem:[#allocation7 + $0x54] sm:$0xf0] }
 0x81d   : > { %v8787_v1 = vrot.slane %v8786_v22, 4  ;;  %v12169_v20 = vld [vmem:[%s16131_s10 + $0x30] sm:$0xff] }
 0x81e   : > { %9840 = vmatpush.bf16.msrb.mxu3 %v12142_v5  ;;  %9854 = vmatpush.bf16.msrb.mxu0 %v12150_v9 }
 0x81f   : > { %v8643_v19 = vpop.permute.xlu0 %8642  ;;  %v8788_v41 = vsel %vm16220_vm8, %v8787_v1, %v8786_v22  ;;  %8792 = vst.msk [vmem:[#allocation7 + $0x30] sm:$0xc] %vm16221_vm13, %v8787_v1 }
 0x820   : > { %9886 = vmatpush.bf16.msra.mxu2 %v12162_v38  ;;  %v8644_v52 = vrot.slane %v8643_v19, 4  ;;  %9868 = vmatpush.bf16.msrb.mxu1 %v12158_v62  ;;  %8791 = vst.msk [vmem:[#allocation7 + $0x28] sm:$0xcc] %vm15835_vm7, %v8788_v41 }
 0x822   : > { %v8645_v12 = vsel %vm16222_vm11, %v8644_v52, %v8643_v19  ;;  %8649 = vst.msk [vmem:[#allocation7 + $0x28] sm:$0x3] %vm16223_vm2, %v8644_v52  ;;  %9841 = vmatpush.bf16.msrb.mxu3 %v12141_v48  ;;  %v12054_v24 = vld [vmem:[#allocation7 + $0x14] sm:$0xf]  ;;  %v11358_v4 = vld [vmem:[#allocation7 + $0x18] sm:$0xf]  ;;  %9855 = vmatpush.bf16.msrb.mxu0 %v12149_v46 }
 0x823   : > { %8648 = vst.msk [vmem:[#allocation7 + $0x20] sm:$0x33] %vm15781_vm12, %v8645_v12  ;;  %v11355_v58 = vor.u32 %v12054_v24, %v11352_v59  ;;  %v11359_v17 = vor.u32 %v12061_v60, %v11358_v4  ;;  %vm16225_vm12 = vmmov %vm16223_vm2  ;;  %v12218_v48 = vld [vmem:[%s16130_s9] ss:$0 sm:$0xff]  ;;  %v12170_v59 = vld [vmem:[%s16131_s10 + $0x38] sm:$0xff] }
 0x824   : > { %9887 = vmatpush.bf16.msra.mxu2 %v12161_v0  ;;  %9869 = vmatpush.bf16.msrb.mxu1 %v12157_v31  ;;  %v8712_v56 = vpop.permute.xlu1 %8711 }
 0x825   : > { %9790 = vmatmul.bf16.vlgmr.msra.gmra.mxu3 %v11355_v58  ;;  %9804 = vmatmul.bf16.vlgmr.msra.gmra.mxu0 %v11359_v17  ;;  %v8715_v18 = vsel %vm16224_vm3, %v8713_v27, %v8712_v56  ;;  %v12155_v27 = vld [vmem:[%s16129_s8 + $0x2d0] sm:$0xff] }
 0x826   : > { %9842 = vmatpush.bf16.msrb.mxu3 %v12140_v49  ;;  %9856 = vmatpush.bf16.msrb.mxu0 %v12148_v11  ;;  %8719 = vst.msk [vmem:[#allocation7 + $0x5c] sm:$0x3] %vm16225_vm12, %v8715_v18 }
 0x827   : > { %9818 = vmatmul.bf16.vlgmr.msra.gmra.mxu1 %v11363_v28  ;;  %v8767_v21 = vpop.permute.xlu0 %8766  ;;  %8811 = vst.msk [vmem:[#allocation7 + $0x5c] sm:$0x33] %vm15745_vm14, %v8804_v63 }
 0x828   : > { %v8768_v43 = vrot.slane %v8767_v21, 4  ;;  %9870 = vmatpush.bf16.msrb.mxu1 %v12156_v29 }
 0x82a   : > { %v8769_v50 = vsel %vm16226_vm4, %v8768_v43, %v8767_v21  ;;  %8773 = vst.msk [vmem:[#allocation7 + $0x30] sm:$0x3] %vm16227_vm10, %v8768_v43  ;;  %9843 = vmatpush.bf16.msrb.mxu3 %v12139_v13  ;;  %v11366_v45 = vld [vmem:[#allocation7 + $0x20] sm:$0xf]  ;;  %9857 = vmatpush.bf16.msrb.mxu0 %v12147_v53  ;;  %v12056_v54 = vld [vmem:[#allocation7 + $0x24] sm:$0xf] }
 0x82b   : > { %8772 = vst.msk [vmem:[#allocation7 + $0x28] sm:$0x33] %vm15745_vm14, %v8769_v50  ;;  %v11367_v61 = vor.u32 %v12062_v2, %v11366_v45  ;;  %vm16228_vm14 = vmmov %vm16221_vm13  ;;  %v11371_v10 = vor.u32 %v12056_v54, %v11368_v30  ;;  %v12166_v30 = vld [vmem:[%s16131_s10 + $0x18] sm:$0xff] }
 0x82c   : > { %9871 = vmatpush.bf16.msrb.mxu1 %v12155_v27 }
 0x82d   : > { %9832 = vmatmul.bf16.vlgmr.msrb.gmra.mxu2 %v11367_v61 }
 0x82e   : > { %9844 = vmatpush.bf16.msrb.mxu3 %v12138_v36  ;;  %9858 = vmatpush.bf16.msrb.mxu0 %v12146_v25 }
 0x82f   : > { %v8832_v32 = vpop.permute.xlu0 %8831 }
 0x830   : > { %v8834_v42 = vrot.slane %v8832_v32, 4  ;;  %8840 = vst.msk [vmem:[#allocation7 + $0x64] sm:$0xc] %vm16228_vm14, %v8832_v32  ;;  %9872 = vmatpush.bf16.msrb.mxu1 %v12154_v39 }
 0x831   : > { %v11382_v40 = vld [vmem:[#allocation7 + $0x30] sm:$0xf] }
 0x832   : > { %v8835_v7 = vsel %vm16229_vm6, %v8833_v57, %v8834_v42  ;;  %9845 = vmatpush.bf16.msrb.mxu3 %v12137_v33  ;;  %9859 = vmatpush.bf16.msrb.mxu0 %v12145_v3  ;;  %v11374_v37 = vld [vmem:[#allocation7 + $0x28] sm:$0xf]  ;;  %v12057_v38 = vld [vmem:[#allocation7 + $0x2c] sm:$0xf]  ;;  %v12290_v3 = vmov 16.0  }
 0x833   : > { %v8836_v6 = vsel %vm16230_vm5, %v8830_v23, %v8835_v7  ;;  %v12168_v23 = vld [vmem:[%s16131_s10 + $0x28] sm:$0xff]  ;;  %12219 = vrcp.f32 %v12290_v3  ;;  %v12167_v57 = vld [vmem:[%s16131_s10 + $0x20] sm:$0xff] }
 0x834   : > { %8839 = vst.msk [vmem:[#allocation7 + $0x5c] sm:$0xcc] %vm15835_vm7, %v8836_v6  ;;  %9873 = vmatpush.bf16.msrb.mxu1 %v12153_v34 }
 0x835   : > { %9846 = vmatmul.bf16.vlgmr.msrb.gmra.mxu3 %v11371_v10 }
 0x836   : > { %9977 = vmatpush.bf16.msra.mxu3 %v12170_v59 }
 0x837   : > { %v12064_v47 = vld [vmem:[#allocation7 + $0x60] sm:$0xf0] }
 0x838   : > { %v11383_v15 = vor.u32 %v12064_v47, %v11382_v40 }
 0x839   : > { %v12220_v10 = vpop.eup %12219 }
 0x83a   : > { %9978 = vmatpush.bf16.msra.mxu3 %v12169_v20  ;;  %vm9908_vm7 = vweird.f32 %v12220_v10  ;;  %v9928_v20 = vld [vmem:[%s16132_s11] sm:$0x1] }
 0x83b   : > { %v12063_v35 = vld [vmem:[#allocation7 + $0x58] sm:$0xf0]  ;;  %v11376_v16 = vld [vmem:[#allocation7 + $0x5c] sm:$0xf0] }
 0x83c   : > { %v11375_v5 = vor.u32 %v12063_v35, %v11374_v37  ;;  %v11379_v9 = vor.u32 %v12057_v38, %v11376_v16  ;;  %v9904_v38 = vmul.f32 16.0, %v12220_v10 }
 0x83d   : > { %11776 = vmatmul.msk.bf16.vlgmr.msra.gmra.mxu2 %vm16231_vm9, %v11383_v15  ;;  %v12165_v15 = vld [vmem:[%s16131_s10 + $0x10] sm:$0xff] }
 0x83e   : > { %9860 = vmatmul.bf16.vlgmr.msrb.gmra.mxu0 %v11375_v5  ;;  %9874 = vmatmul.bf16.vlgmr.msrb.gmra.mxu1 %v11379_v9 }
 0x83f   : > { %9979 = vmatpush.bf16.msra.mxu3 %v12168_v23 }
 0x843   : > { %9980 = vmatpush.bf16.msra.mxu3 %v12167_v57 }
 0x847   : > { %9981 = vmatpush.bf16.msra.mxu3 %v12166_v30 }
 0x84b   : > { %9982 = vmatpush.bf16.msra.mxu3 %v12165_v15 }
 0x881   : > { %v9721_v62 = vpop.f32.mrf.mxu2 }
 0x882   : > { %v9722_v8 = vadd.f32 %v12218_v48, %v9721_v62  ;;  %v12164_v62 = vld [vmem:[%s16131_s10 + $0x8] sm:$0xff] }
 0x883   : > { %9983 = vmatpush.bf16.msra.mxu3 %v12164_v62 }
 0x889   : > { %v9723_v51 = vpop.f32.mrf.mxu2 }
 0x88a   : > { %v9724_v60 = vadd.f32 %v12218_v48, %v9723_v51 }
 0x892   : > { %v9749_v22 = vpop.f32.mrf.mxu0 }
 0x894   : > { %v9763_v0 = vpop.f32.mrf.mxu1 }
 0x898   : > { %v9735_v1 = vpop.f32.mrf.mxu3 }
 0x899   : > { %v9736_v52 = vadd.f32 %v9735_v1, %v9722_v8  ;;  %v12163_v1 = vld [vmem:[%s16131_s10] sm:$0xff] }
 0x89a   : > { %v9777_v46 = vpop.f32.mrf.mxu2  ;;  %v9751_v55 = vpop.f32.mrf.mxu0  ;;  %9984 = vmatpush.bf16.msra.mxu3 %v12163_v1 }
 0x89b   : > { %v9750_v31 = vadd.f32 %v9749_v22, %v9736_v52  ;;  %v9905_v22 = vsub.f32 1.0, %v9904_v38 }
 0x89c   : > { %v9765_v19 = vpop.f32.mrf.mxu1 }
 0x89d   : > { %v9764_v24 = vadd.f32 %v9763_v0, %v9750_v31  ;;  %v9906_v48 = vmul.f32 %v12220_v10, %v9905_v22 }
 0x89f   : > { %v9778_v58 = vadd.f32 %v9777_v46, %v9764_v24 }
 0x8a0   : > { %v9737_v41 = vpop.f32.mrf.mxu3 }
 0x8a1   : > { %v9738_v49 = vadd.f32 %v9737_v41, %v9724_v60 }
 0x8a2   : > { %v9779_v11 = vpop.f32.mrf.mxu2  ;;  %v9805_v4 = vpop.f32.mrf.mxu0 }
 0x8a3   : > { %v9752_v44 = vadd.f32 %v9751_v55, %v9738_v49  ;;  %v9907_v55 = vadd.f32 %v12220_v10, %v9906_v48 }
 0x8a4   : > { %v9819_v14 = vpop.f32.mrf.mxu1 }
 0x8a5   : > { %v9766_v17 = vadd.f32 %v9765_v19, %v9752_v44  ;;  %v9909_v52 = vsel %vm9908_vm7, %v12220_v10, %v9907_v55 }
 0x8a7   : > { %v9780_v28 = vadd.f32 %v9779_v11, %v9766_v17 }
 0x8a8   : > { %v9791_v12 = vpop.f32.mrf.mxu3 }
 0x8a9   : > { %v9792_v26 = vadd.f32 %v9791_v12, %v9778_v58 }
 0x8aa   : > { %v9807_v13 = vpop.f32.mrf.mxu0 }
 0x8ab   : > { %v9806_v18 = vadd.f32 %v9805_v4, %v9792_v26 }
 0x8ac   : > { %v9821_v53 = vpop.f32.mrf.mxu1 }
 0x8ad   : > { %v9820_v21 = vadd.f32 %v9819_v14, %v9806_v18 }
 0x8b0   : > { %v9793_v29 = vpop.f32.mrf.mxu3  ;;  %v9833_v56 = vpop.f32.mrf.mxu2 }
 0x8b1   : > { %v9794_v63 = vadd.f32 %v9793_v29, %v9780_v28  ;;  %v9834_v25 = vadd.f32 %v9833_v56, %v9820_v21 }
 0x8b3   : > { %v9808_v36 = vadd.f32 %v9807_v13, %v9794_v63 }
 0x8b5   : > { %v9822_v61 = vadd.f32 %v9821_v53, %v9808_v36 }
 0x8b8   : > { %v9835_v43 = vpop.f32.mrf.mxu2  ;;  %v9847_v27 = vpop.f32.mrf.mxu3 }
 0x8b9   : > { %v9848_v50 = vadd.f32 %v9847_v27, %v9834_v25  ;;  %v9836_v39 = vadd.f32 %v9835_v43, %v9822_v61 }
 0x8bb   : > { %v9861_v45 = vpop.f32.mrf.mxu0  ;;  %v9875_v2 = vpop.f32.mrf.mxu1 }
 0x8bc   : > { %v9862_v33 = vadd.f32 %v9861_v45, %v9848_v50 }
 0x8be   : > { %v9876_v34 = vadd.f32 %v9875_v2, %v9862_v33 }
 0x8c0   : > { %v9849_v32 = vpop.f32.mrf.mxu3  ;;  %v9889_v42 = vpop.f32.mrf.mxu2 }
 0x8c1   : > { %v9850_v54 = vadd.f32 %v9849_v32, %v9836_v39  ;;  %v9890_v37 = vadd.f32 %v9889_v42, %v9876_v34 }
 0x8c3   : > { %v9863_v7 = vpop.f32.mrf.mxu0  ;;  %v9877_v47 = vpop.f32.mrf.mxu1  ;;  %v9894_v5 = vmax.f32 %v9890_v37, 0.0 }
 0x8c4   : > { %v9864_v6 = vadd.f32 %v9863_v7, %v9850_v54 }
 0x8c6   : > { %v9878_v40 = vadd.f32 %v9877_v47, %v9864_v6 }
 0x8c8   : > { %v9891_v35 = vpop.f32.mrf.mxu2 }
 0x8c9   : > { %v9892_v16 = vadd.f32 %v9891_v35, %v9878_v40 }
 0x8cb   : > { %v9895_v9 = vmax.f32 %v9892_v16, 0.0 }
 0x8cd   : > { %v9896_v0 = vadd.f32 %v9895_v9, %v9894_v5 }
 0x8cf   : > { %v9897_v51 = vrot.slane %v9896_v0, 4 }
 0x8d1   : > { %v9898_v46 = vadd.f32 %v9897_v51, %v9896_v0 }
 0x8d3   : > { %v9899_v8 = vrot.slane %v9898_v46, 2 }
 0x8d5   : > { %v9900_v19 = vadd.f32 %v9899_v8, %v9898_v46 }
 0x8d7   : > { %v9901_v41 = vrot.slane %v9900_v19, 1 }
 0x8d9   : > { %v9902_v59 = vadd.f32 %v9901_v41, %v9900_v19 }
 0x8db   : > { %v9910_v60 = vmul.f32 %v9909_v52, %v9902_v59 }
 0x8dd   : > { %v9911_v31 = vpack.c.bf16 %v9910_v60, %v9910_v60 }
 0x8df   : > { %9985 = vmatmul.bf16.vlgmr.msra.gmra.mxu3 %v9911_v31 }
 0x962   : > { %v9986_v49 = vpop.f32.mrf.mxu3 }
 0x963   : > { %v9987_v11 = vadd.f32 %v9986_v49, %v9928_v20 }
 0x965   : > { %9991 = vst.msk [vmem:[%s405_s15] sm:$0x1] %vm9990_vm0, %v9987_v11 }
 0x966   : > { %12249 = shalt.err (!%p12246_p3)
}
 0x967   : > { %12171 = dma.vmem_to_hbm [thread:$0]  (%p12394_p5), %s10004_s16, 16, %s10006_s0, %s9993_s17  }
 0x96a   : > { %v9988_v12 = vpop.f32.mrf.mxu3 }
 0x96b PF: > { %p12177_p4 = scmp.ge.s32.totalorder %s12284_s24, 2  ;;  %s10017_s18 = sand.u32 1, %s12272_s21  }
 0x96c   : > { %s10018_s29 = scalar_lea.sflag [#allocation9], %s10017_s18 }
 0x96d   : > { %p12174_p7 = pnand %p12177_p4, %p12398_p6 }
 0x96f   : > { %p12175_p8 = pneg %p12174_p7 }
 0x971   : > { %12267 = dma.done.wait (%p12175_p8), %s10018_s29, 16  }
 0x972   : > { %12269 = vsyncadd (%p12175_p8), %s10018_s29, 4294967280  ;;  %p22_p9 = scmp.ge.s32.totalorder %s12381_s27, 4   ;;  %s16232_s21 = smov %s12276_s22 }
 0x973   : > { %s16233_s22 = smov %s12280_s23  ;;  %s16234_s23 = smov %s12392_s30 }
 0x974   : > { %s16235_s24 = smov %s12381_s27  ;;  %24 = sbr.rel (!%p22_p9) target bundleno = 7 (0x7), region = 263 }
 0x979   :  { %10023 = vsyncpa [#allocation9], 1 }
 0x97a   :  { %10025 = vsyncpa [#allocation9 + $0x1], 1 }

</bundles_post_ra>
